<compile_context>
chip_gen: v7x
topology: tpu7x:2x2x1
jax: 0.10.0
libtpu: 0.0.40
codegen_flags: <defaults>
</compile_context>

<pallas_src>
import math
import functools

import jax
import jax.numpy as jnp
from jax.experimental import pallas as pl
from jax.experimental.pallas import tpu as pltpu


PARAM_ORDER = (
    "ln1_w", "ln1_b",
    "wqkv", "bqkv", "wo", "bo",
    "ln2_w", "ln2_b",
    "wfc", "bfc", "wproj", "bproj",
    "aln_w", "aln_b", "adw", "adb", "auw", "aub",
)


def _layernorm(v, w, b, eps=1e-5):
    # v: (R, D) f32 ; w/b: (1, D) f32
    mu = jnp.mean(v, axis=-1, keepdims=True)
    var = jnp.mean((v - mu) ** 2, axis=-1, keepdims=True)
    return (v - mu) * jax.lax.rsqrt(var + eps) * w + b


# -----------------------------------------------------------------------------
# Fused kernel: one grid step = one (batch block, layer) pair.  Grid = (B/bb, L),
# L innermost; activation carried in VMEM scratch across the L axis.
# -----------------------------------------------------------------------------
def fused_transformer_kernel(
    n_head, seq_valid,
    x_ref,
    ln1_w, ln1_b,
    wqkv, bqkv, wo, bo,              # attention in/out projections (bf16, scale folded)
    ln2_w, ln2_b,
    wfc, bfc, wproj, bproj,          # MLP (bf16)
    aln_w, aln_b, adw, adb, auw, aub,  # adapter (bf16, down dim lane-padded)
    o_ref,
    x_scr,                           # (bb*S_pad, D) f32 activation carry
):
    l = pl.program_id(1)
    n_layers = pl.num_programs(1)

    Bt, S, D = x_ref.shape
    R = Bt * S
    hd = D // n_head

    @pl.when(l == 0)
    def _():
        x_scr[...] = x_ref[...].reshape(R, D).astype(jnp.float32)

    x = x_scr[...]                                        # (R, D) f32

    # ---------------- attention branch ----------------
    h = _layernorm(x, ln1_w[0], ln1_b[0])
    qkv = jnp.dot(h.astype(jnp.bfloat16), wqkv[0],
                  preferred_element_type=jnp.float32) + bqkv[0]      # (R, 3D)

    ctx_rows = []
    for bi in range(Bt):                                  # static, small (usually 1)
        qkv_b = qkv[bi * S:(bi + 1) * S]                  # (S, 3D)

        def to_heads(t):  # (S, D) -> (H, S, hd), bf16 for the MXU
            t = t.astype(jnp.bfloat16).reshape(S, n_head, hd)
            return jnp.transpose(t, (1, 0, 2))

        q = to_heads(qkv_b[:, :D])
        k = to_heads(qkv_b[:, D:2 * D])
        v = to_heads(qkv_b[:, 2 * D:])

        # 1/sqrt(hd) already folded into wqkv/bqkv (Q columns) at prepare time.
        s = jnp.einsum('hqd,hkd->hqk', q, k,
                       preferred_element_type=jnp.float32)            # (H, S, S)
        if seq_valid != S:   # static: only when S was padded in the wrapper
            key_idx = jax.lax.broadcasted_iota(jnp.int32, s.shape, 2)
            s = jnp.where(key_idx < seq_valid, s, jnp.float32(-1e30))
        s = s - jnp.max(s, axis=-1, keepdims=True)
        p = jnp.exp(s)
        p = p * pl.reciprocal(jnp.sum(p, axis=-1, keepdims=True), approx=True)

        ctx = jnp.einsum('hqk,hkd->hqd', p.astype(jnp.bfloat16), v,
                         preferred_element_type=jnp.float32)          # (H, S, hd)
        ctx_rows.append(jnp.transpose(ctx, (1, 0, 2)).reshape(S, D))

    ctx_all = ctx_rows[0] if Bt == 1 else jnp.concatenate(ctx_rows, axis=0)

    attn_out = jnp.dot(ctx_all.astype(jnp.bfloat16), wo[0],
                       preferred_element_type=jnp.float32) + bo[0]
    x = x + attn_out

    # ---------------- adapter branch (on post-attention x) ----------------
    a = _layernorm(x, aln_w[0], aln_b[0])
    down = jnp.dot(a.astype(jnp.bfloat16), adw[0],
                   preferred_element_type=jnp.float32) + adb[0]
    down = jnp.maximum(down, 0.0)
    # dropout(p=0.1) is identity in eval mode
    up = (jnp.dot(down.astype(jnp.bfloat16), auw[0],
                  preferred_element_type=jnp.float32) + aub[0]) * 0.1

    # ---------------- MLP branch ----------------
    m = _layernorm(x, ln2_w[0], ln2_b[0])
    hid = jnp.dot(m.astype(jnp.bfloat16), wfc[0],
                  preferred_element_type=jnp.float32) + bfc[0]
    hid = hid * jax.nn.sigmoid(1.702 * hid)               # QuickGELU (EUP)
    mlp_out = jnp.dot(hid.astype(jnp.bfloat16), wproj[0],
                      preferred_element_type=jnp.float32) + bproj[0]

    x = x + mlp_out + up
    x_scr[...] = x

    @pl.when(l == n_layers - 1)
    def _():
        o_ref[...] = x.reshape(Bt, S, D).astype(o_ref.dtype)


# -----------------------------------------------------------------------------
# Parameter preparation — call ONCE at model-load time, OUTSIDE the jitted forward.
# -----------------------------------------------------------------------------
def prepare_transformer_params(layer_params, n_head):
    """Stack per-layer params along a leading L axis in kernel format:
       bf16 matmul weights, adapter down dim zero-padded to 128 lanes (exact:
       relu(0+0)=0 and the zero rows of up_proj contribute 0), and the attention
       scale 1/sqrt(head_dim) folded into the Q columns of in_proj (exact)."""
    def pad128(w, axis):
        n = w.shape[axis]
        t = max(128, ((n + 127) // 128) * 128)
        if t == n:
            return w
        pad = [(0, 0)] * w.ndim
        pad[axis] = (0, t - n)
        return jnp.pad(w, pad)

    def prep_one(p):
        d_model = p["wqkv"].shape[0]
        scale = 1.0 / math.sqrt(d_model // n_head)
        wqkv = p["wqkv"].astype(jnp.float32).at[:, :d_model].multiply(scale)
        bqkv = p["bqkv"].astype(jnp.float32).at[:, :d_model].multiply(scale)

        adw = pad128(p["adw"], 1)
        adb = pad128(p["adb"], 1)
        auw = pad128(p["auw"], 0)

        bf16 = lambda w: w.astype(jnp.bfloat16)
        return dict(
            ln1_w=p["ln1_w"], ln1_b=p["ln1_b"],
            wqkv=bf16(wqkv), bqkv=bqkv, wo=bf16(p["wo"]), bo=p["bo"],
            ln2_w=p["ln2_w"], ln2_b=p["ln2_b"],
            wfc=bf16(p["wfc"]), bfc=p["bfc"], wproj=bf16(p["wproj"]), bproj=p["bproj"],
            aln_w=p["aln_w"], aln_b=p["aln_b"],
            adw=bf16(adw), adb=adb, auw=bf16(auw), aub=p["aub"],
        )

    prepped = [prep_one(p) for p in layer_params]
    return {k: jnp.stack([q[k] for q in prepped], axis=0) for k in PARAM_ORDER}


# -----------------------------------------------------------------------------
# Forward wrappers
# -----------------------------------------------------------------------------
def _fused_transformer_bsd(x_bsd, stacked, n_head, block_b, vmem_limit_bytes):
    B, S, D = x_bsd.shape
    L = stacked["wqkv"].shape[0]

    # Pad S to a multiple of 8 (e.g. CLIP S=197/257) so every vreg/store is dense;
    # padded keys are masked inside the kernel, padded rows stripped on output.
    S_pad = ((S + 7) // 8) * 8
    if S_pad != S:
        x_bsd = jnp.pad(x_bsd, ((0, 0), (0, S_pad - S), (0, 0)))

    bb = max(1, min(int(block_b), B))
    while B % bb:
        bb -= 1
    # NOTE: keep B//bb >= 2 where possible so both v7x TensorCores get work.

    params = [stacked[k] for k in PARAM_ORDER]

    # VMEM budgeting: if double-buffered per-layer weights would blow the limit
    # (v7x, D>=1024), single-buffer the weight streams instead.
    per_layer_w_bytes = sum(math.prod(a.shape[1:]) * a.dtype.itemsize for a in params)
    act_block_bytes = bb * S_pad * D * x_bsd.dtype.itemsize
    resident_est = 2 * per_layer_w_bytes + 4 * act_block_bytes + bb * S_pad * D * 4
    single_buffer_weights = resident_est > int(0.75 * vmem_limit_bytes)

    def w_spec(arr):
        shape = (1,) + tuple(arr.shape[1:])
        idx = lambda b, l, _n=arr.ndim: (l,) + (0,) * (_n - 1)
        if single_buffer_weights:
            return pl.BlockSpec(shape, idx, pipeline_mode=pl.Buffered(1))
        return pl.BlockSpec(shape, idx)

    x_spec = pl.BlockSpec((bb, S_pad, D), lambda b, l: (b, 0, 0))
    out_spec = pl.BlockSpec((bb, S_pad, D), lambda b, l: (b, 0, 0))

    kernel = functools.partial(fused_transformer_kernel, n_head, S)

    y = pl.pallas_call(
        kernel,
        out_shape=jax.ShapeDtypeStruct((B, S_pad, D), x_bsd.dtype),
        grid=(B // bb, L),                      # L innermost: weights streamed per layer
        in_specs=[x_spec] + [w_spec(a) for a in params],
        out_specs=out_spec,
        scratch_shapes=[pltpu.VMEM((bb * S_pad, D), jnp.float32)],
        compiler_params=pltpu.CompilerParams(
            dimension_semantics=("parallel", "arbitrary"),
            vmem_limit_bytes=vmem_limit_bytes,  # safe on v5e/v6e/v7x
        ),
    )(x_bsd, *params)

    if S_pad != S:
        y = y[:, :S, :]
    return y


def transformer_forward(x_sbd, stacked_params, n_head, block_b=1,
                        vmem_limit_bytes=48 * 1024 * 1024):
    """Transformer.forward. x_sbd: (S, B, D) in nn.MultiheadAttention convention."""
    x = jnp.transpose(x_sbd, (1, 0, 2))                       # (B, S, D), once
    y = _fused_transformer_bsd(x, stacked_params, n_head, block_b, vmem_limit_bytes)
    return jnp.transpose(y, (1, 0, 2))                        # back to (S, B, D), once


# -----------------------------------------------------------------------------
# Raw (PyTorch-layout) parameter init + pure-JAX f32 reference for validation
# -----------------------------------------------------------------------------
def init_params(key, d_model, n_head, down_size=64):
    ks = jax.random.split(key, 6)

    def lin(k, fan_in, fan_out):
        bound = 1.0 / math.sqrt(fan_in)
        kw, kb = jax.random.split(k)
        w = jax.random.uniform(kw, (fan_in, fan_out), jnp.float32, -bound, bound)
        b = jax.random.uniform(kb, (1, fan_out), jnp.float32, -bound, bound)
        return w, b

    wqkv, bqkv = lin(ks[0], d_model, 3 * d_model)      # attn in_proj
    wo, bo = lin(ks[1], d_model, d_model)              # attn out_proj
    wfc, bfc = lin(ks[2], d_model, 4 * d_model)        # mlp.c_fc
    wproj, bproj = lin(ks[3], 4 * d_model, d_model)    # mlp.c_proj
    adw, adb = lin(ks[4], d_model, down_size)          # adapter.down_proj
    auw, aub = lin(ks[5], down_size, d_model)          # adapter.up_proj

    ones = jnp.ones((1, d_model), jnp.float32)
    zeros = jnp.zeros((1, d_model), jnp.float32)
    return dict(
        ln1_w=ones, ln1_b=zeros,
        wqkv=wqkv, bqkv=bqkv, wo=wo, bo=bo,
        ln2_w=ones, ln2_b=zeros,
        wfc=wfc, bfc=bfc, wproj=wproj, bproj=bproj,
        aln_w=ones, aln_b=zeros,
        adw=adw, adb=adb, auw=auw, aub=aub,
    )


def transformer_reference(x_sbd, layer_params, n_head):
    """Pure-JAX f32 reference matching the PyTorch module (eval mode)."""
    def ln(v, w, b, eps=1e-5):
        mu = v.mean(-1, keepdims=True)
        var = ((v - mu) ** 2).mean(-1, keepdims=True)
        return (v - mu) / jnp.sqrt(var + eps) * w + b

    x = jnp.transpose(x_sbd, (1, 0, 2))                # (B, S, D)
    B, S, D = x.shape
    hd = D // n_head
    for p in layer_params:
        h = ln(x, p["ln1_w"][0], p["ln1_b"][0])
        qkv = h @ p["wqkv"] + p["bqkv"][0]
        q, k, v = qkv[..., :D], qkv[..., D:2 * D], qkv[..., 2 * D:]
        heads = lambda t: t.reshape(B, S, n_head, hd).transpose(0, 2, 1, 3)
        q, k, v = heads(q), heads(k), heads(v)
        s = jnp.einsum('bhqd,bhkd->bhqk', q, k) / math.sqrt(hd)
        a = jax.nn.softmax(s, axis=-1)
        ctx = jnp.einsum('bhqk,bhkd->bhqd', a, v).transpose(0, 2, 1, 3).reshape(B, S, D)
        x = x + ctx @ p["wo"] + p["bo"][0]
        ad = ln(x, p["aln_w"][0], p["aln_b"][0])
        up = (jnp.maximum(ad @ p["adw"] + p["adb"][0], 0.0) @ p["auw"] + p["aub"][0]) * 0.1
        m = ln(x, p["ln2_w"][0], p["ln2_b"][0])
        hid = m @ p["wfc"] + p["bfc"][0]
        hid = hid * jax.nn.sigmoid(1.702 * hid)
        x = x + (hid @ p["wproj"] + p["bproj"][0]) + up
    return jnp.transpose(x, (1, 0, 2))


if __name__ == "__main__":
    # TPU-friendly small shapes: seq, batch, width, heads, layers.
    S, B, D, H, LAYERS = 64, 2, 256, 4, 2
    key = jax.random.PRNGKey(0)
    kx, kp = jax.random.split(key)
    x = jax.random.normal(kx, (S, B, D), jnp.float32)
    layer_keys = jax.random.split(kp, LAYERS)
    layer_params = [init_params(k, D, H) for k in layer_keys]

    # Weight prep (bf16 cast, adapter padding, scale folding, stacking) happens ONCE,
    # outside the jitted forward.
    stacked = prepare_transformer_params(layer_params, H)

    fwd = jax.jit(functools.partial(transformer_forward, n_head=H))
    out = fwd(x, stacked)
    jax.block_until_ready(out)

    assert out.shape == (S, B, D)
    assert bool(jnp.all(jnp.isfinite(out)))

    # Mixed-precision (bf16 weights + approx reciprocal) vs f32 reference: loose rel tol.
    ref = transformer_reference(x, layer_params, H)
    rel = float(jnp.linalg.norm(out - ref) / jnp.linalg.norm(ref))
    assert rel < 2e-2, f"relative error too large: {rel}"

    print("KERNEL_OK")
</pallas_src>

<mosaic_0001>
module attributes {stable_mosaic.version = 11 : i64} {
  func.func @fused_transformer_kernel(%arg0: i32, %arg1: i32, %arg2: memref<1x64x256xf32, #tpu.memory_space<vmem>>, %arg3: memref<1x1x256xf32, #tpu.memory_space<vmem>>, %arg4: memref<1x1x256xf32, #tpu.memory_space<vmem>>, %arg5: memref<1x256x768xbf16, #tpu.memory_space<vmem>>, %arg6: memref<1x1x768xf32, #tpu.memory_space<vmem>>, %arg7: memref<1x256x256xbf16, #tpu.memory_space<vmem>>, %arg8: memref<1x1x256xf32, #tpu.memory_space<vmem>>, %arg9: memref<1x1x256xf32, #tpu.memory_space<vmem>>, %arg10: memref<1x1x256xf32, #tpu.memory_space<vmem>>, %arg11: memref<1x256x1024xbf16, #tpu.memory_space<vmem>>, %arg12: memref<1x1x1024xf32, #tpu.memory_space<vmem>>, %arg13: memref<1x1024x256xbf16, #tpu.memory_space<vmem>>, %arg14: memref<1x1x256xf32, #tpu.memory_space<vmem>>, %arg15: memref<1x1x256xf32, #tpu.memory_space<vmem>>, %arg16: memref<1x1x256xf32, #tpu.memory_space<vmem>>, %arg17: memref<1x256x128xbf16, #tpu.memory_space<vmem>>, %arg18: memref<1x1x128xf32, #tpu.memory_space<vmem>>, %arg19: memref<1x128x256xbf16, #tpu.memory_space<vmem>>, %arg20: memref<1x1x256xf32, #tpu.memory_space<vmem>>, %arg21: memref<1x64x256xf32, #tpu.memory_space<vmem>>, %arg22: memref<64x256xf32, #tpu.memory_space<vmem>>) attributes {dimension_semantics = [#tpu.dimension_semantics<parallel>, #tpu.dimension_semantics<arbitrary>], iteration_bounds = array<i64: 2, 2>, scalar_prefetch = 0 : i64, scratch_operands = 1 : i64, tpu.core_type = #tpu.core_type<tc>, window_params = [{transform_indices = @transform_0, window_bounds = array<i64: 1, 64, 256>}, {transform_indices = @transform_1, window_bounds = array<i64: 1, 1, 256>}, {transform_indices = @transform_2, window_bounds = array<i64: 1, 1, 256>}, {transform_indices = @transform_3, window_bounds = array<i64: 1, 256, 768>}, {transform_indices = @transform_4, window_bounds = array<i64: 1, 1, 768>}, {transform_indices = @transform_5, window_bounds = array<i64: 1, 256, 256>}, {transform_indices = @transform_6, window_bounds = array<i64: 1, 1, 256>}, {transform_indices = @transform_7, window_bounds = array<i64: 1, 1, 256>}, {transform_indices = @transform_8, window_bounds = array<i64: 1, 1, 256>}, {transform_indices = @transform_9, window_bounds = array<i64: 1, 256, 1024>}, {transform_indices = @transform_10, window_bounds = array<i64: 1, 1, 1024>}, {transform_indices = @transform_11, window_bounds = array<i64: 1, 1024, 256>}, {transform_indices = @transform_12, window_bounds = array<i64: 1, 1, 256>}, {transform_indices = @transform_13, window_bounds = array<i64: 1, 1, 256>}, {transform_indices = @transform_14, window_bounds = array<i64: 1, 1, 256>}, {transform_indices = @transform_15, window_bounds = array<i64: 1, 256, 128>}, {transform_indices = @transform_16, window_bounds = array<i64: 1, 1, 128>}, {transform_indices = @transform_17, window_bounds = array<i64: 1, 128, 256>}, {transform_indices = @transform_18, window_bounds = array<i64: 1, 1, 256>}, {transform_indices = @transform_19, window_bounds = array<i64: 1, 64, 256>}]} {
    %c0_i32 = arith.constant 0 : i32
    %0 = arith.cmpi eq, %arg1, %c0_i32 : i32
    %1 = arith.extui %0 : i1 to i32
    %c0_i32_0 = arith.constant 0 : i32
    %2 = arith.cmpi ne, %1, %c0_i32_0 : i32
    scf.if %2 {
      %c0_87 = arith.constant 0 : index
      %c0_88 = arith.constant 0 : index
      %c0_89 = arith.constant 0 : index
      %176 = vector.load %arg2[%c0_87, %c0_88, %c0_89] : memref<1x64x256xf32, #tpu.memory_space<vmem>>, vector<1x64x256xf32>
      %177 = vector.shape_cast %176 : vector<1x64x256xf32> to vector<64x256xf32>
      %c0_90 = arith.constant 0 : index
      %c0_91 = arith.constant 0 : index
      %178 = vector.load %arg22[%c0_90, %c0_91] : memref<64x256xf32, #tpu.memory_space<vmem>>, vector<64x256xf32>
      tpu.vector_store %arg22[%c0_90, %c0_91], %177 {strides = array<i32>} : memref<64x256xf32, #tpu.memory_space<vmem>>, vector<64x256xf32>,
    } else {
    }
    %c0 = arith.constant 0 : index
    %c0_1 = arith.constant 0 : index
    %3 = vector.load %arg22[%c0, %c0_1] : memref<64x256xf32, #tpu.memory_space<vmem>>, vector<64x256xf32>
    %c0_2 = arith.constant 0 : index
    %c0_3 = arith.constant 0 : index
    %c0_4 = arith.constant 0 : index
    %4 = vector.load %arg3[%c0_2, %c0_3, %c0_4] : memref<1x1x256xf32, #tpu.memory_space<vmem>>, vector<1x1x256xf32>
    %5 = vector.shape_cast %4 : vector<1x1x256xf32> to vector<1x256xf32>
    %c0_5 = arith.constant 0 : index
    %c0_6 = arith.constant 0 : index
    %c0_7 = arith.constant 0 : index
    %6 = vector.load %arg4[%c0_5, %c0_6, %c0_7] : memref<1x1x256xf32, #tpu.memory_space<vmem>>, vector<1x1x256xf32>
    %7 = vector.shape_cast %6 : vector<1x1x256xf32> to vector<1x256xf32>
    %cst = arith.constant dense<0.000000e+00> : vector<64xf32>
    %8 = vector.multi_reduction <add>, %3, %cst [1] : vector<64x256xf32> to vector<64xf32>
    %9 = vector.shape_cast %8 : vector<64xf32> to vector<64x1xf32>
    %cst_8 = arith.constant 2.560000e+02 : f32
    %10 = vector.broadcast %cst_8 : f32 to vector<64x1xf32>
    %11 = arith.divf %9, %10 : vector<64x1xf32>
    %12 = vector.broadcast %11 : vector<64x1xf32> to vector<64x256xf32>
    %13 = arith.subf %3, %12 : vector<64x256xf32>
    %14 = arith.mulf %13, %13 : vector<64x256xf32>
    %cst_9 = arith.constant dense<0.000000e+00> : vector<64xf32>
    %15 = vector.multi_reduction <add>, %14, %cst_9 [1] : vector<64x256xf32> to vector<64xf32>
    %16 = vector.shape_cast %15 : vector<64xf32> to vector<64x1xf32>
    %cst_10 = arith.constant 2.560000e+02 : f32
    %17 = vector.broadcast %cst_10 : f32 to vector<64x1xf32>
    %18 = arith.divf %16, %17 : vector<64x1xf32>
    %19 = vector.broadcast %11 : vector<64x1xf32> to vector<64x256xf32>
    %20 = arith.subf %3, %19 : vector<64x256xf32>
    %cst_11 = arith.constant 9.99999974E-6 : f32
    %21 = vector.broadcast %cst_11 : f32 to vector<64x1xf32>
    %22 = arith.addf %18, %21 : vector<64x1xf32>
    %23 = math.rsqrt %22 : vector<64x1xf32>
    %24 = vector.broadcast %23 : vector<64x1xf32> to vector<64x256xf32>
    %25 = arith.mulf %20, %24 : vector<64x256xf32>
    %26 = vector.broadcast %5 : vector<1x256xf32> to vector<64x256xf32>
    %27 = arith.mulf %25, %26 : vector<64x256xf32>
    %28 = vector.broadcast %7 : vector<1x256xf32> to vector<64x256xf32>
    %29 = arith.addf %27, %28 : vector<64x256xf32>
    %30 = arith.truncf %29 : vector<64x256xf32> to vector<64x256xbf16>
    %c0_12 = arith.constant 0 : index
    %c0_13 = arith.constant 0 : index
    %c0_14 = arith.constant 0 : index
    %31 = vector.load %arg5[%c0_12, %c0_13, %c0_14] : memref<1x256x768xbf16, #tpu.memory_space<vmem>>, vector<1x256x768xbf16>
    %32 = vector.shape_cast %31 : vector<1x256x768xbf16> to vector<256x768xbf16>
    %cst_15 = arith.constant dense<0.000000e+00> : vector<64x768xf32>
    %33 = tpu.matmul %30, %32, %cst_15 {dimension_numbers = #tpu.dot_dimension_numbers<[1], [0], [0], [1], [0, 0, 1, 1], [], []>} : vector<64x256xbf16>, vector<256x768xbf16>, vector<64x768xf32> -> vector<64x768xf32>
    %c0_16 = arith.constant 0 : index
    %c0_17 = arith.constant 0 : index
    %c0_18 = arith.constant 0 : index
    %34 = vector.load %arg6[%c0_16, %c0_17, %c0_18] : memref<1x1x768xf32, #tpu.memory_space<vmem>>, vector<1x1x768xf32>
    %35 = vector.shape_cast %34 : vector<1x1x768xf32> to vector<1x768xf32>
    %36 = vector.broadcast %35 : vector<1x768xf32> to vector<64x768xf32>
    %37 = arith.addf %33, %36 : vector<64x768xf32>
    %38 = vector.extract_strided_slice %37 {offsets = [0, 0], sizes = [64, 256], strides = [1, 1]} : vector<64x768xf32> to vector<64x256xf32>
    %39 = arith.truncf %38 : vector<64x256xf32> to vector<64x256xbf16>
    %40 = vector.shape_cast %39 : vector<64x256xbf16> to vector<64x4x64xbf16>
    %41 = tpu.transpose %40, [1, 0, 2] : vector<64x4x64xbf16> -> vector<4x64x64xbf16>
    %42 = vector.extract_strided_slice %37 {offsets = [0, 256], sizes = [64, 256], strides = [1, 1]} : vector<64x768xf32> to vector<64x256xf32>
    %43 = arith.truncf %42 : vector<64x256xf32> to vector<64x256xbf16>
    %44 = vector.shape_cast %43 : vector<64x256xbf16> to vector<64x4x64xbf16>
    %45 = tpu.transpose %44, [1, 0, 2] : vector<64x4x64xbf16> -> vector<4x64x64xbf16>
    %46 = vector.extract_strided_slice %37 {offsets = [0, 512], sizes = [64, 256], strides = [1, 1]} : vector<64x768xf32> to vector<64x256xf32>
    %47 = arith.truncf %46 : vector<64x256xf32> to vector<64x256xbf16>
    %48 = vector.shape_cast %47 : vector<64x256xbf16> to vector<64x4x64xbf16>
    %49 = tpu.transpose %48, [1, 0, 2] : vector<64x4x64xbf16> -> vector<4x64x64xbf16>
    "tpu.trace_start"() <{level = 10 : i32, message = "hqd,hkd->hqk"}> : () -> ()
    %cst_19 = arith.constant dense<0.000000e+00> : vector<4x64x64xf32>
    %50 = tpu.matmul %41, %45, %cst_19 {dimension_numbers = #tpu.dot_dimension_numbers<[2], [2], [1], [1], [0, 0, 0, 1, 1, 1], [0], [0]>} : vector<4x64x64xbf16>, vector<4x64x64xbf16>, vector<4x64x64xf32> -> vector<4x64x64xf32>
    "tpu.trace_stop"() : () -> ()
    %cst_20 = arith.constant dense<0xFF800000> : vector<4x64xf32>
    %51 = vector.multi_reduction <maximumf>, %50, %cst_20 [2] : vector<4x64x64xf32> to vector<4x64xf32>
    %52 = vector.shape_cast %51 : vector<4x64xf32> to vector<4x64x1xf32>
    %53 = vector.broadcast %52 : vector<4x64x1xf32> to vector<4x64x64xf32>
    %54 = arith.subf %50, %53 : vector<4x64x64xf32>
    %55 = math.exp %54 : vector<4x64x64xf32>
    %cst_21 = arith.constant dense<0.000000e+00> : vector<4x64xf32>
    %56 = vector.multi_reduction <add>, %55, %cst_21 [2] : vector<4x64x64xf32> to vector<4x64xf32>
    %57 = vector.shape_cast %56 : vector<4x64xf32> to vector<4x64x1xf32>
    %58 = tpu.reciprocal %57 {approx = true} : vector<4x64x1xf32> -> vector<4x64x1xf32>
    %59 = vector.broadcast %58 : vector<4x64x1xf32> to vector<4x64x64xf32>
    %60 = arith.mulf %55, %59 : vector<4x64x64xf32>
    %61 = arith.truncf %60 : vector<4x64x64xf32> to vector<4x64x64xbf16>
    "tpu.trace_start"() <{level = 10 : i32, message = "hqk,hkd->hqd"}> : () -> ()
    %cst_22 = arith.constant dense<0.000000e+00> : vector<4x64x64xf32>
    %62 = tpu.matmul %61, %49, %cst_22 {dimension_numbers = #tpu.dot_dimension_numbers<[2], [1], [1], [2], [0, 0, 0, 1, 1, 2], [0], [0]>} : vector<4x64x64xbf16>, vector<4x64x64xbf16>, vector<4x64x64xf32> -> vector<4x64x64xf32>
    "tpu.trace_stop"() : () -> ()
    %63 = tpu.transpose %62, [1, 0, 2] : vector<4x64x64xf32> -> vector<64x4x64xf32>
    %64 = vector.shape_cast %63 : vector<64x4x64xf32> to vector<64x256xf32>
    %65 = arith.truncf %64 : vector<64x256xf32> to vector<64x256xbf16>
    %c0_23 = arith.constant 0 : index
    %c0_24 = arith.constant 0 : index
    %c0_25 = arith.constant 0 : index
    %66 = vector.load %arg7[%c0_23, %c0_24, %c0_25] : memref<1x256x256xbf16, #tpu.memory_space<vmem>>, vector<1x256x256xbf16>
    %67 = vector.shape_cast %66 : vector<1x256x256xbf16> to vector<256x256xbf16>
    %cst_26 = arith.constant dense<0.000000e+00> : vector<64x256xf32>
    %68 = tpu.matmul %65, %67, %cst_26 {dimension_numbers = #tpu.dot_dimension_numbers<[1], [0], [0], [1], [0, 0, 1, 1], [], []>} : vector<64x256xbf16>, vector<256x256xbf16>, vector<64x256xf32> -> vector<64x256xf32>
    %c0_27 = arith.constant 0 : index
    %c0_28 = arith.constant 0 : index
    %c0_29 = arith.constant 0 : index
    %69 = vector.load %arg8[%c0_27, %c0_28, %c0_29] : memref<1x1x256xf32, #tpu.memory_space<vmem>>, vector<1x1x256xf32>
    %70 = vector.shape_cast %69 : vector<1x1x256xf32> to vector<1x256xf32>
    %71 = vector.broadcast %70 : vector<1x256xf32> to vector<64x256xf32>
    %72 = arith.addf %68, %71 : vector<64x256xf32>
    %73 = arith.addf %3, %72 : vector<64x256xf32>
    %c0_30 = arith.constant 0 : index
    %c0_31 = arith.constant 0 : index
    %c0_32 = arith.constant 0 : index
    %74 = vector.load %arg15[%c0_30, %c0_31, %c0_32] : memref<1x1x256xf32, #tpu.memory_space<vmem>>, vector<1x1x256xf32>
    %75 = vector.shape_cast %74 : vector<1x1x256xf32> to vector<1x256xf32>
    %c0_33 = arith.constant 0 : index
    %c0_34 = arith.constant 0 : index
    %c0_35 = arith.constant 0 : index
    %76 = vector.load %arg16[%c0_33, %c0_34, %c0_35] : memref<1x1x256xf32, #tpu.memory_space<vmem>>, vector<1x1x256xf32>
    %77 = vector.shape_cast %76 : vector<1x1x256xf32> to vector<1x256xf32>
    %cst_36 = arith.constant dense<0.000000e+00> : vector<64xf32>
    %78 = vector.multi_reduction <add>, %73, %cst_36 [1] : vector<64x256xf32> to vector<64xf32>
    %79 = vector.shape_cast %78 : vector<64xf32> to vector<64x1xf32>
    %cst_37 = arith.constant 2.560000e+02 : f32
    %80 = vector.broadcast %cst_37 : f32 to vector<64x1xf32>
    %81 = arith.divf %79, %80 : vector<64x1xf32>
    %82 = vector.broadcast %81 : vector<64x1xf32> to vector<64x256xf32>
    %83 = arith.subf %73, %82 : vector<64x256xf32>
    %84 = arith.mulf %83, %83 : vector<64x256xf32>
    %cst_38 = arith.constant dense<0.000000e+00> : vector<64xf32>
    %85 = vector.multi_reduction <add>, %84, %cst_38 [1] : vector<64x256xf32> to vector<64xf32>
    %86 = vector.shape_cast %85 : vector<64xf32> to vector<64x1xf32>
    %cst_39 = arith.constant 2.560000e+02 : f32
    %87 = vector.broadcast %cst_39 : f32 to vector<64x1xf32>
    %88 = arith.divf %86, %87 : vector<64x1xf32>
    %89 = vector.broadcast %81 : vector<64x1xf32> to vector<64x256xf32>
    %90 = arith.subf %73, %89 : vector<64x256xf32>
    %cst_40 = arith.constant 9.99999974E-6 : f32
    %91 = vector.broadcast %cst_40 : f32 to vector<64x1xf32>
    %92 = arith.addf %88, %91 : vector<64x1xf32>
    %93 = math.rsqrt %92 : vector<64x1xf32>
    %94 = vector.broadcast %93 : vector<64x1xf32> to vector<64x256xf32>
    %95 = arith.mulf %90, %94 : vector<64x256xf32>
    %96 = vector.broadcast %75 : vector<1x256xf32> to vector<64x256xf32>
    %97 = arith.mulf %95, %96 : vector<64x256xf32>
    %98 = vector.broadcast %77 : vector<1x256xf32> to vector<64x256xf32>
    %99 = arith.addf %97, %98 : vector<64x256xf32>
    %100 = arith.truncf %99 : vector<64x256xf32> to vector<64x256xbf16>
    %c0_41 = arith.constant 0 : index
    %c0_42 = arith.constant 0 : index
    %c0_43 = arith.constant 0 : index
    %101 = vector.load %arg17[%c0_41, %c0_42, %c0_43] : memref<1x256x128xbf16, #tpu.memory_space<vmem>>, vector<1x256x128xbf16>
    %102 = vector.shape_cast %101 : vector<1x256x128xbf16> to vector<256x128xbf16>
    %cst_44 = arith.constant dense<0.000000e+00> : vector<64x128xf32>
    %103 = tpu.matmul %100, %102, %cst_44 {dimension_numbers = #tpu.dot_dimension_numbers<[1], [0], [0], [1], [0, 0, 1, 1], [], []>} : vector<64x256xbf16>, vector<256x128xbf16>, vector<64x128xf32> -> vector<64x128xf32>
    %c0_45 = arith.constant 0 : index
    %c0_46 = arith.constant 0 : index
    %c0_47 = arith.constant 0 : index
    %104 = vector.load %arg18[%c0_45, %c0_46, %c0_47] : memref<1x1x128xf32, #tpu.memory_space<vmem>>, vector<1x1x128xf32>
    %105 = vector.shape_cast %104 : vector<1x1x128xf32> to vector<1x128xf32>
    %106 = vector.broadcast %105 : vector<1x128xf32> to vector<64x128xf32>
    %107 = arith.addf %103, %106 : vector<64x128xf32>
    %cst_48 = arith.constant 0.000000e+00 : f32
    %108 = vector.broadcast %cst_48 : f32 to vector<64x128xf32>
    %109 = arith.maximumf %107, %108 : vector<64x128xf32>
    %110 = arith.truncf %109 : vector<64x128xf32> to vector<64x128xbf16>
    %c0_49 = arith.constant 0 : index
    %c0_50 = arith.constant 0 : index
    %c0_51 = arith.constant 0 : index
    %111 = vector.load %arg19[%c0_49, %c0_50, %c0_51] : memref<1x128x256xbf16, #tpu.memory_space<vmem>>, vector<1x128x256xbf16>
    %112 = vector.shape_cast %111 : vector<1x128x256xbf16> to vector<128x256xbf16>
    %cst_52 = arith.constant dense<0.000000e+00> : vector<64x256xf32>
    %113 = tpu.matmul %110, %112, %cst_52 {dimension_numbers = #tpu.dot_dimension_numbers<[1], [0], [0], [1], [0, 0, 1, 1], [], []>} : vector<64x128xbf16>, vector<128x256xbf16>, vector<64x256xf32> -> vector<64x256xf32>
    %c0_53 = arith.constant 0 : index
    %c0_54 = arith.constant 0 : index
    %c0_55 = arith.constant 0 : index
    %114 = vector.load %arg20[%c0_53, %c0_54, %c0_55] : memref<1x1x256xf32, #tpu.memory_space<vmem>>, vector<1x1x256xf32>
    %115 = vector.shape_cast %114 : vector<1x1x256xf32> to vector<1x256xf32>
    %116 = vector.broadcast %115 : vector<1x256xf32> to vector<64x256xf32>
    %117 = arith.addf %113, %116 : vector<64x256xf32>
    %cst_56 = arith.constant 1.000000e-01 : f32
    %118 = vector.broadcast %cst_56 : f32 to vector<64x256xf32>
    %119 = arith.mulf %117, %118 : vector<64x256xf32>
    %c0_57 = arith.constant 0 : index
    %c0_58 = arith.constant 0 : index
    %c0_59 = arith.constant 0 : index
    %120 = vector.load %arg9[%c0_57, %c0_58, %c0_59] : memref<1x1x256xf32, #tpu.memory_space<vmem>>, vector<1x1x256xf32>
    %121 = vector.shape_cast %120 : vector<1x1x256xf32> to vector<1x256xf32>
    %c0_60 = arith.constant 0 : index
    %c0_61 = arith.constant 0 : index
    %c0_62 = arith.constant 0 : index
    %122 = vector.load %arg10[%c0_60, %c0_61, %c0_62] : memref<1x1x256xf32, #tpu.memory_space<vmem>>, vector<1x1x256xf32>
    %123 = vector.shape_cast %122 : vector<1x1x256xf32> to vector<1x256xf32>
    %cst_63 = arith.constant dense<0.000000e+00> : vector<64xf32>
    %124 = vector.multi_reduction <add>, %73, %cst_63 [1] : vector<64x256xf32> to vector<64xf32>
    %125 = vector.shape_cast %124 : vector<64xf32> to vector<64x1xf32>
    %cst_64 = arith.constant 2.560000e+02 : f32
    %126 = vector.broadcast %cst_64 : f32 to vector<64x1xf32>
    %127 = arith.divf %125, %126 : vector<64x1xf32>
    %128 = vector.broadcast %127 : vector<64x1xf32> to vector<64x256xf32>
    %129 = arith.subf %73, %128 : vector<64x256xf32>
    %130 = arith.mulf %129, %129 : vector<64x256xf32>
    %cst_65 = arith.constant dense<0.000000e+00> : vector<64xf32>
    %131 = vector.multi_reduction <add>, %130, %cst_65 [1] : vector<64x256xf32> to vector<64xf32>
    %132 = vector.shape_cast %131 : vector<64xf32> to vector<64x1xf32>
    %cst_66 = arith.constant 2.560000e+02 : f32
    %133 = vector.broadcast %cst_66 : f32 to vector<64x1xf32>
    %134 = arith.divf %132, %133 : vector<64x1xf32>
    %135 = vector.broadcast %127 : vector<64x1xf32> to vector<64x256xf32>
    %136 = arith.subf %73, %135 : vector<64x256xf32>
    %cst_67 = arith.constant 9.99999974E-6 : f32
    %137 = vector.broadcast %cst_67 : f32 to vector<64x1xf32>
    %138 = arith.addf %134, %137 : vector<64x1xf32>
    %139 = math.rsqrt %138 : vector<64x1xf32>
    %140 = vector.broadcast %139 : vector<64x1xf32> to vector<64x256xf32>
    %141 = arith.mulf %136, %140 : vector<64x256xf32>
    %142 = vector.broadcast %121 : vector<1x256xf32> to vector<64x256xf32>
    %143 = arith.mulf %141, %142 : vector<64x256xf32>
    %144 = vector.broadcast %123 : vector<1x256xf32> to vector<64x256xf32>
    %145 = arith.addf %143, %144 : vector<64x256xf32>
    %146 = arith.truncf %145 : vector<64x256xf32> to vector<64x256xbf16>
    %c0_68 = arith.constant 0 : index
    %c0_69 = arith.constant 0 : index
    %c0_70 = arith.constant 0 : index
    %147 = vector.load %arg11[%c0_68, %c0_69, %c0_70] : memref<1x256x1024xbf16, #tpu.memory_space<vmem>>, vector<1x256x1024xbf16>
    %148 = vector.shape_cast %147 : vector<1x256x1024xbf16> to vector<256x1024xbf16>
    %cst_71 = arith.constant dense<0.000000e+00> : vector<64x1024xf32>
    %149 = tpu.matmul %146, %148, %cst_71 {dimension_numbers = #tpu.dot_dimension_numbers<[1], [0], [0], [1], [0, 0, 1, 1], [], []>} : vector<64x256xbf16>, vector<256x1024xbf16>, vector<64x1024xf32> -> vector<64x1024xf32>
    %c0_72 = arith.constant 0 : index
    %c0_73 = arith.constant 0 : index
    %c0_74 = arith.constant 0 : index
    %150 = vector.load %arg12[%c0_72, %c0_73, %c0_74] : memref<1x1x1024xf32, #tpu.memory_space<vmem>>, vector<1x1x1024xf32>
    %151 = vector.shape_cast %150 : vector<1x1x1024xf32> to vector<1x1024xf32>
    %152 = vector.broadcast %151 : vector<1x1024xf32> to vector<64x1024xf32>
    %153 = arith.addf %149, %152 : vector<64x1024xf32>
    %cst_75 = arith.constant 1.702000e+00 : f32
    %154 = vector.broadcast %cst_75 : f32 to vector<64x1024xf32>
    %155 = arith.mulf %154, %153 : vector<64x1024xf32>
    %156 = arith.negf %155 : vector<64x1024xf32>
    %157 = math.exp %156 : vector<64x1024xf32>
    %cst_76 = arith.constant 1.000000e+00 : f32
    %158 = vector.broadcast %cst_76 : f32 to vector<64x1024xf32>
    %159 = arith.addf %158, %157 : vector<64x1024xf32>
    %160 = arith.divf %158, %159 : vector<64x1024xf32>
    %161 = arith.mulf %153, %160 : vector<64x1024xf32>
    %162 = arith.truncf %161 : vector<64x1024xf32> to vector<64x1024xbf16>
    %c0_77 = arith.constant 0 : index
    %c0_78 = arith.constant 0 : index
    %c0_79 = arith.constant 0 : index
    %163 = vector.load %arg13[%c0_77, %c0_78, %c0_79] : memref<1x1024x256xbf16, #tpu.memory_space<vmem>>, vector<1x1024x256xbf16>
    %164 = vector.shape_cast %163 : vector<1x1024x256xbf16> to vector<1024x256xbf16>
    %cst_80 = arith.constant dense<0.000000e+00> : vector<64x256xf32>
    %165 = tpu.matmul %162, %164, %cst_80 {dimension_numbers = #tpu.dot_dimension_numbers<[1], [0], [0], [1], [0, 0, 1, 1], [], []>} : vector<64x1024xbf16>, vector<1024x256xbf16>, vector<64x256xf32> -> vector<64x256xf32>
    %c0_81 = arith.constant 0 : index
    %c0_82 = arith.constant 0 : index
    %c0_83 = arith.constant 0 : index
    %166 = vector.load %arg14[%c0_81, %c0_82, %c0_83] : memref<1x1x256xf32, #tpu.memory_space<vmem>>, vector<1x1x256xf32>
    %167 = vector.shape_cast %166 : vector<1x1x256xf32> to vector<1x256xf32>
    %168 = vector.broadcast %167 : vector<1x256xf32> to vector<64x256xf32>
    %169 = arith.addf %165, %168 : vector<64x256xf32>
    %170 = arith.addf %73, %169 : vector<64x256xf32>
    %171 = arith.addf %170, %119 : vector<64x256xf32>
    %c0_84 = arith.constant 0 : index
    %c0_85 = arith.constant 0 : index
    %172 = vector.load %arg22[%c0_84, %c0_85] : memref<64x256xf32, #tpu.memory_space<vmem>>, vector<64x256xf32>
    tpu.vector_store %arg22[%c0_84, %c0_85], %171 {strides = array<i32>} : memref<64x256xf32, #tpu.memory_space<vmem>>, vector<64x256xf32>,
    %c1_i32 = arith.constant 1 : i32
    %173 = arith.cmpi eq, %arg1, %c1_i32 : i32
    %174 = arith.extui %173 : i1 to i32
    %c0_i32_86 = arith.constant 0 : i32
    %175 = arith.cmpi ne, %174, %c0_i32_86 : i32
    scf.if %175 {
      %176 = vector.shape_cast %171 : vector<64x256xf32> to vector<1x64x256xf32>
      %c0_87 = arith.constant 0 : index
      %c0_88 = arith.constant 0 : index
      %c0_89 = arith.constant 0 : index
      %177 = vector.load %arg21[%c0_87, %c0_88, %c0_89] : memref<1x64x256xf32, #tpu.memory_space<vmem>>, vector<1x64x256xf32>
      tpu.vector_store %arg21[%c0_87, %c0_88, %c0_89], %176 {strides = array<i32>} : memref<1x64x256xf32, #tpu.memory_space<vmem>>, vector<1x64x256xf32>,
    } else {
    }
    return
  }
  func.func @transform_0(%arg0: i32, %arg1: i32) -> (i32, i32, i32) {
    %c0_i32 = arith.constant 0 : i32
    %c0_i32_0 = arith.constant 0 : i32
    %c0_i32_1 = arith.constant 0 : i32
    return %arg0, %c0_i32, %c0_i32_0 : i32, i32, i32
  }
  func.func @transform_1(%arg0: i32, %arg1: i32) -> (i32, i32, i32) {
    %c0_i32 = arith.constant 0 : i32
    %c0_i32_0 = arith.constant 0 : i32
    %c0_i32_1 = arith.constant 0 : i32
    return %arg1, %c0_i32, %c0_i32_0 : i32, i32, i32
  }
  func.func @transform_2(%arg0: i32, %arg1: i32) -> (i32, i32, i32) {
    %c0_i32 = arith.constant 0 : i32
    %c0_i32_0 = arith.constant 0 : i32
    %c0_i32_1 = arith.constant 0 : i32
    return %arg1, %c0_i32, %c0_i32_0 : i32, i32, i32
  }
  func.func @transform_3(%arg0: i32, %arg1: i32) -> (i32, i32, i32) {
    %c0_i32 = arith.constant 0 : i32
    %c0_i32_0 = arith.constant 0 : i32
    %c0_i32_1 = arith.constant 0 : i32
    return %arg1, %c0_i32, %c0_i32_0 : i32, i32, i32
  }
  func.func @transform_4(%arg0: i32, %arg1: i32) -> (i32, i32, i32) {
    %c0_i32 = arith.constant 0 : i32
    %c0_i32_0 = arith.constant 0 : i32
    %c0_i32_1 = arith.constant 0 : i32
    return %arg1, %c0_i32, %c0_i32_0 : i32, i32, i32
  }
  func.func @transform_5(%arg0: i32, %arg1: i32) -> (i32, i32, i32) {
    %c0_i32 = arith.constant 0 : i32
    %c0_i32_0 = arith.constant 0 : i32
    %c0_i32_1 = arith.constant 0 : i32
    return %arg1, %c0_i32, %c0_i32_0 : i32, i32, i32
  }
  func.func @transform_6(%arg0: i32, %arg1: i32) -> (i32, i32, i32) {
    %c0_i32 = arith.constant 0 : i32
    %c0_i32_0 = arith.constant 0 : i32
    %c0_i32_1 = arith.constant 0 : i32
    return %arg1, %c0_i32, %c0_i32_0 : i32, i32, i32
  }
  func.func @transform_7(%arg0: i32, %arg1: i32) -> (i32, i32, i32) {
    %c0_i32 = arith.constant 0 : i32
    %c0_i32_0 = arith.constant 0 : i32
    %c0_i32_1 = arith.constant 0 : i32
    return %arg1, %c0_i32, %c0_i32_0 : i32, i32, i32
  }
  func.func @transform_8(%arg0: i32, %arg1: i32) -> (i32, i32, i32) {
    %c0_i32 = arith.constant 0 : i32
    %c0_i32_0 = arith.constant 0 : i32
    %c0_i32_1 = arith.constant 0 : i32
    return %arg1, %c0_i32, %c0_i32_0 : i32, i32, i32
  }
  func.func @transform_9(%arg0: i32, %arg1: i32) -> (i32, i32, i32) {
    %c0_i32 = arith.constant 0 : i32
    %c0_i32_0 = arith.constant 0 : i32
    %c0_i32_1 = arith.constant 0 : i32
    return %arg1, %c0_i32, %c0_i32_0 : i32, i32, i32
  }
  func.func @transform_10(%arg0: i32, %arg1: i32) -> (i32, i32, i32) {
    %c0_i32 = arith.constant 0 : i32
    %c0_i32_0 = arith.constant 0 : i32
    %c0_i32_1 = arith.constant 0 : i32
    return %arg1, %c0_i32, %c0_i32_0 : i32, i32, i32
  }
  func.func @transform_11(%arg0: i32, %arg1: i32) -> (i32, i32, i32) {
    %c0_i32 = arith.constant 0 : i32
    %c0_i32_0 = arith.constant 0 : i32
    %c0_i32_1 = arith.constant 0 : i32
    return %arg1, %c0_i32, %c0_i32_0 : i32, i32, i32
  }
  func.func @transform_12(%arg0: i32, %arg1: i32) -> (i32, i32, i32) {
    %c0_i32 = arith.constant 0 : i32
    %c0_i32_0 = arith.constant 0 : i32
    %c0_i32_1 = arith.constant 0 : i32
    return %arg1, %c0_i32, %c0_i32_0 : i32, i32, i32
  }
  func.func @transform_13(%arg0: i32, %arg1: i32) -> (i32, i32, i32) {
    %c0_i32 = arith.constant 0 : i32
    %c0_i32_0 = arith.constant 0 : i32
    %c0_i32_1 = arith.constant 0 : i32
    return %arg1, %c0_i32, %c0_i32_0 : i32, i32, i32
  }
  func.func @transform_14(%arg0: i32, %arg1: i32) -> (i32, i32, i32) {
    %c0_i32 = arith.constant 0 : i32
    %c0_i32_0 = arith.constant 0 : i32
    %c0_i32_1 = arith.constant 0 : i32
    return %arg1, %c0_i32, %c0_i32_0 : i32, i32, i32
  }
  func.func @transform_15(%arg0: i32, %arg1: i32) -> (i32, i32, i32) {
    %c0_i32 = arith.constant 0 : i32
    %c0_i32_0 = arith.constant 0 : i32
    %c0_i32_1 = arith.constant 0 : i32
    return %arg1, %c0_i32, %c0_i32_0 : i32, i32, i32
  }
  func.func @transform_16(%arg0: i32, %arg1: i32) -> (i32, i32, i32) {
    %c0_i32 = arith.constant 0 : i32
    %c0_i32_0 = arith.constant 0 : i32
    %c0_i32_1 = arith.constant 0 : i32
    return %arg1, %c0_i32, %c0_i32_0 : i32, i32, i32
  }
  func.func @transform_17(%arg0: i32, %arg1: i32) -> (i32, i32, i32) {
    %c0_i32 = arith.constant 0 : i32
    %c0_i32_0 = arith.constant 0 : i32
    %c0_i32_1 = arith.constant 0 : i32
    return %arg1, %c0_i32, %c0_i32_0 : i32, i32, i32
  }
  func.func @transform_18(%arg0: i32, %arg1: i32) -> (i32, i32, i32) {
    %c0_i32 = arith.constant 0 : i32
    %c0_i32_0 = arith.constant 0 : i32
    %c0_i32_1 = arith.constant 0 : i32
    return %arg1, %c0_i32, %c0_i32_0 : i32, i32, i32
  }
  func.func @transform_19(%arg0: i32, %arg1: i32) -> (i32, i32, i32) {
    %c0_i32 = arith.constant 0 : i32
    %c0_i32_0 = arith.constant 0 : i32
    %c0_i32_1 = arith.constant 0 : i32
    return %arg0, %c0_i32, %c0_i32_0 : i32, i32, i32
  }
}

</mosaic_0001>

<bundles_post_ra>
// kernel: transformer_forward.1
= control target key start
LH: loop header
LB: loop body
LE: loop exit
PB: predicated region body
PF: predicated region fallthrough
CT: control target
= control target key end

     0   :  { %s18388_s0 = inlined_call_operand.vmem [shape: f32[2,64,256], index: 0, kind: input, shape index: {}]   ;;  %s18389_s1 = inlined_call_operand.vmem [shape: f32[2,1,256], index: 1, kind: input, shape index: {}]   ;;  %s18390_s2 = inlined_call_operand.vmem [shape: f32[2,1,256], index: 2, kind: input, shape index: {}]   ;;  %s18391_s3 = inlined_call_operand.hbm [shape: bf16[2,256,768], index: 3, kind: input, shape index: {}]   ;;  %s18392_s4 = inlined_call_operand.vmem [shape: f32[2,1,768], index: 4, kind: input, shape index: {}]   ;;  %s18393_s5 = inlined_call_operand.vmem [shape: bf16[2,256,256], index: 5, kind: input, shape index: {}]   ;;  %s18394_s6 = inlined_call_operand.vmem [shape: f32[2,1,256], index: 6, kind: input, shape index: {}]   ;;  %s18395_s7 = inlined_call_operand.vmem [shape: f32[2,1,256], index: 7, kind: input, shape index: {}]   ;;  %s18396_s8 = inlined_call_operand.vmem [shape: f32[2,1,256], index: 8, kind: input, shape index: {}]   ;;  %s18397_s9 = inlined_call_operand.hbm [shape: bf16[2,256,1024], index: 9, kind: input, shape index: {}]   ;;  %s18398_s10 = inlined_call_operand.vmem [shape: f32[2,1,1024], index: 10, kind: input, shape index: {}]   ;;  %s18399_s11 = inlined_call_operand.hbm [shape: bf16[2,1024,256], index: 11, kind: input, shape index: {}]   ;;  %s18400_s12 = inlined_call_operand.vmem [shape: f32[2,1,256], index: 12, kind: input, shape index: {}]   ;;  %s18401_s13 = inlined_call_operand.vmem [shape: f32[2,1,256], index: 13, kind: input, shape index: {}]   ;;  %s18402_s14 = inlined_call_operand.vmem [shape: f32[2,1,256], index: 14, kind: input, shape index: {}]   ;;  %s18403_s15 = inlined_call_operand.hbm [shape: bf16[2,256,128], index: 15, kind: input, shape index: {}]   ;;  %s18404_s16 = inlined_call_operand.hbm [shape: f32[2,1,128], index: 16, kind: input, shape index: {}]   ;;  %s18405_s17 = inlined_call_operand.hbm [shape: bf16[2,128,256], index: 17, kind: input, shape index: {}]   ;;  %s18406_s18 = inlined_call_operand.hbm [shape: f32[2,1,256], index: 18, kind: input, shape index: {}]   ;;  %s18407_s19 = inlined_call_operand.vmem [shape: f32[2,64,256], index: 19, kind: output, shape index: {}]  }
   0x1   :  { %18477 = sst [smem:[#allocation53_spill]] %s18388_s0 }
   0x2   :  { %18478 = sst [smem:[#allocation54_spill]] %s18389_s1 }
   0x3   :  { %18479 = sst [smem:[#allocation55_spill]] %s18390_s2 }
   0x4   :  { %18480 = sst [smem:[#allocation56_spill]] %s18391_s3 }
   0x5   :  { %18481 = sst [smem:[#allocation57_spill]] %s18392_s4 }
   0x6   :  { %18482 = sst [smem:[#allocation58_spill]] %s18393_s5 }
   0x7   :  { %18483 = sst [smem:[#allocation59_spill]] %s18394_s6 }
   0x8   :  { %18484 = sst [smem:[#allocation60_spill]] %s18395_s7 }
   0x9   :  { %18485 = sst [smem:[#allocation61_spill]] %s18396_s8 }
   0xa   :  { %18486 = sst [smem:[#allocation62_spill]] %s18397_s9 }
   0xb   :  { %18487 = sst [smem:[#allocation63_spill]] %s18398_s10 }
   0xc   :  { %18488 = sst [smem:[#allocation64_spill]] %s18399_s11 }
   0xd   :  { %18489 = sst [smem:[#allocation65_spill]] %s18400_s12 }
   0xe   :  { %18490 = sst [smem:[#allocation66_spill]] %s18401_s13 }
   0xf   :  { %18491 = sst [smem:[#allocation67_spill]] %s18402_s14 }
  0x10   :  { %18492 = sst [smem:[#allocation68_spill]] %s18403_s15 }
  0x11   :  { %18493 = sst [smem:[#allocation69_spill]] %s18404_s16 }
  0x12   :  { %18494 = sst [smem:[#allocation70_spill]] %s18405_s17 }
  0x13   :  { %18495 = sst [smem:[#allocation71_spill]] %s18406_s18 }
  0x14   :  { %18496 = sst [smem:[#allocation72_spill]] %s18407_s19 }
  0x15   :  { %24 = vsyncpa [#allocation4], 0 }
  0x16   :  { %26 = vsyncpa [#allocation4 + $0x1], 0 }
  0x17   :  { %27 = vsyncpa [#allocation6], 0 }
  0x18   :  { %29 = vsyncpa [#allocation6 + $0x1], 0 }
  0x19   :  { %30 = vsyncpa [#allocation9], 0 }
  0x1a   :  { %32 = vsyncpa [#allocation9 + $0x1], 0 }
  0x1b   :  { %33 = vsyncpa [#allocation12], 0 }
  0x1c   :  { %35 = vsyncpa [#allocation12 + $0x1], 0  ;;  %s14046_s0 = smov 0   ;;  %s14048_s30 = smov 0  }
  0x1d   :  { %s14050_s20 = smov 0   ;;  %s14052_s21 = smov 0  }
  0x1e   :  { %s14054_s1 = smov 0   ;;  %s14056_s22 = smov 0  }
  0x1f   :  { %s14058_s2 = smov 0   ;;  %s14060_s23 = smov 0  }
  0x20 LB: > { %18497 = sst [smem:[#allocation18_spill]] %s13901_s30  ;;  %s18411_s24 = sadd.s32 4294967295, %s13925_s23   ;;  %s13925_s23 = sphi %s14060_s23, %s41_s23   ;;  %s13921_s2 = sphi %s14058_s2, %s18713_s2   ;;  %s13917_s22 = sphi %s14056_s22, %s18712_s22   ;;  %s13913_s1 = sphi %s14054_s1, %s18711_s1   ;;  %s13909_s21 = sphi %s14052_s21, %s18710_s21   ;;  %s13905_s20 = sphi %s14050_s20, %s18709_s20   ;;  %s13901_s30 = sphi %s14048_s30, %s18708_s30   ;;  %s13897_s0 = sphi %s14046_s0, %s18707_s0  }
  0x21   : > { %18498 = sst [smem:[#allocation19_spill]] %s13905_s20  ;;  %s50_s25 = sadd.s32 1, %s13917_s22 }
  0x22   : > { %18499 = sst [smem:[#allocation20_spill]] %s13917_s22  ;;  %p51_p0 = scmp.ge.s32.totalorder %s50_s25, 2 }
  0x23   : > { %18500 = sst [smem:[#allocation21_spill]] %s13921_s2  ;;  %s53_s3 = sadd.s32 1, %s13921_s2 }
  0x24   : > { %18501 = sst [smem:[#allocation22_spill]] %s13925_s23  ;;  %s138_s26 = sadd.s32 1, %s13905_s20 }
  0x25   : > { %p145_p1 = scmp.ne.s32.totalorder %s13905_s20, %s13901_s30  ;;  %s18715_s25 = smov (%p51_p0, %s50_s25), 0 }
  0x26   : > { %18502 = sst [smem:[#allocation23_spill]] %s18715_s25  ;;  %s18717_s3 = smov (!%p51_p0, %s53_s3), %s13921_s2 }
  0x27   : > { %s135_s27 = ssub.s32 %s13917_s22, %s18715_s25  ;;  %p146_p2 = scmp.eq.s32.totalorder %s13925_s23, 0 }
  0x28   : > { %p55_p3 = scmp.ge.s32.totalorder %s18717_s3, 2  ;;  %p136_p4 = scmp.eq.s32.totalorder %s135_s27, 0 }
  0x29   : > { %p147_p5 = por %p146_p2, %p145_p1  ;;  %p151_p6 = scmp.ne.s32.totalorder %s13901_s30, %s13897_s0 }
  0x2a   : > { %s18719_s3 = smov (%p55_p3, %s18717_s3), 0  ;;  %p152_p7 = scmp.eq.s32.totalorder %s18411_s24, 0 }
  0x2b   : > { %18503 = sst [smem:[#allocation24_spill]] %s18719_s3  ;;  %p12663_p8 = scmp.lt.s32.totalorder %s13925_s23, 4 }
  0x2c   : > { %s14100_s28 = scalar_select %p136_p4, %s13905_s20, %s138_s26  }
  0x2d   : > { %s14106_s29 = sand.u32 1, %s13905_s20   ;;  %p14108_p9 = por %p152_p7, %p151_p6 }
  0x2e   : > { %18504 = sst [smem:[#allocation25_spill]] %s14100_s28  ;;  %s14113_s25 = sand.u32 1, %s13925_s23  }
  0x2f   : > { %s18505_s2 = scalar_select %p14108_p9, 1, 0 }
  0x30   : > { %p14115_p10 = pnand %p12663_p8, %p147_p5  ;;  %s18414_s26 = sshll.u32 %s14106_s29, 10 }
  0x31   : > { %s18413_s27 = sshll.u32 %s13917_s22, 14  ;;  %s18507_s9 = sld [smem:[#allocation62_spill]] }
  0x32   : > { %s18506_s0 = scalar_select %p14115_p10, 1, 0 }
  0x33   : > { %s674_s20 = scalar_lea.vmem [#allocation5], %s18414_s26  ;;  %p14137_p12 = pneg %p14115_p10 }
  0x34   : > { %s681_s19 = sshll.u32 %s674_s20, 4  ;;  %s14130_s19 = int_to_ptr.vmem [resolvable:$true] %s681_s19 }
  0x37   : > { %s14126_s28 = scalar_lea.hbm %s18507_s9, %s18413_s27  ;;  %s13642_s27 = scalar_lea.hbm %s18507_s9, 32768 }
  0x38   : > { %s13637_s13 = scalar_lea.hbm %s14126_s28, 16384  ;;  %p13643_p1 = scmp.lt.u32.totalorder %s14126_s28, %s18507_s9 }
  0x39   : > { %p13638_p11 = scmp.ne.s32.totalorder %s14126_s28, %s13637_s13  ;;  %p13644_p2 = scmp.lt.u32.totalorder %s13642_s27, %s13637_s13 }
  0x3a   : > { %p13646_p4 = scmp.lt.u32.totalorder %s13637_s13, %s14126_s28 }
  0x3b   : > { %p13640_p13 = pnand %p14137_p12, %p13638_p11  ;;  %p13645_p3 = por %p13644_p2, %p13643_p1 }
  0x3d   : > { %p13641_p0 = pneg %p13640_p13  ;;  %p13647_p5 = por %p13646_p4, %p13645_p3 }
  0x3f   : > { %p13648_p6 = pnand %p13647_p5, %p13641_p0 }
  0x41   : > { %13651 = shalt.err (!%p13648_p6)
}
  0x42   : > { %s13652_s14 = scalar_lea.vmem %s14130_s19, 16384  ;;  %s13927_s24 = smov [#allocation5]  }
  0x43   : > { %p13653_p7 = scmp.ne.s32.totalorder %s14130_s19, %s13652_s14  ;;  %s13657_s3 = sshll.u32 %s13927_s24, 4  ;;  %s13658_s3 = int_to_ptr.vmem [resolvable:$false] %s13657_s3 }
  0x44   : > { %s13659_s26 = scalar_lea.vmem %s13658_s3, 32768  ;;  %p13660_p13 = scmp.lt.s32.totalorder %s14130_s19, %s13658_s3 }
  0x45   : > { %p13655_p8 = pnand %p13653_p7, %p14137_p12  ;;  %p13661_p9 = scmp.lt.s32.totalorder %s13659_s26, %s13652_s14 }
  0x47   : > { %p13656_p11 = pneg %p13655_p8  ;;  %p13662_p1 = por %p13661_p9, %p13660_p13 }
  0x49   : > { %p13663_p2 = pnand %p13662_p1, %p13656_p11 }
  0x4b   : > { %13666 = shalt.err (!%p13663_p2)
}
  0x4c   : > { %s13928_s13 = smov 512   ;;  %s13929_s27 = smov 32  }
  0x4d   : > { %s18509_s14 = scalar_lea.sflag [#allocation6], %s14113_s25  ;;  %s18510_s20 = sshll.u32 %s13917_s22, 14 }
  0x4e   : > { %12647 = dma.hbm_to_vmem [thread:$0]  (!%p14115_p10), %s14126_s28, 16384, %s14130_s19, %s18509_s14, %s13928_s13, %s13928_s13, %s13929_s27  }
  0x4f   : > { %s18511_s11 = sld [smem:[#allocation64_spill]]  ;;  %s18512_s9 = sshll.u32 %s14106_s29, 10 }
  0x50   : > { %s702_s10 = scalar_lea.vmem [#allocation7], %s18512_s9  ;;  %p11701_p9 = scmp.ge.s32.totalorder %s13925_s23, 1 }
  0x51   : > { %s709_s8 = sshll.u32 %s702_s10, 4  ;;  %p816_p0 = scmp.lt.s32.totalorder %s13925_s23, 5  ;;  %s14171_s8 = int_to_ptr.vmem [resolvable:$true] %s709_s8 }
  0x52   : > { %s11691_s7 = sshll.u32 %s14106_s29, 7  ;;  %s12305_s4 = sshll.u32 %s13917_s22, 11 }
  0x53   : > { %p14177_p3 = pnand %p11701_p9, %p816_p0  ;;  %s18514_s15 = sld [smem:[#allocation68_spill]] }
  0x54   : > { %s744_s9 = scalar_lea.vmem [#allocation8], %s11691_s7  ;;  %s18416_s27 = scalar_lea.sflag [#allocation9], %s14113_s25 }
  0x55   : > { %s14167_s26 = scalar_lea.hbm %s18511_s11, %s18510_s20  ;;  %s751_s10 = sshll.u32 %s744_s9, 4  ;;  %s14190_s10 = int_to_ptr.vmem [resolvable:$true] %s751_s10 }
  0x56   : > { %s18513_s6 = scalar_select %p14177_p3, 1, 0 }
  0x59   : > { %s14186_s13 = scalar_lea.hbm %s18514_s15, %s12305_s4  ;;  %s13672_s3 = scalar_lea.hbm %s18514_s15, 4096 }
  0x5a   : > { %s13667_s14 = scalar_lea.hbm %s14186_s13, 2048  ;;  %p13673_p7 = scmp.lt.u32.totalorder %s14186_s13, %s18514_s15 }
  0x5b   : > { %p13668_p4 = scmp.ne.s32.totalorder %s14186_s13, %s13667_s14  ;;  %p13674_p8 = scmp.lt.u32.totalorder %s13672_s3, %s13667_s14 }
  0x5c   : > { %p13676_p13 = scmp.lt.u32.totalorder %s13667_s14, %s14186_s13 }
  0x5d   : > { %p13670_p5 = pnand %p13668_p4, %p14137_p12  ;;  %p13675_p11 = por %p13674_p8, %p13673_p7 }
  0x5f   : > { %p13671_p6 = pneg %p13670_p5  ;;  %p13677_p1 = por %p13676_p13, %p13675_p11 }
  0x61   : > { %p13678_p2 = pnand %p13677_p1, %p13671_p6 }
  0x63   : > { %13681 = shalt.err (!%p13678_p2)
}
  0x64   : > { %s13682_s9 = scalar_lea.vmem %s14190_s10, 2048  ;;  %s13930_s20 = smov [#allocation8]  }
  0x65   : > { %p13683_p9 = scmp.ne.s32.totalorder %s14190_s10, %s13682_s9  ;;  %s13687_s24 = sshll.u32 %s13930_s20, 4  ;;  %s13688_s24 = int_to_ptr.vmem [resolvable:$false] %s13687_s24 }
  0x66   : > { %s13689_s19 = scalar_lea.vmem %s13688_s24, 4096  ;;  %p13690_p5 = scmp.lt.s32.totalorder %s14190_s10, %s13688_s24 }
  0x67   : > { %p13685_p0 = pnand %p13683_p9, %p14137_p12  ;;  %p13691_p3 = scmp.lt.s32.totalorder %s13689_s19, %s13682_s9 }
  0x69   : > { %p13686_p4 = pneg %p13685_p0  ;;  %p13692_p7 = por %p13691_p3, %p13690_p5 }
  0x6b   : > { %p13693_p8 = pnand %p13692_p7, %p13686_p4 }
  0x6d   : > { %13696 = shalt.err (!%p13693_p8)
}
  0x6e   : > { %s13931_s14 = smov 64   ;;  %s13932_s3 = smov 4  }
  0x6f   : > { %12653 = dma.hbm_to_vmem [thread:$0]  (!%p14115_p10), %s14186_s13, 2048, %s14190_s10, %s18416_s27, %s13931_s14, %s13931_s14, %s13932_s3  }
  0x70   : > { %s18515_s17 = sld [smem:[#allocation70_spill]]  ;;  %s782_s24 = scalar_lea.vmem [#allocation11], %s11691_s7 }
  0x71   : > { %s789_s19 = sshll.u32 %s782_s24, 4  ;;  %s18417_s15 = scalar_lea.sflag [#allocation12], %s14113_s25  ;;  %s14225_s19 = int_to_ptr.vmem [resolvable:$true] %s789_s19 }
  0x76   : > { %s14221_s9 = scalar_lea.hbm %s18515_s17, %s12305_s4  ;;  %s13702_s4 = scalar_lea.hbm %s18515_s17, 4096 }
  0x77   : > { %s13697_s5 = scalar_lea.hbm %s14221_s9, 2048  ;;  %p13703_p13 = scmp.lt.u32.totalorder %s14221_s9, %s18515_s17 }
  0x78   : > { %p13698_p3 = scmp.ne.s32.totalorder %s14221_s9, %s13697_s5  ;;  %p13704_p1 = scmp.lt.u32.totalorder %s13702_s4, %s13697_s5 }
  0x79   : > { %p13706_p9 = scmp.lt.u32.totalorder %s13697_s5, %s14221_s9 }
  0x7a   : > { %p13700_p6 = pnand %p13698_p3, %p14137_p12  ;;  %p13705_p2 = por %p13704_p1, %p13703_p13 }
  0x7c   : > { %p13701_p11 = pneg %p13700_p6  ;;  %p13707_p0 = por %p13706_p9, %p13705_p2 }
  0x7e   : > { %p13708_p4 = pnand %p13707_p0, %p13701_p11 }
  0x80   : > { %13711 = shalt.err (!%p13708_p4)
}
  0x81   : > { %s13712_s7 = scalar_lea.vmem %s14225_s19, 2048  ;;  %s13933_s28 = smov [#allocation11]  }
  0x82   : > { %p13713_p5 = scmp.ne.s32.totalorder %s14225_s19, %s13712_s7  ;;  %s13717_s20 = sshll.u32 %s13933_s28, 4  ;;  %s13718_s20 = int_to_ptr.vmem [resolvable:$false] %s13717_s20 }
  0x83   : > { %s13719_s24 = scalar_lea.vmem %s13718_s20, 4096  ;;  %p13720_p3 = scmp.lt.s32.totalorder %s14225_s19, %s13718_s20 }
  0x84   : > { %p13715_p7 = pnand %p13713_p5, %p14137_p12  ;;  %p13721_p6 = scmp.lt.s32.totalorder %s13719_s24, %s13712_s7 }
  0x86   : > { %p13716_p8 = pneg %p13715_p7  ;;  %p13722_p13 = por %p13721_p6, %p13720_p3 }
  0x88   : > { %p13723_p1 = pnand %p13722_p13, %p13716_p8 }
  0x8a   : > { %13726 = shalt.err (!%p13723_p1)
}
  0x8b   : > { %s13934_s5 = smov 128   ;;  %s13935_s13 = smov 8  }
  0x8c   : > { %12659 = dma.hbm_to_vmem [thread:$0]  (!%p14115_p10), %s14221_s9, 2048, %s14225_s19, %s18417_s15, %s13934_s5, %s13934_s5, %s13935_s13  }
  0x8d   : > { %s12623_s10 = smul.u32 768, %s14106_s29  ;;  %s18516_s7 = sld [smem:[#allocation56_spill]] }
  0x8e   : > { %s12624_s4 = smul.u32 12288, %s13917_s22  ;;  %s614_s27 = scalar_lea.sflag [#allocation4], %s14106_s29 }
  0x8f   : > { %s617_s20 = scalar_lea.vmem [#allocation3], %s12623_s10 }
  0x90   : > { %s624_s24 = sshll.u32 %s617_s20, 4  ;;  %s14261_s24 = int_to_ptr.vmem [resolvable:$true] %s624_s24 }
  0x93   : > { %s14259_s28 = scalar_lea.hbm %s18516_s7, %s12624_s4  ;;  %s13732_s14 = scalar_lea.hbm %s18516_s7, 24576 }
  0x94   : > { %s13727_s17 = scalar_lea.hbm %s14259_s28, 12288  ;;  %p13733_p0 = scmp.lt.u32.totalorder %s14259_s28, %s18516_s7 }
  0x95   : > { %p13728_p11 = scmp.ne.s32.totalorder %s14259_s28, %s13727_s17  ;;  %p13734_p4 = scmp.lt.u32.totalorder %s13732_s14, %s13727_s17 }
  0x96   : > { %p13736_p7 = scmp.lt.u32.totalorder %s13727_s17, %s14259_s28 }
  0x97   : > { %p13730_p2 = pnand %p13728_p11, %p14137_p12  ;;  %p13735_p5 = por %p13734_p4, %p13733_p0 }
  0x99   : > { %p13731_p9 = pneg %p13730_p2  ;;  %p13737_p8 = por %p13736_p7, %p13735_p5 }
  0x9b   : > { %p13738_p3 = pnand %p13737_p8, %p13731_p9 }
  0x9d   : > { %13741 = shalt.err (!%p13738_p3)
}
  0x9e   : > { %s13742_s10 = scalar_lea.vmem %s14261_s24, 12288  ;;  %s13936_s20 = smov [#allocation3]  }
  0x9f   : > { %p13743_p6 = scmp.ne.s32.totalorder %s14261_s24, %s13742_s10  ;;  %s13747_s9 = sshll.u32 %s13936_s20, 4  ;;  %s13748_s9 = int_to_ptr.vmem [resolvable:$false] %s13747_s9 }
  0xa0   : > { %s13749_s19 = scalar_lea.vmem %s13748_s9, 24576  ;;  %p13750_p11 = scmp.lt.s32.totalorder %s14261_s24, %s13748_s9 }
  0xa1   : > { %p13745_p13 = pnand %p13743_p6, %p14137_p12  ;;  %p13751_p2 = scmp.lt.s32.totalorder %s13749_s19, %s13742_s10 }
  0xa3   : > { %p13746_p1 = pneg %p13745_p13  ;;  %p13752_p0 = por %p13751_p2, %p13750_p11 }
  0xa5   : > { %p13753_p4 = pnand %p13752_p0, %p13746_p1 }
  0xa7   : > { %13756 = shalt.err (!%p13753_p4)
}
  0xa8   : > { %s13937_s17 = smov 384   ;;  %s13938_s14 = smov 24  }
  0xa9   : > { %12644 = dma.hbm_to_vmem [thread:$0]  (!%p14115_p10), %s14259_s28, 12288, %s14261_s24, %s614_s27, %s13937_s17, %s13937_s17, %s13938_s14  }
  0xaa   : > { %s13757_s4 = scalar_lea.hbm %s14167_s26, 16384  ;;  %s13762_s20 = scalar_lea.hbm %s18511_s11, 32768 }
  0xab   : > { %p13758_p9 = scmp.ne.s32.totalorder %s14167_s26, %s13757_s4  ;;  %p13763_p8 = scmp.lt.u32.totalorder %s14167_s26, %s18511_s11 }
  0xac   : > { %p13764_p3 = scmp.lt.u32.totalorder %s13762_s20, %s13757_s4  ;;  %p13766_p13 = scmp.lt.u32.totalorder %s13757_s4, %s14167_s26 }
  0xad   : > { %p13760_p5 = pnand %p13758_p9, %p14137_p12 }
  0xae   : > { %p13765_p6 = por %p13764_p3, %p13763_p8 }
  0xaf   : > { %p13761_p7 = pneg %p13760_p5 }
  0xb0   : > { %p13767_p1 = por %p13766_p13, %p13765_p6 }
  0xb2   : > { %p13768_p11 = pnand %p13767_p1, %p13761_p7 }
  0xb4   : > { %13771 = shalt.err (!%p13768_p11)
}
  0xb5   : > { %s13772_s27 = scalar_lea.vmem %s14171_s8, 16384  ;;  %s13939_s28 = smov [#allocation7]  }
  0xb6   : > { %p13773_p2 = scmp.ne.s32.totalorder %s14171_s8, %s13772_s27  ;;  %s13777_s24 = sshll.u32 %s13939_s28, 4  ;;  %s13778_s24 = int_to_ptr.vmem [resolvable:$false] %s13777_s24 }
  0xb7   : > { %s13779_s17 = scalar_lea.vmem %s13778_s24, 32768  ;;  %p13780_p9 = scmp.lt.s32.totalorder %s14171_s8, %s13778_s24 }
  0xb8   : > { %p13775_p0 = pnand %p13773_p2, %p14137_p12  ;;  %p13781_p5 = scmp.lt.s32.totalorder %s13779_s17, %s13772_s27 }
  0xba   : > { %p13776_p4 = pneg %p13775_p0  ;;  %p13782_p8 = por %p13781_p5, %p13780_p9 }
  0xbc   : > { %p13783_p3 = pnand %p13782_p8, %p13776_p4 }
  0xbe   : > { %13786 = shalt.err (!%p13783_p3)
}
  0xbf   : > { %s18517_s14 = scalar_lea.sflag [#allocation6], %s14113_s25  ;;  %s11694_s4 = sshll.u32 %s13917_s22, 4 }
  0xc0   : > { %12650 = dma.hbm_to_vmem [thread:$0]  (!%p14115_p10), %s14167_s26, 16384, %s14171_s8, %s18517_s14, %s13934_s5, %s13934_s5, %s13935_s13  }
  0xc1   : > { %s764_s3 = scalar_lea.vmem [#allocation10], %s14106_s29  ;;  %s18518_s16 = sld [smem:[#allocation69_spill]] }
  0xc2   : > { %s771_s10 = sshll.u32 %s764_s3, 4  ;;  %s772_s10 = int_to_ptr.vmem [resolvable:$true] %s771_s10 }
  0xc7   : > { %s769_s19 = scalar_lea.hbm %s18518_s16, %s11694_s4  ;;  %s13792_s17 = scalar_lea.hbm %s18518_s16, 32 }
  0xc8   : > { %s13787_s27 = scalar_lea.hbm %s769_s19, 16  ;;  %p13793_p1 = scmp.lt.u32.totalorder %s769_s19, %s18518_s16 }
  0xc9   : > { %p13788_p7 = scmp.ne.s32.totalorder %s769_s19, %s13787_s27  ;;  %p13794_p11 = scmp.lt.u32.totalorder %s13792_s17, %s13787_s27 }
  0xca   : > { %p13796_p0 = scmp.lt.u32.totalorder %s13787_s27, %s769_s19 }
  0xcb   : > { %p13790_p6 = pnand %p13788_p7, %p14137_p12  ;;  %p13795_p2 = por %p13794_p11, %p13793_p1 }
  0xcd   : > { %p13791_p13 = pneg %p13790_p6  ;;  %p13797_p4 = por %p13796_p0, %p13795_p2 }
  0xcf   : > { %p13798_p9 = pnand %p13797_p4, %p13791_p13 }
  0xd1   : > { %13801 = shalt.err (!%p13798_p9)
}
  0xd2   : > { %s13802_s8 = scalar_lea.vmem %s772_s10, 16  ;;  %s13940_s26 = smov [#allocation10]  }
  0xd3   : > { %p13803_p5 = scmp.ne.s32.totalorder %s772_s10, %s13802_s8  ;;  %s13807_s5 = sshll.u32 %s13940_s26, 4  ;;  %s13808_s5 = int_to_ptr.vmem [resolvable:$false] %s13807_s5 }
  0xd4   : > { %s13809_s13 = scalar_lea.vmem %s13808_s5, 32  ;;  %p13810_p7 = scmp.lt.s32.totalorder %s772_s10, %s13808_s5 }
  0xd5   : > { %p13805_p8 = pnand %p13803_p5, %p14137_p12  ;;  %p13811_p6 = scmp.lt.s32.totalorder %s13809_s13, %s13802_s8 }
  0xd7   : > { %p13806_p3 = pneg %p13805_p8  ;;  %p13812_p10 = por %p13811_p6, %p13810_p7 }
  0xd9   : > { %p13813_p1 = pnand %p13812_p10, %p13806_p3 }
  0xdb   : > { %13816 = shalt.err (!%p13813_p1)
}
  0xdc   : > { %p18519_p11 = scmp.ne.s32.totalorder %s18506_s0, 0  ;;  %s18520_s15 = scalar_lea.sflag [#allocation9], %s14113_s25 }
  0xdd   : > { %s11698_s7 = sshll.u32 %s14106_s29, 1  ;;  %s12307_s14 = sshll.u32 %s13917_s22, 5 }
  0xde   : > { %12656 = dma.hbm_to_vmem [thread:$0]  (!%p18519_p11), %s769_s19, 16, %s772_s10, %s18520_s15  }
  0xdf   : > { %s18521_s18 = sld [smem:[#allocation71_spill]]  ;;  %s803_s9 = scalar_lea.vmem [#allocation13], %s11698_s7 }
  0xe0   : > { %s811_s27 = sshll.u32 %s803_s9, 4  ;;  %s812_s27 = int_to_ptr.vmem [resolvable:$true] %s811_s27 }
  0xe5   : > { %s14337_s20 = scalar_lea.hbm %s18521_s18, %s12307_s14  ;;  %s13822_s19 = scalar_lea.hbm %s18521_s18, 64 }
  0xe6   : > { %s13817_s28 = scalar_lea.hbm %s14337_s20, 32  ;;  %p13823_p0 = scmp.lt.u32.totalorder %s14337_s20, %s18521_s18 }
  0xe7   : > { %p13818_p10 = scmp.ne.s32.totalorder %s14337_s20, %s13817_s28  ;;  %p13824_p4 = scmp.lt.u32.totalorder %s13822_s19, %s13817_s28 }
  0xe8   : > { %p13826_p5 = scmp.lt.u32.totalorder %s13817_s28, %s14337_s20 }
  0xe9   : > { %p13820_p13 = pnand %p13818_p10, %p14137_p12  ;;  %p13825_p9 = por %p13824_p4, %p13823_p0 }
  0xeb   : > { %p13821_p2 = pneg %p13820_p13  ;;  %p13827_p8 = por %p13826_p5, %p13825_p9 }
  0xed   : > { %p13828_p3 = pnand %p13827_p8, %p13821_p2 }
  0xef   : > { %13831 = shalt.err (!%p13828_p3)
}
  0xf0   : > { %s13832_s8 = scalar_lea.vmem %s812_s27, 32  ;;  %s13941_s26 = smov [#allocation13]  }
  0xf1   : > { %p13833_p7 = scmp.ne.s32.totalorder %s812_s27, %s13832_s8  ;;  %s13837_s5 = sshll.u32 %s13941_s26, 4  ;;  %s13838_s5 = int_to_ptr.vmem [resolvable:$false] %s13837_s5 }
  0xf2   : > { %s13839_s13 = scalar_lea.vmem %s13838_s5, 64  ;;  %p13840_p10 = scmp.lt.s32.totalorder %s812_s27, %s13838_s5 }
  0xf3   : > { %p13835_p6 = pnand %p13833_p7, %p14137_p12  ;;  %p13841_p13 = scmp.lt.s32.totalorder %s13839_s13, %s13832_s8 }
  0xf5   : > { %p13836_p1 = pneg %p13835_p6  ;;  %p13842_p11 = por %p13841_p13, %p13840_p10 }
  0xf7   : > { %p13843_p0 = pnand %p13842_p11, %p13836_p1 }
  0xf9   : > { %13846 = shalt.err (!%p13843_p0)
}
  0xfa   : > { %p18522_p4 = scmp.ne.s32.totalorder %s18506_s0, 0  ;;  %s18523_s15 = scalar_lea.sflag [#allocation12], %s14113_s25 }
  0xfb   : > { %p18524_p2 = scmp.ne.s32.totalorder %s18513_s6, 0 }
  0xfc   : > { %12662 = dma.hbm_to_vmem [thread:$0]  (!%p18522_p4), %s14337_s20, 32, %s812_s27, %s18523_s15  }
  0xfd   : > { %820 = sbr.rel (%p18524_p2) target bundleno = 3594 (0xe0a), region = 96 }
 0x104   : > { %s14361_s12 = sand.u32 1, %s13901_s30   ;;  %p18526_p12 = scmp.ne.s32.totalorder %s18505_s2, 0 }
 0x105   : > { %18525 = sst [smem:[#allocation26_spill]] %s14361_s12  ;;  %s12625_s7 = smul.u32 768, %s14361_s12 }
 0x106   : > { %s823_s14 = scalar_lea.sflag [#allocation4], %s14361_s12 }
 0x107   : > { %s14365_s4 = scalar_lea.vmem [#allocation3], %s12625_s7 }
 0x108   : > { %13880 = dma.done.wait (%p18526_p12), %s823_s14, 12288  }
 0x109   : > { %13882 = vsyncadd (%p18526_p12), %s823_s14, 4294955008  ;;  %s18527_s25 = sadd.s32 4294967295, %s13925_s23   ;;  %s11702_s0 = sshll.u32 %s14361_s12, 10 }
 0x10a   : > { %s831_s6 = sand.u32 1, %s18527_s25   ;;  %s14374_s20 = scalar_lea.vmem [#allocation5], %s11702_s0 }
 0x10b   : > { %s832_s3 = scalar_lea.sflag [#allocation6], %s831_s6 }
 0x10c   : > { %13884 = dma.done.wait (%p18526_p12), %s832_s3, 32768  }
 0x10d   : > { %13886 = vsyncadd (%p18526_p12), %s832_s3, 4294934528  ;;  %s11704_s9 = sshll.u32 %s14361_s12, 7  ;;  %s14381_s27 = scalar_lea.vmem [#allocation7], %s11702_s0 }
 0x10e   : > { %18528 = sst [smem:[#allocation27_spill]] %s14381_s27  ;;  %s850_s28 = scalar_lea.sflag [#allocation9], %s831_s6 }
 0x10f   : > { %s14383_s10 = scalar_lea.vmem [#allocation8], %s11704_s9 }
 0x110   : > { %18529 = sst [smem:[#allocation28_spill]] %s14383_s10 }
 0x111   : > { %13888 = dma.done.wait (%p18526_p12), %s850_s28, 2064  }
 0x112   : > { %13890 = vsyncadd (%p18526_p12), %s850_s28, 4294965232  ;;  %s867_s19 = scalar_lea.sflag [#allocation12], %s831_s6  ;;  %s14390_s24 = scalar_lea.vmem [#allocation11], %s11704_s9 }
 0x113   : > { %18530 = sst [smem:[#allocation29_spill]] %s14390_s24 }
 0x114   : > { %13892 = dma.done.wait (%p18526_p12), %s867_s19, 2080  }
 0x115   : > { %13894 = vsyncadd (%p18526_p12), %s867_s19, 4294965216  ;;  %s11706_s17 = sshll.u32 %s14361_s12, 1  ;;  %p1013_p11 = scmp.lt.s32.totalorder %s13913_s1, 1 }
 0x116   : > { %p1018_p9 = scmp.lt.s32.totalorder %s13909_s21, 1  ;;  %s18531_s15 = sld [smem:[#allocation53_spill]] }
 0x117   : > { %s18721_s1 = smov (!%p1013_p11, %s13913_s1), 1  ;;  %s18534_s29 = sld [smem:[#allocation58_spill]] }
 0x118   : > { %s1019_s8 = scalar_select %p1018_p9, %s13909_s21, 1 }
 0x119   : > { %s12308_s26 = sshll.u32 %s18721_s1, 7  ;;  %s18536_s23 = sld [smem:[#allocation57_spill]] }
 0x11a   : > { %s14406_s14 = sshll.u32 %s1019_s8, 1  ;;  %s12626_s19 = smul.u32 6, %s1019_s8 }
 0x11b   : > { %s12309_s5 = sshll.u32 %s1019_s8, 8  ;;  %s18538_s27 = sld [smem:[#allocation61_spill]] }
 0x11c   : > { %s14404_s7 = scalar_lea.vmem %s18531_s15, %s12308_s26  ;;  %s11716_s13 = sshll.u32 %s1019_s8, 3 }
 0x11d   : > { %s14419_s11 = scalar_lea.vmem %s18534_s29, %s12309_s5  ;;  %s18539_s15 = sld [smem:[#allocation63_spill]] }
 0x11e   : > { %s18540_s25 = sld [smem:[#allocation65_spill]]  ;;  %s18542_s1 = sld [smem:[#allocation67_spill]] }
 0x11f   : > { %s14428_s12 = scalar_lea.vmem %s18536_s23, %s12626_s19  ;;  %s18541_s19 = sld [smem:[#allocation66_spill]] }
 0x120   : > { %s18543_s8 = sld [smem:[#allocation72_spill]]  ;;  %s14460_s29 = scalar_lea.vmem [#allocation13], %s11706_s17 }
 0x121   : > { %s1046_s24 = scalar_lea.vmem %s18538_s27, %s14406_s14  ;;  %p11722_p5 = scmp.ne.s32.totalorder %s13909_s21, 0 }
 0x122   : > { %v1073_v0 = vld [vmem:[%s14404_s7] sm:$0xff] (!%p11722_p5)  ;;  %v1074_v1 = vld [vmem:[%s14404_s7 + $0x8] sm:$0xff] (!%p11722_p5)  ;;  %v1075_v2 = vld [vmem:[%s14404_s7 + $0x10] sm:$0xff] (!%p11722_p5) }
 0x123   : > { %s14441_s10 = scalar_lea.vmem %s18539_s15, %s11716_s13  ;;  %1072 = sbr.rel (%p11722_p5) target bundleno = 299 (0x12b), region = 128  ;;  %1089 = vst [vmem:[#allocation2] sm:$0xff] (!%p11722_p5), %v1073_v0  ;;  %1090 = vst [vmem:[#allocation2 + $0x8] sm:$0xff] (!%p11722_p5), %v1074_v1  ;;  %v1076_v3 = vld [vmem:[%s14404_s7 + $0x18] sm:$0xff] (!%p11722_p5)  ;;  %v1077_v4 = vld [vmem:[%s14404_s7 + $0x20] sm:$0xff] (!%p11722_p5) }
 0x124   : > { %s1054_s30 = scalar_lea.vmem %s18540_s25, %s14406_s14  ;;  %s1062_s3 = scalar_lea.vmem %s18542_s1, %s14406_s14  ;;  %1091 = vst [vmem:[#allocation2 + $0x10] sm:$0xff] (!%p11722_p5), %v1075_v2  ;;  %v1078_v5 = vld [vmem:[%s14404_s7 + $0x28] sm:$0xff] (!%p11722_p5)  ;;  %1092 = vst [vmem:[#allocation2 + $0x18] sm:$0xff] (!%p11722_p5), %v1076_v3  ;;  %v1079_v6 = vld [vmem:[%s14404_s7 + $0x30] sm:$0xff] (!%p11722_p5) }
 0x125   : > { %s1058_s18 = scalar_lea.vmem %s18541_s19, %s14406_s14  ;;  %1093 = vst [vmem:[#allocation2 + $0x20] sm:$0xff] (!%p11722_p5), %v1077_v4  ;;  %1094 = vst [vmem:[#allocation2 + $0x28] sm:$0xff] (!%p11722_p5), %v1078_v5  ;;  %v1080_v7 = vld [vmem:[%s14404_s7 + $0x38] sm:$0xff] (!%p11722_p5)  ;;  %v1081_v8 = vld [vmem:[%s14404_s7 + $0x40] sm:$0xff] (!%p11722_p5) }
 0x126   : > { %s14458_s9 = scalar_lea.vmem %s18543_s8, %s12308_s26  ;;  %1095 = vst [vmem:[#allocation2 + $0x30] sm:$0xff] (!%p11722_p5), %v1079_v6  ;;  %1096 = vst [vmem:[#allocation2 + $0x38] sm:$0xff] (!%p11722_p5), %v1080_v7  ;;  %v1082_v9 = vld [vmem:[%s14404_s7 + $0x48] sm:$0xff] (!%p11722_p5)  ;;  %v1083_v10 = vld [vmem:[%s14404_s7 + $0x50] sm:$0xff] (!%p11722_p5) }
 0x127   : > { %1097 = vst [vmem:[#allocation2 + $0x40] sm:$0xff] (!%p11722_p5), %v1081_v8  ;;  %v1084_v11 = vld [vmem:[%s14404_s7 + $0x58] sm:$0xff] (!%p11722_p5)  ;;  %1098 = vst [vmem:[#allocation2 + $0x48] sm:$0xff] (!%p11722_p5), %v1082_v9  ;;  %v1085_v12 = vld [vmem:[%s14404_s7 + $0x60] sm:$0xff] (!%p11722_p5) }
 0x128   : > { %1099 = vst [vmem:[#allocation2 + $0x50] sm:$0xff] (!%p11722_p5), %v1083_v10  ;;  %1100 = vst [vmem:[#allocation2 + $0x58] sm:$0xff] (!%p11722_p5), %v1084_v11  ;;  %v1086_v13 = vld [vmem:[%s14404_s7 + $0x68] sm:$0xff] (!%p11722_p5)  ;;  %v1087_v14 = vld [vmem:[%s14404_s7 + $0x70] sm:$0xff] (!%p11722_p5) }
 0x129   : > { %1101 = vst [vmem:[#allocation2 + $0x60] sm:$0xff] (!%p11722_p5), %v1085_v12  ;;  %1102 = vst [vmem:[#allocation2 + $0x68] sm:$0xff] (!%p11722_p5), %v1086_v13  ;;  %v1088_v15 = vld [vmem:[%s14404_s7 + $0x78] sm:$0xff] (!%p11722_p5) }
 0x12a   : > { %1103 = vst [vmem:[#allocation2 + $0x70] sm:$0xff] %v1087_v14  ;;  %1104 = vst [vmem:[#allocation2 + $0x78] sm:$0xff] %v1088_v15 }
 0x12b PF: > { %v14479_v16 = vld [vmem:[#allocation2] sm:$0xff]  ;;  %v14481_v17 = vld [vmem:[#allocation2 + $0x8] sm:$0xff]  ;;  %s18547_s7 = sld [smem:[#allocation54_spill]]  ;;  %s18549_s16 = sld [smem:[#allocation55_spill]]  ;;  %vm5379_vm0 = vcmask 523264  }
 0x12c   : > { %v1123_v19 = vadd.f32 %v14481_v17, %v14479_v16  ;;  %v14489_v21 = vld [vmem:[#allocation2 + $0x10] sm:$0xff]  ;;  %v14491_v22 = vld [vmem:[#allocation2 + $0x18] sm:$0xff]  ;;  %s18627_s25 = sld [smem:[#allocation59_spill]]  ;;  %s18644_s19 = sld [smem:[#allocation29_spill]] }
 0x12d   : > { %v14483_v18 = vld [vmem:[#allocation2 + $0x20] sm:$0xff]  ;;  %v14487_v20 = vld [vmem:[#allocation2 + $0x28] sm:$0xff]  ;;  %v1126_v26 = vadd.f32 %v14491_v22, %v14489_v21  ;;  %s18643_s23 = sld [smem:[#allocation28_spill]]  ;;  %s18646_s8 = sld [smem:[#allocation60_spill]] }
 0x12e   : > { %v1129_v23 = vadd.f32 %v14487_v20, %v14483_v18  ;;  %v14495_v24 = vld [vmem:[#allocation2 + $0x30] sm:$0xff]  ;;  %v14497_v25 = vld [vmem:[#allocation2 + $0x38] sm:$0xff]  ;;  %1124 = vadd.xlane.f32.xlu0 %v1123_v19  ;;  %p12300_p8 = scmp.ne.s32.totalorder %s13909_s21, 1 }
 0x12f   : > { %v1132_v27 = vadd.f32 %v14497_v25, %v14495_v24  ;;  %v14503_v28 = vld [vmem:[#allocation2 + $0x40] sm:$0xff]  ;;  %v14505_v29 = vld [vmem:[#allocation2 + $0x48] sm:$0xff] }
 0x130   : > { %1130 = vadd.xlane.f32.xlu1 %v1129_v23  ;;  %v14507_v30 = vld [vmem:[#allocation2 + $0x50] sm:$0xff]  ;;  %v14509_v31 = vld [vmem:[#allocation2 + $0x58] sm:$0xff]  ;;  %v1135_v34 = vadd.f32 %v14505_v29, %v14503_v28 }
 0x131   : > { %v14511_v32 = vld [vmem:[#allocation2 + $0x60] sm:$0xff]  ;;  %v14513_v33 = vld [vmem:[#allocation2 + $0x68] sm:$0xff]  ;;  %v14517_v35 = vld [vmem:[#allocation2 + $0x70] sm:$0xff]  ;;  %v1138_v37 = vadd.f32 %v14509_v31, %v14507_v30  ;;  %s18548_s13 = scalar_lea.vmem %s18547_s7, %s14406_s14  ;;  %s18550_s2 = scalar_lea.vmem %s18549_s16, %s14406_s14 }
 0x132   : > { %1127 = vadd.xlane.f32.xlu0 %v1126_v26  ;;  %v14519_v36 = vld [vmem:[#allocation2 + $0x78] sm:$0xff]  ;;  %v1141_v38 = vadd.f32 %v14513_v33, %v14511_v32  ;;  %v12783_v42 = vld [vmem:[%s14365_s4 + $0x34] ss:$24 sps:$4 sm:$0xff]   ;;  %v12785_v43 = vld [vmem:[%s14365_s4 + $0x30] ss:$24 sps:$4 sm:$0xff]   ;;  %s18628_s22 = scalar_lea.vmem %s18627_s25, %s14406_s14 }
 0x133   : > { %v1144_v39 = vadd.f32 %v14519_v36, %v14517_v35  ;;  %v12780_v40 = vld [vmem:[%s14365_s4 + $0x4] ss:$24 sps:$4 sm:$0xff]   ;;  %v12782_v41 = vld [vmem:[%s14365_s4] ss:$24 sps:$4 sm:$0xff]   ;;  %v12789_v46 = vld [vmem:[%s14365_s4 + $0x94] ss:$24 sps:$4 sm:$0xff]   ;;  %s18647_s17 = scalar_lea.vmem %s18646_s8, %s14406_s14 }
 0x134   : > { %1133 = vadd.xlane.f32.xlu1 %v1132_v27  ;;  %1922 = vmatprep.subr.bf16.mxu1 %v12780_v40  ;;  %v12786_v44 = vld [vmem:[%s14365_s4 + $0x64] ss:$24 sps:$4 sm:$0xff]   ;;  %v12788_v45 = vld [vmem:[%s14365_s4 + $0x60] ss:$24 sps:$4 sm:$0xff]   ;;  %v12791_v47 = vld [vmem:[%s14365_s4 + $0x90] ss:$24 sps:$4 sm:$0xff]  }
 0x135   : > { %1923 = vmatpush1.bf16.msra.mxu1 %v12782_v41  ;;  %v12792_v48 = vld [vmem:[%s14365_s4 + $0xc4] ss:$24 sps:$4 sm:$0xff]   ;;  %v12794_v49 = vld [vmem:[%s14365_s4 + $0xc0] ss:$24 sps:$4 sm:$0xff]   ;;  %v12795_v50 = vld [vmem:[%s14365_s4 + $0xf4] ss:$24 sps:$4 sm:$0xff]  }
 0x136   : > { %1136 = vadd.xlane.f32.xlu0 %v1135_v34  ;;  %1924 = vmatprep.subr.bf16.mxu1 %v12783_v42  ;;  %v12797_v51 = vld [vmem:[%s14365_s4 + $0xf0] ss:$24 sps:$4 sm:$0xff]   ;;  %v12798_v52 = vld [vmem:[%s14365_s4 + $0x124] ss:$24 sps:$4 sm:$0xff]   ;;  %v12800_v53 = vld [vmem:[%s14365_s4 + $0x120] ss:$24 sps:$4 sm:$0xff]  }
 0x137   : > { %v12801_v54 = vld [vmem:[%s14365_s4 + $0x154] ss:$24 sps:$4 sm:$0xff]   ;;  %v12803_v55 = vld [vmem:[%s14365_s4 + $0x150] ss:$24 sps:$4 sm:$0xff]   ;;  %v12804_v56 = vld [vmem:[%s14365_s4 + $0x184] ss:$24 sps:$4 sm:$0xff]  }
 0x138   : > { %1139 = vadd.xlane.f32.xlu1 %v1138_v37  ;;  %v12806_v57 = vld [vmem:[%s14365_s4 + $0x180] ss:$24 sps:$4 sm:$0xff]   ;;  %v12807_v58 = vld [vmem:[%s14365_s4 + $0x1b4] ss:$24 sps:$4 sm:$0xff]  }
 0x139   : > { %1925 = vmatpush1.bf16.msra.mxu1 %v12785_v43 }
 0x13a   : > { %1142 = vadd.xlane.f32.xlu0 %v1141_v38  ;;  %1926 = vmatprep.subr.bf16.mxu1 %v12786_v44 }
 0x13c   : > { %1145 = vadd.xlane.f32.xlu1 %v1144_v39 }
 0x13d   : > { %1927 = vmatpush1.bf16.msra.mxu1 %v12788_v45 }
 0x13e   : > { %1928 = vmatprep.subr.bf16.mxu1 %v12789_v46 }
 0x141   : > { %1929 = vmatpush1.bf16.msra.mxu1 %v12791_v47 }
 0x142   : > { %1930 = vmatprep.subr.bf16.mxu1 %v12792_v48 }
 0x145   : > { %1931 = vmatpush1.bf16.msra.mxu1 %v12794_v49 }
 0x146   : > { %1932 = vmatprep.subr.bf16.mxu1 %v12795_v50 }
 0x149   : > { %1933 = vmatpush1.bf16.msra.mxu1 %v12797_v51  ;;  %v12809_v51 = vld [vmem:[%s14365_s4 + $0x1b0] ss:$24 sps:$4 sm:$0xff]  }
 0x14a   : > { %1934 = vmatprep.subr.bf16.mxu1 %v12798_v52  ;;  %v12810_v52 = vld [vmem:[%s14365_s4 + $0x1e4] ss:$24 sps:$4 sm:$0xff]  }
 0x14d   : > { %1935 = vmatpush1.bf16.msra.mxu1 %v12800_v53  ;;  %v12812_v53 = vld [vmem:[%s14365_s4 + $0x1e0] ss:$24 sps:$4 sm:$0xff]  }
 0x14e   : > { %1936 = vmatprep.subr.bf16.mxu1 %v12801_v54  ;;  %v12813_v54 = vld [vmem:[%s14365_s4 + $0x214] ss:$24 sps:$4 sm:$0xff]  }
 0x151   : > { %1937 = vmatpush1.bf16.msra.mxu1 %v12803_v55  ;;  %v12815_v55 = vld [vmem:[%s14365_s4 + $0x210] ss:$24 sps:$4 sm:$0xff]  }
 0x152   : > { %1938 = vmatprep.subr.bf16.mxu1 %v12804_v56  ;;  %v12816_v56 = vld [vmem:[%s14365_s4 + $0x244] ss:$24 sps:$4 sm:$0xff]  }
 0x155   : > { %1939 = vmatpush1.bf16.msra.mxu1 %v12806_v57  ;;  %v12818_v57 = vld [vmem:[%s14365_s4 + $0x240] ss:$24 sps:$4 sm:$0xff]  }
 0x156   : > { %1940 = vmatprep.subr.bf16.mxu1 %v12807_v58  ;;  %v12819_v58 = vld [vmem:[%s14365_s4 + $0x274] ss:$24 sps:$4 sm:$0xff]  }
 0x159   : > { %1941 = vmatpush1.bf16.msra.mxu1 %v12809_v51 }
 0x15a   : > { %1942 = vmatprep.subr.bf16.mxu1 %v12810_v52 }
 0x15d   : > { %1943 = vmatpush1.bf16.msra.mxu1 %v12812_v53 }
 0x15e   : > { %1944 = vmatprep.subr.bf16.mxu1 %v12813_v54 }
 0x161   : > { %1945 = vmatpush1.bf16.msra.mxu1 %v12815_v55 }
 0x162   : > { %1946 = vmatprep.subr.bf16.mxu1 %v12816_v56 }
 0x165   : > { %1947 = vmatpush1.bf16.msra.mxu1 %v12818_v57 }
 0x166   : > { %1948 = vmatprep.subr.bf16.mxu1 %v12819_v58 }
 0x1bb   : > { %v1125_v59 = vpop.xlane.xlu0 %1124 }
 0x1bc   : > { %v1148_v60 = vmul.f32 0.00390625, %v1125_v59  ;;  %v12821_v59 = vld [vmem:[%s14365_s4 + $0x270] ss:$24 sps:$4 sm:$0xff]  }
 0x1bd   : > { %v1131_v61 = vpop.xlane.xlu1 %1130  ;;  %1949 = vmatpush1.bf16.msra.mxu1 %v12821_v59 }
 0x1be   : > { %v1150_v62 = vmul.f32 0.00390625, %v1131_v61  ;;  %v14547_v63 = vsub.f32 %v14479_v16, %v1148_v60  ;;  %v14550_v0 = vsub.f32 %v14481_v17, %v1148_v60  ;;  %v12822_v60 = vld [vmem:[%s14365_s4 + $0x2a4] ss:$24 sps:$4 sm:$0xff]   ;;  %v12824_v61 = vld [vmem:[%s14365_s4 + $0x2a0] ss:$24 sps:$4 sm:$0xff]  }
 0x1bf   : > { %v1128_v3 = vpop.xlane.xlu0 %1127  ;;  %1950 = vmatprep.subr.bf16.mxu1 %v12822_v60 }
 0x1c0   : > { %v14553_v1 = vsub.f32 %v14483_v18, %v1150_v62  ;;  %v14556_v2 = vsub.f32 %v14487_v20, %v1150_v62  ;;  %v1149_v4 = vmul.f32 0.00390625, %v1128_v3  ;;  %v1172_v6 = vmul.f32 %v14547_v63, %v14547_v63  ;;  %v12825_v62 = vld [vmem:[%s14365_s4 + $0x2d4] ss:$24 sps:$4 sm:$0xff]   ;;  %v12827_v3 = vld [vmem:[%s14365_s4 + $0x2d0] ss:$24 sps:$4 sm:$0xff]  }
 0x1c1   : > { %v1134_v5 = vpop.xlane.xlu1 %1133  ;;  %v1173_v7 = vmul.f32 %v14550_v0, %v14550_v0  ;;  %1951 = vmatpush1.bf16.msra.mxu1 %v12824_v61 }
 0x1c2   : > { %v1151_v8 = vmul.f32 0.00390625, %v1134_v5  ;;  %v1176_v9 = vmul.f32 %v14553_v1, %v14553_v1  ;;  %v1177_v10 = vmul.f32 %v14556_v2, %v14556_v2  ;;  %v14567_v11 = vsub.f32 %v14489_v21, %v1149_v4  ;;  %1952 = vmatprep.subr.bf16.mxu1 %v12825_v62 }
 0x1c3   : > { %v14570_v12 = vsub.f32 %v14491_v22, %v1149_v4  ;;  %v1188_v13 = vadd.f32 %v1173_v7, %v1172_v6  ;;  %v1137_v16 = vpop.xlane.xlu0 %1136  ;;  %v12830_v4 = vld [vmem:[%s14365_s4 + $0xc] ss:$24 sps:$4 sm:$0xff]  }
 0x1c4   : > { %v14573_v14 = vsub.f32 %v14495_v24, %v1151_v8  ;;  %v14576_v15 = vsub.f32 %v14497_v25, %v1151_v8  ;;  %v1152_v17 = vmul.f32 0.00390625, %v1137_v16  ;;  %v1194_v19 = vadd.f32 %v1177_v10, %v1176_v9 }
 0x1c5   : > { %1189 = vadd.xlane.f32.xlu0 %v1188_v13  ;;  %v1140_v18 = vpop.xlane.xlu1 %1139  ;;  %v1174_v20 = vmul.f32 %v14567_v11, %v14567_v11  ;;  %v1175_v21 = vmul.f32 %v14570_v12, %v14570_v12  ;;  %1953 = vmatpush1.bf16.msra.mxu1 %v12827_v3  ;;  %v1253_v8 = vlaneseq }
 0x1c6   : > { %v1153_v22 = vmul.f32 0.00390625, %v1140_v18  ;;  %v1178_v23 = vmul.f32 %v14573_v14, %v14573_v14  ;;  %v1179_v24 = vmul.f32 %v14576_v15, %v14576_v15  ;;  %v14587_v25 = vsub.f32 %v14503_v28, %v1152_v17  ;;  %1995 = vmatprep.subr.bf16.mxu1 %v12830_v4 }
 0x1c7   : > { %v14590_v26 = vsub.f32 %v14505_v29, %v1152_v17  ;;  %v1191_v27 = vadd.f32 %v1175_v21, %v1174_v20  ;;  %v1143_v38 = vpop.xlane.xlu0 %1142 }
 0x1c8   : > { %v14593_v34 = vsub.f32 %v14507_v30, %v1153_v22  ;;  %v14596_v37 = vsub.f32 %v14509_v31, %v1153_v22  ;;  %v1154_v39 = vmul.f32 0.00390625, %v1143_v38  ;;  %v1197_v41 = vadd.f32 %v1179_v24, %v1178_v23 }
 0x1c9   : > { %1195 = vadd.xlane.f32.xlu0 %v1194_v19  ;;  %1192 = vadd.xlane.f32.xlu1 %v1191_v27  ;;  %v1146_v40 = vpop.xlane.xlu1 %1145  ;;  %v1180_v28 = vmul.f32 %v14587_v25, %v14587_v25  ;;  %v1181_v29 = vmul.f32 %v14590_v26, %v14590_v26  ;;  %v14640_v19 = vshrl.u32 %v1253_v8, 7 }
 0x1ca   : > { %v1155_v42 = vmul.f32 0.00390625, %v1146_v40  ;;  %v1182_v30 = vmul.f32 %v14593_v34, %v14593_v34  ;;  %v1183_v31 = vmul.f32 %v14596_v37, %v14596_v37  ;;  %v14607_v43 = vsub.f32 %v14511_v32, %v1154_v39 }
 0x1cb   : > { %v14610_v44 = vsub.f32 %v14513_v33, %v1154_v39  ;;  %v1200_v45 = vadd.f32 %v1181_v29, %v1180_v28  ;;  %18544 = vst [vmem:[#allocation30_spill] sm:$0xff] %v14640_v19  ;;  %v14643_v38 = vsub.s32 1, %v14640_v19  ;;  %v14646_v39 = vsub.s32 0, %v14640_v19  ;;  %v1121_v28 = vld [vmem:[%s18548_s13] sm:$0x3] }
 0x1cc   : > { %v14613_v46 = vsub.f32 %v14517_v35, %v1155_v42  ;;  %v14616_v47 = vsub.f32 %v14519_v36, %v1155_v42  ;;  %v1203_v48 = vadd.f32 %v1183_v31, %v1182_v30  ;;  %v1184_v32 = vmul.f32 %v14607_v43, %v14607_v43 }
 0x1cd   : > { %1198 = vadd.xlane.f32.xlu1 %v1197_v41  ;;  %1201 = vadd.xlane.f32.xlu0 %v1200_v45  ;;  %v1185_v33 = vmul.f32 %v14610_v44, %v14610_v44  ;;  %18545 = vst [vmem:[#allocation31_spill] sm:$0xff] %v14643_v38  ;;  %18546 = vst [vmem:[#allocation32_spill] sm:$0xff] %v14646_v39  ;;  %v1122_v45 = vld [vmem:[%s18550_s2] sm:$0x3] }
 0x1ce   : > { %v1186_v49 = vmul.f32 %v14613_v46, %v14613_v46  ;;  %v1187_v35 = vmul.f32 %v14616_v47, %v14616_v47  ;;  %v14667_v51 = vrot.slane %v1122_v45, %v14643_v38  ;;  %v14672_v56 = vrot.slane %v1122_v45, %v14646_v39  ;;  %v12834_v45 = vld [vmem:[%s14365_s4 + $0x68] ss:$24 sps:$4 sm:$0xff]  }
 0x1cf   : > { %v1206_v36 = vadd.f32 %v1185_v33, %v1184_v32  ;;  %v14662_v32 = vrot.slane %v1121_v28, %v14646_v39 }
 0x1d0   : > { %v1209_v50 = vadd.f32 %v1187_v35, %v1186_v49 }
 0x1d1   : > { %1204 = vadd.xlane.f32.xlu1 %v1203_v48  ;;  %1207 = vadd.xlane.f32.xlu0 %v1206_v36  ;;  %v14659_v48 = vrot.slane %v1121_v28, %v14643_v38 }
 0x1d5   : > { %1210 = vadd.xlane.f32.xlu1 %v1209_v50 }
 0x252   : > { %v1190_v5 = vpop.xlane.xlu0 %1189 }
 0x253   : > { %v1212_v6 = vmul.f32 0.00390625, %v1190_v5 }
 0x255   : > { %v1220_v7 = vadd.f32 1e-05, %v1212_v6 }
 0x256   : > { %v1193_v9 = vpop.xlane.xlu1 %1192  ;;  %v1196_v10 = vpop.xlane.xlu0 %1195 }
 0x257   : > { %13204 = vrsqrt.f32 %v1220_v7  ;;  %v1213_v13 = vmul.f32 0.00390625, %v1193_v9  ;;  %v1214_v16 = vmul.f32 0.00390625, %v1196_v10  ;;  %v12828_v9 = vld [vmem:[%s14365_s4 + $0x8] ss:$24 sps:$4 sm:$0xff]  }
 0x259   : > { %v1221_v17 = vadd.f32 1e-05, %v1213_v13  ;;  %v1222_v18 = vadd.f32 1e-05, %v1214_v16 }
 0x25a   : > { %v1199_v20 = vpop.xlane.xlu1 %1198  ;;  %v1202_v21 = vpop.xlane.xlu0 %1201 }
 0x25b   : > { %13206 = vrsqrt.f32 %v1221_v17  ;;  %v1215_v22 = vmul.f32 0.00390625, %v1199_v20  ;;  %v1216_v23 = vmul.f32 0.00390625, %v1202_v21 }
 0x25c   : > { %13208 = vrsqrt.f32 %v1222_v18  ;;  %v12833_v18 = vld [vmem:[%s14365_s4 + $0x3c] ss:$24 sps:$4 sm:$0xff]  }
 0x25d   : > { %v1223_v24 = vadd.f32 1e-05, %v1215_v22  ;;  %v1224_v27 = vadd.f32 1e-05, %v1216_v23  ;;  %v12831_v23 = vld [vmem:[%s14365_s4 + $0x38] ss:$24 sps:$4 sm:$0xff]  }
 0x25e   : > { %v1205_v40 = vpop.xlane.xlu1 %1204  ;;  %v1208_v41 = vpop.xlane.xlu0 %1207 }
 0x25f   : > { %13210 = vrsqrt.f32 %v1223_v24  ;;  %v1217_v29 = vmul.f32 0.00390625, %v1205_v40  ;;  %v1218_v42 = vmul.f32 0.00390625, %v1208_v41  ;;  %v12836_v41 = vld [vmem:[%s14365_s4 + $0x6c] ss:$24 sps:$4 sm:$0xff]  }
 0x260   : > { %13212 = vrsqrt.f32 %v1224_v27 }
 0x261   : > { %v13205_v30 = vpop.eup %13204  ;;  %v1225_v31 = vadd.f32 1e-05, %v1217_v29  ;;  %v1226_v33 = vadd.f32 1e-05, %v1218_v42 }
 0x262   : > { %v1211_v49 = vpop.xlane.xlu1 %1210  ;;  %v1237_v35 = vmul.f32 %v13205_v30, %v14550_v0  ;;  %v1236_v36 = vmul.f32 %v13205_v30, %v14547_v63 }
 0x263   : > { %13214 = vrsqrt.f32 %v1225_v31  ;;  %v1219_v50 = vmul.f32 0.00390625, %v1211_v49 }
 0x264   : > { %v1264_v54 = vmul.f32 %v14659_v48, %v1237_v35  ;;  %v1263_v55 = vmul.f32 %v14662_v32, %v1236_v36  ;;  %13216 = vrsqrt.f32 %v1226_v33  ;;  %v12839_v35 = vld [vmem:[%s14365_s4 + $0x9c] ss:$24 sps:$4 sm:$0xff]  }
 0x265   : > { %v13207_v52 = vpop.eup %13206  ;;  %v1227_v53 = vadd.f32 1e-05, %v1219_v50 }
 0x266   : > { %v13209_v57 = vpop.eup %13208  ;;  %v1239_v0 = vmul.f32 %v13207_v52, %v14570_v12  ;;  %v1238_v63 = vmul.f32 %v13207_v52, %v14567_v11  ;;  %v1291_v62 = vadd.f32 %v14667_v51, %v1264_v54  ;;  %v1290_v3 = vadd.f32 %v14672_v56, %v1263_v55 }
 0x267   : > { %13218 = vrsqrt.f32 %v1227_v53  ;;  %v1241_v58 = vmul.f32 %v13209_v57, %v14556_v2  ;;  %v1240_v7 = vmul.f32 %v13209_v57, %v14553_v1  ;;  %v12842_v53 = vld [vmem:[%s14365_s4 + $0xcc] ss:$24 sps:$4 sm:$0xff]  }
 0x268   : > { %v1266_v59 = vmul.f32 %v14659_v48, %v1239_v0  ;;  %v1265_v60 = vmul.f32 %v14662_v32, %v1238_v63 }
 0x269   : > { %v13211_v61 = vpop.eup %13210  ;;  %v1268_v4 = vmul.f32 %v14659_v48, %v1241_v58  ;;  %v1267_v21 = vmul.f32 %v14662_v32, %v1240_v7  ;;  %v12840_v58 = vld [vmem:[%s14365_s4 + $0xc8] ss:$24 sps:$4 sm:$0xff]   ;;  %v12855_v7 = vld [vmem:[%s14365_s4 + $0x1b8] ss:$24 sps:$4 sm:$0xff]  }
 0x26a   : > { %v13213_v5 = vpop.eup %13212  ;;  %v1293_v12 = vadd.f32 %v14667_v51, %v1266_v59  ;;  %v1292_v11 = vadd.f32 %v14672_v56, %v1265_v60  ;;  %v1243_v6 = vmul.f32 %v13211_v61, %v14576_v15  ;;  %v1242_v2 = vmul.f32 %v13211_v61, %v14573_v14  ;;  %v12845_v60 = vld [vmem:[%s14365_s4 + $0xfc] ss:$24 sps:$4 sm:$0xff]  }
 0x26b   : > { %v1245_v16 = vmul.f32 %v13213_v5, %v14590_v26  ;;  %v1295_v14 = vadd.f32 %v14667_v51, %v1268_v4  ;;  %v1294_v30 = vadd.f32 %v14672_v56, %v1267_v21  ;;  %v1244_v31 = vmul.f32 %v13213_v5, %v14587_v25  ;;  %v12846_v5 = vld [vmem:[%s14365_s4 + $0x128] ss:$24 sps:$4 sm:$0xff]  }
 0x26c   : > { %v14687_v8 = vpack.c.bf16 %v1293_v12, %v1291_v62  ;;  %v14690_v10 = vpack.c.bf16 %v1292_v11, %v1290_v3  ;;  %v1270_v13 = vmul.f32 %v14659_v48, %v1243_v6  ;;  %v1269_v20 = vmul.f32 %v14662_v32, %v1242_v2  ;;  %v12851_v12 = vld [vmem:[%s14365_s4 + $0x15c] ss:$24 sps:$4 sm:$0xff]   ;;  %v12849_v11 = vld [vmem:[%s14365_s4 + $0x158] ss:$24 sps:$4 sm:$0xff]   ;;  %v12854_v6 = vld [vmem:[%s14365_s4 + $0x18c] ss:$24 sps:$4 sm:$0xff]  }
 0x26d   : > { %v13215_v17 = vpop.eup %13214  ;;  %v1272_v24 = vmul.f32 %v14659_v48, %v1245_v16  ;;  %v1271_v25 = vmul.f32 %v14662_v32, %v1244_v31  ;;  %v12857_v2 = vld [vmem:[%s14365_s4 + $0x1bc] ss:$24 sps:$4 sm:$0xff]   ;;  %v12870_v21 = vld [vmem:[%s14365_s4 + $0x2a8] ss:$24 sps:$4 sm:$0xff]  }
 0x26e   : > { %1954 = vmatprep.mubr.bf16.mxu1 %v14687_v8  ;;  %v1297_v1 = vadd.f32 %v14667_v51, %v1270_v13  ;;  %v1247_v15 = vmul.f32 %v13215_v17, %v14596_v37  ;;  %v13217_v22 = vpop.eup %13216  ;;  %v1296_v37 = vadd.f32 %v14672_v56, %v1269_v20  ;;  %v1246_v28 = vmul.f32 %v13215_v17, %v14593_v34  ;;  %v12858_v13 = vld [vmem:[%s14365_s4 + $0x1e8] ss:$24 sps:$4 sm:$0xff]   ;;  %v12863_v16 = vld [vmem:[%s14365_s4 + $0x21c] ss:$24 sps:$4 sm:$0xff]   ;;  %v12861_v17 = vld [vmem:[%s14365_s4 + $0x218] ss:$24 sps:$4 sm:$0xff]  }
 0x26f   : > { %1955 = vmatmul.mubr.bf16.vlgmr.msra.gmra.mrb[0].mxu1 %v14690_v10  ;;  %v1299_v33 = vadd.f32 %v14667_v51, %v1272_v24  ;;  %v1249_v49 = vmul.f32 %v13217_v22, %v14610_v44  ;;  %v12837_v44 = vld [vmem:[%s14365_s4 + $0x98] ss:$24 sps:$4 sm:$0xff]   ;;  %v1298_v0 = vadd.f32 %v14672_v56, %v1271_v25  ;;  %v1248_v63 = vmul.f32 %v13217_v22, %v14607_v43  ;;  %v12864_v20 = vld [vmem:[%s14365_s4 + $0x248] ss:$24 sps:$4 sm:$0xff]   ;;  %v12875_v22 = vld [vmem:[%s14365_s4 + $0x2dc] ss:$24 sps:$4 sm:$0xff]  }
 0x270   : > { %1996 = vmatpush1.bf16.msra.mxu1 %v12828_v9  ;;  %v14702_v26 = vpack.c.bf16 %v1297_v1, %v1295_v14  ;;  %v1274_v27 = vmul.f32 %v14659_v48, %v1247_v15  ;;  %v14718_v34 = vpack.c.bf16 %v1296_v37, %v1294_v30  ;;  %v1273_v36 = vmul.f32 %v14662_v32, %v1246_v28  ;;  %v12843_v43 = vld [vmem:[%s14365_s4 + $0xf8] ss:$24 sps:$4 sm:$0xff]   ;;  %v12860_v9 = vld [vmem:[%s14365_s4 + $0x1ec] ss:$24 sps:$4 sm:$0xff]   ;;  %v12869_v14 = vld [vmem:[%s14365_s4 + $0x27c] ss:$24 sps:$4 sm:$0xff]  }
 0x271   : > { %v13219_v40 = vpop.eup %13218  ;;  %1997 = vmatprep.subr.bf16.mxu1 %v12833_v18  ;;  %v1276_v52 = vmul.f32 %v14659_v48, %v1249_v49  ;;  %v1275_v62 = vmul.f32 %v14662_v32, %v1248_v63  ;;  %v12866_v18 = vld [vmem:[%s14365_s4 + $0x24c] ss:$24 sps:$4 sm:$0xff]   ;;  %v12867_v1 = vld [vmem:[%s14365_s4 + $0x278] ss:$24 sps:$4 sm:$0xff]  }
 0x272   : > { %1964 = vmatprep.mubr.bf16.mxu1 %v14702_v26  ;;  %v1301_v29 = vadd.f32 %v14667_v51, %v1274_v27  ;;  %v1251_v42 = vmul.f32 %v13219_v40, %v14616_v47  ;;  %v1300_v54 = vadd.f32 %v14672_v56, %v1273_v36  ;;  %v1250_v55 = vmul.f32 %v13219_v40, %v14613_v46  ;;  %v12872_v15 = vld [vmem:[%s14365_s4 + $0x2ac] ss:$24 sps:$4 sm:$0xff]   ;;  %v12876_v27 = vld [vmem:[%s14365_s4 + $0x10] ss:$24 sps:$4 sm:$0xff]  }
 0x273   : > { %v1303_v59 = vadd.f32 %v14667_v51, %v1276_v52  ;;  %v1302_v4 = vadd.f32 %v14672_v56, %v1275_v62  ;;  %v12878_v24 = vld [vmem:[%s14365_s4 + $0x14] ss:$24 sps:$4 sm:$0xff]   ;;  %v12881_v40 = vld [vmem:[%s14365_s4 + $0x44] ss:$24 sps:$4 sm:$0xff]   ;;  %v12882_v28 = vld [vmem:[%s14365_s4 + $0x70] ss:$24 sps:$4 sm:$0xff]  }
 0x274   : > { %1998 = vmatpush1.bf16.msra.mxu1 %v12831_v23  ;;  %v14722_v50 = vpack.c.bf16 %v1301_v29, %v1299_v33  ;;  %v1278_v47 = vmul.f32 %v14659_v48, %v1251_v42  ;;  %v14738_v48 = vpack.c.bf16 %v1300_v54, %v1298_v0  ;;  %v1277_v46 = vmul.f32 %v14662_v32, %v1250_v55  ;;  %v12873_v23 = vld [vmem:[%s14365_s4 + $0x2d8] ss:$24 sps:$4 sm:$0xff]   ;;  %v12884_v37 = vld [vmem:[%s14365_s4 + $0x74] ss:$24 sps:$4 sm:$0xff]   ;;  %v12887_v29 = vld [vmem:[%s14365_s4 + $0xa4] ss:$24 sps:$4 sm:$0xff]  }
 0x275   : > { %1999 = vmatprep.subr.bf16.mxu1 %v12836_v41  ;;  %v12879_v41 = vld [vmem:[%s14365_s4 + $0x40] ss:$24 sps:$4 sm:$0xff]   ;;  %v12890_v30 = vld [vmem:[%s14365_s4 + $0xd4] ss:$24 sps:$4 sm:$0xff]   ;;  %v12888_v31 = vld [vmem:[%s14365_s4 + $0xd0] ss:$24 sps:$4 sm:$0xff]  }
 0x276   : > { %v1305_v57 = vadd.f32 %v14667_v51, %v1278_v47  ;;  %v12848_v51 = vld [vmem:[%s14365_s4 + $0x12c] ss:$24 sps:$4 sm:$0xff]   ;;  %v1304_v3 = vadd.f32 %v14672_v56, %v1277_v46  ;;  %v12852_v56 = vld [vmem:[%s14365_s4 + $0x188] ss:$24 sps:$4 sm:$0xff]  }
 0x277   : > { %1965 = vmatmul.mubr.bf16.gmra.mrb[4].mxu1 %v14718_v34  ;;  %v12885_v42 = vld [vmem:[%s14365_s4 + $0xa0] ss:$24 sps:$4 sm:$0xff]   ;;  %v12896_v49 = vld [vmem:[%s14365_s4 + $0x134] ss:$24 sps:$4 sm:$0xff]   ;;  %v12899_v36 = vld [vmem:[%s14365_s4 + $0x164] ss:$24 sps:$4 sm:$0xff]  }
 0x278   : > { %2000 = vmatpush1.bf16.msra.mxu1 %v12834_v45  ;;  %1974 = vmatprep.mubr.bf16.mxu1 %v14722_v50  ;;  %v14742_v61 = vpack.c.bf16 %v1305_v57, %v1303_v59  ;;  %v14752_v32 = vpack.c.bf16 %v1304_v3, %v1302_v4  ;;  %v12893_v45 = vld [vmem:[%s14365_s4 + $0x104] ss:$24 sps:$4 sm:$0xff]   ;;  %v12891_v33 = vld [vmem:[%s14365_s4 + $0x100] ss:$24 sps:$4 sm:$0xff]   ;;  %v12902_v25 = vld [vmem:[%s14365_s4 + $0x194] ss:$24 sps:$4 sm:$0xff]  }
 0x279   : > { %2001 = vmatprep.subr.bf16.mxu1 %v12839_v35  ;;  %v12894_v35 = vld [vmem:[%s14365_s4 + $0x130] ss:$24 sps:$4 sm:$0xff]   ;;  %v12897_v47 = vld [vmem:[%s14365_s4 + $0x160] ss:$24 sps:$4 sm:$0xff]   ;;  %v12905_v52 = vld [vmem:[%s14365_s4 + $0x1c4] ss:$24 sps:$4 sm:$0xff]  }
 0x27a   : > { %v12908_v54 = vld [vmem:[%s14365_s4 + $0x1f4] ss:$24 sps:$4 sm:$0xff]   ;;  %v12906_v55 = vld [vmem:[%s14365_s4 + $0x1f0] ss:$24 sps:$4 sm:$0xff]   ;;  %v12909_v57 = vld [vmem:[%s14365_s4 + $0x220] ss:$24 sps:$4 sm:$0xff]  }
 0x27b   : > { %v12914_v0 = vld [vmem:[%s14365_s4 + $0x254] ss:$24 sps:$4 sm:$0xff]   ;;  %v12912_v63 = vld [vmem:[%s14365_s4 + $0x250] ss:$24 sps:$4 sm:$0xff]   ;;  %v12915_v59 = vld [vmem:[%s14365_s4 + $0x280] ss:$24 sps:$4 sm:$0xff]  }
 0x27c   : > { %2002 = vmatpush1.bf16.msra.mxu1 %v12837_v44  ;;  %v12900_v44 = vld [vmem:[%s14365_s4 + $0x190] ss:$24 sps:$4 sm:$0xff]   ;;  %v12923_v62 = vld [vmem:[%s14365_s4 + $0x2e4] ss:$24 sps:$4 sm:$0xff]  }
 0x27d   : > { %2003 = vmatprep.subr.bf16.mxu1 %v12842_v53  ;;  %v12903_v53 = vld [vmem:[%s14365_s4 + $0x1c0] ss:$24 sps:$4 sm:$0xff]   ;;  %v12918_v46 = vld [vmem:[%s14365_s4 + $0x2b0] ss:$24 sps:$4 sm:$0xff]  }
 0x27f   : > { %1975 = vmatmul.mubr.bf16.gmra.mrb[8].mxu1 %v14738_v48 }
 0x280   : > { %2004 = vmatpush1.bf16.msra.mxu1 %v12840_v58  ;;  %1984 = vmatprep.mubr.bf16.mxu1 %v14742_v61  ;;  %v12917_v58 = vld [vmem:[%s14365_s4 + $0x284] ss:$24 sps:$4 sm:$0xff]  }
 0x281   : > { %2005 = vmatprep.subr.bf16.mxu1 %v12845_v60  ;;  %v12920_v60 = vld [vmem:[%s14365_s4 + $0x2b4] ss:$24 sps:$4 sm:$0xff]  }
 0x284   : > { %2006 = vmatpush1.bf16.msra.mxu1 %v12843_v43  ;;  %v12921_v43 = vld [vmem:[%s14365_s4 + $0x2e0] ss:$24 sps:$4 sm:$0xff]  }
 0x285   : > { %2007 = vmatprep.subr.bf16.mxu1 %v12848_v51  ;;  %v14822_v51 = vld [vmem:[%s14428_s12] sm:$0x3f]  ;;  %s13942_s12 = smov 64  }
 0x286   : > { %v1415_v3 = vrot.slane %v14822_v51, %v14646_v39 }
 0x287   : > { %1985 = vmatmul.mubr.bf16.gmra.mrb[12].mxu1 %v14752_v32 }
 0x288   : > { %2008 = vmatpush1.bf16.msra.mxu1 %v12846_v5  ;;  %2027 = vmatprep.mubr.bf16.mxu1 %v14687_v8 }
 0x289   : > { %2009 = vmatprep.subr.bf16.mxu1 %v12851_v12 }
 0x28c   : > { %2010 = vmatpush1.bf16.msra.mxu1 %v12849_v11 }
 0x28d   : > { %2011 = vmatprep.subr.bf16.mxu1 %v12854_v6 }
 0x290   : > { %2012 = vmatpush1.bf16.msra.mxu1 %v12852_v56 }
 0x291   : > { %2013 = vmatprep.subr.bf16.mxu1 %v12857_v2 }
 0x294   : > { %2014 = vmatpush1.bf16.msra.mxu1 %v12855_v7 }
 0x295   : > { %2015 = vmatprep.subr.bf16.mxu1 %v12860_v9 }
 0x298   : > { %2016 = vmatpush1.bf16.msra.mxu1 %v12858_v13 }
 0x299   : > { %2017 = vmatprep.subr.bf16.mxu1 %v12863_v16 }
 0x29c   : > { %2018 = vmatpush1.bf16.msra.mxu1 %v12861_v17 }
 0x29d   : > { %2019 = vmatprep.subr.bf16.mxu1 %v12866_v18 }
 0x2a0   : > { %2020 = vmatpush1.bf16.msra.mxu1 %v12864_v20 }
 0x2a1   : > { %2021 = vmatprep.subr.bf16.mxu1 %v12869_v14 }
 0x2a4   : > { %2022 = vmatpush1.bf16.msra.mxu1 %v12867_v1 }
 0x2a5   : > { %2023 = vmatprep.subr.bf16.mxu1 %v12872_v15 }
 0x2a8   : > { %2024 = vmatpush1.bf16.msra.mxu1 %v12870_v21 }
 0x2a9   : > { %2025 = vmatprep.subr.bf16.mxu1 %v12875_v22 }
 0x2ac   : > { %2026 = vmatpush1.bf16.msra.mxu1 %v12873_v23 }
 0x2ad   : > { %2068 = vmatprep.subr.bf16.mxu1 %v12878_v24 }
 0x2af   : > { %2028 = vmatmul.mubr.bf16.vlgmr.msra.gmra.mrb[16].mxu1 %v14690_v10 }
 0x2b0   : > { %2037 = vmatprep.mubr.bf16.mxu1 %v14702_v26  ;;  %2069 = vmatpush1.bf16.msra.mxu1 %v12876_v27 }
 0x2b1   : > { %2070 = vmatprep.subr.bf16.mxu1 %v12881_v40 }
 0x2b4   : > { %2071 = vmatpush1.bf16.msra.mxu1 %v12879_v41 }
 0x2b5   : > { %2072 = vmatprep.subr.bf16.mxu1 %v12884_v37 }
 0x2b7   : > { %2038 = vmatmul.mubr.bf16.gmra.mrb[20].mxu1 %v14718_v34 }
 0x2b8   : > { %2047 = vmatprep.mubr.bf16.mxu1 %v14722_v50  ;;  %2073 = vmatpush1.bf16.msra.mxu1 %v12882_v28 }
 0x2b9   : > { %2074 = vmatprep.subr.bf16.mxu1 %v12887_v29 }
 0x2bc   : > { %2075 = vmatpush1.bf16.msra.mxu1 %v12885_v42 }
 0x2bd   : > { %2076 = vmatprep.subr.bf16.mxu1 %v12890_v30 }
 0x2bf   : > { %2048 = vmatmul.mubr.bf16.gmra.mrb[24].mxu1 %v14738_v48 }
 0x2c0   : > { %2057 = vmatprep.mubr.bf16.mxu1 %v14742_v61  ;;  %2077 = vmatpush1.bf16.msra.mxu1 %v12888_v31 }
 0x2c1   : > { %2078 = vmatprep.subr.bf16.mxu1 %v12893_v45 }
 0x2c4   : > { %2079 = vmatpush1.bf16.msra.mxu1 %v12891_v33 }
 0x2c5   : > { %2080 = vmatprep.subr.bf16.mxu1 %v12896_v49 }
 0x2c7   : > { %2058 = vmatmul.mubr.bf16.gmra.mrb[28].mxu1 %v14752_v32 }
 0x2c8   : > { %2081 = vmatpush1.bf16.msra.mxu1 %v12894_v35  ;;  %2100 = vmatprep.mubr.bf16.mxu1 %v14687_v8  ;;  %v12911_v8 = vld [vmem:[%s14365_s4 + $0x224] ss:$24 sps:$4 sm:$0xff]  }
 0x2c9   : > { %2082 = vmatprep.subr.bf16.mxu1 %v12899_v36  ;;  %v18429_v36 = vsub.s32 2, %v14640_v19 }
 0x2cc   : > { %2083 = vmatpush1.bf16.msra.mxu1 %v12897_v47  ;;  %v18428_v47 = vsub.s32 3, %v14640_v19 }
 0x2cd   : > { %2084 = vmatprep.subr.bf16.mxu1 %v12902_v25  ;;  %v1423_v25 = vrot.slane %v14822_v51, %v18429_v36 }
 0x2d0   : > { %2085 = vmatpush1.bf16.msra.mxu1 %v12900_v44 }
 0x2d1   : > { %2086 = vmatprep.subr.bf16.mxu1 %v12905_v52  ;;  %v1427_v52 = vrot.slane %v14822_v51, %v18428_v47 }
 0x2d4   : > { %2087 = vmatpush1.bf16.msra.mxu1 %v12903_v53 }
 0x2d5   : > { %2088 = vmatprep.subr.bf16.mxu1 %v12908_v54 }
 0x2d8   : > { %2089 = vmatpush1.bf16.msra.mxu1 %v12906_v55 }
 0x2d9   : > { %2090 = vmatprep.subr.bf16.mxu1 %v12911_v8 }
 0x2dc   : > { %2091 = vmatpush1.bf16.msra.mxu1 %v12909_v57 }
 0x2dd   : > { %2092 = vmatprep.subr.bf16.mxu1 %v12914_v0 }
 0x2e0   : > { %2093 = vmatpush1.bf16.msra.mxu1 %v12912_v63 }
 0x2e1   : > { %2094 = vmatprep.subr.bf16.mxu1 %v12917_v58 }
 0x2e4   : > { %2095 = vmatpush1.bf16.msra.mxu1 %v12915_v59 }
 0x2e5   : > { %2096 = vmatprep.subr.bf16.mxu1 %v12920_v60 }
 0x2e8   : > { %2097 = vmatpush1.bf16.msra.mxu1 %v12918_v46 }
 0x2e9   : > { %2098 = vmatprep.subr.bf16.mxu1 %v12923_v62 }
 0x2ec   : > { %2099 = vmatpush1.bf16.msra.mxu1 %v12921_v43 }
 0x2ef   : > { %2101 = vmatmul.mubr.bf16.vlgmr.msra.gmra.mrb[32].mxu1 %v14690_v10  ;;  %v1419_v10 = vrot.slane %v14822_v51, %v14643_v38 }
 0x2f0   : > { %2110 = vmatprep.mubr.bf16.mxu1 %v14702_v26 }
 0x2f7   : > { %2111 = vmatmul.mubr.bf16.gmra.mrb[36].mxu1 %v14718_v34 }
 0x2f8   : > { %2120 = vmatprep.mubr.bf16.mxu1 %v14722_v50 }
 0x2ff   : > { %2121 = vmatmul.mubr.bf16.gmra.mrb[40].mxu1 %v14738_v48 }
 0x300   : > { %2130 = vmatprep.mubr.bf16.mxu1 %v14742_v61 }
 0x307   : > { %2131 = vmatmul.mubr.bf16.gmra.mrb[44].mxu1 %v14752_v32 }
 0x342   : > { %v1956_v4 = vpop.f32.mrb[0].mxu1 }
 0x343   : > { %v1958_v26 = vpop.f32.mrb[1].mxu1  ;;  %v1957_v34 = vadd.f32 %v1956_v4, %v1415_v3 }
 0x344   : > { %v1960_v5 = vpop.f32.mrb[2].mxu1  ;;  %v1959_v11 = vadd.f32 %v1958_v26, %v1419_v10 }
 0x345   : > { %v1961_v12 = vadd.f32 %v1960_v5, %v1415_v3  ;;  %v1962_v50 = vpop.f32.mrb[3].mxu1 }
 0x346   : > { %v1963_v48 = vadd.f32 %v1962_v50, %v1419_v10 }
 0x347   : > { %v14828_v6 = vpack.c.bf16 %v1961_v12, %v1957_v34 }
 0x348   : > { %v14830_v61 = vpack.c.bf16 %v1963_v48, %v1959_v11 }
 0x34a   : > { %v1966_v32 = vpop.f32.mrb[4].mxu1 }
 0x34b   : > { %v1968_v56 = vpop.f32.mrb[5].mxu1  ;;  %v1967_v7 = vadd.f32 %v1966_v32, %v1415_v3 }
 0x34c   : > { %v1970_v2 = vpop.f32.mrb[6].mxu1  ;;  %v1969_v16 = vadd.f32 %v1968_v56, %v1419_v10 }
 0x34d   : > { %v1971_v9 = vadd.f32 %v1970_v2, %v1415_v3  ;;  %v1972_v13 = vpop.f32.mrb[7].mxu1 }
 0x34e   : > { %v1973_v17 = vadd.f32 %v1972_v13, %v1419_v10 }
 0x34f   : > { %v14832_v18 = vpack.c.bf16 %v1971_v9, %v1967_v7 }
 0x350   : > { %v14834_v20 = vpack.c.bf16 %v1973_v17, %v1969_v16 }
 0x352   : > { %v1976_v14 = vpop.f32.mrb[8].mxu1 }
 0x353   : > { %v1978_v1 = vpop.f32.mrb[9].mxu1  ;;  %v1977_v21 = vadd.f32 %v1976_v14, %v1415_v3 }
 0x354   : > { %v1980_v15 = vpop.f32.mrb[10].mxu1  ;;  %v1979_v24 = vadd.f32 %v1978_v1, %v1419_v10 }
 0x355   : > { %v1981_v22 = vadd.f32 %v1980_v15, %v1415_v3  ;;  %v1982_v23 = vpop.f32.mrb[11].mxu1 }
 0x356   : > { %v1983_v27 = vadd.f32 %v1982_v23, %v1419_v10 }
 0x357   : > { %v14836_v40 = vpack.c.bf16 %v1981_v22, %v1977_v21 }
 0x358   : > { %v14838_v41 = vpack.c.bf16 %v1983_v27, %v1979_v24 }
 0x35a   : > { %v1986_v37 = vpop.f32.mrb[12].mxu1 }
 0x35b   : > { %v1988_v28 = vpop.f32.mrb[13].mxu1  ;;  %v1987_v42 = vadd.f32 %v1986_v37, %v1415_v3  ;;  %v18431_v37 = vsub.s32 4, %v14640_v19 }
 0x35c   : > { %v1990_v29 = vpop.f32.mrb[14].mxu1  ;;  %v1989_v45 = vadd.f32 %v1988_v28, %v1419_v10  ;;  %v18430_v28 = vsub.s32 5, %v14640_v19 }
 0x35d   : > { %v1991_v30 = vadd.f32 %v1990_v29, %v1415_v3  ;;  %v1992_v31 = vpop.f32.mrb[15].mxu1  ;;  %v1431_v29 = vrot.slane %v14822_v51, %v18431_v37 }
 0x35e   : > { %v1993_v33 = vadd.f32 %v1992_v31, %v1419_v10 }
 0x35f   : > { %v14840_v49 = vpack.c.bf16 %v1991_v30, %v1987_v42  ;;  %v1435_v30 = vrot.slane %v14822_v51, %v18430_v28 }
 0x360   : > { %v14842_v35 = vpack.c.bf16 %v1993_v33, %v1989_v45 }
 0x382   : > { %v2029_v44 = vpop.f32.mrb[16].mxu1 }
 0x383   : > { %v2031_v53 = vpop.f32.mrb[17].mxu1  ;;  %v2030_v55 = vadd.f32 %v2029_v44, %v1423_v25 }
 0x384   : > { %v2033_v54 = vpop.f32.mrb[18].mxu1  ;;  %v2032_v0 = vadd.f32 %v2031_v53, %v1427_v52 }
 0x385   : > { %v2034_v8 = vadd.f32 %v2033_v54, %v1423_v25  ;;  %v2035_v57 = vpop.f32.mrb[19].mxu1 }
 0x386   : > { %v2036_v63 = vadd.f32 %v2035_v57, %v1427_v52 }
 0x387   : > { %v14852_v58 = vpack.c.bf16 %v2034_v8, %v2030_v55 }
 0x388   : > { %v14854_v59 = vpack.c.bf16 %v2036_v63, %v2032_v0 }
 0x389   : > { %3231 = vrot.lane.b32.xlu0 %v14852_v58, %s13942_s12 }
 0x38a   : > { %v2039_v60 = vpop.f32.mrb[20].mxu1  ;;  %3243 = vrot.lane.b32.xlu1 %v14854_v59, %s13942_s12 }
 0x38b   : > { %v2041_v46 = vpop.f32.mrb[21].mxu1  ;;  %v2040_v43 = vadd.f32 %v2039_v60, %v1423_v25 }
 0x38c   : > { %v2043_v62 = vpop.f32.mrb[22].mxu1  ;;  %v2042_v10 = vadd.f32 %v2041_v46, %v1427_v52 }
 0x38d   : > { %v2044_v3 = vadd.f32 %v2043_v62, %v1423_v25  ;;  %v2045_v4 = vpop.f32.mrb[23].mxu1 }
 0x38e   : > { %v2046_v26 = vadd.f32 %v2045_v4, %v1427_v52 }
 0x38f   : > { %v14860_v5 = vpack.c.bf16 %v2044_v3, %v2040_v43 }
 0x390   : > { %v14862_v34 = vpack.c.bf16 %v2046_v26, %v2042_v10 }
 0x391   : > { %3233 = vrot.lane.b32.xlu1 %v14860_v5, %s13942_s12 }
 0x392   : > { %v2049_v12 = vpop.f32.mrb[24].mxu1 }
 0x393   : > { %v2051_v50 = vpop.f32.mrb[25].mxu1  ;;  %v2050_v48 = vadd.f32 %v2049_v12, %v1423_v25 }
 0x394   : > { %v2053_v11 = vpop.f32.mrb[26].mxu1  ;;  %v2052_v2 = vadd.f32 %v2051_v50, %v1427_v52 }
 0x395   : > { %v2054_v32 = vadd.f32 %v2053_v11, %v1423_v25  ;;  %v2055_v56 = vpop.f32.mrb[27].mxu1  ;;  %3245 = vrot.lane.b32.xlu1 %v14862_v34, %s13942_s12 }
 0x396   : > { %v2056_v7 = vadd.f32 %v2055_v56, %v1427_v52 }
 0x397   : > { %v14868_v9 = vpack.c.bf16 %v2054_v32, %v2050_v48 }
 0x398   : > { %v14870_v13 = vpack.c.bf16 %v2056_v7, %v2052_v2 }
 0x399   : > { %3235 = vrot.lane.b32.xlu0 %v14868_v9, %s13942_s12 }
 0x39a   : > { %v2059_v16 = vpop.f32.mrb[28].mxu1  ;;  %3247 = vrot.lane.b32.xlu1 %v14870_v13, %s13942_s12 }
 0x39b   : > { %v2061_v17 = vpop.f32.mrb[29].mxu1  ;;  %v2060_v1 = vadd.f32 %v2059_v16, %v1423_v25 }
 0x39c   : > { %v2063_v14 = vpop.f32.mrb[30].mxu1  ;;  %v2062_v22 = vadd.f32 %v2061_v17, %v1427_v52 }
 0x39d   : > { %v2064_v15 = vadd.f32 %v2063_v14, %v1423_v25  ;;  %v2065_v21 = vpop.f32.mrb[31].mxu1 }
 0x39e   : > { %v2066_v23 = vadd.f32 %v2065_v21, %v1427_v52 }
 0x39f   : > { %v14876_v24 = vpack.c.bf16 %v2064_v15, %v2060_v1 }
 0x3a0   : > { %v14878_v27 = vpack.c.bf16 %v2066_v23, %v2062_v22 }
 0x3a1   : > { %3237 = vrot.lane.b32.xlu0 %v14876_v24, %s13942_s12 }
 0x3a2   : > { %3249 = vrot.lane.b32.xlu1 %v14878_v27, %s13942_s12 }
 0x3a5   : > { %2153 = vrot.lane.b32.xlu0 %v14828_v6, %s13942_s12 }
 0x3a6   : > { %2165 = vrot.lane.b32.xlu1 %v14830_v61, %s13942_s12 }
 0x3a9   : > { %2155 = vrot.lane.b32.xlu0 %v14832_v18, %s13942_s12 }
 0x3aa   : > { %2167 = vrot.lane.b32.xlu1 %v14834_v20, %s13942_s12 }
 0x3ad   : > { %2157 = vrot.lane.b32.xlu0 %v14836_v40, %s13942_s12 }
 0x3ae   : > { %2169 = vrot.lane.b32.xlu1 %v14838_v41, %s13942_s12 }
 0x3b1   : > { %2159 = vrot.lane.b32.xlu0 %v14840_v49, %s13942_s12 }
 0x3b2   : > { %2171 = vrot.lane.b32.xlu1 %v14842_v35, %s13942_s12 }
 0x3c2   : > { %v2102_v42 = vpop.f32.mrb[32].mxu1 }
 0x3c3   : > { %v2104_v31 = vpop.f32.mrb[33].mxu1  ;;  %v2103_v33 = vadd.f32 %v2102_v42, %v1431_v29 }
 0x3c4   : > { %v2106_v45 = vpop.f32.mrb[34].mxu1  ;;  %v2105_v52 = vadd.f32 %v2104_v31, %v1435_v30  ;;  %v13943_v31 = vmov 1983009808  }
 0x3c5   : > { %v2107_v25 = vadd.f32 %v2106_v45, %v1431_v29  ;;  %v2108_v44 = vpop.f32.mrb[35].mxu1  ;;  %v2245_v45 = vunpack.c.l.s4 %v13943_v31  ;;  %v3303_v31 = vshrl.u32 %v14876_v24, 16 }
 0x3c6   : > { %v2109_v53 = vadd.f32 %v2108_v44, %v1435_v30 }
 0x3c7   : > { %v14908_v54 = vpack.c.bf16 %v2107_v25, %v2103_v33  ;;  %v13944_v33 = vmov 1934713408   ;;  %v2246_v44 = vunpack.c.0.s8 %v2245_v45 }
 0x3c8   : > { %v14910_v55 = vpack.c.bf16 %v2109_v53, %v2105_v52  ;;  %v2276_v25 = vunpack.c.l.s4 %v13944_v33 }
 0x3c9   : > { %18551 = vst [vmem:[#allocation33_spill] sm:$0xff] %v14908_v54  ;;  %4303 = vrot.lane.b32.xlu0 %v14908_v54, %s13942_s12  ;;  %v18574_v54 = vshrl.u32 %v14836_v40, 16 }
 0x3ca   : > { %18552 = vst [vmem:[#allocation34_spill] sm:$0xff] %v14910_v55  ;;  %v2112_v8 = vpop.f32.mrb[36].mxu1  ;;  %4315 = vrot.lane.b32.xlu1 %v14910_v55, %s13942_s12  ;;  %v2277_v52 = vunpack.c.0.s8 %v2276_v25 }
 0x3cb   : > { %v2114_v57 = vpop.f32.mrb[37].mxu1  ;;  %v2113_v0 = vadd.f32 %v2112_v8, %v1431_v29 }
 0x3cc   : > { %v2116_v51 = vpop.f32.mrb[38].mxu1  ;;  %v2115_v46 = vadd.f32 %v2114_v57, %v1435_v30 }
 0x3cd   : > { %v2117_v63 = vadd.f32 %v2116_v51, %v1431_v29  ;;  %v2118_v60 = vpop.f32.mrb[39].mxu1  ;;  %v18432_v51 = vmov 0  }
 0x3ce   : > { %v2119_v62 = vadd.f32 %v2118_v60, %v1435_v30 }
 0x3cf   : > { %v14916_v43 = vpack.c.bf16 %v2117_v63, %v2113_v0  ;;  %v14943_v0 = vpack.i.b16 %v18432_v51, %v18432_v51  ;;  %v14946_v63 = vsub.s32 %v2246_v44, %v14640_v19 }
 0x3d0   : > { %v14918_v3 = vpack.c.bf16 %v2119_v62, %v2115_v46  ;;  %v3255_v62 = vshrl.u32 %v14852_v58, 16 }
 0x3d1   : > { %18553 = vst [vmem:[#allocation35_spill] sm:$0xff] %v14916_v43  ;;  %4305 = vrot.lane.b32.xlu1 %v14916_v43, %s13942_s12 }
 0x3d2   : > { %18554 = vst [vmem:[#allocation36_spill] sm:$0xff] %v14918_v3  ;;  %v2122_v4 = vpop.f32.mrb[40].mxu1 }
 0x3d3   : > { %v2124_v10 = vpop.f32.mrb[41].mxu1  ;;  %v2123_v12 = vadd.f32 %v2122_v4, %v1431_v29 }
 0x3d4   : > { %v2126_v26 = vpop.f32.mrb[42].mxu1  ;;  %v2125_v48 = vadd.f32 %v2124_v10, %v1435_v30  ;;  %v14952_v10 = vsub.s32 %v2277_v52, %v14640_v19 }
 0x3d5   : > { %v2127_v50 = vadd.f32 %v2126_v26, %v1431_v29  ;;  %v2128_v11 = vpop.f32.mrb[43].mxu1  ;;  %4317 = vrot.lane.b32.xlu1 %v14918_v3, %s13942_s12 }
 0x3d6   : > { %v2129_v32 = vadd.f32 %v2128_v11, %v1435_v30 }
 0x3d7   : > { %v14924_v56 = vpack.c.bf16 %v2127_v50, %v2123_v12  ;;  %v3263_v12 = vshrl.u32 %v14854_v59, 16  ;;  %v3271_v50 = vshrl.u32 %v14860_v5, 16 }
 0x3d8   : > { %v14926_v2 = vpack.c.bf16 %v2129_v32, %v2125_v48 }
 0x3d9   : > { %4307 = vrot.lane.b32.xlu0 %v14924_v56, %s13942_s12 }
 0x3da   : > { %18555 = vst [vmem:[#allocation37_spill] sm:$0xff] %v14926_v2  ;;  %v2132_v7 = vpop.f32.mrb[44].mxu1  ;;  %4319 = vrot.lane.b32.xlu1 %v14926_v2, %s13942_s12 }
 0x3db   : > { %v2133_v16 = vadd.f32 %v2132_v7, %v1431_v29  ;;  %v2134_v17 = vpop.f32.mrb[45].mxu1  ;;  %v3279_v7 = vshrl.u32 %v14862_v34, 16 }
 0x3dc   : > { %v2135_v14 = vadd.f32 %v2134_v17, %v1435_v30  ;;  %v2136_v1 = vpop.f32.mrb[46].mxu1 }
 0x3dd   : > { %v2137_v15 = vadd.f32 %v2136_v1, %v1431_v29  ;;  %v2138_v21 = vpop.f32.mrb[47].mxu1  ;;  %v3295_v1 = vshrl.u32 %v14870_v13, 16 }
 0x3de   : > { %v2139_v22 = vadd.f32 %v2138_v21, %v1435_v30 }
 0x3df   : > { %v14932_v23 = vpack.c.bf16 %v2137_v15, %v2133_v16  ;;  %v3287_v16 = vshrl.u32 %v14868_v9, 16 }
 0x3e0   : > { %v14934_v42 = vpack.c.bf16 %v2139_v22, %v2135_v14 }
 0x3e1   : > { %18556 = vst [vmem:[#allocation38_spill] sm:$0xff] %v14932_v23 }
 0x3e2   : > { %18557 = vst [vmem:[#allocation39_spill] sm:$0xff] %v14934_v42 }
 0x3fb   : > { %v3232_v4 = vpop.permute.xlu0 %3231 }
 0x3fc   : > { %v3253_v11 = vpack.i.b16 %v3232_v4, %v14852_v58  ;;  %v3256_v48 = vshrl.u32 %v3232_v4, 16  ;;  %v3244_v32 = vpop.permute.xlu1 %3243 }
 0x3fd   : > { %v3261_v17 = vpack.i.b16 %v3244_v32, %v14854_v59  ;;  %v3264_v14 = vshrl.u32 %v3244_v32, 16 }
 0x3fe   : > { %v3257_v15 = vpack.i.b16 %v3256_v48, %v3255_v62  ;;  %v3315_v21 = vcombine.high %v3253_v11, %v14943_v0  ;;  %v3322_v22 = vrot.slane %v3253_v11, %v14946_v63 }
 0x3ff   : > { %v3265_v45 = vpack.i.b16 %v3264_v14, %v3263_v12  ;;  %v3330_v58 = vcombine.high %v3261_v17, %v14943_v0  ;;  %v3337_v33 = vrot.slane %v3261_v17, %v14946_v63 }
 0x400   : > { %v3329_v44 = vrot.slane %v3315_v21, %v14946_v63  ;;  %v3381_v59 = vcombine.high %v3257_v15, %v14943_v0  ;;  %v3388_v52 = vrot.slane %v3257_v15, %v14946_v63 }
 0x401   : > { %v3344_v62 = vrot.slane %v3330_v58, %v14946_v63  ;;  %v3345_v4 = vcombine.low %v3322_v22, %v3337_v33  ;;  %v3346_v48 = vcombine.high %v3322_v22, %v3337_v33  ;;  %v3396_v11 = vcombine.high %v3265_v45, %v14943_v0 }
 0x402   : > { %v3395_v12 = vrot.slane %v3381_v59, %v14946_v63  ;;  %v3403_v32 = vrot.slane %v3265_v45, %v14946_v63 }
 0x403   : > { %v3353_v21 = vrot.slane %v3345_v4, %v14952_v10  ;;  %v3360_v47 = vrot.slane %v3346_v48, %v14952_v10  ;;  %v3361_v36 = vcombine.low %v3329_v44, %v3344_v62  ;;  %v3362_v15 = vcombine.high %v3329_v44, %v3344_v62  ;;  %v3234_v28 = vpop.permute.xlu1 %3233 }
 0x404   : > { %v3410_v58 = vrot.slane %v3396_v11, %v14946_v63  ;;  %v3411_v22 = vcombine.low %v3388_v52, %v3403_v32  ;;  %v3412_v33 = vcombine.high %v3388_v52, %v3403_v32  ;;  %v3269_v37 = vpack.i.b16 %v3234_v28, %v14860_v5 }
 0x405   : > { %v14982_v59 = vrot.slane %v3361_v36, %v14952_v10  ;;  %v3376_v45 = vrot.slane %v3362_v15, %v14952_v10  ;;  %v3843_v51 = vcombine.low %v3353_v21, %v3360_v47  ;;  %v11835_v14 = vcombine.high %v3353_v21, %v3360_v47 }
 0x406   : > { %v14986_v4 = vrot.slane %v3411_v22, %v14952_v10  ;;  %v14989_v48 = vrot.slane %v3412_v33, %v14952_v10  ;;  %v3427_v44 = vcombine.low %v3395_v12, %v3410_v58  ;;  %v3428_v62 = vcombine.high %v3395_v12, %v3410_v58 }
 0x407   : > { %v14992_v11 = vrot.slane %v3843_v51, %v14946_v63  ;;  %v14995_v52 = vrot.slane %v11835_v14, %v14946_v63  ;;  %v3246_v36 = vpop.permute.xlu1 %3245  ;;  %v3859_v22 = vcombine.low %v14982_v59, %v3376_v45  ;;  %v11836_v12 = vcombine.high %v14982_v59, %v3376_v45 }
 0x408   : > { %v15000_v47 = vrot.slane %v3427_v44, %v14952_v10  ;;  %v15003_v21 = vrot.slane %v3428_v62, %v14952_v10  ;;  %v3272_v14 = vshrl.u32 %v3234_v28, 16  ;;  %v3447_v58 = vcombine.high %v3269_v37, %v14943_v0 }
 0x409   : > { %v3277_v33 = vpack.i.b16 %v3246_v36, %v14862_v34  ;;  %v3454_v62 = vrot.slane %v3269_v37, %v14946_v63  ;;  %v3280_v32 = vshrl.u32 %v3246_v36, 16  ;;  %v15027_v37 = vrot.slane %v3859_v22, %v14946_v63 }
 0x40a   : > { %v3273_v45 = vpack.i.b16 %v3272_v14, %v3271_v50  ;;  %v3461_v46 = vrot.slane %v3447_v58, %v14946_v63 }
 0x40b   : > { %v3462_v28 = vcombine.high %v3277_v33, %v14943_v0  ;;  %v3469_v17 = vrot.slane %v3277_v33, %v14946_v63  ;;  %v3236_v26 = vpop.permute.xlu0 %3235  ;;  %v3281_v60 = vpack.i.b16 %v3280_v32, %v3279_v7 }
 0x40c   : > { %v3285_v30 = vpack.i.b16 %v3236_v26, %v14868_v9  ;;  %v3513_v36 = vcombine.high %v3273_v45, %v14943_v0  ;;  %v3288_v14 = vshrl.u32 %v3236_v26, 16  ;;  %v3520_v29 = vrot.slane %v3273_v45, %v14946_v63  ;;  %v3248_v45 = vpop.permute.xlu1 %3247 }
 0x40d   : > { %v3476_v5 = vrot.slane %v3462_v28, %v14946_v63  ;;  %v3477_v50 = vcombine.low %v3454_v62, %v3469_v17  ;;  %v3478_v33 = vcombine.high %v3454_v62, %v3469_v17  ;;  %v3528_v57 = vcombine.high %v3281_v60, %v14943_v0 }
 0x40e   : > { %v3535_v58 = vrot.slane %v3281_v60, %v14946_v63  ;;  %v3527_v34 = vrot.slane %v3513_v36, %v14946_v63  ;;  %v3289_v60 = vpack.i.b16 %v3288_v14, %v3287_v16  ;;  %v3579_v62 = vcombine.high %v3285_v30, %v14943_v0 }
 0x40f   : > { %v3485_v7 = vrot.slane %v3477_v50, %v14952_v10  ;;  %v3493_v32 = vcombine.low %v3461_v46, %v3476_v5  ;;  %v3494_v22 = vcombine.high %v3461_v46, %v3476_v5  ;;  %v3492_v8 = vrot.slane %v3478_v33, %v14952_v10 }
 0x410   : > { %v3542_v53 = vrot.slane %v3528_v57, %v14946_v63  ;;  %v3543_v28 = vcombine.low %v3520_v29, %v3535_v58  ;;  %v3544_v59 = vcombine.high %v3520_v29, %v3535_v58  ;;  %v3586_v33 = vrot.slane %v3285_v30, %v14946_v63 }
 0x411   : > { %v15039_v26 = vrot.slane %v3493_v32, %v14952_v10  ;;  %v15042_v17 = vrot.slane %v3494_v22, %v14952_v10  ;;  %v3943_v5 = vcombine.low %v3485_v7, %v3492_v8  ;;  %v11839_v50 = vcombine.high %v3485_v7, %v3492_v8 }
 0x412   : > { %v15048_v46 = vrot.slane %v3543_v28, %v14952_v10  ;;  %v15051_v36 = vrot.slane %v3544_v59, %v14952_v10  ;;  %v3559_v57 = vcombine.low %v3527_v34, %v3542_v53  ;;  %v3560_v29 = vcombine.high %v3527_v34, %v3542_v53 }
 0x413   : > { %v15055_v58 = vrot.slane %v11836_v12, %v14946_v63  ;;  %v3238_v53 = vpop.permute.xlu0 %3237  ;;  %v15068_v8 = vrot.slane %v3943_v5, %v14946_v63  ;;  %v3645_v34 = vcombine.high %v3289_v60, %v14943_v0  ;;  %v15076_v32 = vrot.slane %v11839_v50, %v14946_v63 }
 0x414   : > { %v15058_v9 = vrot.slane %v3559_v57, %v14952_v10  ;;  %v15061_v16 = vrot.slane %v3560_v29, %v14952_v10  ;;  %v3250_v7 = vpop.permute.xlu1 %3249  ;;  %v3593_v28 = vrot.slane %v3579_v62, %v14946_v63  ;;  %v3293_v57 = vpack.i.b16 %v3248_v45, %v14870_v13 }
 0x415   : > { %v3296_v5 = vshrl.u32 %v3248_v45, 16  ;;  %v3301_v30 = vpack.i.b16 %v3238_v53, %v14876_v24  ;;  %v3304_v12 = vshrl.u32 %v3238_v53, 16  ;;  %v3652_v59 = vrot.slane %v3289_v60, %v14946_v63 }
 0x416   : > { %v3594_v14 = vcombine.high %v3293_v57, %v14943_v0  ;;  %v3601_v50 = vrot.slane %v3293_v57, %v14946_v63  ;;  %v3312_v44 = vshrl.u32 %v3250_v7, 16  ;;  %v3659_v22 = vrot.slane %v3645_v34, %v14946_v63 }
 0x417   : > { %v3297_v62 = vpack.i.b16 %v3296_v5, %v3295_v1  ;;  %v3305_v15 = vpack.i.b16 %v3304_v12, %v3303_v31  ;;  %v3309_v45 = vpack.i.b16 %v3250_v7, %v14878_v27  ;;  %v3711_v60 = vcombine.high %v3301_v30, %v14943_v0 }
 0x418   : > { %v3608_v29 = vrot.slane %v3594_v14, %v14946_v63  ;;  %v3609_v53 = vcombine.low %v3586_v33, %v3601_v50  ;;  %v3610_v51 = vcombine.high %v3586_v33, %v3601_v50  ;;  %v3718_v34 = vrot.slane %v3301_v30, %v14946_v63 }
 0x419   : > { %v3660_v25 = vcombine.high %v3297_v62, %v14943_v0  ;;  %v3667_v57 = vrot.slane %v3297_v62, %v14946_v63  ;;  %v18558_v13 = vshrl.u32 %v14878_v27, 16  ;;  %v3777_v50 = vcombine.high %v3305_v15, %v14943_v0 }
 0x41a   : > { %v3617_v24 = vrot.slane %v3609_v53, %v14952_v10  ;;  %v3624_v31 = vrot.slane %v3610_v51, %v14952_v10  ;;  %v3625_v12 = vcombine.low %v3593_v28, %v3608_v29  ;;  %v3626_v7 = vcombine.high %v3593_v28, %v3608_v29 }
 0x41b   : > { %v3313_v1 = vpack.i.b16 %v3312_v44, %v18558_v13  ;;  %v3674_v14 = vrot.slane %v3660_v25, %v14946_v63  ;;  %v3675_v33 = vcombine.low %v3652_v59, %v3667_v57  ;;  %v3676_v5 = vcombine.high %v3652_v59, %v3667_v57 }
 0x41c   : > { %v15106_v19 = vrot.slane %v3625_v12, %v14952_v10  ;;  %v15109_v30 = vrot.slane %v3626_v7, %v14952_v10  ;;  %v4043_v27 = vcombine.low %v3617_v24, %v3624_v31  ;;  %v11843_v44 = vcombine.high %v3617_v24, %v3624_v31 }
 0x41d   : > { %v15112_v62 = vrot.slane %v3675_v33, %v14952_v10  ;;  %v15115_v51 = vrot.slane %v3676_v5, %v14952_v10  ;;  %v3691_v28 = vcombine.low %v3659_v22, %v3674_v14  ;;  %v3692_v25 = vcombine.high %v3659_v22, %v3674_v14 }
 0x41e   : > { %v15118_v59 = vrot.slane %v4043_v27, %v14946_v63  ;;  %v15121_v29 = vrot.slane %v11843_v44, %v14946_v63  ;;  %v3725_v53 = vrot.slane %v3711_v60, %v14946_v63  ;;  %v3784_v57 = vrot.slane %v3305_v15, %v14946_v63 }
 0x41f   : > { %v15126_v13 = vrot.slane %v3691_v28, %v14952_v10  ;;  %v15129_v24 = vrot.slane %v3692_v25, %v14952_v10  ;;  %v3726_v7 = vcombine.high %v3309_v45, %v14943_v0  ;;  %v3733_v60 = vrot.slane %v3309_v45, %v14946_v63 }
 0x420   : > { %v3792_v15 = vcombine.high %v3313_v1, %v14943_v0  ;;  %v3791_v5 = vrot.slane %v3777_v50, %v14946_v63  ;;  %v3799_v27 = vrot.slane %v3313_v1, %v14946_v63  ;;  %v3875_v31 = vcombine.low %v14992_v11, %v14995_v52 }
 0x421   : > { %v3740_v44 = vrot.slane %v3726_v7, %v14946_v63  ;;  %v3741_v28 = vcombine.low %v3718_v34, %v3733_v60  ;;  %v3742_v25 = vcombine.high %v3718_v34, %v3733_v60  ;;  %v3883_v14 = vcombine.low %v15027_v37, %v15055_v58 }
 0x422   : > { %v3806_v12 = vrot.slane %v3792_v15, %v14946_v63  ;;  %v3807_v22 = vcombine.low %v3784_v57, %v3799_v27  ;;  %v3808_v45 = vcombine.high %v3784_v57, %v3799_v27  ;;  %v3882_v27 = vrot.slane %v3875_v31, %v14952_v10 }
 0x423   : > { %v3749_v33 = vrot.slane %v3741_v28, %v14952_v10  ;;  %v3756_v50 = vrot.slane %v3742_v25, %v14952_v10  ;;  %v3757_v38 = vcombine.low %v3725_v53, %v3740_v44  ;;  %v3758_v1 = vcombine.high %v3725_v53, %v3740_v44  ;;  %v2166_v28 = vpop.permute.xlu1 %2165 }
 0x424   : > { %v15155_v7 = vrot.slane %v3807_v22, %v14952_v10  ;;  %v15158_v34 = vrot.slane %v3808_v45, %v14952_v10  ;;  %v3823_v60 = vcombine.low %v3791_v5, %v3806_v12  ;;  %v3824_v57 = vcombine.high %v3791_v5, %v3806_v12  ;;  %v2154_v12 = vpop.permute.xlu0 %2153 }
 0x425   : > { %v15161_v15 = vrot.slane %v3757_v38, %v14952_v10  ;;  %v15164_v11 = vrot.slane %v3758_v1, %v14952_v10  ;;  %v4143_v52 = vcombine.low %v3749_v33, %v3756_v50  ;;  %v11847_v37 = vcombine.high %v3749_v33, %v3756_v50 }
 0x426   : > { %v15169_v53 = vrot.slane %v3823_v60, %v14952_v10  ;;  %v15172_v22 = vrot.slane %v3824_v57, %v14952_v10  ;;  %v3890_v45 = vrot.slane %v3883_v14, %v14952_v10  ;;  %v18559_v50 = vcombine.low %v14986_v4, %v14989_v48 }
 0x427   : > { %v15176_v38 = vrot.slane %v4143_v52, %v14946_v63  ;;  %v15179_v5 = vrot.slane %v11847_v37, %v14946_v63  ;;  %v18560_v60 = vcombine.high %v14986_v4, %v14989_v48  ;;  %v18561_v52 = vcombine.low %v15000_v47, %v15003_v21 }
 0x428   : > { %v3900_v1 = vrot.slane %v18559_v50, %v14946_v63  ;;  %v18562_v14 = vcombine.high %v15000_v47, %v15003_v21  ;;  %v2175_v33 = vpack.i.b16 %v2154_v12, %v14828_v6  ;;  %v2178_v4 = vshrl.u32 %v2154_v12, 16 }
 0x429   : > { %v3908_v57 = vrot.slane %v18560_v60, %v14946_v63  ;;  %v3916_v37 = vrot.slane %v18561_v52, %v14946_v63  ;;  %v2183_v48 = vpack.i.b16 %v2166_v28, %v14830_v61  ;;  %v15214_v39 = vcombine.low %v3882_v27, %v3890_v45 }
 0x42a   : > { %v3924_v44 = vrot.slane %v18562_v14, %v14946_v63  ;;  %v2243_v52 = vcombine.high %v2175_v33, %v14943_v0  ;;  %v2250_v58 = vrot.slane %v2175_v33, %v14946_v63  ;;  %v18563_v47 = vshrl.u32 %v14828_v6, 16 }
 0x42b   : > { %v3925_v60 = vcombine.low %v3900_v1, %v3908_v57  ;;  %v2186_v14 = vshrl.u32 %v2166_v28, 16  ;;  %v2258_v50 = vcombine.high %v2183_v48, %v14943_v0  ;;  %v15223_v1 = vcombine.high %v3882_v27, %v3890_v45  ;;  %v2156_v45 = vpop.permute.xlu0 %2155 }
 0x42c   : > { %v3933_v25 = vcombine.low %v3916_v37, %v3924_v44  ;;  %v2179_v21 = vpack.i.b16 %v2178_v4, %v18563_v47  ;;  %v2257_v31 = vrot.slane %v2243_v52, %v14946_v63  ;;  %v2265_v44 = vrot.slane %v2183_v48, %v14946_v63 }
 0x42d   : > { %v3932_v23 = vrot.slane %v3925_v60, %v14952_v10  ;;  %18564 = vst [vmem:[#allocation40_spill] sm:$0xff] %v15223_v1  ;;  %v18565_v57 = vshrl.u32 %v14830_v61, 16  ;;  %v2272_v6 = vrot.slane %v2258_v50, %v14946_v63 }
 0x42e   : > { %v3940_v12 = vrot.slane %v3933_v25, %v14952_v10  ;;  %v2309_v33 = vcombine.high %v2179_v21, %v14943_v0  ;;  %v2273_v60 = vcombine.low %v2250_v58, %v2265_v44  ;;  %v2274_v47 = vcombine.high %v2250_v58, %v2265_v44 }
 0x42f   : > { %v2187_v37 = vpack.i.b16 %v2186_v14, %v18565_v57  ;;  %v2316_v25 = vrot.slane %v2179_v21, %v14946_v63  ;;  %v2289_v52 = vcombine.low %v2257_v31, %v2272_v6  ;;  %v2290_v42 = vcombine.high %v2257_v31, %v2272_v6 }
 0x430   : > { %v15229_v28 = vcombine.low %v3932_v23, %v3940_v12  ;;  %v15231_v4 = vcombine.high %v3932_v23, %v3940_v12  ;;  %v2323_v50 = vrot.slane %v2309_v33, %v14946_v63  ;;  %v2281_v23 = vrot.slane %v2273_v60, %v14952_v10  ;;  %v2168_v12 = vpop.permute.xlu1 %2167 }
 0x431   : > { %v2324_v27 = vcombine.high %v2187_v37, %v14943_v0  ;;  %v2288_v14 = vrot.slane %v2274_v47, %v14952_v10  ;;  %v15243_v58 = vrot.slane %v2289_v52, %v14952_v10  ;;  %v15246_v31 = vrot.slane %v2290_v42, %v14952_v10 }
 0x432   : > { %18566 = vst [vmem:[#allocation41_spill] sm:$0xff] %v15229_v28  ;;  %18567 = vst [vmem:[#allocation42_spill] sm:$0xff] %v15231_v4  ;;  %v4245_v48 = vpack.i.b16 %v15229_v28, %v15214_v39  ;;  %v4251_v61 = vpack.i.b16 %v15231_v4, %v15223_v1  ;;  %v2331_v21 = vrot.slane %v2187_v37, %v14946_v63  ;;  %v2200_v52 = vshrl.u32 %v2156_v45, 16 }
 0x433   : > { %v2338_v57 = vrot.slane %v2324_v27, %v14946_v63  ;;  %v2197_v6 = vpack.i.b16 %v2156_v45, %v14832_v18  ;;  %v2771_v47 = vcombine.low %v2281_v23, %v2288_v14  ;;  %v11819_v43 = vcombine.high %v2281_v23, %v2288_v14 }
 0x434   : > { %12607 = vmatprep.subr.msk.bf16.mxu1 %vm5379_vm0, %v4245_v48  ;;  %12615 = vmatprep.subr.msk.bf16.mxu0 %vm5379_vm0, %v4251_v61  ;;  %v5393_v44 = vsel %vm5379_vm0, %v4245_v48, 0  ;;  %v5571_v33 = vsel %vm5379_vm0, %v4251_v61, 0  ;;  %v2339_v60 = vcombine.low %v2316_v25, %v2331_v21  ;;  %v2340_v42 = vcombine.high %v2316_v25, %v2331_v21 }
 0x435   : > { %12416 = vmatpush3.bf16.xpose.msra.mxu1 %v5393_v44  ;;  %12448 = vmatpush3.bf16.xpose.msra.mxu0 %v5571_v33  ;;  %v2355_v37 = vcombine.low %v2323_v50, %v2338_v57  ;;  %v2356_v3 = vcombine.high %v2323_v50, %v2338_v57  ;;  %v15264_v27 = vrot.slane %v2771_v47, %v14946_v63  ;;  %v18572_v14 = vshrl.u32 %v14832_v18, 16  ;;  %v2158_v44 = vpop.permute.xlu0 %2157  ;;  %v2170_v47 = vpop.permute.xlu1 %2169 }
 0x436   : > { %v15258_v48 = vrot.slane %v2339_v60, %v14952_v10  ;;  %v15261_v61 = vrot.slane %v2340_v42, %v14952_v10  ;;  %v15275_v23 = vrot.slane %v11819_v43, %v14946_v63  ;;  %v2375_v60 = vcombine.high %v2197_v6, %v14943_v0 }
 0x437   : > { %v15269_v45 = vrot.slane %v2355_v37, %v14952_v10  ;;  %v15272_v50 = vrot.slane %v2356_v3, %v14952_v10  ;;  %v2201_v21 = vpack.i.b16 %v2200_v52, %v18572_v14  ;;  %v2382_v42 = vrot.slane %v2197_v6, %v14946_v63 }
 0x438   : > { %18568 = vst [vmem:[#allocation43_spill] sm:$0xff] %v15258_v48  ;;  %18569 = vst [vmem:[#allocation44_spill] sm:$0xff] %v15261_v61  ;;  %v2389_v37 = vrot.slane %v2375_v60, %v14946_v63  ;;  %v2205_v14 = vpack.i.b16 %v2168_v12, %v14834_v20  ;;  %v2208_v57 = vshrl.u32 %v2168_v12, 16  ;;  %v2213_v33 = vpack.i.b16 %v2158_v44, %v14836_v40 }
 0x439   : > { %18570 = vst [vmem:[#allocation45_spill] sm:$0xff] %v15269_v45  ;;  %18571 = vst [vmem:[#allocation46_spill] sm:$0xff] %v15272_v50  ;;  %v2441_v18 = vcombine.high %v2201_v21, %v14943_v0  ;;  %v2448_v52 = vrot.slane %v2201_v21, %v14946_v63  ;;  %v2216_v25 = vshrl.u32 %v2158_v44, 16  ;;  %v2221_v4 = vpack.i.b16 %v2170_v47, %v14838_v41 }
 0x43a   : > { %v2224_v3 = vshrl.u32 %v2170_v47, 16  ;;  %v18573_v1 = vshrl.u32 %v14834_v20, 16  ;;  %v2390_v55 = vcombine.high %v2205_v14, %v14943_v0  ;;  %v2397_v21 = vrot.slane %v2205_v14, %v14946_v63 }
 0x43b   : > { %v2455_v6 = vrot.slane %v2441_v18, %v14946_v63  ;;  %v2507_v60 = vcombine.high %v2213_v33, %v14943_v0  ;;  %v2217_v12 = vpack.i.b16 %v2216_v25, %v18574_v54  ;;  %v2514_v2 = vrot.slane %v2213_v33, %v14946_v63 }
 0x43c   : > { %v2209_v43 = vpack.i.b16 %v2208_v57, %v18573_v1  ;;  %v18575_v18 = vshrl.u32 %v14838_v41, 16  ;;  %v2522_v47 = vcombine.high %v2221_v4, %v14943_v0  ;;  %v2404_v20 = vrot.slane %v2390_v55, %v14946_v63 }
 0x43d   : > { %v2405_v1 = vcombine.low %v2382_v42, %v2397_v21  ;;  %v2406_v57 = vcombine.high %v2382_v42, %v2397_v21  ;;  %v2521_v50 = vrot.slane %v2507_v60, %v14946_v63  ;;  %v2573_v40 = vcombine.high %v2217_v12, %v14943_v0 }
 0x43e   : > { %v15306_v44 = vpack.i.b16 %v2224_v3, %v18575_v18  ;;  %v2456_v28 = vcombine.high %v2209_v43, %v14943_v0  ;;  %v2463_v14 = vrot.slane %v2209_v43, %v14946_v63  ;;  %v15315_v54 = vrot.slane %v2217_v12, %v14946_v63 }
 0x43f   : > { %v2413_v41 = vrot.slane %v2405_v1, %v14952_v10  ;;  %v2420_v25 = vrot.slane %v2406_v57, %v14952_v10  ;;  %v2421_v33 = vcombine.low %v2389_v37, %v2404_v20  ;;  %v2422_v3 = vcombine.high %v2389_v37, %v2404_v20 }
 0x440   : > { %v2470_v55 = vrot.slane %v2456_v28, %v14946_v63  ;;  %v2471_v42 = vcombine.low %v2448_v52, %v2463_v14  ;;  %v2472_v21 = vcombine.high %v2448_v52, %v2463_v14  ;;  %v15321_v18 = vrot.slane %v2573_v40, %v14946_v63 }
 0x441   : > { %v2429_v43 = vrot.slane %v2421_v33, %v14952_v10  ;;  %v2436_v60 = vrot.slane %v2422_v3, %v14952_v10  ;;  %v2871_v45 = vcombine.low %v2413_v41, %v2420_v25  ;;  %v11823_v12 = vcombine.high %v2413_v41, %v2420_v25 }
 0x442   : > { %v2479_v61 = vrot.slane %v2471_v42, %v14952_v10  ;;  %v2486_v1 = vrot.slane %v2472_v21, %v14952_v10  ;;  %v2487_v57 = vcombine.low %v2455_v6, %v2470_v55  ;;  %v2488_v48 = vcombine.high %v2455_v6, %v2470_v55 }
 0x443   : > { %v2878_v37 = vrot.slane %v2871_v45, %v14946_v63  ;;  %v2886_v28 = vrot.slane %v11823_v12, %v14946_v63  ;;  %v2887_v52 = vcombine.low %v2429_v43, %v2436_v60  ;;  %v11824_v20 = vcombine.high %v2429_v43, %v2436_v60 }
 0x444   : > { %v2495_v14 = vrot.slane %v2487_v57, %v14952_v10  ;;  %v2502_v40 = vrot.slane %v2488_v48, %v14952_v10  ;;  %v2921_v33 = vcombine.low %v2479_v61, %v2486_v1  ;;  %v11825_v3 = vcombine.high %v2479_v61, %v2486_v1 }
 0x445   : > { %v2894_v41 = vrot.slane %v2887_v52, %v14946_v63  ;;  %v2902_v25 = vrot.slane %v11824_v20, %v14946_v63  ;;  %v2903_v42 = vcombine.low %v2878_v37, %v2886_v28  ;;  %v2529_v21 = vrot.slane %v2221_v4, %v14946_v63 }
 0x446   : > { %v2928_v6 = vrot.slane %v2921_v33, %v14946_v63  ;;  %v2936_v45 = vrot.slane %v11825_v3, %v14946_v63  ;;  %v2937_v55 = vcombine.low %v2495_v14, %v2502_v40  ;;  %v11826_v12 = vcombine.high %v2495_v14, %v2502_v40 }
 0x447   : > { %v15337_v43 = vrot.slane %v2903_v42, %v14952_v10  ;;  %v2911_v60 = vcombine.low %v2894_v41, %v2902_v25  ;;  %v2536_v48 = vrot.slane %v2522_v47, %v14946_v63  ;;  %v2537_v61 = vcombine.low %v2514_v2, %v2529_v21 }
 0x448   : > { %v15341_v1 = vrot.slane %v2937_v55, %v14946_v63  ;;  %v15344_v57 = vrot.slane %v11826_v12, %v14946_v63  ;;  %v2953_v4 = vcombine.low %v2928_v6, %v2936_v45  ;;  %v2538_v37 = vcombine.high %v2514_v2, %v2529_v21 }
 0x449   : > { %v15347_v28 = vrot.slane %v2911_v60, %v14952_v10  ;;  %v2545_v52 = vrot.slane %v2537_v61, %v14952_v10  ;;  %v2553_v20 = vcombine.low %v2521_v50, %v2536_v48  ;;  %v2554_v14 = vcombine.high %v2521_v50, %v2536_v48 }
 0x44a   : > { %v15351_v40 = vrot.slane %v2953_v4, %v14952_v10  ;;  %v2961_v47 = vcombine.low %v15341_v1, %v15344_v57  ;;  %v2552_v33 = vrot.slane %v2538_v37, %v14952_v10  ;;  %v2588_v3 = vcombine.high %v15306_v44, %v14943_v0 }
 0x44b   : > { %v2561_v2 = vrot.slane %v2553_v20, %v14952_v10  ;;  %v2568_v41 = vrot.slane %v2554_v14, %v14952_v10  ;;  %v2595_v25 = vrot.slane %v15306_v44, %v14946_v63  ;;  %v18576_v50 = vcombine.low %v15039_v26, %v15042_v17 }
 0x44c   : > { %v2602_v21 = vrot.slane %v2588_v3, %v14946_v63  ;;  %v2971_v6 = vcombine.low %v2545_v52, %v2552_v33  ;;  %v11827_v45 = vcombine.high %v2545_v52, %v2552_v33  ;;  %v18577_v55 = vcombine.high %v15039_v26, %v15042_v17 }
 0x44d   : > { %v3966_v42 = vrot.slane %v18576_v50, %v14946_v63  ;;  %v2603_v60 = vcombine.low %v15315_v54, %v2595_v25  ;;  %v2604_v48 = vcombine.high %v15315_v54, %v2595_v25  ;;  %v2987_v61 = vcombine.low %v2561_v2, %v2568_v41 }
 0x44e   : > { %v3974_v12 = vrot.slane %v18577_v55, %v14946_v63  ;;  %v11828_v44 = vcombine.high %v2561_v2, %v2568_v41  ;;  %v2619_v4 = vcombine.low %v15321_v18, %v2602_v21  ;;  %v2620_v37 = vcombine.high %v15321_v18, %v2602_v21  ;;  %v2160_v55 = vpop.permute.xlu0 %2159 }
 0x44f   : > { %v15376_v20 = vrot.slane %v2971_v6, %v14946_v63  ;;  %v15379_v52 = vrot.slane %v11827_v45, %v14946_v63  ;;  %v2611_v14 = vrot.slane %v2603_v60, %v14952_v10  ;;  %v2618_v26 = vrot.slane %v2604_v48, %v14952_v10 }
 0x450   : > { %v15384_v17 = vrot.slane %v2987_v61, %v14946_v63  ;;  %v15387_v54 = vrot.slane %v11828_v44, %v14946_v63  ;;  %v15390_v33 = vrot.slane %v2619_v4, %v14952_v10  ;;  %v15393_v18 = vrot.slane %v2620_v37, %v14952_v10 }
 0x451   : > { %v3975_v3 = vcombine.low %v15068_v8, %v15076_v32  ;;  %v3983_v2 = vcombine.low %v3966_v42, %v3974_v12  ;;  %v3021_v41 = vcombine.low %v2611_v14, %v2618_v26  ;;  %v11829_v25 = vcombine.high %v2611_v14, %v2618_v26  ;;  %v2172_v12 = vpop.permute.xlu1 %2171 }
 0x452   : > { %v18578_v50 = vcombine.low %v15048_v46, %v15051_v36  ;;  %v18579_v6 = vcombine.high %v15048_v46, %v15051_v36  ;;  %v18580_v46 = vcombine.low %v15058_v9, %v15061_v16  ;;  %v18581_v44 = vcombine.high %v15058_v9, %v15061_v16 }
 0x453   : > { %v3982_v32 = vrot.slane %v3975_v3, %v14952_v10  ;;  %v3990_v42 = vrot.slane %v3983_v2, %v14952_v10  ;;  %v15412_v48 = vrot.slane %v3021_v41, %v14946_v63  ;;  %v15415_v61 = vrot.slane %v11829_v25, %v14946_v63 }
 0x454   : > { %v4000_v21 = vrot.slane %v18578_v50, %v14946_v63  ;;  %v4008_v45 = vrot.slane %v18579_v6, %v14946_v63  ;;  %v4016_v36 = vrot.slane %v18580_v46, %v14946_v63  ;;  %v4024_v4 = vrot.slane %v18581_v44, %v14946_v63 }
 0x455   : > { %v15425_v37 = vcombine.low %v3982_v32, %v3990_v42  ;;  %v15427_v26 = vcombine.high %v3982_v32, %v3990_v42  ;;  %v2229_v3 = vpack.i.b16 %v2160_v55, %v14840_v49  ;;  %v2232_v41 = vshrl.u32 %v2160_v55, 16 }
 0x456   : > { %v4025_v14 = vcombine.low %v4000_v21, %v4008_v45  ;;  %v4033_v2 = vcombine.low %v4016_v36, %v4024_v4  ;;  %v2237_v25 = vpack.i.b16 %v2172_v12, %v14842_v35  ;;  %v2240_v50 = vshrl.u32 %v2172_v12, 16 }
 0x457   : > { %v2639_v46 = vcombine.high %v2229_v3, %v14943_v0  ;;  %v2646_v8 = vrot.slane %v2229_v3, %v14946_v63  ;;  %v18582_v9 = vcombine.low %v15106_v19, %v15109_v30  ;;  %v18583_v45 = vshrl.u32 %v14840_v49, 16 }
 0x458   : > { %v4032_v6 = vrot.slane %v4025_v14, %v14952_v10  ;;  %v4040_v21 = vrot.slane %v4033_v2, %v14952_v10  ;;  %v18584_v32 = vshrl.u32 %v14842_v35, 16  ;;  %v2654_v12 = vcombine.high %v2237_v25, %v14943_v0 }
 0x459   : > { %v15438_v16 = vrot.slane %v18582_v9, %v14946_v63  ;;  %v2233_v55 = vpack.i.b16 %v2232_v41, %v18583_v45  ;;  %v2653_v36 = vrot.slane %v2639_v46, %v14946_v63  ;;  %v2661_v44 = vrot.slane %v2237_v25, %v14946_v63 }
 0x45a   : > { %v2241_v42 = vpack.i.b16 %v2240_v50, %v18584_v32  ;;  %v18585_v4 = vcombine.high %v15106_v19, %v15109_v30  ;;  %v4075_v3 = vcombine.low %v15118_v59, %v15121_v29  ;;  %v15454_v2 = vcombine.low %v4032_v6, %v4040_v21 }
 0x45b   : > { %v15456_v49 = vcombine.high %v4032_v6, %v4040_v21  ;;  %v2705_v35 = vcombine.high %v2233_v55, %v14943_v0  ;;  %v2712_v41 = vrot.slane %v2233_v55, %v14946_v63  ;;  %v2668_v50 = vrot.slane %v2654_v12, %v14946_v63 }
 0x45c   : > { %v4074_v14 = vrot.slane %v18585_v4, %v14946_v63  ;;  %v2669_v46 = vcombine.low %v2646_v8, %v2661_v44  ;;  %v2670_v25 = vcombine.high %v2646_v8, %v2661_v44  ;;  %v2720_v9 = vcombine.high %v2241_v42, %v14943_v0 }
 0x45d   : > { %v4257_v19 = vpack.i.b16 %v15454_v2, %v15425_v37  ;;  %v4263_v30 = vpack.i.b16 %v15456_v49, %v15427_v26  ;;  %v2719_v59 = vrot.slane %v2705_v35, %v14946_v63  ;;  %v2727_v29 = vrot.slane %v2241_v42, %v14946_v63 }
 0x45e   : > { %v2677_v6 = vrot.slane %v2669_v46, %v14952_v10  ;;  %v2684_v21 = vrot.slane %v2670_v25, %v14952_v10  ;;  %v2685_v45 = vcombine.low %v2653_v36, %v2668_v50  ;;  %v2686_v55 = vcombine.high %v2653_v36, %v2668_v50 }
 0x45f   : > { %12608 = vmatprep.subr.msk.bf16.mxu1 %vm5379_vm0, %v4257_v19  ;;  %12616 = vmatprep.subr.msk.bf16.mxu0 %vm5379_vm0, %v4263_v30  ;;  %v5396_v8 = vsel %vm5379_vm0, %v4257_v19, 0  ;;  %v5574_v32 = vsel %vm5379_vm0, %v4263_v30, 0  ;;  %v2734_v12 = vrot.slane %v2720_v9, %v14946_v63  ;;  %v2735_v44 = vcombine.low %v2712_v41, %v2727_v29 }
 0x460   : > { %12418 = vmatpush3.bf16.xpose.msra.mxu1 %v5396_v8  ;;  %12450 = vmatpush3.bf16.xpose.msra.mxu0 %v5574_v32  ;;  %v2693_v42 = vrot.slane %v2685_v45, %v14952_v10  ;;  %v2700_v4 = vrot.slane %v2686_v55, %v14952_v10  ;;  %v2736_v35 = vcombine.high %v2712_v41, %v2727_v29  ;;  %v4359_v36 = vshrl.u32 %v14924_v56, 16 }
 0x461   : > { %v15479_v50 = vrot.slane %v2735_v44, %v14952_v10  ;;  %v2751_v46 = vcombine.low %v2719_v59, %v2734_v12  ;;  %v2752_v25 = vcombine.high %v2719_v59, %v2734_v12  ;;  %v3071_v19 = vcombine.low %v2677_v6, %v2684_v21 }
 0x462   : > { %v15482_v30 = vrot.slane %v2736_v35, %v14952_v10  ;;  %v11831_v9 = vcombine.high %v2677_v6, %v2684_v21  ;;  %v3087_v60 = vcombine.low %v2693_v42, %v2700_v4  ;;  %v11832_v8 = vcombine.high %v2693_v42, %v2700_v4 }
 0x463   : > { %v15485_v32 = vrot.slane %v2751_v46, %v14952_v10  ;;  %v15488_v45 = vrot.slane %v2752_v25, %v14952_v10  ;;  %v15491_v41 = vrot.slane %v3071_v19, %v14946_v63  ;;  %v4246_v29 = vshrl.u32 %v15214_v39, 16 }
 0x464   : > { %v15495_v59 = vrot.slane %v11831_v9, %v14946_v63  ;;  %v15498_v55 = vrot.slane %v3087_v60, %v14946_v63  ;;  %v3121_v6 = vcombine.low %v15479_v50, %v15482_v30  ;;  %v4082_v21 = vrot.slane %v4075_v3, %v14952_v10 }
 0x465   : > { %v15504_v12 = vrot.slane %v11832_v8, %v14946_v63  ;;  %v11833_v44 = vcombine.high %v15479_v50, %v15482_v30  ;;  %v3137_v42 = vcombine.low %v15485_v32, %v15488_v45  ;;  %v4083_v4 = vcombine.low %v15438_v16, %v4074_v14 }
 0x466   : > { %v11834_v60 = vcombine.high %v15485_v32, %v15488_v45  ;;  %v18586_v35 = vcombine.low %v15112_v62, %v15115_v51  ;;  %v18587_v3 = vcombine.high %v15112_v62, %v15115_v51  ;;  %v18588_v50 = vcombine.low %v15126_v13, %v15129_v24  ;;  %v18616_v32 = vld [vmem:[#allocation35_spill] sm:$0xff] }
 0x467   : > { %v15526_v16 = vrot.slane %v3121_v6, %v14946_v63  ;;  %v4090_v14 = vrot.slane %v4083_v4, %v14952_v10  ;;  %v18589_v30 = vcombine.high %v15126_v13, %v15129_v24  ;;  %v18590_v62 = vcombine.low %v15161_v15, %v15164_v11 }
 0x468   : > { %v4100_v46 = vrot.slane %v18586_v35, %v14946_v63  ;;  %v4108_v25 = vrot.slane %v18587_v3, %v14946_v63  ;;  %v4116_v19 = vrot.slane %v18588_v50, %v14946_v63  ;;  %v18591_v35 = vcombine.high %v15161_v15, %v15164_v11 }
 0x469   : > { %v4124_v9 = vrot.slane %v18589_v30, %v14946_v63  ;;  %v4166_v51 = vrot.slane %v18590_v62, %v14946_v63  ;;  %v4175_v6 = vcombine.low %v15176_v38, %v15179_v5  ;;  %v18592_v4 = vcombine.low %v15155_v7, %v15158_v34 }
 0x46a   : > { %v4125_v8 = vcombine.low %v4100_v46, %v4108_v25  ;;  %v4174_v3 = vrot.slane %v18591_v35, %v14946_v63  ;;  %v15547_v24 = vcombine.low %v4082_v21, %v4090_v14  ;;  %v15549_v30 = vcombine.high %v4082_v21, %v4090_v14 }
 0x46b   : > { %v4200_v13 = vrot.slane %v18592_v4, %v14946_v63  ;;  %v4133_v50 = vcombine.low %v4116_v19, %v4124_v9  ;;  %v18593_v46 = vcombine.high %v15155_v7, %v15158_v34  ;;  %v4182_v11 = vrot.slane %v4175_v6, %v14952_v10  ;;  %v18598_v6 = vld [vmem:[#allocation43_spill] sm:$0xff] }
 0x46c   : > { %v4132_v15 = vrot.slane %v4125_v8, %v14952_v10  ;;  %v4183_v38 = vcombine.low %v4166_v51, %v4174_v3  ;;  %v18594_v5 = vcombine.low %v15169_v53, %v15172_v22  ;;  %v18595_v21 = vcombine.high %v15169_v53, %v15172_v22  ;;  %v18599_v53 = vld [vmem:[#allocation44_spill] sm:$0xff] }
 0x46d   : > { %v4208_v25 = vrot.slane %v18593_v46, %v14946_v63  ;;  %v4140_v35 = vrot.slane %v4133_v50, %v14952_v10  ;;  %v18596_v7 = vcombine.low %v15243_v58, %v15246_v31  ;;  %v18597_v51 = vcombine.high %v15243_v58, %v15246_v31 }
 0x46e   : > { %v4216_v62 = vrot.slane %v18594_v5, %v14946_v63  ;;  %v4224_v19 = vrot.slane %v18595_v21, %v14946_v63  ;;  %v4190_v9 = vrot.slane %v4183_v38, %v14952_v10  ;;  %v2803_v3 = vcombine.low %v15264_v27, %v15275_v23 }
 0x46f   : > { %v4225_v14 = vcombine.low %v4200_v13, %v4208_v25  ;;  %v2794_v34 = vrot.slane %v18596_v7, %v14946_v63  ;;  %v2802_v8 = vrot.slane %v18597_v51, %v14946_v63  ;;  %v18600_v22 = vcombine.low %v18598_v6, %v18599_v53  ;;  %v18606_v51 = vld [vmem:[#allocation41_spill] sm:$0xff] }
 0x470   : > { %v15581_v13 = vcombine.low %v4132_v15, %v4140_v35  ;;  %v15583_v50 = vcombine.high %v4132_v15, %v4140_v35  ;;  %v4233_v25 = vcombine.low %v4216_v62, %v4224_v19  ;;  %v15586_v38 = vcombine.low %v4182_v11, %v4190_v9  ;;  %v18603_v19 = vld [vmem:[#allocation46_spill] sm:$0xff] }
 0x471   : > { %v2828_v4 = vrot.slane %v18600_v22, %v14946_v63  ;;  %v4232_v46 = vrot.slane %v4225_v14, %v14952_v10  ;;  %v15588_v5 = vcombine.high %v4182_v11, %v4190_v9  ;;  %v2810_v58 = vrot.slane %v2803_v3, %v14952_v10  ;;  %v18602_v11 = vld [vmem:[#allocation45_spill] sm:$0xff] }
 0x472   : > { %v2811_v31 = vcombine.low %v2794_v34, %v2802_v8  ;;  %v4269_v27 = vpack.i.b16 %v15581_v13, %v15547_v24  ;;  %v4275_v23 = vpack.i.b16 %v15583_v50, %v15549_v30  ;;  %v4240_v21 = vrot.slane %v4233_v25, %v14952_v10 }
 0x473   : > { %v18601_v15 = vcombine.high %v18598_v6, %v18599_v53  ;;  %v18604_v14 = vcombine.low %v18602_v11, %v18603_v19  ;;  %v18605_v34 = vcombine.high %v18602_v11, %v18603_v19  ;;  %v4247_v8 = vshrl.u32 %v18606_v51, 16  ;;  %v18607_v11 = vld [vmem:[#allocation37_spill] sm:$0xff] }
 0x474   : > { %v2818_v35 = vrot.slane %v2811_v31, %v14952_v10  ;;  %12609 = vmatprep.subr.msk.bf16.mxu1 %vm5379_vm0, %v4269_v27  ;;  %12617 = vmatprep.subr.msk.bf16.mxu0 %vm5379_vm0, %v4275_v23  ;;  %v5399_v3 = vsel %vm5379_vm0, %v4269_v27, 0  ;;  %v5577_v6 = vsel %vm5379_vm0, %v4275_v23, 0  ;;  %v15614_v53 = vcombine.low %v4232_v46, %v4240_v21 }
 0x475   : > { %v2836_v62 = vrot.slane %v18601_v15, %v14946_v63  ;;  %v2844_v7 = vrot.slane %v18604_v14, %v14946_v63  ;;  %v2852_v9 = vrot.slane %v18605_v34, %v14946_v63  ;;  %v15616_v22 = vcombine.high %v4232_v46, %v4240_v21  ;;  %12420 = vmatpush3.bf16.xpose.msra.mxu1 %v5399_v3 }
 0x476   : > { %v15619_v25 = vrot.slane %v11833_v44, %v14946_v63  ;;  %12452 = vmatpush3.bf16.xpose.msra.mxu0 %v5577_v6  ;;  %v4367_v19 = vshrl.u32 %v18607_v11, 16  ;;  %v4281_v14 = vpack.i.b16 %v15614_v53, %v15586_v38  ;;  %v15626_v23 = vcombine.low %v2810_v58, %v2818_v35  ;;  %v4304_v6 = vpop.permute.xlu0 %4303 }
 0x477   : > { %v2853_v31 = vcombine.low %v2828_v4, %v2836_v62  ;;  %v2861_v15 = vcombine.low %v2844_v7, %v2852_v9  ;;  %v4287_v27 = vpack.i.b16 %v15616_v22, %v15588_v5  ;;  %v4248_v46 = vpack.i.b16 %v4247_v8, %v4246_v29 }
 0x478   : > { %v2968_v4 = vrot.slane %v2961_v47, %v14952_v10  ;;  %v4258_v62 = vshrl.u32 %v15425_v37, 16  ;;  %12610 = vmatprep.subr.msk.bf16.mxu1 %vm5379_vm0, %v4281_v14  ;;  %v5402_v7 = vsel %vm5379_vm0, %v4281_v14, 0  ;;  %v15640_v34 = vcombine.high %v2810_v58, %v2818_v35 }
 0x479   : > { %v2860_v44 = vrot.slane %v2853_v31, %v14952_v10  ;;  %v2868_v21 = vrot.slane %v2861_v15, %v14952_v10  ;;  %12618 = vmatprep.subr.msk.bf16.mxu0 %vm5379_vm0, %v4287_v27  ;;  %v15644_v39 = vcombine.low %v15337_v43, %v15347_v28  ;;  %v2920_v29 = vcombine.high %v15337_v43, %v15347_v28 }
 0x47a   : > { %v15653_v57 = vcombine.low %v15351_v40, %v2968_v4  ;;  %v2970_v47 = vcombine.high %v15351_v40, %v2968_v4  ;;  %v5580_v37 = vsel %vm5379_vm0, %v4287_v27, 0  ;;  %v3003_v35 = vcombine.low %v15376_v20, %v15379_v52 }
 0x47b   : > { %v15648_v9 = vcombine.low %v2860_v44, %v2868_v21  ;;  %v15650_v1 = vcombine.high %v2860_v44, %v2868_v21  ;;  %v3192_v58 = vshrl.u32 %v2920_v29, 16  ;;  %v3011_v51 = vcombine.low %v15384_v17, %v15387_v54  ;;  %v4316_v21 = vpop.permute.xlu1 %4315 }
 0x47c   : > { %v3185_v8 = vpack.i.b16 %v15653_v57, %v15644_v39  ;;  %v18608_v40 = vcombine.low %v15390_v33, %v15393_v18  ;;  %v3191_v31 = vpack.i.b16 %v2970_v47, %v2920_v29  ;;  %v3193_v20 = vshrl.u32 %v2970_v47, 16 }
 0x47d   : > { %v3173_v43 = vpack.i.b16 %v15648_v9, %v15626_v23  ;;  %v3179_v28 = vpack.i.b16 %v15650_v1, %v15640_v34  ;;  %v3010_v52 = vrot.slane %v3003_v35, %v14952_v10  ;;  %v3018_v17 = vrot.slane %v3011_v51, %v14952_v10  ;;  %12422 = vmatpush3.bf16.xpose.msra.mxu1 %v5402_v7  ;;  %v18612_v51 = vld [vmem:[#allocation34_spill] sm:$0xff] }
 0x47e   : > { %v3044_v3 = vrot.slane %v18608_v40, %v14946_v63  ;;  %v18609_v54 = vcombine.high %v15390_v33, %v15393_v18  ;;  %v3053_v14 = vcombine.low %v15412_v48, %v15415_v61  ;;  %v5482_v27 = vsel %vm5379_vm0, %v4248_v46, 0  ;;  %12454 = vmatpush3.bf16.xpose.msra.mxu0 %v5580_v37  ;;  %12611 = vmatprep.subr.msk.bf16.mxu1 %vm5379_vm0, %v4248_v46  ;;  %v18610_v61 = vld [vmem:[#allocation33_spill] sm:$0xff] }
 0x47f   : > { %12423 = vmatprep.mubr.msk.bf16.mxu1 %vm5379_vm0, %v3173_v43  ;;  %v4259_v44 = vshrl.u32 %v15454_v2, 16  ;;  %12455 = vmatprep.mubr.msk.bf16.mxu0 %vm5379_vm0, %v3179_v28  ;;  %v15683_v4 = vpack.i.b16 %v3193_v20, %v3192_v58  ;;  %v15685_v7 = vcombine.low %v3010_v52, %v3018_v17  ;;  %v15687_v29 = vcombine.high %v3010_v52, %v3018_v17 }
 0x480   : > { %v3052_v15 = vrot.slane %v18609_v54, %v14946_v63  ;;  %v4328_v47 = vshrl.u32 %v4304_v6, 16  ;;  %v3060_v33 = vrot.slane %v3053_v14, %v14952_v10  ;;  %v4325_v35 = vpack.i.b16 %v4304_v6, %v18610_v61 }
 0x481   : > { %v4260_v48 = vpack.i.b16 %v4259_v44, %v4258_v62  ;;  %v18611_v2 = vshrl.u32 %v18610_v61, 16  ;;  %v4333_v43 = vpack.i.b16 %v4316_v21, %v18612_v51  ;;  %v4336_v58 = vshrl.u32 %v4316_v21, 16 }
 0x482   : > { %v3061_v18 = vcombine.low %v3044_v3, %v3052_v15  ;;  %v3103_v28 = vcombine.low %v15491_v41, %v15495_v59  ;;  %v4387_v20 = vcombine.high %v4325_v35, %v14943_v0  ;;  %v4394_v46 = vrot.slane %v4325_v35, %v14946_v63 }
 0x483   : > { %v4329_v37 = vpack.i.b16 %v4328_v47, %v18611_v2  ;;  %v3111_v62 = vcombine.low %v15498_v55, %v15504_v12  ;;  %v18613_v52 = vshrl.u32 %v18612_v51, 16  ;;  %v4402_v54 = vcombine.high %v4333_v43, %v14943_v0  ;;  %v18614_v47 = vld [vmem:[#allocation40_spill] sm:$0xff] }
 0x484   : > { %v3068_v40 = vrot.slane %v3061_v18, %v14952_v10  ;;  %v4401_v59 = vrot.slane %v4387_v20, %v14946_v63  ;;  %v4409_v14 = vrot.slane %v4333_v43, %v14946_v63  ;;  %12424 = vmatmul.mubr.msk.bf16.vlgmr.msra.gmra.mrb[48].mxu1 %vm5379_vm0, %v3185_v8  ;;  %v4252_v18 = vshrl.u32 %v18614_v47, 16  ;;  %v18615_v43 = vld [vmem:[#allocation42_spill] sm:$0xff]  ;;  %v4306_v20 = vpop.permute.xlu1 %4305 }
 0x485   : > { %v4453_v3 = vcombine.high %v4329_v37, %v14943_v0  ;;  %v4460_v6 = vrot.slane %v4329_v37, %v14946_v63  ;;  %v4337_v17 = vpack.i.b16 %v4336_v58, %v18613_v52  ;;  %v4416_v12 = vrot.slane %v4402_v54, %v14946_v63  ;;  %12456 = vmatmul.mubr.msk.bf16.vlgmr.msra.gmra.mrb[0].mxu0 %vm5379_vm0, %v3191_v31 }
 0x486   : > { %v15707_v15 = vcombine.low %v3060_v33, %v3068_v40  ;;  %v15709_v41 = vcombine.high %v3060_v33, %v3068_v40  ;;  %12432 = vmatpush3.bf16.xpose.msra.mxu1 %v5482_v27  ;;  %v4417_v8 = vcombine.low %v4394_v46, %v4409_v14  ;;  %v4418_v35 = vcombine.high %v4394_v46, %v4409_v14 }
 0x487   : > { %v4467_v55 = vrot.slane %v4453_v3, %v14946_v63  ;;  %v4468_v44 = vcombine.high %v4337_v17, %v14943_v0  ;;  %v4475_v21 = vrot.slane %v4337_v17, %v14946_v63  ;;  %12612 = vmatprep.subr.msk.bf16.mxu1 %vm5379_vm0, %v4260_v48  ;;  %v4433_v2 = vcombine.low %v4401_v59, %v4416_v12 }
 0x488   : > { %v3197_v33 = vpack.i.b16 %v15707_v15, %v15685_v7  ;;  %v3203_v61 = vpack.i.b16 %v15709_v41, %v15687_v29  ;;  %v4434_v37 = vcombine.high %v4401_v59, %v4416_v12  ;;  %v4253_v58 = vshrl.u32 %v18615_v43, 16 }
 0x489   : > { %v4482_v51 = vrot.slane %v4468_v44, %v14946_v63  ;;  %v15730_v31 = vrot.slane %v4417_v8, %v14952_v10  ;;  %v4483_v27 = vcombine.low %v4460_v6, %v4475_v21  ;;  %v4484_v40 = vcombine.high %v4460_v6, %v4475_v21 }
 0x48a   : > { %12427 = vmatprep.mubr.msk.bf16.mxu1 %vm5379_vm0, %v3197_v33  ;;  %12459 = vmatprep.mubr.msk.bf16.mxu0 %vm5379_vm0, %v3203_v61  ;;  %v15733_v3 = vrot.slane %v4418_v35, %v14952_v10  ;;  %v15736_v46 = vrot.slane %v4433_v2, %v14952_v10  ;;  %v15739_v52 = vrot.slane %v4434_v37, %v14952_v10  ;;  %v5485_v21 = vsel %vm5379_vm0, %v4260_v48, 0 }
 0x48b   : > { %v4499_v17 = vcombine.low %v4467_v55, %v4482_v51  ;;  %v15743_v59 = vrot.slane %v4483_v27, %v14952_v10  ;;  %v15746_v14 = vrot.slane %v4484_v40, %v14952_v10  ;;  %v4500_v6 = vcombine.high %v4467_v55, %v4482_v51 }
 0x48c   : > { %v4915_v12 = vcombine.low %v15730_v31, %v15733_v3  ;;  %v3110_v44 = vrot.slane %v3103_v28, %v14952_v10  ;;  %v3174_v33 = vshrl.u32 %v15626_v23, 16  ;;  %v11851_v35 = vcombine.high %v15730_v31, %v15733_v3 }
 0x48d   : > { %v15754_v61 = vrot.slane %v4499_v17, %v14952_v10  ;;  %v15757_v8 = vrot.slane %v4500_v6, %v14952_v10  ;;  %v4931_v55 = vcombine.low %v15736_v46, %v15739_v52  ;;  %v11852_v2 = vcombine.high %v15736_v46, %v15739_v52 }
 0x48e   : > { %v3118_v23 = vrot.slane %v3111_v62, %v14952_v10  ;;  %v3144_v28 = vrot.slane %v3137_v42, %v14946_v63  ;;  %v15773_v37 = vrot.slane %v4915_v12, %v14946_v63  ;;  %v3152_v31 = vrot.slane %v11834_v60, %v14946_v63  ;;  %12434 = vmatpush3.bf16.xpose.msra.mxu1 %v5485_v21  ;;  %v4318_v62 = vpop.permute.xlu1 %4317 }
 0x48f   : > { %v3153_v27 = vcombine.low %v15526_v16, %v15619_v25  ;;  %v3175_v42 = vshrl.u32 %v15648_v9, 16  ;;  %v4270_v17 = vshrl.u32 %v15547_v24, 16  ;;  %v4271_v54 = vshrl.u32 %v15581_v13, 16  ;;  %v18617_v16 = vld [vmem:[#allocation36_spill] sm:$0xff] }
 0x490   : > { %v15783_v40 = vcombine.low %v3110_v44, %v3118_v23  ;;  %v15785_v3 = vcombine.high %v3110_v44, %v3118_v23  ;;  %v3161_v12 = vcombine.low %v3144_v28, %v3152_v31  ;;  %v4341_v45 = vpack.i.b16 %v4306_v20, %v18616_v32 }
 0x491   : > { %v3160_v6 = vrot.slane %v3153_v27, %v14952_v10  ;;  %v3176_v60 = vpack.i.b16 %v3175_v42, %v3174_v33  ;;  %v4344_v51 = vshrl.u32 %v4306_v20, 16  ;;  %v4349_v25 = vpack.i.b16 %v4318_v62, %v18617_v16 }
 0x492   : > { %v4352_v21 = vshrl.u32 %v4318_v62, 16  ;;  %v3168_v48 = vrot.slane %v3161_v12, %v14952_v10  ;;  %v4272_v44 = vpack.i.b16 %v4271_v54, %v4270_v17  ;;  %v4519_v23 = vcombine.high %v4341_v45, %v14943_v0 }
 0x493   : > { %v4526_v9 = vrot.slane %v4341_v45, %v14946_v63  ;;  %v18618_v24 = vshrl.u32 %v18616_v32, 16  ;;  %v18619_v28 = vshrl.u32 %v18617_v16, 16  ;;  %v4534_v31 = vcombine.high %v4349_v25, %v14943_v0 }
 0x494   : > { %v4541_v20 = vrot.slane %v4349_v25, %v14946_v63  ;;  %v15802_v33 = vcombine.low %v3160_v6, %v3168_v48  ;;  %v15804_v62 = vcombine.high %v3160_v6, %v3168_v48  ;;  %12613 = vmatprep.subr.msk.bf16.mxu1 %vm5379_vm0, %v4272_v44  ;;  %v4533_v54 = vrot.slane %v4519_v23, %v14946_v63 }
 0x495   : > { %v4345_v27 = vpack.i.b16 %v4344_v51, %v18618_v24  ;;  %v4353_v13 = vpack.i.b16 %v4352_v21, %v18619_v28  ;;  %v5488_v42 = vsel %vm5379_vm0, %v4272_v44, 0  ;;  %v4548_v12 = vrot.slane %v4534_v31, %v14946_v63  ;;  %v4308_v31 = vpop.permute.xlu0 %4307 }
 0x496   : > { %v4549_v32 = vcombine.low %v4526_v9, %v4541_v20  ;;  %v3209_v45 = vpack.i.b16 %v15802_v33, %v15783_v40  ;;  %v3215_v48 = vpack.i.b16 %v15804_v62, %v15785_v3  ;;  %v4550_v6 = vcombine.high %v4526_v9, %v4541_v20  ;;  %12436 = vmatpush3.bf16.xpose.msra.mxu1 %v5488_v42 }
 0x497   : > { %v4585_v17 = vcombine.high %v4345_v27, %v14943_v0  ;;  %v4592_v51 = vrot.slane %v4345_v27, %v14946_v63  ;;  %v4600_v16 = vcombine.high %v4353_v13, %v14943_v0  ;;  %v4565_v44 = vcombine.low %v4533_v54, %v4548_v12 }
 0x498   : > { %v4557_v21 = vrot.slane %v4549_v32, %v14952_v10  ;;  %v4566_v23 = vcombine.high %v4533_v54, %v4548_v12  ;;  %12428 = vmatmul.mubr.msk.bf16.gmra.mrb[52].mxu1 %vm5379_vm0, %v3209_v45  ;;  %12460 = vmatmul.mubr.msk.bf16.gmra.mrb[4].mxu0 %vm5379_vm0, %v3215_v48  ;;  %v4564_v27 = vrot.slane %v4550_v6, %v14952_v10 }
 0x499   : > { %v4599_v25 = vrot.slane %v4585_v17, %v14946_v63  ;;  %v4607_v28 = vrot.slane %v4353_v13, %v14946_v63  ;;  %v4614_v9 = vrot.slane %v4600_v16, %v14946_v63  ;;  %v15826_v20 = vrot.slane %v11851_v35, %v14946_v63  ;;  %12439 = vmatprep.mubr.msk.bf16.mxu1 %vm5379_vm0, %v3176_v60 }
 0x49a   : > { %v15830_v54 = vrot.slane %v4565_v44, %v14952_v10  ;;  %v15833_v42 = vrot.slane %v4566_v23, %v14952_v10  ;;  %v4283_v17 = vshrl.u32 %v15614_v53, 16  ;;  %v5015_v48 = vcombine.low %v4557_v21, %v4564_v27 }
 0x49b   : > { %v4615_v12 = vcombine.low %v4592_v51, %v4607_v28  ;;  %v4616_v32 = vcombine.high %v4592_v51, %v4607_v28  ;;  %v4631_v45 = vcombine.low %v4599_v25, %v4614_v9  ;;  %v4632_v13 = vcombine.high %v4599_v25, %v4614_v9  ;;  %v4320_v51 = vpop.permute.xlu1 %4319 }
 0x49c   : > { %v11855_v6 = vcombine.high %v4557_v21, %v4564_v27  ;;  %v4282_v16 = vshrl.u32 %v15586_v38, 16  ;;  %v4357_v35 = vpack.i.b16 %v4308_v31, %v14924_v56  ;;  %v4981_v60 = vcombine.low %v15754_v61, %v15757_v8 }
 0x49d   : > { %v11854_v44 = vcombine.high %v15754_v61, %v15757_v8  ;;  %v15843_v23 = vrot.slane %v4615_v12, %v14952_v10  ;;  %v15846_v53 = vrot.slane %v4616_v32, %v14952_v10  ;;  %v5031_v25 = vcombine.low %v15830_v54, %v15833_v42 }
 0x49e   : > { %v11856_v38 = vcombine.high %v15830_v54, %v15833_v42  ;;  %v4284_v21 = vpack.i.b16 %v4283_v17, %v4282_v16  ;;  %v4360_v27 = vshrl.u32 %v4308_v31, 16  ;;  %v15853_v28 = vrot.slane %v4631_v45, %v14952_v10 }
 0x49f   : > { %v15856_v9 = vrot.slane %v4632_v13, %v14952_v10  ;;  %v15859_v12 = vrot.slane %v5015_v48, %v14946_v63  ;;  %v15862_v32 = vrot.slane %v11855_v6, %v14946_v63  ;;  %v4651_v17 = vcombine.high %v4357_v35, %v14943_v0 }
 0x4a0   : > { %12614 = vmatprep.subr.msk.bf16.mxu1 %vm5379_vm0, %v4284_v21  ;;  %v4361_v31 = vpack.i.b16 %v4360_v27, %v4359_v36  ;;  %v4365_v45 = vpack.i.b16 %v4320_v51, %v18607_v11  ;;  %v4658_v13 = vrot.slane %v4357_v35, %v14946_v63  ;;  %v4368_v16 = vshrl.u32 %v4320_v51, 16 }
 0x4a1   : > { %v5491_v48 = vsel %vm5379_vm0, %v4284_v21, 0  ;;  %v15877_v6 = vpack.i.b16 %v4253_v58, %v4252_v18  ;;  %v4665_v24 = vrot.slane %v4651_v17, %v14946_v63  ;;  %v4938_v35 = vrot.slane %v4931_v55, %v14946_v63 }
 0x4a2   : > { %v4717_v56 = vcombine.high %v4361_v31, %v14943_v0  ;;  %v4666_v36 = vcombine.high %v4365_v45, %v14943_v0  ;;  %12438 = vmatpush3.bf16.xpose.msra.mxu1 %v5491_v48  ;;  %v4724_v51 = vrot.slane %v4361_v31, %v14946_v63  ;;  %v4369_v47 = vpack.i.b16 %v4368_v16, %v4367_v19 }
 0x4a3   : > { %v4673_v18 = vrot.slane %v4365_v45, %v14946_v63  ;;  %12619 = vmatprep.subr.msk.bf16.mxu1 %vm5379_vm0, %v15877_v6  ;;  %v4946_v43 = vrot.slane %v11852_v2, %v14946_v63  ;;  %v11857_v58 = vcombine.high %v15843_v23, %v15846_v53  ;;  %v4947_v11 = vcombine.low %v15773_v37, %v15826_v20 }
 0x4a4   : > { %v4731_v55 = vrot.slane %v4717_v56, %v14946_v63  ;;  %v4680_v21 = vrot.slane %v4666_v36, %v14946_v63  ;;  %v4732_v31 = vcombine.high %v4369_v47, %v14943_v0  ;;  %v4739_v17 = vrot.slane %v4369_v47, %v14946_v63 }
 0x4a5   : > { %v4681_v19 = vcombine.low %v4658_v13, %v4673_v18  ;;  %v4682_v27 = vcombine.high %v4658_v13, %v4673_v18  ;;  %v4955_v46 = vcombine.low %v4938_v35, %v4946_v43  ;;  %v18620_v52 = vcombine.low %v15743_v59, %v15746_v14 }
 0x4a6   : > { %v4697_v45 = vcombine.low %v4665_v24, %v4680_v21  ;;  %v4698_v16 = vcombine.high %v4665_v24, %v4680_v21  ;;  %v4746_v37 = vrot.slane %v4732_v31, %v14946_v63  ;;  %v4747_v20 = vcombine.low %v4724_v51, %v4739_v17 }
 0x4a7   : > { %v4972_v2 = vrot.slane %v18620_v52, %v14946_v63  ;;  %v4689_v48 = vrot.slane %v4681_v19, %v14952_v10  ;;  %v4696_v56 = vrot.slane %v4682_v27, %v14952_v10  ;;  %v4748_v24 = vcombine.high %v4724_v51, %v4739_v17 }
 0x4a8   : > { %v15912_v13 = vrot.slane %v4697_v45, %v14952_v10  ;;  %v15915_v36 = vrot.slane %v4698_v16, %v14952_v10  ;;  %v18621_v35 = vcombine.high %v15743_v59, %v15746_v14  ;;  %v4763_v18 = vcombine.low %v4731_v55, %v4746_v37 }
 0x4a9   : > { %v4764_v43 = vcombine.high %v4731_v55, %v4746_v37  ;;  %v5115_v21 = vcombine.low %v4689_v48, %v4696_v56  ;;  %v15922_v19 = vrot.slane %v4955_v46, %v14952_v10  ;;  %v5081_v27 = vcombine.low %v15853_v28, %v15856_v9 }
 0x4aa   : > { %v4980_v47 = vrot.slane %v18621_v35, %v14946_v63  ;;  %v11858_v31 = vcombine.high %v15853_v28, %v15856_v9  ;;  %v11859_v45 = vcombine.high %v4689_v48, %v4696_v56  ;;  %v15929_v51 = vrot.slane %v4947_v11, %v14952_v10 }
 0x4ab   : > { %v4755_v17 = vrot.slane %v4747_v20, %v14952_v10  ;;  %v4762_v59 = vrot.slane %v4748_v24, %v14952_v10  ;;  %v5131_v14 = vcombine.low %v15912_v13, %v15915_v36  ;;  %v11860_v55 = vcombine.high %v15912_v13, %v15915_v36 }
 0x4ac   : > { %v4771_v16 = vrot.slane %v4763_v18, %v14952_v10  ;;  %v4778_v46 = vrot.slane %v4764_v43, %v14952_v10  ;;  %v15940_v28 = vrot.slane %v5115_v21, %v14946_v63  ;;  %v4988_v9 = vrot.slane %v4981_v60, %v14946_v63 }
 0x4ad   : > { %v15947_v11 = vrot.slane %v11859_v45, %v14946_v63  ;;  %v15951_v52 = vcombine.low %v15929_v51, %v15922_v19  ;;  %v4996_v48 = vrot.slane %v11854_v44, %v14946_v63  ;;  %v4997_v56 = vcombine.low %v4972_v2, %v4980_v47 }
 0x4ae   : > { %v3186_v37 = vshrl.u32 %v15644_v39, 16  ;;  %v3187_v20 = vshrl.u32 %v15653_v57, 16  ;;  %v3198_v13 = vshrl.u32 %v15685_v7, 16  ;;  %v3199_v60 = vshrl.u32 %v15707_v15, 16 }
 0x4af   : > { %v5165_v36 = vcombine.low %v4755_v17, %v4762_v59  ;;  %v11861_v24 = vcombine.high %v4755_v17, %v4762_v59  ;;  %v15962_v35 = vrot.slane %v4997_v56, %v14952_v10  ;;  %v5005_v18 = vcombine.low %v4988_v9, %v4996_v48 }
 0x4b0   : > { %v3188_v43 = vpack.i.b16 %v3187_v20, %v3186_v37  ;;  %v3200_v21 = vpack.i.b16 %v3199_v60, %v3198_v13  ;;  %v4264_v61 = vshrl.u32 %v15427_v26, 16  ;;  %v4265_v8 = vshrl.u32 %v15456_v49, 16 }
 0x4b1   : > { %v15967_v39 = vrot.slane %v5005_v18, %v14952_v10  ;;  %v3211_v57 = vshrl.u32 %v15802_v33, 16  ;;  %v5038_v7 = vrot.slane %v5031_v25, %v14946_v63  ;;  %v5046_v15 = vrot.slane %v11856_v38, %v14946_v63 }
 0x4b2   : > { %12440 = vmatmul.mubr.msk.bf16.vlgmr.msra.gmra.mrb[56].mxu1 %vm5379_vm0, %v3188_v43  ;;  %v5660_v26 = vsel %vm5379_vm0, %v15877_v6, 0  ;;  %v4266_v49 = vpack.i.b16 %v4265_v8, %v4264_v61  ;;  %v18622_v33 = vcombine.low %v15843_v23, %v15846_v53  ;;  %v5080_v2 = vrot.slane %v11857_v58, %v14946_v63 }
 0x4b3   : > { %v15988_v25 = vcombine.low %v15962_v35, %v15967_v39  ;;  %12443 = vmatprep.mubr.msk.bf16.mxu1 %vm5379_vm0, %v3200_v21  ;;  %12464 = vmatpush3.bf16.xpose.msra.mxu1 %v5660_v26  ;;  %v3210_v54 = vshrl.u32 %v15783_v40, 16  ;;  %v5047_v42 = vcombine.low %v15859_v12, %v15862_v32  ;;  %v5055_v38 = vcombine.low %v5038_v7, %v5046_v15 }
 0x4b4   : > { %v5072_v44 = vrot.slane %v18622_v33, %v14946_v63  ;;  %v5181_v6 = vcombine.low %v4771_v16, %v4778_v46  ;;  %12620 = vmatprep.subr.msk.bf16.mxu1 %vm5379_vm0, %v4266_v49  ;;  %v5088_v23 = vrot.slane %v5081_v27, %v14946_v63  ;;  %v5096_v53 = vrot.slane %v11858_v31, %v14946_v63 }
 0x4b5   : > { %v11862_v47 = vcombine.high %v4771_v16, %v4778_v46  ;;  %v5317_v45 = vpack.i.b16 %v15988_v25, %v15951_v52  ;;  %v3212_v17 = vpack.i.b16 %v3211_v57, %v3210_v54  ;;  %v4276_v59 = vshrl.u32 %v15549_v30, 16 }
 0x4b6   : > { %v5097_v58 = vcombine.low %v5072_v44, %v5080_v2  ;;  %v5062_v40 = vrot.slane %v5055_v38, %v14952_v10  ;;  %v5105_v9 = vcombine.low %v5088_v23, %v5096_v53  ;;  %v4277_v12 = vshrl.u32 %v15583_v50, 16 }
 0x4b7   : > { %v5138_v32 = vrot.slane %v5131_v14, %v14946_v63  ;;  %12479 = vmatprep.subr.bf16.mxu0 %v5317_v45  ;;  %v5054_v27 = vrot.slane %v5047_v42, %v14952_v10  ;;  %v5146_v16 = vrot.slane %v11860_v55, %v14946_v63  ;;  %v5172_v46 = vrot.slane %v5165_v36, %v14946_v63 }
 0x4b8   : > { %v5104_v31 = vrot.slane %v5097_v58, %v14952_v10  ;;  %12480 = vmatpush3.bf16.msra.mxu0 %v5317_v45  ;;  %v5112_v48 = vrot.slane %v5105_v9, %v14952_v10  ;;  %v5147_v30 = vcombine.low %v15940_v28, %v15947_v11  ;;  %v5180_v56 = vrot.slane %v11861_v24, %v14946_v63 }
 0x4b9   : > { %v5188_v50 = vrot.slane %v5181_v6, %v14946_v63  ;;  %v5663_v14 = vsel %vm5379_vm0, %v4266_v49, 0  ;;  %v18623_v37 = vshrl.u32 %v15640_v34, 16  ;;  %v18624_v20 = vshrl.u32 %v15650_v1, 16 }
 0x4ba   : > { %v5155_v55 = vcombine.low %v5138_v32, %v5146_v16  ;;  %v5196_v60 = vrot.slane %v11862_v47, %v14946_v63  ;;  %12444 = vmatmul.mubr.msk.bf16.gmra.mrb[60].mxu1 %vm5379_vm0, %v3212_v17  ;;  %v5063_v36 = vcombine.low %v5054_v27, %v5062_v40  ;;  %v5113_v18 = vcombine.low %v5104_v31, %v5112_v48 }
 0x4bb   : > { %v3182_v13 = vpack.i.b16 %v18624_v20, %v18623_v37  ;;  %v4278_v43 = vpack.i.b16 %v4277_v12, %v4276_v59  ;;  %v5197_v28 = vcombine.low %v5172_v46, %v5180_v56  ;;  %12466 = vmatpush3.bf16.xpose.msra.mxu1 %v5663_v14  ;;  %v5154_v34 = vrot.slane %v5147_v30, %v14952_v10 }
 0x4bc   : > { %v5162_v11 = vrot.slane %v5155_v55, %v14952_v10  ;;  %v5205_v24 = vcombine.low %v5188_v50, %v5196_v60  ;;  %v5333_v21 = vpack.i.b16 %v5113_v18, %v5063_v36  ;;  %v4289_v1 = vshrl.u32 %v15616_v22, 16 }
 0x4bd   : > { %12471 = vmatprep.mubr.msk.bf16.mxu1 %vm5379_vm0, %v3182_v13  ;;  %12621 = vmatprep.subr.msk.bf16.mxu1 %vm5379_vm0, %v4278_v43  ;;  %v5204_v61 = vrot.slane %v5197_v28, %v14952_v10  ;;  %v3204_v57 = vshrl.u32 %v15687_v29, 16  ;;  %v3205_v7 = vshrl.u32 %v15709_v41, 16  ;;  %v4288_v26 = vshrl.u32 %v15588_v5, 16 }
 0x4be   : > { %v5212_v8 = vrot.slane %v5205_v24, %v14952_v10  ;;  %12481 = vmatprep.subr.bf16.mxu0 %v5333_v21  ;;  %v5163_v15 = vcombine.low %v5154_v34, %v5162_v11  ;;  %v3216_v44 = vshrl.u32 %v15785_v3, 16  ;;  %v3217_v2 = vshrl.u32 %v15804_v62, 16 }
 0x4bf   : > { %12482 = vmatpush3.bf16.msra.mxu0 %v5333_v21  ;;  %v3206_v33 = vpack.i.b16 %v3205_v7, %v3204_v57  ;;  %v5666_v22 = vsel %vm5379_vm0, %v4278_v43, 0  ;;  %v4964_v54 = vcombine.high %v15929_v51, %v15922_v19  ;;  %v5014_v29 = vcombine.high %v15962_v35, %v15967_v39 }
 0x4c0   : > { %v5213_v49 = vcombine.low %v5204_v61, %v5212_v8  ;;  %v5064_v41 = vcombine.high %v5054_v27, %v5062_v40  ;;  %v4290_v38 = vpack.i.b16 %v4289_v1, %v4288_v26  ;;  %v3218_v6 = vpack.i.b16 %v3217_v2, %v3216_v44 }
 0x4c1   : > { %v5114_v5 = vcombine.high %v5104_v31, %v5112_v48  ;;  %v16036_v23 = vpack.i.b16 %v5014_v29, %v4964_v54  ;;  %v5327_v53 = vshrl.u32 %v4964_v54, 16  ;;  %v5328_v58 = vshrl.u32 %v5014_v29, 16 }
 0x4c2   : > { %v5349_v42 = vpack.i.b16 %v5213_v49, %v5163_v15  ;;  %v5164_v3 = vcombine.high %v5154_v34, %v5162_v11  ;;  %v5214_v47 = vcombine.high %v5204_v61, %v5212_v8  ;;  %v5343_v51 = vshrl.u32 %v5064_v41, 16 }
 0x4c3   : > { %12468 = vmatpush3.bf16.xpose.msra.mxu1 %v5666_v22  ;;  %v16038_v62 = vpack.i.b16 %v5114_v5, %v5064_v41  ;;  %v16041_v19 = vpack.i.b16 %v5328_v58, %v5327_v53  ;;  %v5344_v35 = vshrl.u32 %v5114_v5, 16  ;;  %v5320_v59 = vshrl.u32 %v15988_v25, 16 }
 0x4c4   : > { %12483 = vmatprep.subr.bf16.mxu0 %v5349_v42  ;;  %12622 = vmatprep.subr.msk.bf16.mxu1 %vm5379_vm0, %v4290_v38  ;;  %v16043_v39 = vpack.i.b16 %v5214_v47, %v5164_v3  ;;  %v5359_v45 = vshrl.u32 %v5164_v3, 16  ;;  %v5360_v17 = vshrl.u32 %v5214_v47, 16  ;;  %v5319_v12 = vshrl.u32 %v15951_v52, 16 }
 0x4c5   : > { %12484 = vmatpush3.bf16.msra.mxu0 %v5349_v42  ;;  %v16046_v40 = vpack.i.b16 %v5344_v35, %v5343_v51  ;;  %v5669_v32 = vsel %vm5379_vm0, %v4290_v38, 0  ;;  %v5336_v31 = vshrl.u32 %v5113_v18, 16  ;;  %v5335_v16 = vshrl.u32 %v5063_v36, 16 }
 0x4c6   : > { %v16048_v9 = vpack.i.b16 %v5360_v17, %v5359_v45  ;;  %v5321_v27 = vpack.i.b16 %v5320_v59, %v5319_v12  ;;  %v5352_v48 = vshrl.u32 %v5213_v49, 16  ;;  %v5351_v25 = vshrl.u32 %v5163_v15, 16 }
 0x4c7   : > { %v5337_v46 = vpack.i.b16 %v5336_v31, %v5335_v16 }
 0x4c8   : > { %v5353_v30 = vpack.i.b16 %v5352_v48, %v5351_v25 }
 0x4cb   : > { %12470 = vmatpush3.bf16.xpose.msra.mxu1 %v5669_v32 }
 0x4cc   : > { %12495 = vmatprep.subr.bf16.mxu1 %v5321_v27 }
 0x4d2   : > { %12472 = vmatmul.mubr.msk.bf16.vlgmr.msra.gmra.mrb[64].mxu1 %vm5379_vm0, %v15683_v4 }
 0x4d3   : > { %12475 = vmatprep.mubr.msk.bf16.mxu1 %vm5379_vm0, %v3206_v33  ;;  %12496 = vmatpush3.bf16.msra.mxu1 %v5321_v27 }
 0x4d4   : > { %12497 = vmatprep.subr.bf16.mxu1 %v5337_v46 }
 0x4d7   : > { %12498 = vmatpush3.bf16.msra.mxu1 %v5337_v46 }
 0x4d8   : > { %12499 = vmatprep.subr.bf16.mxu1 %v5353_v30 }
 0x4da   : > { %12476 = vmatmul.mubr.msk.bf16.gmra.mrb[68].mxu1 %vm5379_vm0, %v3218_v6 }
 0x4db   : > { %12500 = vmatpush3.bf16.msra.mxu1 %v5353_v30 }
 0x557   : > { %v16056_v52 = vpop.f32.mrb[48].mxu1 }
 0x558   : > { %v16058_v56 = vpop.f32.mrb[0].mxu0  ;;  %v16060_v50 = vpop.f32.mrb[49].mxu1  ;;  %v5742_v4 = vsel %vm5379_vm0, %v16056_v52, -inf }
 0x559   : > { %v16064_v14 = vpop.f32.mrb[1].mxu0  ;;  %v16066_v37 = vpop.f32.mrb[50].mxu1  ;;  %5743 = vmax.xlane.f32.xlu0 %v5742_v4  ;;  %v5790_v36 = vsel %vm5379_vm0, %v16058_v56, -inf  ;;  %v5736_v43 = vsel %vm5379_vm0, %v16060_v50, -inf }
 0x55a   : > { %v16068_v20 = vpop.f32.mrb[2].mxu0  ;;  %v16070_v13 = vpop.f32.mrb[51].mxu1  ;;  %v5745_v55 = vsel %vm5379_vm0, %v16066_v37, -inf  ;;  %v5784_v11 = vsel %vm5379_vm0, %v16064_v14, -inf }
 0x55b   : > { %v16074_v60 = vpop.f32.mrb[3].mxu0  ;;  %5746 = vmax.xlane.f32.xlu1 %v5745_v55  ;;  %v5793_v18 = vsel %vm5379_vm0, %v16068_v20, -inf  ;;  %v5739_v28 = vsel %vm5379_vm0, %v16070_v13, -inf }
 0x55c   : > { %v5787_v24 = vsel %vm5379_vm0, %v16074_v60, -inf }
 0x55d   : > { %5791 = vmax.xlane.f32.xlu0 %v5790_v36 }
 0x55f   : > { %5794 = vmax.xlane.f32.xlu1 %v5793_v18 }
 0x561   : > { %5737 = vmax.xlane.f32.xlu0 %v5736_v43 }
 0x563   : > { %5740 = vmax.xlane.f32.xlu1 %v5739_v28  ;;  %v18625_v28 = vld [vmem:[#allocation39_spill] sm:$0xff] }
 0x565   : > { %5785 = vmax.xlane.f32.xlu0 %v5784_v11  ;;  %v18626_v11 = vld [vmem:[#allocation38_spill] sm:$0xff] }
 0x567   : > { %5788 = vmax.xlane.f32.xlu1 %v5787_v24 }
 0x56b   : > { %v16088_v21 = vpop.f32.mrb[52].mxu1  ;;  %v16090_v34 = vpop.f32.mrb[4].mxu0 }
 0x56c   : > { %v16092_v1 = vpop.f32.mrb[53].mxu1  ;;  %v16094_v61 = vpop.f32.mrb[5].mxu0  ;;  %v5754_v8 = vsel %vm5379_vm0, %v16088_v21, -inf  ;;  %v5802_v33 = vsel %vm5379_vm0, %v16090_v34, -inf }
 0x56d   : > { %v16098_v57 = vpop.f32.mrb[54].mxu1  ;;  %v16100_v7 = vpop.f32.mrb[6].mxu0  ;;  %5755 = vmax.xlane.f32.xlu0 %v5754_v8  ;;  %v5748_v2 = vsel %vm5379_vm0, %v16092_v1, -inf  ;;  %v5796_v54 = vsel %vm5379_vm0, %v16094_v61, -inf }
 0x56e   : > { %v16102_v15 = vpop.f32.mrb[55].mxu1  ;;  %v16104_v26 = vpop.f32.mrb[7].mxu0  ;;  %v5757_v49 = vsel %vm5379_vm0, %v16098_v57, -inf  ;;  %v5805_v44 = vsel %vm5379_vm0, %v16100_v7, -inf }
 0x56f   : > { %5758 = vmax.xlane.f32.xlu1 %v5757_v49  ;;  %v5751_v22 = vsel %vm5379_vm0, %v16102_v15, -inf  ;;  %v5799_v29 = vsel %vm5379_vm0, %v16104_v26, -inf }
 0x571   : > { %5803 = vmax.xlane.f32.xlu0 %v5802_v33 }
 0x573   : > { %5806 = vmax.xlane.f32.xlu1 %v5805_v44 }
 0x575   : > { %5749 = vmax.xlane.f32.xlu0 %v5748_v2 }
 0x577   : > { %5752 = vmax.xlane.f32.xlu1 %v5751_v22 }
 0x579   : > { %5797 = vmax.xlane.f32.xlu0 %v5796_v54 }
 0x57b   : > { %5800 = vmax.xlane.f32.xlu1 %v5799_v29 }
 0x585   : > { %v16120_v41 = vpop.f32.mrb[56].mxu1 }
 0x586   : > { %v16122_v42 = vpop.f32.mrb[57].mxu1  ;;  %v5766_v38 = vsel %vm5379_vm0, %v16120_v41, -inf }
 0x587   : > { %5767 = vmax.xlane.f32.xlu0 %v5766_v38  ;;  %v16126_v6 = vpop.f32.mrb[58].mxu1  ;;  %v5760_v58 = vsel %vm5379_vm0, %v16122_v42, -inf }
 0x588   : > { %v16128_v5 = vpop.f32.mrb[59].mxu1  ;;  %v5769_v53 = vsel %vm5379_vm0, %v16126_v6, -inf }
 0x589   : > { %5770 = vmax.xlane.f32.xlu1 %v5769_v53  ;;  %v5763_v51 = vsel %vm5379_vm0, %v16128_v5, -inf }
 0x58b   : > { %5761 = vmax.xlane.f32.xlu0 %v5760_v58 }
 0x58d   : > { %v16134_v3 = vpop.f32.mrb[60].mxu1 }
 0x58e   : > { %v16136_v47 = vpop.f32.mrb[61].mxu1  ;;  %v5778_v59 = vsel %vm5379_vm0, %v16134_v3, -inf }
 0x58f   : > { %5764 = vmax.xlane.f32.xlu0 %v5763_v51  ;;  %v16140_v35 = vpop.f32.mrb[62].mxu1  ;;  %v5772_v32 = vsel %vm5379_vm0, %v16136_v47, -inf }
 0x590   : > { %v16142_v45 = vpop.f32.mrb[63].mxu1  ;;  %v5781_v17 = vsel %vm5379_vm0, %v16140_v35, -inf }
 0x591   : > { %5782 = vmax.xlane.f32.xlu1 %v5781_v17  ;;  %v5775_v12 = vsel %vm5379_vm0, %v16142_v45, -inf }
 0x593   : > { %5779 = vmax.xlane.f32.xlu0 %v5778_v59 }
 0x595   : > { %5776 = vmax.xlane.f32.xlu1 %v5775_v12 }
 0x597   : > { %5773 = vmax.xlane.f32.xlu0 %v5772_v32 }
 0x5a5   : > { %v16152_v27 = vpop.f32.mrb[64].mxu1 }
 0x5a6   : > { %v16154_v31 = vpop.f32.mrb[65].mxu1  ;;  %v5814_v16 = vsel %vm5379_vm0, %v16152_v27, -inf }
 0x5a7   : > { %5815 = vmax.xlane.f32.xlu0 %v5814_v16  ;;  %v16158_v46 = vpop.f32.mrb[66].mxu1  ;;  %v5808_v30 = vsel %vm5379_vm0, %v16154_v31, -inf }
 0x5a8   : > { %v16160_v48 = vpop.f32.mrb[67].mxu1  ;;  %v5817_v25 = vsel %vm5379_vm0, %v16158_v46, -inf }
 0x5a9   : > { %5818 = vmax.xlane.f32.xlu1 %v5817_v25  ;;  %v5811_v4 = vsel %vm5379_vm0, %v16160_v48, -inf }
 0x5ab   : > { %5809 = vmax.xlane.f32.xlu0 %v5808_v30 }
 0x5ad   : > { %5812 = vmax.xlane.f32.xlu1 %v5811_v4  ;;  %v16168_v55 = vpop.f32.mrb[68].mxu1 }
 0x5ae   : > { %v16170_v36 = vpop.f32.mrb[69].mxu1  ;;  %v5826_v24 = vsel %vm5379_vm0, %v16168_v55, -inf }
 0x5af   : > { %v16172_v18 = vpop.f32.mrb[70].mxu1  ;;  %v5820_v49 = vsel %vm5379_vm0, %v16170_v36, -inf }
 0x5b0   : > { %v16174_v43 = vpop.f32.mrb[71].mxu1  ;;  %v5829_v8 = vsel %vm5379_vm0, %v16172_v18, -inf }
 0x5b1   : > { %v5823_v33 = vsel %vm5379_vm0, %v16174_v43, -inf }
 0x5be   : > { %4321 = vrot.lane.b32.xlu1 %v18625_v28, %s13942_s12 }
 0x5c1   : > { %4309 = vrot.lane.b32.xlu0 %v18626_v11, %s13942_s12 }
 0x5e0   : > { %5827 = vmax.xlane.f32.xlu0 %v5826_v24 }
 0x5e2   : > { %5830 = vmax.xlane.f32.xlu1 %v5829_v8 }
 0x5e4   : > { %5821 = vmax.xlane.f32.xlu0 %v5820_v49 }
 0x5e6   : > { %5824 = vmax.xlane.f32.xlu1 %v5823_v33  ;;  %v5744_v44 = vpop.xlane.xlu0 %5743 }
 0x5e7   : > { %v5834_v2 = vsub.f32 %v16056_v52, %v5744_v44 }
 0x5e8   : > { %v5747_v22 = vpop.xlane.xlu1 %5746 }
 0x5e9   : > { %v5868_v54 = vmul.f32 1.442695, %v5834_v2  ;;  %v5835_v29 = vsub.f32 %v16066_v37, %v5747_v22 }
 0x5ea   : > { %v16190_v38 = vpop.xlane.xlu0 %5791 }
 0x5eb   : > { %13220 = vpow2.f32 %v5868_v54  ;;  %v5870_v53 = vmul.f32 1.442695, %v5835_v29 }
 0x5ec   : > { %v16192_v58 = vpop.xlane.xlu1 %5794 }
 0x5ed   : > { %13222 = vpow2.f32 %v5870_v53 }
 0x5ee   : > { %v5738_v51 = vpop.xlane.xlu0 %5737 }
 0x5ef   : > { %v5832_v17 = vsub.f32 %v16060_v50, %v5738_v51 }
 0x5f0   : > { %v5741_v59 = vpop.xlane.xlu1 %5740 }
 0x5f1   : > { %v5864_v12 = vmul.f32 1.442695, %v5832_v17  ;;  %v5833_v32 = vsub.f32 %v16070_v13, %v5741_v59 }
 0x5f2   : > { %v5786_v16 = vpop.xlane.xlu0 %5785 }
 0x5f3   : > { %13224 = vpow2.f32 %v5864_v12  ;;  %v5866_v52 = vmul.f32 1.442695, %v5833_v32  ;;  %v5848_v25 = vsub.f32 %v16064_v14, %v5786_v16 }
 0x5f4   : > { %v5789_v37 = vpop.xlane.xlu1 %5788 }
 0x5f5   : > { %v16197_v30 = vpop.eup %13220  ;;  %13226 = vpow2.f32 %v5866_v52  ;;  %v5896_v4 = vmul.f32 1.442695, %v5848_v25  ;;  %v5849_v24 = vsub.f32 %v16074_v60, %v5789_v37 }
 0x5f6   : > { %v5934_v8 = vsel %vm5379_vm0, %v16197_v30, 0.0 }
 0x5f7   : > { %v16202_v50 = vpop.eup %13222  ;;  %13228 = vpow2.f32 %v5896_v4  ;;  %v5898_v49 = vmul.f32 1.442695, %v5849_v24  ;;  %5935 = vadd.xlane.f32.xlu0 %v5934_v8 }
 0x5f8   : > { %v5937_v13 = vsel %vm5379_vm0, %v16202_v50, 0.0 }
 0x5f9   : > { %13230 = vpow2.f32 %v5898_v49  ;;  %5938 = vadd.xlane.f32.xlu1 %v5937_v13 }
 0x5fa   : > { %v5756_v14 = vpop.xlane.xlu0 %5755 }
 0x5fb   : > { %v5838_v33 = vsub.f32 %v16088_v21, %v5756_v14 }
 0x5fc   : > { %v5759_v44 = vpop.xlane.xlu1 %5758 }
 0x5fd   : > { %v5876_v2 = vmul.f32 1.442695, %v5838_v33  ;;  %v5839_v60 = vsub.f32 %v16098_v57, %v5759_v44  ;;  %v16208_v22 = vpop.eup %13224 }
 0x5fe   : > { %v16210_v54 = vpop.xlane.xlu0 %5803  ;;  %v5928_v51 = vsel %vm5379_vm0, %v16208_v22, 0.0 }
 0x5ff   : > { %13232 = vpow2.f32 %v5876_v2  ;;  %v5878_v29 = vmul.f32 1.442695, %v5839_v60  ;;  %v5854_v53 = vsub.f32 %v16090_v34, %v16210_v54  ;;  %v16216_v17 = vpop.eup %13226  ;;  %5929 = vadd.xlane.f32.xlu0 %v5928_v51 }
 0x600   : > { %v16218_v59 = vpop.xlane.xlu1 %5806  ;;  %v5931_v57 = vsel %vm5379_vm0, %v16216_v17, 0.0 }
 0x601   : > { %13234 = vpow2.f32 %v5878_v29  ;;  %v5855_v21 = vsub.f32 %v16100_v7, %v16218_v59  ;;  %v16224_v12 = vpop.eup %13228  ;;  %5932 = vadd.xlane.f32.xlu1 %v5931_v57  ;;  %v4375_v59 = vshrl.u32 %v18626_v11, 16 }
 0x602   : > { %v5750_v32 = vpop.xlane.xlu0 %5749  ;;  %v5976_v52 = vsel %vm5379_vm0, %v16224_v12, 0.0 }
 0x603   : > { %v5836_v16 = vsub.f32 %v16092_v1, %v5750_v32  ;;  %v16229_v25 = vpop.eup %13230  ;;  %5977 = vadd.xlane.f32.xlu0 %v5976_v52 }
 0x604   : > { %v5753_v37 = vpop.xlane.xlu1 %5752  ;;  %v5979_v8 = vsel %vm5379_vm0, %v16229_v25, 0.0 }
 0x605   : > { %v5872_v4 = vmul.f32 1.442695, %v5836_v16  ;;  %v5837_v24 = vsub.f32 %v16102_v15, %v5753_v37  ;;  %5980 = vadd.xlane.f32.xlu1 %v5979_v8 }
 0x606   : > { %v16242_v44 = vpop.xlane.xlu0 %5797 }
 0x607   : > { %13236 = vpow2.f32 %v5872_v4  ;;  %v5874_v49 = vmul.f32 1.442695, %v5837_v24 }
 0x608   : > { %v16244_v15 = vpop.xlane.xlu1 %5800 }
 0x609   : > { %v16234_v13 = vpop.eup %13232  ;;  %13238 = vpow2.f32 %v5874_v49 }
 0x60a   : > { %v5946_v1 = vsel %vm5379_vm0, %v16234_v13, 0.0 }
 0x60b   : > { %v16238_v14 = vpop.eup %13234  ;;  %5947 = vadd.xlane.f32.xlu0 %v5946_v1 }
 0x60c   : > { %v5949_v33 = vsel %vm5379_vm0, %v16238_v14, 0.0 }
 0x60d   : > { %5950 = vadd.xlane.f32.xlu1 %v5949_v33 }
 0x611   : > { %v16246_v2 = vpop.eup %13236 }
 0x612   : > { %v5940_v60 = vsel %vm5379_vm0, %v16246_v2, 0.0 }
 0x613   : > { %v16250_v29 = vpop.eup %13238  ;;  %5941 = vadd.xlane.f32.xlu0 %v5940_v60 }
 0x614   : > { %v5768_v51 = vpop.xlane.xlu0 %5767  ;;  %v5943_v32 = vsel %vm5379_vm0, %v16250_v29, 0.0 }
 0x615   : > { %v5842_v57 = vsub.f32 %v16120_v41, %v5768_v51  ;;  %5944 = vadd.xlane.f32.xlu1 %v5943_v32 }
 0x616   : > { %v5771_v16 = vpop.xlane.xlu1 %5770 }
 0x617   : > { %v5884_v52 = vmul.f32 1.442695, %v5842_v57  ;;  %v5843_v37 = vsub.f32 %v16126_v6, %v5771_v16  ;;  %v5851_v57 = vsub.f32 %v16068_v20, %v16192_v58 }
 0x618   : > { %v5762_v4 = vpop.xlane.xlu0 %5761 }
 0x619   : > { %13240 = vpow2.f32 %v5884_v52  ;;  %v5886_v24 = vmul.f32 1.442695, %v5843_v37  ;;  %v5840_v8 = vsub.f32 %v16122_v42, %v5762_v4  ;;  %v5850_v37 = vsub.f32 %v16058_v56, %v16190_v38 }
 0x61b   : > { %13242 = vpow2.f32 %v5886_v24  ;;  %v5880_v49 = vmul.f32 1.442695, %v5840_v8  ;;  %v5902_v24 = vmul.f32 1.442695, %v5851_v57  ;;  %v5900_v38 = vmul.f32 1.442695, %v5850_v37 }
 0x61c   : > { %v5765_v1 = vpop.xlane.xlu0 %5764 }
 0x61d   : > { %13244 = vpow2.f32 %v5880_v49  ;;  %v5841_v33 = vsub.f32 %v16128_v5, %v5765_v1 }
 0x61e   : > { %v5783_v41 = vpop.xlane.xlu1 %5782 }
 0x61f   : > { %v5882_v60 = vmul.f32 1.442695, %v5841_v33  ;;  %v5847_v51 = vsub.f32 %v16140_v35, %v5783_v41 }
 0x620   : > { %v5780_v32 = vpop.xlane.xlu0 %5779 }
 0x621   : > { %13246 = vpow2.f32 %v5882_v60  ;;  %v5894_v6 = vmul.f32 1.442695, %v5847_v51  ;;  %v5846_v16 = vsub.f32 %v16134_v3, %v5780_v32 }
 0x622   : > { %v5777_v52 = vpop.xlane.xlu1 %5776 }
 0x623   : > { %v16262_v42 = vpop.eup %13240  ;;  %13248 = vpow2.f32 %v5894_v6  ;;  %v5892_v5 = vmul.f32 1.442695, %v5846_v16  ;;  %v5845_v4 = vsub.f32 %v16142_v45, %v5777_v52 }
 0x624   : > { %v5774_v35 = vpop.xlane.xlu0 %5773  ;;  %v5958_v20 = vsel %vm5379_vm0, %v16262_v42, 0.0 }
 0x625   : > { %v16269_v58 = vpop.eup %13242  ;;  %13250 = vpow2.f32 %v5892_v5  ;;  %v5890_v8 = vmul.f32 1.442695, %v5845_v4  ;;  %v5844_v3 = vsub.f32 %v16136_v47, %v5774_v35  ;;  %5959 = vadd.xlane.f32.xlu0 %v5958_v20  ;;  %v5908_v20 = vmul.f32 1.442695, %v5854_v53 }
 0x626   : > { %v5961_v49 = vsel %vm5379_vm0, %v16269_v58, 0.0 }
 0x627   : > { %v16274_v56 = vpop.eup %13244  ;;  %13252 = vpow2.f32 %v5890_v8  ;;  %v5888_v45 = vmul.f32 1.442695, %v5844_v3  ;;  %5962 = vadd.xlane.f32.xlu1 %v5961_v49  ;;  %v5910_v8 = vmul.f32 1.442695, %v5855_v21  ;;  %v5852_v3 = vsub.f32 %v16094_v61, %v16242_v44 }
 0x628   : > { %13254 = vpow2.f32 %v5902_v24  ;;  %v5952_v1 = vsel %vm5379_vm0, %v16274_v56, 0.0  ;;  %v5853_v61 = vsub.f32 %v16104_v26, %v16244_v15 }
 0x629   : > { %13256 = vpow2.f32 %v5888_v45  ;;  %5953 = vadd.xlane.f32.xlu0 %v5952_v1  ;;  %v5904_v53 = vmul.f32 1.442695, %v5852_v3 }
 0x62a   : > { %13258 = vpow2.f32 %v5900_v38 }
 0x62b   : > { %v16278_v33 = vpop.eup %13246  ;;  %13260 = vpow2.f32 %v5908_v20 }
 0x62c   : > { %v5955_v47 = vsel %vm5379_vm0, %v16278_v33, 0.0  ;;  %13262 = vpow2.f32 %v5910_v8 }
 0x62d   : > { %v16282_v41 = vpop.eup %13248  ;;  %5956 = vadd.xlane.f32.xlu0 %v5955_v47 }
 0x62e   : > { %v5973_v60 = vsel %vm5379_vm0, %v16282_v41, 0.0 }
 0x62f   : > { %v16286_v51 = vpop.eup %13250  ;;  %5974 = vadd.xlane.f32.xlu1 %v5973_v60 }
 0x630   : > { %v5970_v57 = vsel %vm5379_vm0, %v16286_v51, 0.0 }
 0x631   : > { %v16290_v32 = vpop.eup %13252  ;;  %5971 = vadd.xlane.f32.xlu0 %v5970_v57 }
 0x632   : > { %v16292_v6 = vpop.eup %13254  ;;  %v5967_v16 = vsel %vm5379_vm0, %v16290_v32, 0.0 }
 0x633   : > { %v16296_v52 = vpop.eup %13256  ;;  %5968 = vadd.xlane.f32.xlu1 %v5967_v16  ;;  %v5985_v35 = vsel %vm5379_vm0, %v16292_v6, 0.0 }
 0x634   : > { %v5816_v37 = vpop.xlane.xlu0 %5815  ;;  %v5964_v5 = vsel %vm5379_vm0, %v16296_v52, 0.0  ;;  %v16300_v4 = vpop.eup %13258 }
 0x635   : > { %5965 = vadd.xlane.f32.xlu0 %v5964_v5  ;;  %v5982_v38 = vsel %vm5379_vm0, %v16300_v4, 0.0  ;;  %v5858_v45 = vsub.f32 %v16152_v27, %v5816_v37  ;;  %v4383_v37 = vshrl.u32 %v18625_v28, 16  ;;  %v5906_v5 = vmul.f32 1.442695, %v5853_v61 }
 0x636   : > { %v5819_v24 = vpop.xlane.xlu1 %5818 }
 0x637   : > { %5986 = vadd.xlane.f32.xlu1 %v5985_v35  ;;  %v5859_v34 = vsub.f32 %v16158_v46, %v5819_v24  ;;  %v5916_v44 = vmul.f32 1.442695, %v5858_v45 }
 0x638   : > { %v5810_v49 = vpop.xlane.xlu0 %5809 }
 0x639   : > { %v5856_v1 = vsub.f32 %v16154_v31, %v5810_v49  ;;  %5983 = vadd.xlane.f32.xlu0 %v5982_v38  ;;  %v5918_v16 = vmul.f32 1.442695, %v5859_v34 }
 0x63a   : > { %v5813_v47 = vpop.xlane.xlu1 %5812 }
 0x63b   : > { %v5912_v54 = vmul.f32 1.442695, %v5856_v1  ;;  %v5857_v7 = vsub.f32 %v16160_v48, %v5813_v47  ;;  %v16332_v1 = vpop.eup %13260 }
 0x63c   : > { %v4310_v21 = vpop.permute.xlu0 %4309 }
 0x63d   : > { %v5914_v27 = vmul.f32 1.442695, %v5857_v7  ;;  %v4373_v31 = vpack.i.b16 %v4310_v21, %v18626_v11  ;;  %v4376_v60 = vshrl.u32 %v4310_v21, 16  ;;  %13264 = vpow2.f32 %v5912_v54  ;;  %v16336_v54 = vpop.eup %13262 }
 0x63e   : > { %v4322_v57 = vpop.permute.xlu1 %4321 }
 0x63f   : > { %13266 = vpow2.f32 %v5914_v27  ;;  %v4377_v46 = vpack.i.b16 %v4376_v60, %v4375_v59  ;;  %v4783_v48 = vcombine.high %v4373_v31, %v14943_v0  ;;  %v4381_v26 = vpack.i.b16 %v4322_v57, %v18625_v28 }
 0x640   : > { %13268 = vpow2.f32 %v5904_v53  ;;  %v4384_v15 = vshrl.u32 %v4322_v57, 16  ;;  %v4790_v24 = vrot.slane %v4373_v31, %v14946_v63 }
 0x641   : > { %13270 = vpow2.f32 %v5916_v44  ;;  %v4798_v11 = vcombine.high %v4381_v26, %v14943_v0  ;;  %v4805_v20 = vrot.slane %v4381_v26, %v14946_v63  ;;  %v4797_v8 = vrot.slane %v4783_v48, %v14946_v63 }
 0x642   : > { %v4385_v35 = vpack.i.b16 %v4384_v15, %v4383_v37  ;;  %13272 = vpow2.f32 %v5918_v16  ;;  %v4849_v3 = vcombine.high %v4377_v46, %v14943_v0  ;;  %v4856_v47 = vrot.slane %v4377_v46, %v14946_v63 }
 0x643   : > { %v4812_v49 = vrot.slane %v4798_v11, %v14946_v63  ;;  %v4813_v38 = vcombine.low %v4790_v24, %v4805_v20  ;;  %v4814_v45 = vcombine.high %v4790_v24, %v4805_v20  ;;  %13274 = vpow2.f32 %v5906_v5 }
 0x644   : > { %v4864_v28 = vcombine.high %v4385_v35, %v14943_v0  ;;  %v4871_v34 = vrot.slane %v4385_v35, %v14946_v63  ;;  %v4863_v21 = vrot.slane %v4849_v3, %v14946_v63 }
 0x645   : > { %v4821_v7 = vrot.slane %v4813_v38, %v14952_v10  ;;  %v4828_v53 = vrot.slane %v4814_v45, %v14952_v10  ;;  %v4829_v61 = vcombine.low %v4797_v8, %v4812_v49  ;;  %v4830_v59 = vcombine.high %v4797_v8, %v4812_v49 }
 0x646   : > { %v4878_v44 = vrot.slane %v4864_v28, %v14946_v63  ;;  %v4879_v0 = vcombine.low %v4856_v47, %v4871_v34  ;;  %v4880_v27 = vcombine.high %v4856_v47, %v4871_v34 }
 0x647   : > { %v16342_v31 = vpop.eup %13264  ;;  %v4837_v60 = vrot.slane %v4829_v61, %v14952_v10  ;;  %v4844_v57 = vrot.slane %v4830_v59, %v14952_v10  ;;  %v5215_v16 = vcombine.low %v4821_v7, %v4828_v53  ;;  %v11863_v46 = vcombine.high %v4821_v7, %v4828_v53 }
 0x648   : > { %v4887_v37 = vrot.slane %v4879_v0, %v14952_v10  ;;  %v4894_v26 = vrot.slane %v4880_v27, %v14952_v10  ;;  %v4895_v15 = vcombine.low %v4863_v21, %v4878_v44  ;;  %v4896_v5 = vcombine.high %v4863_v21, %v4878_v44 }
 0x649   : > { %v16346_v48 = vpop.eup %13266  ;;  %v5222_v35 = vrot.slane %v5215_v16, %v14946_v63  ;;  %v5230_v11 = vrot.slane %v11863_v46, %v14946_v63  ;;  %v5231_v20 = vcombine.low %v4837_v60, %v4844_v57  ;;  %v11864_v8 = vcombine.high %v4837_v60, %v4844_v57 }
 0x64a   : > { %v16350_v24 = vpop.eup %13268  ;;  %v4903_v49 = vrot.slane %v4895_v15, %v14952_v10  ;;  %v4910_v38 = vrot.slane %v4896_v5, %v14952_v10  ;;  %v5265_v45 = vcombine.low %v4887_v37, %v4894_v26  ;;  %v11865_v28 = vcombine.high %v4887_v37, %v4894_v26 }
 0x64b   : > { %v16354_v3 = vpop.eup %13270  ;;  %v6000_v47 = vsel %vm5379_vm0, %v16342_v31, 0.0  ;;  %v6003_v34 = vsel %vm5379_vm0, %v16346_v48, 0.0  ;;  %v5238_v7 = vrot.slane %v5231_v20, %v14946_v63  ;;  %v5246_v53 = vrot.slane %v11864_v8, %v14946_v63 }
 0x64c   : > { %v16364_v61 = vpop.eup %13272  ;;  %v5281_v59 = vcombine.low %v4903_v49, %v4910_v38  ;;  %v11866_v21 = vcombine.high %v4903_v49, %v4910_v38  ;;  %6001 = vadd.xlane.f32.xlu0 %v6000_v47  ;;  %6004 = vadd.xlane.f32.xlu1 %v6003_v34  ;;  %v5247_v44 = vcombine.low %v5222_v35, %v5230_v11  ;;  %v6006_v16 = vsel %vm5379_vm0, %v16354_v3, 0.0 }
 0x64d   : > { %v5255_v0 = vcombine.low %v5238_v7, %v5246_v53  ;;  %v5272_v27 = vrot.slane %v5265_v45, %v14946_v63  ;;  %v5280_v60 = vrot.slane %v11865_v28, %v14946_v63  ;;  %v16368_v57 = vpop.eup %13274  ;;  %v6009_v26 = vsel %vm5379_vm0, %v16364_v61, 0.0 }
 0x64e   : > { %v5288_v46 = vrot.slane %v5281_v59, %v14946_v63  ;;  %v5296_v37 = vrot.slane %v11866_v21, %v14946_v63  ;;  %v5254_v15 = vrot.slane %v5247_v44, %v14952_v10  ;;  %v5988_v45 = vsel %vm5379_vm0, %v16350_v24, 0.0 }
 0x64f   : > { %v5262_v5 = vrot.slane %v5255_v0, %v14952_v10  ;;  %v5297_v35 = vcombine.low %v5272_v27, %v5280_v60  ;;  %v5991_v28 = vsel %vm5379_vm0, %v16368_v57, 0.0  ;;  %v5994_v27 = vsel %vm5379_vm0, %v16332_v1, 0.0 }
 0x650   : > { %6007 = vadd.xlane.f32.xlu0 %v6006_v16  ;;  %6010 = vadd.xlane.f32.xlu1 %v6009_v26  ;;  %v5305_v11 = vcombine.low %v5288_v46, %v5296_v37  ;;  %v5997_v60 = vsel %vm5379_vm0, %v16336_v54, 0.0 }
 0x651   : > { %v5263_v20 = vcombine.low %v5254_v15, %v5262_v5  ;;  %v5264_v8 = vcombine.high %v5254_v15, %v5262_v5  ;;  %v5304_v49 = vrot.slane %v5297_v35, %v14952_v10 }
 0x652   : > { %v5312_v38 = vrot.slane %v5305_v11, %v14952_v10 }
 0x653   : > { %v5367_v7 = vshrl.u32 %v5263_v20, 16  ;;  %v5375_v53 = vshrl.u32 %v5264_v8, 16 }
 0x654   : > { %5989 = vadd.xlane.f32.xlu0 %v5988_v45  ;;  %5992 = vadd.xlane.f32.xlu1 %v5991_v28  ;;  %v5313_v47 = vcombine.low %v5304_v49, %v5312_v38  ;;  %v5314_v34 = vcombine.high %v5304_v49, %v5312_v38 }
 0x656   : > { %v5365_v59 = vpack.i.b16 %v5313_v47, %v5263_v20  ;;  %v5368_v21 = vshrl.u32 %v5313_v47, 16  ;;  %v16384_v44 = vpack.i.b16 %v5314_v34, %v5264_v8  ;;  %v5376_v0 = vshrl.u32 %v5314_v34, 16 }
 0x658   : > { %5995 = vadd.xlane.f32.xlu0 %v5994_v27  ;;  %12485 = vmatprep.subr.bf16.mxu0 %v5365_v59  ;;  %v5369_v16 = vpack.i.b16 %v5368_v21, %v5367_v7  ;;  %v16390_v46 = vpack.i.b16 %v5376_v0, %v5375_v53 }
 0x659   : > { %5998 = vadd.xlane.f32.xlu1 %v5997_v60  ;;  %12486 = vmatpush3.bf16.msra.mxu0 %v5365_v59 }
 0x65a   : > { %12501 = vmatprep.subr.bf16.mxu1 %v5369_v16  ;;  %12511 = vmatprep.subr.bf16.mxu0 %v16036_v23 }
 0x65b   : > { %12502 = vmatpush3.bf16.msra.mxu1 %v5369_v16 }
 0x65c   : > { %12527 = vmatprep.subr.bf16.mxu1 %v16041_v19 }
 0x66d   : > { %v5828_v37 = vpop.xlane.xlu0 %5827 }
 0x66e   : > { %v5862_v26 = vsub.f32 %v16168_v55, %v5828_v37 }
 0x66f   : > { %v5831_v15 = vpop.xlane.xlu1 %5830 }
 0x670   : > { %v5863_v35 = vsub.f32 %v16172_v18, %v5831_v15  ;;  %v5924_v20 = vmul.f32 1.442695, %v5862_v26 }
 0x671   : > { %v5822_v5 = vpop.xlane.xlu0 %5821 }
 0x672   : > { %v5860_v11 = vsub.f32 %v16170_v36, %v5822_v5  ;;  %v5926_v45 = vmul.f32 1.442695, %v5863_v35 }
 0x673   : > { %v5825_v8 = vpop.xlane.xlu1 %5824 }
 0x674   : > { %v5920_v49 = vmul.f32 1.442695, %v5860_v11  ;;  %v5861_v38 = vsub.f32 %v16174_v43, %v5825_v8 }
 0x676   : > { %13276 = vpow2.f32 %v5920_v49  ;;  %v5922_v28 = vmul.f32 1.442695, %v5861_v38 }
 0x677   : > { %13278 = vpow2.f32 %v5924_v20 }
 0x678   : > { %13280 = vpow2.f32 %v5922_v28 }
 0x679   : > { %13282 = vpow2.f32 %v5926_v45 }
 0x680   : > { %v16398_v47 = vpop.eup %13276 }
 0x681   : > { %v16400_v55 = vpop.eup %13278  ;;  %v6012_v18 = vsel %vm5379_vm0, %v16398_v47, 0.0 }
 0x682   : > { %v16404_v34 = vpop.eup %13280  ;;  %6013 = vadd.xlane.f32.xlu0 %v6012_v18  ;;  %v6018_v7 = vsel %vm5379_vm0, %v16400_v55, 0.0 }
 0x683   : > { %v6015_v36 = vsel %vm5379_vm0, %v16404_v34, 0.0  ;;  %v16408_v43 = vpop.eup %13282 }
 0x684   : > { %6016 = vadd.xlane.f32.xlu1 %v6015_v36  ;;  %v6021_v53 = vsel %vm5379_vm0, %v16408_v43, 0.0  ;;  %v5936_v59 = vpop.xlane.xlu0 %5935 }
 0x686   : > { %6019 = vadd.xlane.f32.xlu0 %v6018_v7  ;;  %v5939_v21 = vpop.xlane.xlu1 %5938 }
 0x687   : > { %13284 = vrcp.f32 %v5939_v21 }
 0x688   : > { %6022 = vadd.xlane.f32.xlu1 %v6021_v53 }
 0x68c   : > { %v5930_v0 = vpop.xlane.xlu0 %5929 }
 0x68d   : > { %13286 = vrcp.f32 %v5930_v0 }
 0x68e   : > { %13288 = vrcp.f32 %v5936_v59  ;;  %v5933_v27 = vpop.xlane.xlu1 %5932 }
 0x68f   : > { %13290 = vrcp.f32 %v5933_v27 }
 0x690   : > { %v5978_v60 = vpop.xlane.xlu0 %5977 }
 0x691   : > { %v13285_v16 = vpop.eup %13284  ;;  %13292 = vrcp.f32 %v5978_v60 }
 0x692   : > { %v5981_v37 = vpop.xlane.xlu1 %5980  ;;  %v6059_v35 = vmul.f32 %v13285_v16, %v16202_v50 }
 0x693   : > { %13294 = vrcp.f32 %v5981_v37 }
 0x697   : > { %v13287_v26 = vpop.eup %13286 }
 0x698   : > { %v13289_v15 = vpop.eup %13288  ;;  %v6056_v11 = vmul.f32 %v13287_v26, %v16208_v22  ;;  %v5948_v49 = vpop.xlane.xlu0 %5947 }
 0x699   : > { %v13291_v5 = vpop.eup %13290  ;;  %v6058_v8 = vmul.f32 %v13289_v15, %v16197_v30 }
 0x69a   : > { %v6057_v20 = vmul.f32 %v13291_v5, %v16216_v17  ;;  %v5951_v38 = vpop.xlane.xlu1 %5950 }
 0x69b   : > { %v6089_v28 = vpack.c.bf16 %v6059_v35, %v6058_v8  ;;  %13296 = vrcp.f32 %v5951_v38  ;;  %v13293_v30 = vpop.eup %13292 }
 0x69c   : > { %v6088_v45 = vpack.c.bf16 %v6057_v20, %v6056_v11 }
 0x69d   : > { %v13295_v22 = vpop.eup %13294 }
 0x69e   : > { %12487 = vmatprep.mubr.msk.bf16.mxu0 %vm5379_vm0, %v6088_v45  ;;  %v6073_v21 = vmul.f32 %v13295_v22, %v16229_v25 }
 0x69f   : > { %12488 = vmatmul.mubr.msk.bf16.vlgmr.msra.gmra.mrb[8].mxu0 %vm5379_vm0, %v6089_v28 }
 0x6a0   : > { %v5942_v18 = vpop.xlane.xlu0 %5941  ;;  %12512 = vmatpush3.bf16.msra.mxu0 %v16036_v23 }
 0x6a1   : > { %13298 = vrcp.f32 %v5942_v18  ;;  %12513 = vmatprep.subr.bf16.mxu0 %v16038_v62 }
 0x6a2   : > { %13300 = vrcp.f32 %v5948_v49  ;;  %v5945_v50 = vpop.xlane.xlu1 %5944 }
 0x6a3   : > { %13302 = vrcp.f32 %v5945_v50 }
 0x6a4   : > { %12514 = vmatpush3.bf16.msra.mxu0 %v16038_v62 }
 0x6a5   : > { %12515 = vmatprep.subr.bf16.mxu0 %v16043_v39  ;;  %v13297_v17 = vpop.eup %13296 }
 0x6a6   : > { %v6063_v23 = vmul.f32 %v13297_v17, %v16238_v14 }
 0x6a8   : > { %12516 = vmatpush3.bf16.msra.mxu0 %v16043_v39  ;;  %v6072_v39 = vmul.f32 %v13293_v30, %v16224_v12 }
 0x6a9   : > { %12517 = vmatprep.subr.bf16.mxu0 %v16384_v44 }
 0x6aa   : > { %v6096_v37 = vpack.c.bf16 %v6073_v21, %v6072_v39 }
 0x6ab   : > { %v13299_v36 = vpop.eup %13298 }
 0x6ac   : > { %v13301_v7 = vpop.eup %13300  ;;  %12518 = vmatpush3.bf16.msra.mxu0 %v16384_v44  ;;  %v6060_v59 = vmul.f32 %v13299_v36, %v16246_v2 }
 0x6ad   : > { %v13303_v53 = vpop.eup %13302  ;;  %v6062_v0 = vmul.f32 %v13301_v7, %v16234_v13 }
 0x6ae   : > { %v6061_v62 = vmul.f32 %v13303_v53, %v16250_v29 }
 0x6af   : > { %v6091_v16 = vpack.c.bf16 %v6063_v23, %v6062_v0 }
 0x6b0   : > { %v6090_v27 = vpack.c.bf16 %v6061_v62, %v6060_v59 }
 0x6b2   : > { %v5960_v60 = vpop.xlane.xlu0 %5959  ;;  %12491 = vmatprep.mubr.msk.bf16.mxu0 %vm5379_vm0, %v6090_v27 }
 0x6b3   : > { %12492 = vmatmul.mubr.msk.bf16.gmra.mrb[12].mxu0 %vm5379_vm0, %v6091_v16 }
 0x6b4   : > { %v5963_v44 = vpop.xlane.xlu1 %5962  ;;  %12519 = vmatprep.mubr.msk.bf16.mxu0 %vm5379_vm0, %v6096_v37 }
 0x6b5   : > { %13304 = vrcp.f32 %v5963_v44 }
 0x6b6   : > { %v5954_v14 = vpop.xlane.xlu0 %5953 }
 0x6b7   : > { %13306 = vrcp.f32 %v5954_v14 }
 0x6b8   : > { %13308 = vrcp.f32 %v5960_v60 }
 0x6ba   : > { %v5957_v25 = vpop.xlane.xlu0 %5956 }
 0x6bb   : > { %13310 = vrcp.f32 %v5957_v25 }
 0x6bc   : > { %v5975_v13 = vpop.xlane.xlu1 %5974 }
 0x6be   : > { %v5972_v2 = vpop.xlane.xlu0 %5971 }
 0x6bf   : > { %13312 = vrcp.f32 %v5972_v2  ;;  %v13305_v29 = vpop.eup %13304 }
 0x6c0   : > { %v5969_v12 = vpop.xlane.xlu1 %5968  ;;  %v6067_v20 = vmul.f32 %v13305_v29, %v16269_v58 }
 0x6c1   : > { %13314 = vrcp.f32 %v5969_v12  ;;  %v13307_v15 = vpop.eup %13306 }
 0x6c2   : > { %13316 = vrcp.f32 %v5975_v13  ;;  %v5966_v26 = vpop.xlane.xlu0 %5965  ;;  %v13309_v5 = vpop.eup %13308  ;;  %v6064_v49 = vmul.f32 %v13307_v15, %v16274_v56 }
 0x6c3   : > { %13318 = vrcp.f32 %v5966_v26  ;;  %v6066_v45 = vmul.f32 %v13309_v5, %v16262_v42 }
 0x6c4   : > { %v5987_v35 = vpop.xlane.xlu1 %5986 }
 0x6c5   : > { %v13311_v11 = vpop.eup %13310  ;;  %13320 = vrcp.f32 %v5987_v35  ;;  %v6093_v18 = vpack.c.bf16 %v6067_v20, %v6066_v45 }
 0x6c6   : > { %v5984_v8 = vpop.xlane.xlu0 %5983  ;;  %v6065_v38 = vmul.f32 %v13311_v11, %v16278_v33 }
 0x6c7   : > { %13322 = vrcp.f32 %v5984_v8 }
 0x6c8   : > { %v6092_v28 = vpack.c.bf16 %v6065_v38, %v6064_v49 }
 0x6c9   : > { %v13313_v50 = vpop.eup %13312 }
 0x6ca   : > { %12503 = vmatprep.mubr.msk.bf16.mxu1 %vm5379_vm0, %v6092_v28  ;;  %v6070_v56 = vmul.f32 %v13313_v50, %v16286_v51 }
 0x6cb   : > { %v13315_v30 = vpop.eup %13314  ;;  %12504 = vmatmul.mubr.msk.bf16.vlgmr.msra.gmra.mrb[72].mxu1 %vm5379_vm0, %v6093_v18 }
 0x6cc   : > { %v13317_v22 = vpop.eup %13316  ;;  %12528 = vmatpush3.bf16.msra.mxu1 %v16041_v19  ;;  %v6069_v42 = vmul.f32 %v13315_v30, %v16290_v32 }
 0x6cd   : > { %v13319_v58 = vpop.eup %13318  ;;  %12529 = vmatprep.subr.bf16.mxu1 %v16046_v40  ;;  %v6071_v36 = vmul.f32 %v13317_v22, %v16282_v41 }
 0x6ce   : > { %v6068_v33 = vmul.f32 %v13319_v58, %v16296_v52  ;;  %v12924_v58 = vld [vmem:[%s14419_s11] ss:$8 sps:$4 sm:$0xff]  }
 0x6cf   : > { %v13321_v17 = vpop.eup %13320  ;;  %v6095_v23 = vpack.c.bf16 %v6071_v36, %v6070_v56  ;;  %v12926_v56 = vld [vmem:[%s14419_s11 + $0x4] ss:$8 sps:$4 sm:$0xff]  }
 0x6d0   : > { %12530 = vmatpush3.bf16.msra.mxu1 %v16046_v40  ;;  %v6094_v7 = vpack.c.bf16 %v6069_v42, %v6068_v33  ;;  %v6075_v19 = vmul.f32 %v13321_v17, %v16292_v6  ;;  %7792 = vmatprep.subr.bf16.mxu0 %v12926_v56  ;;  %v12927_v33 = vld [vmem:[%s14419_s11 + $0x10] ss:$8 sps:$4 sm:$0xff]   ;;  %v12929_v42 = vld [vmem:[%s14419_s11 + $0x14] ss:$8 sps:$4 sm:$0xff]  }
 0x6d1   : > { %v13323_v53 = vpop.eup %13322  ;;  %12531 = vmatprep.subr.bf16.mxu1 %v16048_v9 }
 0x6d2   : > { %v6074_v59 = vmul.f32 %v13323_v53, %v16300_v4  ;;  %12507 = vmatprep.mubr.msk.bf16.mxu1 %vm5379_vm0, %v6094_v7  ;;  %v12930_v7 = vld [vmem:[%s14419_s11 + $0x20] ss:$8 sps:$4 sm:$0xff]   ;;  %v12932_v53 = vld [vmem:[%s14419_s11 + $0x24] ss:$8 sps:$4 sm:$0xff]  }
 0x6d3   : > { %12508 = vmatmul.mubr.msk.bf16.gmra.mrb[76].mxu1 %vm5379_vm0, %v6095_v23 }
 0x6d4   : > { %v6097_v51 = vpack.c.bf16 %v6075_v19, %v6074_v59  ;;  %12532 = vmatpush3.bf16.msra.mxu1 %v16048_v9  ;;  %v12935_v19 = vld [vmem:[%s14419_s11 + $0x34] ss:$8 sps:$4 sm:$0xff]  }
 0x6d5   : > { %12533 = vmatprep.subr.bf16.mxu1 %v16390_v46 }
 0x6d6   : > { %12520 = vmatmul.mubr.msk.bf16.vlgmr.msra.gmra.mrb[16].mxu0 %vm5379_vm0, %v6097_v51  ;;  %v12933_v51 = vld [vmem:[%s14419_s11 + $0x30] ss:$8 sps:$4 sm:$0xff]  }
 0x6d7   : > { %7793 = vmatpush1.bf16.msra.mxu0 %v12924_v58 }
 0x6d8   : > { %12534 = vmatpush3.bf16.msra.mxu1 %v16390_v46  ;;  %7794 = vmatprep.subr.bf16.mxu0 %v12929_v42 }
 0x6d9   : > { %v6002_v40 = vpop.xlane.xlu0 %6001  ;;  %v6005_v41 = vpop.xlane.xlu1 %6004 }
 0x6da   : > { %13324 = vrcp.f32 %v6002_v40  ;;  %v12938_v40 = vld [vmem:[%s14419_s11 + $0x44] ss:$8 sps:$4 sm:$0xff]  }
 0x6db   : > { %13326 = vrcp.f32 %v6005_v41  ;;  %7795 = vmatpush1.bf16.msra.mxu0 %v12927_v33 }
 0x6dc   : > { %7796 = vmatprep.subr.bf16.mxu0 %v12932_v53 }
 0x6dd   : > { %v6008_v32 = vpop.xlane.xlu0 %6007  ;;  %v6011_v6 = vpop.xlane.xlu1 %6010 }
 0x6de   : > { %13328 = vrcp.f32 %v6008_v32  ;;  %v12936_v32 = vld [vmem:[%s14419_s11 + $0x40] ss:$8 sps:$4 sm:$0xff]  }
 0x6df   : > { %13330 = vrcp.f32 %v6011_v6  ;;  %7797 = vmatpush1.bf16.msra.mxu0 %v12930_v7 }
 0x6e0   : > { %7798 = vmatprep.subr.bf16.mxu0 %v12935_v19 }
 0x6e1   : > { %v5990_v52 = vpop.xlane.xlu0 %5989  ;;  %v5993_v4 = vpop.xlane.xlu1 %5992 }
 0x6e2   : > { %13332 = vrcp.f32 %v5990_v52  ;;  %v12941_v52 = vld [vmem:[%s14419_s11 + $0x54] ss:$8 sps:$4 sm:$0xff]  }
 0x6e3   : > { %13334 = vrcp.f32 %v5993_v4  ;;  %7799 = vmatpush1.bf16.msra.mxu0 %v12933_v51 }
 0x6e4   : > { %v13325_v62 = vpop.eup %13324  ;;  %7800 = vmatprep.subr.bf16.mxu0 %v12938_v40 }
 0x6e5   : > { %v13327_v9 = vpop.eup %13326  ;;  %v5996_v21 = vpop.xlane.xlu0 %5995  ;;  %v6080_v27 = vmul.f32 %v13325_v62, %v16342_v31 }
 0x6e6   : > { %13336 = vrcp.f32 %v5996_v21  ;;  %v5999_v0 = vpop.xlane.xlu1 %5998  ;;  %v6081_v46 = vmul.f32 %v13327_v9, %v16346_v48 }
 0x6e7   : > { %13338 = vrcp.f32 %v5999_v0  ;;  %7801 = vmatpush1.bf16.msra.mxu0 %v12936_v32 }
 0x6e8   : > { %v13329_v39 = vpop.eup %13328  ;;  %v6100_v60 = vpack.c.bf16 %v6081_v46, %v6080_v27  ;;  %v12939_v46 = vld [vmem:[%s14419_s11 + $0x50] ss:$8 sps:$4 sm:$0xff]   ;;  %7802 = vmatprep.subr.bf16.mxu0 %v12941_v52 }
 0x6e9   : > { %v13331_v16 = vpop.eup %13330  ;;  %v6082_v37 = vmul.f32 %v13329_v39, %v16354_v3 }
 0x6ea   : > { %v6083_v44 = vmul.f32 %v13331_v16, %v16364_v61  ;;  %12535 = vmatprep.mubr.msk.bf16.mxu1 %vm5379_vm0, %v6100_v60 }
 0x6eb   : > { %7803 = vmatpush1.bf16.msra.mxu0 %v12939_v46 }
 0x6ec   : > { %v13333_v14 = vpop.eup %13332  ;;  %v6101_v25 = vpack.c.bf16 %v6083_v44, %v6082_v37  ;;  %v12944_v37 = vld [vmem:[%s14419_s11 + $0x64] ss:$8 sps:$4 sm:$0xff]  }
 0x6ed   : > { %v13335_v13 = vpop.eup %13334  ;;  %v6076_v2 = vmul.f32 %v13333_v14, %v16350_v24  ;;  %7804 = vmatprep.subr.bf16.mxu0 %v12944_v37 }
 0x6ee   : > { %12536 = vmatmul.mubr.msk.bf16.vlgmr.msra.gmra.mrb[80].mxu1 %vm5379_vm0, %v6101_v25  ;;  %v6077_v31 = vmul.f32 %v13335_v13, %v16368_v57 }
 0x6f0   : > { %v13337_v48 = vpop.eup %13336  ;;  %v6098_v12 = vpack.c.bf16 %v6077_v31, %v6076_v2  ;;  %v12942_v31 = vld [vmem:[%s14419_s11 + $0x60] ss:$8 sps:$4 sm:$0xff]  }
 0x6f1   : > { %v13339_v29 = vpop.eup %13338  ;;  %v6078_v3 = vmul.f32 %v13337_v48, %v16332_v1  ;;  %v12947_v48 = vld [vmem:[%s14419_s11 + $0x74] ss:$8 sps:$4 sm:$0xff]   ;;  %7805 = vmatpush1.bf16.msra.mxu0 %v12942_v31 }
 0x6f2   : > { %12523 = vmatprep.mubr.msk.bf16.mxu0 %vm5379_vm0, %v6098_v12  ;;  %v6079_v61 = vmul.f32 %v13339_v29, %v16336_v54  ;;  %v12945_v12 = vld [vmem:[%s14419_s11 + $0x70] ss:$8 sps:$4 sm:$0xff]   ;;  %7806 = vmatprep.subr.bf16.mxu0 %v12947_v48  ;;  %v12950_v29 = vld [vmem:[%s14419_s11 + $0x84] ss:$8 sps:$4 sm:$0xff]  }
 0x6f4   : > { %v6099_v26 = vpack.c.bf16 %v6079_v61, %v6078_v3  ;;  %v12948_v3 = vld [vmem:[%s14419_s11 + $0x80] ss:$8 sps:$4 sm:$0xff]   ;;  %v12953_v61 = vld [vmem:[%s14419_s11 + $0x94] ss:$8 sps:$4 sm:$0xff]  }
 0x6f5   : > { %7807 = vmatpush1.bf16.msra.mxu0 %v12945_v12 }
 0x6f6   : > { %12524 = vmatmul.mubr.msk.bf16.gmra.mrb[20].mxu0 %vm5379_vm0, %v6099_v26  ;;  %7808 = vmatprep.subr.bf16.mxu0 %v12950_v29  ;;  %v12951_v26 = vld [vmem:[%s14419_s11 + $0x90] ss:$8 sps:$4 sm:$0xff]  }
 0x6f9   : > { %7809 = vmatpush1.bf16.msra.mxu0 %v12948_v3 }
 0x6fa   : > { %7810 = vmatprep.subr.bf16.mxu0 %v12953_v61  ;;  %v12963_v61 = vld [vmem:[%s14419_s11 + $0xd0] ss:$8 sps:$4 sm:$0xff]  }
 0x6fd   : > { %7811 = vmatpush1.bf16.msra.mxu0 %v12951_v26 }
 0x70f   : > { %v6014_v15 = vpop.xlane.xlu0 %6013 }
 0x710   : > { %13340 = vrcp.f32 %v6014_v15  ;;  %v12956_v15 = vld [vmem:[%s14419_s11 + $0xa4] ss:$8 sps:$4 sm:$0xff]  }
 0x711   : > { %v6017_v5 = vpop.xlane.xlu1 %6016  ;;  %7812 = vmatprep.subr.bf16.mxu0 %v12956_v15 }
 0x712   : > { %13342 = vrcp.f32 %v6017_v5  ;;  %v12954_v5 = vld [vmem:[%s14419_s11 + $0xa0] ss:$8 sps:$4 sm:$0xff]  }
 0x713   : > { %v6020_v35 = vpop.xlane.xlu0 %6019  ;;  %7813 = vmatpush1.bf16.msra.mxu0 %v12954_v5 }
 0x714   : > { %13344 = vrcp.f32 %v6020_v35  ;;  %v12959_v35 = vld [vmem:[%s14419_s11 + $0xb4] ss:$8 sps:$4 sm:$0xff]  }
 0x715   : > { %v6023_v24 = vpop.xlane.xlu1 %6022  ;;  %7814 = vmatprep.subr.bf16.mxu0 %v12959_v35 }
 0x716   : > { %13346 = vrcp.f32 %v6023_v24 }
 0x71a   : > { %v13341_v57 = vpop.eup %13340 }
 0x71b   : > { %v6084_v20 = vmul.f32 %v13341_v57, %v16398_v47  ;;  %v12957_v57 = vld [vmem:[%s14419_s11 + $0xb0] ss:$8 sps:$4 sm:$0xff]  }
 0x71c   : > { %v13343_v11 = vpop.eup %13342  ;;  %7815 = vmatpush1.bf16.msra.mxu0 %v12957_v57  ;;  %v12968_v57 = vld [vmem:[%s14419_s11 + $0xe4] ss:$8 sps:$4 sm:$0xff]  }
 0x71d   : > { %v6085_v8 = vmul.f32 %v13343_v11, %v16404_v34 }
 0x71e   : > { %v13345_v1 = vpop.eup %13344 }
 0x71f   : > { %v6102_v54 = vpack.c.bf16 %v6085_v8, %v6084_v20  ;;  %v6086_v38 = vmul.f32 %v13345_v1, %v16400_v55 }
 0x720   : > { %v13347_v49 = vpop.eup %13346 }
 0x721   : > { %12539 = vmatprep.mubr.msk.bf16.mxu1 %vm5379_vm0, %v6102_v54  ;;  %v6087_v45 = vmul.f32 %v13347_v49, %v16408_v43  ;;  %v12962_v49 = vld [vmem:[%s14419_s11 + $0xc4] ss:$8 sps:$4 sm:$0xff]  }
 0x722   : > { %7816 = vmatprep.subr.bf16.mxu0 %v12962_v49 }
 0x723   : > { %v6103_v28 = vpack.c.bf16 %v6087_v45, %v6086_v38 }
 0x725   : > { %12540 = vmatmul.mubr.msk.bf16.gmra.mrb[84].mxu1 %vm5379_vm0, %v6103_v28 }
 0x772   : > { %v16476_v18 = vpop.f32.mrb[8].mxu0 }
 0x773   : > { %v16478_v47 = vpop.f32.mrb[9].mxu0 }
 0x774   : > { %v16480_v34 = vpop.f32.mrb[10].mxu0 }
 0x775   : > { %v16482_v50 = vpop.f32.mrb[11].mxu0 }
 0x786   : > { %v16484_v30 = vpop.f32.mrb[12].mxu0 }
 0x787   : > { %v16486_v55 = vpop.f32.mrb[13].mxu0 }
 0x788   : > { %v16488_v43 = vpop.f32.mrb[14].mxu0 }
 0x789   : > { %v16490_v22 = vpop.f32.mrb[15].mxu0 }
 0x79e   : > { %v16496_v17 = vpop.f32.mrb[72].mxu1 }
 0x79f   : > { %v16498_v36 = vpop.f32.mrb[73].mxu1 }
 0x7a0   : > { %v16502_v23 = vpop.f32.mrb[74].mxu1 }
 0x7a1   : > { %v16505_v59 = vpop.f32.mrb[75].mxu1 }
 0x7a6   : > { %v16509_v41 = vpop.f32.mrb[76].mxu1 }
 0x7a7   : > { %v16512_v6 = vpop.f32.mrb[77].mxu1 }
 0x7a8   : > { %v16515_v4 = vpop.f32.mrb[78].mxu1 }
 0x7a9   : > { %v16517_v62 = vpop.f32.mrb[79].mxu1  ;;  %v12521_v9 = vpop.f32.mrb[16].mxu0 }
 0x7aa   : > { %v6548_v21 = vcombine.low %v16476_v18, %v12521_v9  ;;  %v6549_v0 = vcombine.high %v16476_v18, %v12521_v9  ;;  %v6304_v27 = vpop.f32.mrb[17].mxu0 }
 0x7ab   : > { %v6412_v39 = vcombine.low %v16478_v47, %v6304_v27  ;;  %v6413_v60 = vcombine.high %v16478_v47, %v6304_v27  ;;  %v16524_v16 = vpop.f32.mrb[18].mxu0 }
 0x7ac   : > { %v6616_v44 = vcombine.low %v16480_v34, %v16524_v16  ;;  %v6617_v14 = vcombine.high %v16480_v34, %v16524_v16  ;;  %v16531_v25 = vpop.f32.mrb[19].mxu0  ;;  %v6556_v11 = vrot.slane %v6548_v21, %v14946_v63  ;;  %v6563_v20 = vrot.slane %v6549_v0, %v14946_v63  ;;  %v12965_v21 = vld [vmem:[%s14419_s11 + $0xd4] ss:$8 sps:$4 sm:$0xff]  }
 0x7ad   : > { %v6480_v13 = vcombine.low %v16482_v50, %v16531_v25  ;;  %v6481_v2 = vcombine.high %v16482_v50, %v16531_v25  ;;  %v6420_v38 = vrot.slane %v6412_v39, %v14946_v63  ;;  %v6427_v45 = vrot.slane %v6413_v60, %v14946_v63 }
 0x7c1   : > { %v12537_v24 = vpop.f32.mrb[80].mxu1 }
 0x7c2   : > { %v6564_v8 = vcombine.low %v16496_v17, %v12537_v24  ;;  %v6565_v1 = vcombine.high %v16496_v17, %v12537_v24  ;;  %v6381_v54 = vpop.f32.mrb[81].mxu1 }
 0x7c3   : > { %v6428_v28 = vcombine.low %v16498_v36, %v6381_v54  ;;  %v6429_v18 = vcombine.high %v16498_v36, %v6381_v54  ;;  %v12538_v47 = vpop.f32.mrb[82].mxu1  ;;  %v12960_v36 = vld [vmem:[%s14419_s11 + $0xc0] ss:$8 sps:$4 sm:$0xff]  }
 0x7c4   : > { %v6572_v58 = vrot.slane %v6564_v8, %v14946_v63  ;;  %v6579_v56 = vrot.slane %v6565_v1, %v14946_v63  ;;  %v6632_v33 = vcombine.low %v16502_v23, %v12538_v47  ;;  %v6633_v42 = vcombine.high %v16502_v23, %v12538_v47  ;;  %v6384_v17 = vpop.f32.mrb[83].mxu1  ;;  %7817 = vmatpush1.bf16.msra.mxu0 %v12960_v36  ;;  %v12966_v47 = vld [vmem:[%s14419_s11 + $0xe0] ss:$8 sps:$4 sm:$0xff]  }
 0x7c5   : > { %v6436_v7 = vrot.slane %v6428_v28, %v14946_v63  ;;  %v6443_v53 = vrot.slane %v6429_v18, %v14946_v63  ;;  %v6496_v19 = vcombine.low %v16505_v59, %v6384_v17  ;;  %v6497_v51 = vcombine.high %v16505_v59, %v6384_v17  ;;  %7818 = vmatprep.subr.bf16.mxu0 %v12965_v21 }
 0x7c6   : > { %v6580_v40 = vcombine.low %v6556_v11, %v6572_v58  ;;  %v6581_v32 = vcombine.high %v6556_v11, %v6572_v58  ;;  %v6596_v52 = vcombine.low %v6563_v20, %v6579_v56  ;;  %v6597_v9 = vcombine.high %v6563_v20, %v6579_v56 }
 0x7c7   : > { %v6444_v0 = vcombine.low %v6420_v38, %v6436_v7  ;;  %v6445_v23 = vcombine.high %v6420_v38, %v6436_v7  ;;  %v6460_v27 = vcombine.low %v6427_v45, %v6443_v53  ;;  %v6461_v46 = vcombine.high %v6427_v45, %v6443_v53 }
 0x7c8   : > { %v16568_v39 = vrot.slane %v6580_v40, %v14952_v10  ;;  %v16571_v60 = vrot.slane %v6581_v32, %v14952_v10  ;;  %v16574_v59 = vrot.slane %v6596_v52, %v14952_v10  ;;  %v16577_v37 = vrot.slane %v6597_v9, %v14952_v10  ;;  %7819 = vmatpush1.bf16.msra.mxu0 %v12963_v61 }
 0x7c9   : > { %v6452_v31 = vrot.slane %v6444_v0, %v14952_v10  ;;  %v6459_v48 = vrot.slane %v6445_v23, %v14952_v10  ;;  %v6468_v12 = vrot.slane %v6460_v27, %v14952_v10  ;;  %v6475_v29 = vrot.slane %v6461_v46, %v14952_v10  ;;  %v16583_v3 = vpop.f32.mrb[20].mxu0  ;;  %7820 = vmatprep.subr.bf16.mxu0 %v12968_v57 }
 0x7ca   : > { %v7092_v26 = vcombine.low %v16568_v39, %v16571_v60  ;;  %v11903_v15 = vcombine.high %v16568_v39, %v16571_v60  ;;  %v7108_v5 = vcombine.low %v16574_v59, %v16577_v37  ;;  %v11904_v35 = vcombine.high %v16574_v59, %v16577_v37  ;;  %v16594_v24 = vpop.f32.mrb[21].mxu0 }
 0x7cb   : > { %v6956_v11 = vcombine.low %v6452_v31, %v6459_v48  ;;  %v11899_v20 = vcombine.high %v6452_v31, %v6459_v48  ;;  %v6972_v8 = vcombine.low %v6468_v12, %v6475_v29  ;;  %v11900_v1 = vcombine.high %v6468_v12, %v6475_v29  ;;  %v16597_v54 = vpop.f32.mrb[22].mxu0 }
 0x7cc   : > { %v16599_v49 = vpop.f32.mrb[23].mxu0  ;;  %v6624_v38 = vrot.slane %v6616_v44, %v14946_v63  ;;  %v6631_v45 = vrot.slane %v6617_v14, %v14946_v63  ;;  %v6488_v28 = vrot.slane %v6480_v13, %v14946_v63  ;;  %v6495_v18 = vrot.slane %v6481_v2, %v14946_v63  ;;  %7821 = vmatpush1.bf16.msra.mxu0 %v12966_v47 }
 0x7cd   : > { %v6640_v58 = vrot.slane %v6632_v33, %v14946_v63  ;;  %v6647_v44 = vrot.slane %v6633_v42, %v14946_v63  ;;  %v6504_v56 = vrot.slane %v6496_v19, %v14946_v63  ;;  %v6511_v34 = vrot.slane %v6497_v51, %v14946_v63 }
 0x7ce   : > { %v6820_v16 = vcombine.low %v16484_v30, %v16583_v3  ;;  %v6821_v14 = vcombine.high %v16484_v30, %v16583_v3  ;;  %v6684_v50 = vcombine.low %v16486_v55, %v16594_v24  ;;  %v6685_v25 = vcombine.high %v16486_v55, %v16594_v24 }
 0x7cf   : > { %v6648_v13 = vcombine.low %v6624_v38, %v6640_v58  ;;  %v6649_v2 = vcombine.high %v6624_v38, %v6640_v58  ;;  %v6664_v33 = vcombine.low %v6631_v45, %v6647_v44  ;;  %v6665_v42 = vcombine.high %v6631_v45, %v6647_v44 }
 0x7d0   : > { %v6512_v17 = vcombine.low %v6488_v28, %v6504_v56  ;;  %v6513_v7 = vcombine.high %v6488_v28, %v6504_v56  ;;  %v6528_v53 = vcombine.low %v6495_v18, %v6511_v34  ;;  %v6529_v19 = vcombine.high %v6495_v18, %v6511_v34 }
 0x7d1   : > { %v6656_v51 = vrot.slane %v6648_v13, %v14952_v10  ;;  %v6663_v36 = vrot.slane %v6649_v2, %v14952_v10  ;;  %v6672_v40 = vrot.slane %v6664_v33, %v14952_v10  ;;  %v6679_v32 = vrot.slane %v6665_v42, %v14952_v10  ;;  %v12969_v33 = vld [vmem:[%s14419_s11 + $0xf0] ss:$8 sps:$4 sm:$0xff]   ;;  %v12971_v42 = vld [vmem:[%s14419_s11 + $0xf4] ss:$8 sps:$4 sm:$0xff]  }
 0x7d2   : > { %v6520_v52 = vrot.slane %v6512_v17, %v14952_v10  ;;  %v6527_v9 = vrot.slane %v6513_v7, %v14952_v10  ;;  %v6536_v21 = vrot.slane %v6528_v53, %v14952_v10  ;;  %v6543_v0 = vrot.slane %v6529_v19, %v14952_v10  ;;  %7822 = vmatprep.subr.bf16.mxu0 %v12971_v42 }
 0x7d3   : > { %v7160_v23 = vcombine.low %v6656_v51, %v6663_v36  ;;  %v11905_v27 = vcombine.high %v6656_v51, %v6663_v36  ;;  %v7176_v46 = vcombine.low %v6672_v40, %v6679_v32  ;;  %v11906_v39 = vcombine.high %v6672_v40, %v6679_v32  ;;  %7823 = vmatpush1.bf16.msra.mxu0 %v12969_v33 }
 0x7d4   : > { %v7024_v60 = vcombine.low %v6520_v52, %v6527_v9  ;;  %v11901_v59 = vcombine.high %v6520_v52, %v6527_v9  ;;  %v7040_v37 = vcombine.low %v6536_v21, %v6543_v0  ;;  %v11902_v31 = vcombine.high %v6536_v21, %v6543_v0 }
 0x7d5   : > { %v6963_v48 = vrot.slane %v6956_v11, %v14946_v63  ;;  %v6971_v12 = vrot.slane %v11899_v20, %v14946_v63  ;;  %v6979_v29 = vrot.slane %v6972_v8, %v14946_v63  ;;  %v6987_v61 = vrot.slane %v11900_v1, %v14946_v63 }
 0x7d6   : > { %v7031_v57 = vrot.slane %v7024_v60, %v14946_v63  ;;  %v7039_v38 = vrot.slane %v11901_v59, %v14946_v63  ;;  %v7047_v45 = vrot.slane %v7040_v37, %v14946_v63  ;;  %v7055_v28 = vrot.slane %v11902_v31, %v14946_v63 }
 0x7d7   : > { %v7099_v18 = vrot.slane %v7092_v26, %v14946_v63  ;;  %v7107_v47 = vrot.slane %v11903_v15, %v14946_v63  ;;  %v7115_v11 = vrot.slane %v7108_v5, %v14946_v63  ;;  %v7123_v20 = vrot.slane %v11904_v35, %v14946_v63 }
 0x7d8   : > { %v6888_v8 = vcombine.low %v16488_v43, %v16597_v54  ;;  %v6889_v1 = vcombine.high %v16488_v43, %v16597_v54  ;;  %v6752_v58 = vcombine.low %v16490_v22, %v16599_v49  ;;  %v6753_v26 = vcombine.high %v16490_v22, %v16599_v49 }
 0x7d9   : > { %v6989_v44 = vcombine.high %v6963_v48, %v6971_v12  ;;  %v7005_v56 = vcombine.high %v6979_v29, %v6987_v61  ;;  %v7057_v15 = vcombine.high %v7031_v57, %v7039_v38  ;;  %v7073_v34 = vcombine.high %v7047_v45, %v7055_v28 }
 0x7da   : > { %v7167_v5 = vrot.slane %v7160_v23, %v14946_v63  ;;  %v7175_v35 = vrot.slane %v11905_v27, %v14946_v63  ;;  %v7183_v13 = vrot.slane %v7176_v46, %v14946_v63  ;;  %v7191_v2 = vrot.slane %v11906_v39, %v14946_v63 }
 0x7db   : > { %v16665_v17 = vrot.slane %v6989_v44, %v14952_v10  ;;  %v16668_v7 = vrot.slane %v7005_v56, %v14952_v10  ;;  %v16671_v53 = vrot.slane %v7057_v15, %v14952_v10  ;;  %v16674_v19 = vrot.slane %v7073_v34, %v14952_v10 }
 0x7dc   : > { %v6988_v51 = vcombine.low %v6963_v48, %v6971_v12  ;;  %v7004_v36 = vcombine.low %v6979_v29, %v6987_v61  ;;  %v7056_v40 = vcombine.low %v7031_v57, %v7039_v38  ;;  %v7072_v32 = vcombine.low %v7047_v45, %v7055_v28 }
 0x7dd   : > { %v7023_v52 = vcombine.high %v16665_v17, %v16668_v7  ;;  %v7091_v9 = vcombine.high %v16671_v53, %v16674_v19  ;;  %v7125_v21 = vcombine.high %v7099_v18, %v7107_v47  ;;  %v7141_v0 = vcombine.high %v7115_v11, %v7123_v20 }
 0x7de   : > { %v16681_v23 = vrot.slane %v6988_v51, %v14952_v10  ;;  %v16684_v27 = vrot.slane %v7004_v36, %v14952_v10  ;;  %v16687_v46 = vrot.slane %v7056_v40, %v14952_v10  ;;  %v16690_v39 = vrot.slane %v7072_v32, %v14952_v10 }
 0x7df   : > { %v12740_v60 = vpack.i.bf16 %v7091_v9, %v7023_v52  ;;  %v16693_v59 = vrot.slane %v7125_v21, %v14952_v10  ;;  %v16696_v37 = vrot.slane %v7141_v0, %v14952_v10  ;;  %v7193_v31 = vcombine.high %v7167_v5, %v7175_v35 }
 0x7e0   : > { %v7021_v48 = vcombine.high %v16681_v23, %v16684_v27  ;;  %v7089_v12 = vcombine.high %v16687_v46, %v16690_v39  ;;  %v7209_v29 = vcombine.high %v7183_v13, %v7191_v2  ;;  %v7124_v61 = vcombine.low %v7099_v18, %v7107_v47 }
 0x7e1   : > { %12741 = vrot.lane.b32.xlu0 %v12740_v60, %s13942_s12  ;;  %v7159_v57 = vcombine.high %v16693_v59, %v16696_v37  ;;  %v16706_v38 = vrot.slane %v7193_v31, %v14952_v10  ;;  %v7140_v45 = vcombine.low %v7115_v11, %v7123_v20  ;;  %v7192_v28 = vcombine.low %v7167_v5, %v7175_v35 }
 0x7e2   : > { %v12745_v44 = vpack.i.bf16 %v7089_v12, %v7021_v48  ;;  %v16709_v56 = vrot.slane %v7209_v29, %v14952_v10  ;;  %v16712_v15 = vrot.slane %v7124_v61, %v14952_v10  ;;  %v7208_v34 = vcombine.low %v7183_v13, %v7191_v2 }
 0x7e3   : > { %v16715_v18 = vrot.slane %v7140_v45, %v14952_v10  ;;  %v16718_v47 = vrot.slane %v7192_v28, %v14952_v10  ;;  %v7020_v33 = vcombine.low %v16681_v23, %v16684_v27  ;;  %v7088_v11 = vcombine.low %v16687_v46, %v16690_v39 }
 0x7e4   : > { %12746 = vrot.lane.b32.xlu1 %v12745_v44, %s13942_s12  ;;  %v7227_v20 = vcombine.high %v16706_v38, %v16709_v56  ;;  %v16728_v5 = vrot.slane %v7208_v34, %v14952_v10  ;;  %v7022_v35 = vcombine.low %v16665_v17, %v16668_v7  ;;  %v7090_v13 = vcombine.low %v16671_v53, %v16674_v19 }
 0x7e5   : > { %v7157_v2 = vcombine.high %v16712_v15, %v16715_v18  ;;  %v7158_v42 = vcombine.low %v16693_v59, %v16696_v37  ;;  %v7226_v51 = vcombine.low %v16706_v38, %v16709_v56  ;;  %v7156_v36 = vcombine.low %v16712_v15, %v16715_v18 }
 0x7e6   : > { %v12750_v40 = vpack.i.bf16 %v7227_v20, %v7159_v57  ;;  %v7225_v32 = vcombine.high %v16718_v47, %v16728_v5  ;;  %v7224_v52 = vcombine.low %v16718_v47, %v16728_v5  ;;  %v6828_v21 = vrot.slane %v6820_v16, %v14946_v63 }
 0x7e7   : > { %v6835_v0 = vrot.slane %v6821_v14, %v14946_v63  ;;  %v6692_v60 = vrot.slane %v6684_v50, %v14946_v63  ;;  %v6699_v31 = vrot.slane %v6685_v25, %v14946_v63  ;;  %v16768_v16 = vrot.slane %v6888_v8, %v14946_v63 }
 0x7e8   : > { %12751 = vrot.lane.b32.xlu1 %v12750_v40, %s13942_s12  ;;  %v12755_v9 = vpack.i.bf16 %v7225_v32, %v7157_v2  ;;  %v16774_v30 = vrot.slane %v6889_v1, %v14946_v63  ;;  %v16782_v55 = vrot.slane %v6752_v58, %v14946_v63  ;;  %v16788_v24 = vrot.slane %v6753_v26, %v14946_v63 }
 0x7ec   : > { %12756 = vrot.lane.b32.xlu1 %v12755_v9, %s13942_s12 }
 0x7f8   : > { %v12541_v48 = vpop.f32.mrb[84].mxu1 }
 0x7f9   : > { %v6836_v3 = vcombine.low %v16509_v41, %v12541_v48  ;;  %v6837_v14 = vcombine.high %v16509_v41, %v12541_v48  ;;  %v6397_v50 = vpop.f32.mrb[85].mxu1 }
 0x7fa   : > { %v6700_v43 = vcombine.low %v16512_v6, %v6397_v50  ;;  %v6701_v54 = vcombine.high %v16512_v6, %v6397_v50  ;;  %v12542_v25 = vpop.f32.mrb[86].mxu1 }
 0x7fb   : > { %v6844_v41 = vrot.slane %v6836_v3, %v14946_v63  ;;  %v6851_v8 = vrot.slane %v6837_v14, %v14946_v63  ;;  %v6904_v1 = vcombine.low %v16515_v4, %v12542_v25  ;;  %v6905_v58 = vcombine.high %v16515_v4, %v12542_v25  ;;  %v6400_v12 = vpop.f32.mrb[87].mxu1 }
 0x7fc   : > { %v6708_v29 = vrot.slane %v6700_v43, %v14946_v63  ;;  %v6715_v22 = vrot.slane %v6701_v54, %v14946_v63  ;;  %v6768_v49 = vcombine.low %v16517_v62, %v6400_v12  ;;  %v6769_v26 = vcombine.high %v16517_v62, %v6400_v12 }
 0x7fd   : > { %v6852_v61 = vcombine.low %v6828_v21, %v6844_v41  ;;  %v6853_v6 = vcombine.high %v6828_v21, %v6844_v41  ;;  %v6868_v57 = vcombine.low %v6835_v0, %v6851_v8  ;;  %v6869_v45 = vcombine.high %v6835_v0, %v6851_v8 }
 0x7fe   : > { %v6716_v28 = vcombine.low %v6692_v60, %v6708_v29  ;;  %v6717_v44 = vcombine.high %v6692_v60, %v6708_v29  ;;  %v6732_v34 = vcombine.low %v6699_v31, %v6715_v22  ;;  %v6733_v20 = vcombine.high %v6699_v31, %v6715_v22 }
 0x7ff   : > { %v6860_v2 = vrot.slane %v6852_v61, %v14952_v10  ;;  %v6867_v4 = vrot.slane %v6853_v6, %v14952_v10  ;;  %v6876_v40 = vrot.slane %v6868_v57, %v14952_v10  ;;  %v6883_v32 = vrot.slane %v6869_v45, %v14952_v10 }
 0x800   : > { %v6724_v9 = vrot.slane %v6716_v28, %v14952_v10  ;;  %v6731_v62 = vrot.slane %v6717_v44, %v14952_v10  ;;  %v6740_v21 = vrot.slane %v6732_v34, %v14952_v10  ;;  %v6747_v0 = vrot.slane %v6733_v20, %v14952_v10 }
 0x801   : > { %v7364_v48 = vcombine.low %v6860_v2, %v6867_v4  ;;  %v11911_v60 = vcombine.high %v6860_v2, %v6867_v4  ;;  %v7380_v3 = vcombine.low %v6876_v40, %v6883_v32  ;;  %v11912_v31 = vcombine.high %v6876_v40, %v6883_v32 }
 0x802   : > { %v7228_v14 = vcombine.low %v6724_v9, %v6731_v62  ;;  %v11907_v50 = vcombine.high %v6724_v9, %v6731_v62  ;;  %v7244_v43 = vcombine.low %v6740_v21, %v6747_v0  ;;  %v11908_v54 = vcombine.high %v6740_v21, %v6747_v0 }
 0x803   : > { %v16809_v25 = vrot.slane %v7364_v48, %v14946_v63  ;;  %v16812_v41 = vrot.slane %v11911_v60, %v14946_v63  ;;  %v16815_v8 = vrot.slane %v7380_v3, %v14946_v63  ;;  %v16818_v12 = vrot.slane %v11912_v31, %v14946_v63 }
 0x804   : > { %v7235_v29 = vrot.slane %v7228_v14, %v14946_v63  ;;  %v7243_v22 = vrot.slane %v11907_v50, %v14946_v63  ;;  %v7251_v61 = vrot.slane %v7244_v43, %v14946_v63  ;;  %v7259_v6 = vrot.slane %v11908_v54, %v14946_v63 }
 0x805   : > { %v6912_v57 = vrot.slane %v6904_v1, %v14946_v63  ;;  %v6919_v45 = vrot.slane %v6905_v58, %v14946_v63  ;;  %v6776_v28 = vrot.slane %v6768_v49, %v14946_v63  ;;  %v6783_v44 = vrot.slane %v6769_v26, %v14946_v63 }
 0x806   : > { %v7261_v34 = vcombine.high %v7235_v29, %v7243_v22  ;;  %v7277_v20 = vcombine.high %v7251_v61, %v7259_v6  ;;  %v7260_v2 = vcombine.low %v7235_v29, %v7243_v22  ;;  %v7276_v4 = vcombine.low %v7251_v61, %v7259_v6 }
 0x807   : > { %v6920_v40 = vcombine.low %v16768_v16, %v6912_v57  ;;  %v6921_v32 = vcombine.high %v16768_v16, %v6912_v57  ;;  %v6936_v9 = vcombine.low %v16774_v30, %v6919_v45  ;;  %v6937_v62 = vcombine.high %v16774_v30, %v6919_v45 }
 0x808   : > { %v6784_v1 = vcombine.low %v16782_v55, %v6776_v28  ;;  %v6785_v58 = vcombine.high %v16782_v55, %v6776_v28  ;;  %v6800_v49 = vcombine.low %v16788_v24, %v6783_v44  ;;  %v6801_v26 = vcombine.high %v16788_v24, %v6783_v44 }
 0x809   : > { %v6928_v21 = vrot.slane %v6920_v40, %v14952_v10  ;;  %v6935_v0 = vrot.slane %v6921_v32, %v14952_v10  ;;  %v6944_v48 = vrot.slane %v6936_v9, %v14952_v10  ;;  %v6951_v16 = vrot.slane %v6937_v62, %v14952_v10 }
 0x80a   : > { %v6792_v60 = vrot.slane %v6784_v1, %v14952_v10  ;;  %v6799_v30 = vrot.slane %v6785_v58, %v14952_v10  ;;  %v6808_v3 = vrot.slane %v6800_v49, %v14952_v10  ;;  %v6815_v55 = vrot.slane %v6801_v26, %v14952_v10 }
 0x80b   : > { %v7432_v31 = vcombine.low %v6928_v21, %v6935_v0  ;;  %v11913_v14 = vcombine.high %v6928_v21, %v6935_v0  ;;  %v7448_v50 = vcombine.low %v6944_v48, %v6951_v16  ;;  %v11914_v24 = vcombine.high %v6944_v48, %v6951_v16 }
 0x80c   : > { %v7296_v43 = vcombine.low %v6792_v60, %v6799_v30  ;;  %v11909_v54 = vcombine.high %v6792_v60, %v6799_v30  ;;  %v7312_v29 = vcombine.low %v6808_v3, %v6815_v55  ;;  %v11910_v22 = vcombine.high %v6808_v3, %v6815_v55 }
 0x80d   : > { %v7439_v61 = vrot.slane %v7432_v31, %v14946_v63  ;;  %v7447_v6 = vrot.slane %v11913_v14, %v14946_v63  ;;  %v7455_v57 = vrot.slane %v7448_v50, %v14946_v63  ;;  %v7463_v45 = vrot.slane %v11914_v24, %v14946_v63 }
 0x80e   : > { %v7303_v28 = vrot.slane %v7296_v43, %v14946_v63  ;;  %v7311_v44 = vrot.slane %v11909_v54, %v14946_v63  ;;  %v7319_v40 = vrot.slane %v7312_v29, %v14946_v63  ;;  %v7327_v32 = vrot.slane %v11910_v22, %v14946_v63 }
 0x80f   : > { %v16853_v9 = vrot.slane %v7261_v34, %v14952_v10  ;;  %v16856_v62 = vrot.slane %v7277_v20, %v14952_v10  ;;  %v16859_v1 = vrot.slane %v7260_v2, %v14952_v10  ;;  %v16862_v58 = vrot.slane %v7276_v4, %v14952_v10 }
 0x810   : > { %v7329_v49 = vcombine.high %v7303_v28, %v7311_v44  ;;  %v7345_v26 = vcombine.high %v7319_v40, %v7327_v32  ;;  %v7328_v21 = vcombine.low %v7303_v28, %v7311_v44  ;;  %v7344_v0 = vcombine.low %v7319_v40, %v7327_v32 }
 0x811   : > { %v7295_v48 = vcombine.high %v16853_v9, %v16856_v62  ;;  %v7293_v63 = vcombine.high %v16859_v1, %v16862_v58  ;;  %v7397_v34 = vcombine.high %v16809_v25, %v16812_v41  ;;  %v7413_v20 = vcombine.high %v16815_v8, %v16818_v12 }
 0x812   : > { %v16873_v2 = vrot.slane %v7329_v49, %v14952_v10  ;;  %v16876_v4 = vrot.slane %v7345_v26, %v14952_v10  ;;  %v16879_v16 = vrot.slane %v7328_v21, %v14952_v10  ;;  %v16882_v60 = vrot.slane %v7344_v0, %v14952_v10 }
 0x813   : > { %v16885_v30 = vrot.slane %v7397_v34, %v14952_v10  ;;  %v16888_v3 = vrot.slane %v7413_v20, %v14952_v10  ;;  %v7465_v55 = vcombine.high %v7439_v61, %v7447_v6  ;;  %v7481_v31 = vcombine.high %v7455_v57, %v7463_v45 }
 0x814   : > { %v7363_v14 = vcombine.high %v16873_v2, %v16876_v4  ;;  %v7361_v50 = vcombine.high %v16879_v16, %v16882_v60  ;;  %v7396_v24 = vcombine.low %v16809_v25, %v16812_v41  ;;  %v7412_v43 = vcombine.low %v16815_v8, %v16818_v12 }
 0x815   : > { %v7431_v54 = vcombine.high %v16885_v30, %v16888_v3  ;;  %v16901_v29 = vrot.slane %v7465_v55, %v14952_v10  ;;  %v16904_v22 = vrot.slane %v7481_v31, %v14952_v10  ;;  %v7464_v28 = vcombine.low %v7439_v61, %v7447_v6 }
 0x816   : > { %v12760_v44 = vpack.i.bf16 %v7363_v14, %v7295_v48  ;;  %v12765_v40 = vpack.i.bf16 %v7361_v50, %v7293_v63  ;;  %v16907_v32 = vrot.slane %v7396_v24, %v14952_v10  ;;  %v16910_v25 = vrot.slane %v7412_v43, %v14952_v10 }
 0x817   : > { %v7499_v41 = vcombine.high %v16901_v29, %v16904_v22  ;;  %v16915_v8 = vrot.slane %v7464_v28, %v14952_v10  ;;  %v7480_v12 = vcombine.low %v7455_v57, %v7463_v45  ;;  %v7294_v49 = vcombine.low %v16853_v9, %v16856_v62 }
 0x818   : > { %12761 = vrot.lane.b32.xlu0 %v12760_v44, %s13942_s12  ;;  %12766 = vrot.lane.b32.xlu1 %v12765_v40, %s13942_s12  ;;  %v7429_v61 = vcombine.high %v16907_v32, %v16910_v25  ;;  %v7362_v6 = vcombine.low %v16873_v2, %v16876_v4  ;;  %v7292_v26 = vcombine.low %v16859_v1, %v16862_v58 }
 0x819   : > { %v12770_v21 = vpack.i.bf16 %v7499_v41, %v7431_v54  ;;  %v16928_v0 = vrot.slane %v7480_v12, %v14952_v10  ;;  %v7360_v57 = vcombine.low %v16879_v16, %v16882_v60  ;;  %v7430_v45 = vcombine.low %v16885_v30, %v16888_v3  ;;  %v7620_v41 = vld [vmem:[%s18628_s22] sm:$0x3] }
 0x81a   : > { %v7498_v9 = vcombine.low %v16901_v29, %v16904_v22  ;;  %v7428_v62 = vcombine.low %v16907_v32, %v16910_v25 }
 0x81b   : > { %v7497_v48 = vcombine.high %v16915_v8, %v16928_v0  ;;  %v7496_v1 = vcombine.low %v16915_v8, %v16928_v0  ;;  %v18629_v8 = vld [vmem:[#allocation32_spill] sm:$0xff] }
 0x81c   : > { %12771 = vrot.lane.b32.xlu0 %v12770_v21, %s13942_s12  ;;  %v16990_v12 = vrot.slane %v7620_v41, %v18629_v8 }
 0x81d   : > { %v12775_v10 = vpack.i.bf16 %v7497_v48, %v7429_v61 }
 0x81f   : > { %12776 = vrot.lane.b32.xlu1 %v12775_v10, %s13942_s12 }
 0x853   : > { %v12742_v58 = vpop.permute.xlu0 %12741 }
 0x854   : > { %v12744_v63 = vunpack.i.h.bf16 %v12742_v58  ;;  %v12743_v34 = vunpack.i.l.bf16 %v12742_v58 }
 0x856   : > { %v12747_v20 = vpop.permute.xlu1 %12746  ;;  %v7572_v2 = vsel %vm5379_vm0, %v7022_v35, %v12743_v34  ;;  %v7573_v4 = vsel %vm5379_vm0, %v7090_v13, %v12744_v63  ;;  %v13622_v63 = vld [vmem:[#allocation2 + $0x10] sm:$0xff] }
 0x857   : > { %v12749_v16 = vunpack.i.h.bf16 %v12747_v20  ;;  %v12748_v60 = vunpack.i.l.bf16 %v12747_v20  ;;  %v7581_v30 = vpack.c.bf16 %v7573_v4, %v7572_v2  ;;  %v13623_v20 = vld [vmem:[#allocation2 + $0x18] sm:$0xff] }
 0x859   : > { %v7565_v3 = vsel %vm5379_vm0, %v7088_v11, %v12749_v16  ;;  %v7564_v17 = vsel %vm5379_vm0, %v7020_v33, %v12748_v60  ;;  %7824 = vmatprep.mubr.bf16.mxu0 %v7581_v30 }
 0x85a   : > { %v7580_v7 = vpack.c.bf16 %v7565_v3, %v7564_v17  ;;  %v12752_v35 = vpop.permute.xlu1 %12751 }
 0x85b   : > { %v12754_v55 = vunpack.i.h.bf16 %v12752_v35  ;;  %v12753_v53 = vunpack.i.l.bf16 %v12752_v35  ;;  %v13624_v35 = vld [vmem:[#allocation2 + $0x20] sm:$0xff] }
 0x85c   : > { %7825 = vmatmul.mubr.bf16.vlgmr.msra.gmra.mrb[24].mxu0 %v7580_v7 }
 0x85d   : > { %v7574_v19 = vsel %vm5379_vm0, %v7158_v42, %v12753_v53  ;;  %v7575_v46 = vsel %vm5379_vm0, %v7226_v51, %v12754_v55 }
 0x85e   : > { %v12757_v39 = vpop.permute.xlu1 %12756  ;;  %v7583_v23 = vpack.c.bf16 %v7575_v46, %v7574_v19  ;;  %v13625_v46 = vld [vmem:[#allocation2 + $0x28] sm:$0xff] }
 0x85f   : > { %v12759_v27 = vunpack.i.h.bf16 %v12757_v39  ;;  %v12758_v33 = vunpack.i.l.bf16 %v12757_v39 }
 0x860   : > { %7834 = vmatprep.mubr.bf16.mxu0 %v7583_v23 }
 0x861   : > { %v7566_v11 = vsel %vm5379_vm0, %v7156_v36, %v12758_v33  ;;  %v7567_v59 = vsel %vm5379_vm0, %v7224_v52, %v12759_v27  ;;  %v13626_v27 = vld [vmem:[#allocation2 + $0x30] sm:$0xff] }
 0x862   : > { %v7582_v37 = vpack.c.bf16 %v7567_v59, %v7566_v11  ;;  %v13627_v11 = vld [vmem:[#allocation2 + $0x38] sm:$0xff] }
 0x864   : > { %7835 = vmatmul.mubr.bf16.gmra.mrb[28].mxu0 %v7582_v37 }
 0x88a   : > { %v12762_v38 = vpop.permute.xlu0 %12761  ;;  %v12767_v56 = vpop.permute.xlu1 %12766 }
 0x88b   : > { %v12764_v13 = vunpack.i.h.bf16 %v12762_v38  ;;  %v12763_v42 = vunpack.i.l.bf16 %v12762_v38  ;;  %v12769_v51 = vunpack.i.h.bf16 %v12767_v56  ;;  %v12768_v31 = vunpack.i.l.bf16 %v12767_v56 }
 0x88d   : > { %v7576_v14 = vsel %vm5379_vm0, %v7294_v49, %v12763_v42  ;;  %v7577_v50 = vsel %vm5379_vm0, %v7362_v6, %v12764_v13  ;;  %v7568_v15 = vsel %vm5379_vm0, %v7292_v26, %v12768_v31  ;;  %v7569_v18 = vsel %vm5379_vm0, %v7360_v57, %v12769_v51  ;;  %v18630_v49 = vld [vmem:[#allocation31_spill] sm:$0xff] }
 0x88e   : > { %v12772_v36 = vpop.permute.xlu0 %12771  ;;  %v7585_v47 = vpack.c.bf16 %v7577_v50, %v7576_v14  ;;  %v7584_v5 = vpack.c.bf16 %v7569_v18, %v7568_v15  ;;  %v16993_v61 = vrot.slane %v7620_v41, %v18630_v49  ;;  %v13628_v14 = vld [vmem:[#allocation2 + $0x40] sm:$0xff] }
 0x88f   : > { %v12774_v52 = vunpack.i.h.bf16 %v12772_v36  ;;  %v12773_v24 = vunpack.i.l.bf16 %v12772_v36  ;;  %v13629_v36 = vld [vmem:[#allocation2 + $0x48] sm:$0xff]  ;;  %v13632_v41 = vld [vmem:[#allocation2 + $0x60] sm:$0xff] }
 0x890   : > { %7844 = vmatprep.mubr.bf16.mxu0 %v7585_v47 }
 0x891   : > { %v12777_v43 = vpop.permute.xlu1 %12776  ;;  %7845 = vmatmul.mubr.bf16.gmra.mrb[32].mxu0 %v7584_v5  ;;  %v7578_v54 = vsel %vm5379_vm0, %v7430_v45, %v12773_v24  ;;  %v7579_v29 = vsel %vm5379_vm0, %v7498_v9, %v12774_v52  ;;  %v13620_v45 = vld [vmem:[#allocation2] sm:$0xff]  ;;  %v13630_v52 = vld [vmem:[#allocation2 + $0x50] sm:$0xff] }
 0x892   : > { %v12779_v22 = vunpack.i.h.bf16 %v12777_v43  ;;  %v12778_v28 = vunpack.i.l.bf16 %v12777_v43  ;;  %v7587_v44 = vpack.c.bf16 %v7579_v29, %v7578_v54  ;;  %v13631_v43 = vld [vmem:[#allocation2 + $0x58] sm:$0xff] }
 0x894   : > { %7854 = vmatprep.mubr.bf16.mxu0 %v7587_v44  ;;  %v7570_v40 = vsel %vm5379_vm0, %v7428_v62, %v12778_v28  ;;  %v7571_v32 = vsel %vm5379_vm0, %v7496_v1, %v12779_v22  ;;  %v13621_v1 = vld [vmem:[#allocation2 + $0x8] sm:$0xff] }
 0x895   : > { %v7586_v25 = vpack.c.bf16 %v7571_v32, %v7570_v40 }
 0x899   : > { %7855 = vmatmul.mubr.bf16.gmra.mrb[36].mxu0 %v7586_v25 }
 0x92f   : > { %v7826_v6 = vpop.f32.mrb[24].mxu0 }
 0x930   : > { %v7827_v26 = vadd.f32 %v7826_v6, %v16990_v12  ;;  %v7828_v21 = vpop.f32.mrb[25].mxu0 }
 0x931   : > { %v7829_v0 = vadd.f32 %v7828_v21, %v16993_v61  ;;  %v7830_v57 = vpop.f32.mrb[26].mxu0 }
 0x932   : > { %v16997_v9 = vadd.f32 %v13620_v45, %v7827_v26  ;;  %v7831_v62 = vadd.f32 %v7830_v57, %v16990_v12  ;;  %v7832_v48 = vpop.f32.mrb[27].mxu0 }
 0x933   : > { %v17000_v10 = vadd.f32 %v13621_v1, %v7829_v0  ;;  %v7833_v58 = vadd.f32 %v7832_v48, %v16993_v61  ;;  %v13633_v0 = vld [vmem:[#allocation2 + $0x68] sm:$0xff]  ;;  %v13635_v1 = vld [vmem:[#allocation2 + $0x78] sm:$0xff] }
 0x934   : > { %v17003_v34 = vadd.f32 %v13622_v63, %v7831_v62  ;;  %v13634_v62 = vld [vmem:[#allocation2 + $0x70] sm:$0xff] }
 0x935   : > { %v17005_v2 = vadd.f32 %v13623_v20, %v7833_v58  ;;  %v7883_v4 = vadd.f32 %v17000_v10, %v16997_v9  ;;  %v8546_v20 = vld [vmem:[%s14374_s20] sm:$0xff] }
 0x937   : > { %v7836_v16 = vpop.f32.mrb[28].mxu0  ;;  %7884 = vadd.xlane.f32.xlu0 %v7883_v4  ;;  %v7886_v60 = vadd.f32 %v17005_v2, %v17003_v34  ;;  %v8554_v4 = vld [vmem:[%s14374_s20 + $0x40] sm:$0xff] }
 0x938   : > { %v7837_v30 = vadd.f32 %v7836_v16, %v16990_v12  ;;  %v7838_v3 = vpop.f32.mrb[29].mxu0 }
 0x939   : > { %v7839_v17 = vadd.f32 %v7838_v3, %v16993_v61  ;;  %v7840_v7 = vpop.f32.mrb[30].mxu0  ;;  %7887 = vadd.xlane.f32.xlu1 %v7886_v60 }
 0x93a   : > { %v17013_v55 = vadd.f32 %v13624_v35, %v7837_v30  ;;  %v7841_v53 = vadd.f32 %v7840_v7, %v16990_v12  ;;  %v7842_v19 = vpop.f32.mrb[31].mxu0  ;;  %v8558_v30 = vld [vmem:[%s14374_s20 + $0x60] sm:$0xff] }
 0x93b   : > { %v17016_v39 = vadd.f32 %v13625_v46, %v7839_v17  ;;  %v7843_v23 = vadd.f32 %v7842_v19, %v16993_v61  ;;  %v11989_v3 = vcombine.high %v8554_v4, %v8558_v30  ;;  %v8562_v17 = vld [vmem:[%s14374_s20 + $0x80] sm:$0xff]  ;;  %v11988_v35 = vcombine.low %v8554_v4, %v8558_v30 }
 0x93c   : > { %18631 = vst [vmem:[#allocation43_spill] sm:$0xff] %v17013_v55  ;;  %v17019_v33 = vadd.f32 %v13626_v27, %v7841_v53  ;;  %v8566_v7 = vld [vmem:[%s14374_s20 + $0xa0] sm:$0xff] }
 0x93d   : > { %18632 = vst [vmem:[#allocation44_spill] sm:$0xff] %v17016_v39  ;;  %v17021_v59 = vadd.f32 %v13627_v11, %v7843_v23  ;;  %v7889_v37 = vadd.f32 %v17016_v39, %v17013_v55  ;;  %v11997_v53 = vcombine.high %v8562_v17, %v8566_v7  ;;  %v8570_v19 = vld [vmem:[%s14374_s20 + $0xc0] sm:$0xff]  ;;  %v12974_v11 = vld [vmem:[%s18643_s23 + $0x48] sm:$0xff]  }
 0x93e   : > { %18633 = vst [vmem:[#allocation45_spill] sm:$0xff] %v17019_v33  ;;  %v12972_v46 = vld [vmem:[%s18643_s23 + $0x40] sm:$0xff]  }
 0x93f   : > { %18634 = vst [vmem:[#allocation46_spill] sm:$0xff] %v17021_v59  ;;  %7890 = vadd.xlane.f32.xlu0 %v7889_v37  ;;  %v7892_v38 = vadd.f32 %v17021_v59, %v17019_v33  ;;  %v8574_v23 = vld [vmem:[%s14374_s20 + $0xe0] sm:$0xff]  ;;  %12375 = vmatprep.subr.bf16.mxu1 %v12972_v46  ;;  %v11996_v37 = vcombine.low %v8562_v17, %v8566_v7 }
 0x940   : > { %v12973_v27 = vld [vmem:[%s18643_s23] sm:$0xff]  }
 0x941   : > { %12376 = vmatpush3.bf16.msra.mxu1 %v12973_v27 }
 0x942   : > { %12377 = vmatprep.subr.bf16.mxu1 %v12974_v11 }
 0x943   : > { %7893 = vadd.xlane.f32.xlu0 %v7892_v38  ;;  %v12975_v38 = vld [vmem:[%s18643_s23 + $0x8] sm:$0xff]  }
 0x945   : > { %12378 = vmatpush3.bf16.msra.mxu1 %v12975_v38 }
 0x964   : > { %v7846_v56 = vpop.f32.mrb[32].mxu0 }
 0x965   : > { %v7847_v13 = vadd.f32 %v7846_v56, %v16990_v12  ;;  %v7848_v42 = vpop.f32.mrb[33].mxu0  ;;  %v12005_v56 = vcombine.high %v8570_v19, %v8574_v23 }
 0x966   : > { %v7849_v51 = vadd.f32 %v7848_v42, %v16993_v61  ;;  %v7850_v31 = vpop.f32.mrb[34].mxu0  ;;  %v8582_v42 = vld [vmem:[%s14374_s20 + $0x120] sm:$0xff] }
 0x967   : > { %v17029_v50 = vadd.f32 %v13628_v14, %v7847_v13  ;;  %v7851_v15 = vadd.f32 %v7850_v31, %v16990_v12  ;;  %v7852_v18 = vpop.f32.mrb[35].mxu0  ;;  %v8578_v13 = vld [vmem:[%s14374_s20 + $0x100] sm:$0xff] }
 0x968   : > { %v17032_v47 = vadd.f32 %v13629_v36, %v7849_v51  ;;  %v7853_v5 = vadd.f32 %v7852_v18, %v16993_v61  ;;  %v12004_v51 = vcombine.low %v8570_v19, %v8574_v23  ;;  %v12013_v31 = vcombine.high %v8578_v13, %v8582_v42  ;;  %v8586_v14 = vld [vmem:[%s14374_s20 + $0x140] sm:$0xff] }
 0x969   : > { %18635 = vst [vmem:[#allocation41_spill] sm:$0xff] %v17029_v50  ;;  %v17035_v24 = vadd.f32 %v13630_v52, %v7851_v15  ;;  %v8590_v15 = vld [vmem:[%s14374_s20 + $0x160] sm:$0xff]  ;;  %v12012_v18 = vcombine.low %v8578_v13, %v8582_v42 }
 0x96a   : > { %18636 = vst [vmem:[#allocation37_spill] sm:$0xff] %v17032_v47  ;;  %v17037_v54 = vadd.f32 %v13631_v43, %v7853_v5  ;;  %v7895_v29 = vadd.f32 %v17032_v47, %v17029_v50  ;;  %v12021_v36 = vcombine.high %v8586_v14, %v8590_v15  ;;  %v8594_v5 = vld [vmem:[%s14374_s20 + $0x180] sm:$0xff]  ;;  %v12020_v43 = vcombine.low %v8586_v14, %v8590_v15 }
 0x96b   : > { %18637 = vst [vmem:[#allocation33_spill] sm:$0xff] %v17035_v24  ;;  %v8598_v52 = vld [vmem:[%s14374_s20 + $0x1a0] sm:$0xff] }
 0x96c   : > { %18638 = vst [vmem:[#allocation34_spill] sm:$0xff] %v17037_v54  ;;  %v7856_v22 = vpop.f32.mrb[36].mxu0  ;;  %7896 = vadd.xlane.f32.xlu0 %v7895_v29  ;;  %v7898_v28 = vadd.f32 %v17037_v54, %v17035_v24  ;;  %v12029_v29 = vcombine.high %v8594_v5, %v8598_v52 }
 0x96d   : > { %v7857_v44 = vadd.f32 %v7856_v22, %v16990_v12  ;;  %v7858_v40 = vpop.f32.mrb[37].mxu0  ;;  %v8602_v22 = vld [vmem:[%s14374_s20 + $0x1c0] sm:$0xff] }
 0x96e   : > { %v7859_v32 = vadd.f32 %v7858_v40, %v16993_v61  ;;  %v7860_v25 = vpop.f32.mrb[38].mxu0  ;;  %7899 = vadd.xlane.f32.xlu1 %v7898_v28  ;;  %v8606_v28 = vld [vmem:[%s14374_s20 + $0x1e0] sm:$0xff] }
 0x96f   : > { %v17045_v6 = vadd.f32 %v13632_v41, %v7857_v44  ;;  %v7861_v26 = vadd.f32 %v7860_v25, %v16990_v12  ;;  %v7862_v21 = vpop.f32.mrb[39].mxu0  ;;  %v12028_v44 = vcombine.low %v8594_v5, %v8598_v52  ;;  %v12037_v40 = vcombine.high %v8602_v22, %v8606_v28  ;;  %v8614_v25 = vld [vmem:[%s14374_s20 + $0x220] sm:$0xff] }
 0x970   : > { %v17048_v57 = vadd.f32 %v13633_v0, %v7859_v32  ;;  %v7863_v45 = vadd.f32 %v7862_v21, %v16993_v61  ;;  %v8550_v61 = vld [vmem:[%s14374_s20 + $0x20] sm:$0xff]  ;;  %v12036_v41 = vcombine.low %v8602_v22, %v8606_v28  ;;  %v12977_v22 = vld [vmem:[%s18643_s23 + $0x10] sm:$0xff]   ;;  %v12978_v28 = vld [vmem:[%s18643_s23 + $0x58] sm:$0xff]  }
 0x971   : > { %18639 = vst [vmem:[#allocation40_spill] sm:$0xff] %v17045_v6  ;;  %v17051_v48 = vadd.f32 %v13634_v62, %v7861_v26  ;;  %v11980_v16 = vcombine.low %v8546_v20, %v8550_v61  ;;  %v11981_v60 = vcombine.high %v8546_v20, %v8550_v61  ;;  %v8610_v32 = vld [vmem:[%s14374_s20 + $0x200] sm:$0xff] }
 0x972   : > { %18640 = vst [vmem:[#allocation42_spill] sm:$0xff] %v17048_v57  ;;  %v17053_v58 = vadd.f32 %v13635_v1, %v7863_v45  ;;  %v7901_v63 = vadd.f32 %v17048_v57, %v17045_v6  ;;  %v12045_v26 = vcombine.high %v8610_v32, %v8614_v25  ;;  %v8618_v21 = vld [vmem:[%s14374_s20 + $0x240] sm:$0xff]  ;;  %v12044_v45 = vcombine.low %v8610_v32, %v8614_v25  ;;  %v12979_v25 = vld [vmem:[%s18643_s23 + $0x18] sm:$0xff]  }
 0x973   : > { %18641 = vst [vmem:[#allocation35_spill] sm:$0xff] %v17051_v48  ;;  %9356 = vmatprep.subr.bf16.mxu0 %v11981_v60  ;;  %v8622_v0 = vld [vmem:[%s14374_s20 + $0x260] sm:$0xff] }
 0x974   : > { %18642 = vst [vmem:[#allocation36_spill] sm:$0xff] %v17053_v58  ;;  %7902 = vadd.xlane.f32.xlu0 %v7901_v63  ;;  %v7904_v12 = vadd.f32 %v17053_v58, %v17051_v48  ;;  %9357 = vmatpush1.bf16.msra.mxu0 %v11980_v16  ;;  %v12053_v62 = vcombine.high %v8618_v21, %v8622_v0  ;;  %v8626_v5 = vld [vmem:[%s14374_s20 + $0x280] sm:$0xff] }
 0x975   : > { %9358 = vmatprep.subr.bf16.mxu0 %v11989_v3  ;;  %v12052_v1 = vcombine.low %v8618_v21, %v8622_v0  ;;  %v8630_v52 = vld [vmem:[%s14374_s20 + $0x2a0] sm:$0xff] }
 0x976   : > { %7905 = vadd.xlane.f32.xlu1 %v7904_v12  ;;  %v12980_v0 = vld [vmem:[%s18643_s23 + $0x60] sm:$0xff]  }
 0x978   : > { %9359 = vmatpush1.bf16.msra.mxu0 %v11988_v35 }
 0x979   : > { %9360 = vmatprep.subr.bf16.mxu0 %v11997_v53 }
 0x97c   : > { %9361 = vmatpush1.bf16.msra.mxu0 %v11996_v37 }
 0x97d   : > { %9362 = vmatprep.subr.bf16.mxu0 %v12005_v56 }
 0x980   : > { %9363 = vmatpush1.bf16.msra.mxu0 %v12004_v51 }
 0x981   : > { %9364 = vmatprep.subr.bf16.mxu0 %v12013_v31 }
 0x984   : > { %9365 = vmatpush1.bf16.msra.mxu0 %v12012_v18 }
 0x985   : > { %9366 = vmatprep.subr.bf16.mxu0 %v12021_v36  ;;  %v12976_v36 = vld [vmem:[%s18643_s23 + $0x50] sm:$0xff]  }
 0x986   : > { %12379 = vmatprep.subr.bf16.mxu1 %v12976_v36  ;;  %v8666_v36 = vld [vmem:[%s14374_s20 + $0x3c0] sm:$0xff] }
 0x987   : > { %12380 = vmatpush3.bf16.msra.mxu1 %v12977_v22 }
 0x988   : > { %9367 = vmatpush1.bf16.msra.mxu0 %v12020_v43  ;;  %v12060_v43 = vcombine.low %v8626_v5, %v8630_v52  ;;  %12381 = vmatprep.subr.bf16.mxu1 %v12978_v28 }
 0x989   : > { %9368 = vmatprep.subr.bf16.mxu0 %v12029_v29  ;;  %v12061_v29 = vcombine.high %v8626_v5, %v8630_v52  ;;  %v8670_v5 = vld [vmem:[%s14374_s20 + $0x3e0] sm:$0xff] }
 0x98b   : > { %12382 = vmatpush3.bf16.msra.mxu1 %v12979_v25  ;;  %v12986_v25 = vld [vmem:[%s18643_s23 + $0x78] sm:$0xff]  }
 0x98c   : > { %9369 = vmatpush1.bf16.msra.mxu0 %v12028_v44  ;;  %v8634_v44 = vld [vmem:[%s14374_s20 + $0x2c0] sm:$0xff]  ;;  %12383 = vmatprep.subr.bf16.mxu1 %v12980_v0 }
 0x98d   : > { %9370 = vmatprep.subr.bf16.mxu0 %v12037_v40  ;;  %v8638_v40 = vld [vmem:[%s14374_s20 + $0x2e0] sm:$0xff] }
 0x98e   : > { %v12069_v32 = vcombine.high %v8634_v44, %v8638_v40  ;;  %v12068_v21 = vcombine.low %v8634_v44, %v8638_v40  ;;  %v17166_v44 = vld [vmem:[%s14374_s20 + $0x10] sm:$0xff] }
 0x98f   : > { %v17169_v40 = vld [vmem:[%s14374_s20 + $0x30] sm:$0xff] }
 0x990   : > { %9371 = vmatpush1.bf16.msra.mxu0 %v12036_v41  ;;  %v8642_v41 = vld [vmem:[%s14374_s20 + $0x300] sm:$0xff] }
 0x991   : > { %9372 = vmatprep.subr.bf16.mxu0 %v12045_v26  ;;  %v8646_v26 = vld [vmem:[%s14374_s20 + $0x320] sm:$0xff] }
 0x994   : > { %9373 = vmatpush1.bf16.msra.mxu0 %v12044_v45  ;;  %v12077_v45 = vcombine.high %v8642_v41, %v8646_v26 }
 0x995   : > { %9374 = vmatprep.subr.bf16.mxu0 %v12053_v62  ;;  %v8650_v62 = vld [vmem:[%s14374_s20 + $0x340] sm:$0xff] }
 0x998   : > { %9375 = vmatpush1.bf16.msra.mxu0 %v12052_v1  ;;  %v8654_v1 = vld [vmem:[%s14374_s20 + $0x360] sm:$0xff] }
 0x999   : > { %9376 = vmatprep.subr.bf16.mxu0 %v12061_v29 }
 0x99c   : > { %9377 = vmatpush1.bf16.msra.mxu0 %v12060_v43  ;;  %v12985_v43 = vld [vmem:[%s18643_s23 + $0x30] sm:$0xff]  }
 0x99d   : > { %9378 = vmatprep.subr.bf16.mxu0 %v12069_v32 }
 0x9a0   : > { %9379 = vmatpush1.bf16.msra.mxu0 %v12068_v21 }
 0x9a1   : > { %9380 = vmatprep.subr.bf16.mxu0 %v12077_v45 }
 0x9c4   : > { %v7885_v63 = vpop.xlane.xlu0 %7884 }
 0x9c5   : > { %v7907_v12 = vmul.f32 0.00390625, %v7885_v63  ;;  %v12981_v63 = vld [vmem:[%s18643_s23 + $0x20] sm:$0xff]  }
 0x9c6   : > { %v7888_v20 = vpop.xlane.xlu1 %7887  ;;  %12384 = vmatpush3.bf16.msra.mxu1 %v12981_v63 }
 0x9c7   : > { %v17084_v61 = vsub.f32 %v16997_v9, %v7907_v12  ;;  %v17087_v4 = vsub.f32 %v17000_v10, %v7907_v12  ;;  %v7908_v16 = vmul.f32 0.00390625, %v7888_v20  ;;  %v12076_v12 = vcombine.low %v8642_v41, %v8646_v26  ;;  %v12982_v20 = vld [vmem:[%s18643_s23 + $0x68] sm:$0xff]  }
 0x9c8   : > { %12385 = vmatprep.subr.bf16.mxu1 %v12982_v20  ;;  %v12101_v41 = vcombine.high %v8666_v36, %v8670_v5  ;;  %v11984_v26 = vcombine.low %v17166_v44, %v17169_v40  ;;  %v12100_v20 = vcombine.low %v8666_v36, %v8670_v5 }
 0x9c9   : > { %v7931_v60 = vmul.f32 %v17084_v61, %v17084_v61  ;;  %v7932_v30 = vmul.f32 %v17087_v4, %v17087_v4  ;;  %v17094_v3 = vsub.f32 %v17003_v34, %v7908_v16  ;;  %v17097_v17 = vsub.f32 %v17005_v2, %v7908_v16  ;;  %9381 = vmatpush1.bf16.msra.mxu0 %v12076_v12 }
 0x9cb   : > { %v7933_v7 = vmul.f32 %v17094_v3, %v17094_v3  ;;  %v7934_v35 = vmul.f32 %v17097_v17, %v17097_v17  ;;  %v7947_v53 = vadd.f32 %v7932_v30, %v7931_v60  ;;  %v12085_v60 = vcombine.high %v8650_v62, %v8654_v1 }
 0x9cc   : > { %v7891_v19 = vpop.xlane.xlu0 %7890 }
 0x9cd   : > { %v7909_v46 = vmul.f32 0.00390625, %v7891_v19  ;;  %7948 = vadd.xlane.f32.xlu0 %v7947_v53  ;;  %v7950_v23 = vadd.f32 %v7934_v35, %v7933_v7  ;;  %v8658_v7 = vld [vmem:[%s14374_s20 + $0x380] sm:$0xff]  ;;  %v12983_v19 = vld [vmem:[%s18643_s23 + $0x28] sm:$0xff]   ;;  %9382 = vmatprep.subr.bf16.mxu0 %v12085_v60 }
 0x9ce   : > { %v8662_v35 = vld [vmem:[%s14374_s20 + $0x3a0] sm:$0xff]  ;;  %12386 = vmatpush3.bf16.msra.mxu1 %v12983_v19 }
 0x9cf   : > { %v17104_v27 = vsub.f32 %v17013_v55, %v7909_v46  ;;  %v17107_v11 = vsub.f32 %v17016_v39, %v7909_v46  ;;  %7951 = vadd.xlane.f32.xlu1 %v7950_v23  ;;  %v12092_v52 = vcombine.low %v8658_v7, %v8662_v35 }
 0x9d0   : > { %v7894_v37 = vpop.xlane.xlu0 %7893 }
 0x9d1   : > { %v7935_v38 = vmul.f32 %v17104_v27, %v17104_v27  ;;  %v7936_v56 = vmul.f32 %v17107_v11, %v17107_v11  ;;  %v7910_v13 = vmul.f32 0.00390625, %v7894_v37 }
 0x9d3   : > { %v17114_v42 = vsub.f32 %v17019_v33, %v7910_v13  ;;  %v17117_v51 = vsub.f32 %v17021_v59, %v7910_v13  ;;  %v7953_v31 = vadd.f32 %v7936_v56, %v7935_v38  ;;  %v12084_v38 = vcombine.low %v8650_v62, %v8654_v1  ;;  %v12984_v56 = vld [vmem:[%s18643_s23 + $0x70] sm:$0xff]   ;;  %v12987_v62 = vld [vmem:[%s18643_s23 + $0x38] sm:$0xff]  }
 0x9d4   : > { %v12093_v13 = vcombine.high %v8658_v7, %v8662_v35  ;;  %12387 = vmatprep.subr.bf16.mxu1 %v12984_v56  ;;  %v12996_v56 = vld [vmem:[%s18644_s19 + $0x4] ss:$8 sps:$4 sm:$0xff]  }
 0x9d5   : > { %v7937_v14 = vmul.f32 %v17114_v42, %v17114_v42  ;;  %v7938_v15 = vmul.f32 %v17117_v51, %v17117_v51  ;;  %7954 = vadd.xlane.f32.xlu0 %v7953_v31  ;;  %9383 = vmatpush1.bf16.msra.mxu0 %v12084_v38 }
 0x9d6   : > { %9384 = vmatprep.subr.bf16.mxu0 %v12093_v13  ;;  %12388 = vmatpush3.bf16.msra.mxu1 %v12985_v43 }
 0x9d7   : > { %v7956_v18 = vadd.f32 %v7938_v15, %v7937_v14  ;;  %12389 = vmatprep.subr.bf16.mxu1 %v12986_v25 }
 0x9d9   : > { %7957 = vadd.xlane.f32.xlu1 %v7956_v18  ;;  %9385 = vmatpush1.bf16.msra.mxu0 %v12092_v52 }
 0x9da   : > { %9386 = vmatprep.subr.bf16.mxu0 %v12101_v41  ;;  %12390 = vmatpush3.bf16.msra.mxu1 %v12987_v62  ;;  %v8483_v62 = vld [vmem:[%s1046_s24] sm:$0x3]  ;;  %s18650_s24 = sld [smem:[#allocation27_spill]] }
 0x9db   : > { %8393 = vmatprep.subr.bf16.mxu1 %v12996_v56  ;;  %v17239_v56 = vrot.slane %v8483_v62, %v18629_v8 }
 0x9dd   : > { %9387 = vmatpush1.bf16.msra.mxu0 %v12100_v20 }
 0x9f9   : > { %v7897_v16 = vpop.xlane.xlu0 %7896 }
 0x9fa   : > { %v7911_v30 = vmul.f32 0.00390625, %v7897_v16  ;;  %v11985_v16 = vcombine.high %v17166_v44, %v17169_v40 }
 0x9fb   : > { %v7900_v53 = vpop.xlane.xlu1 %7899 }
 0x9fc   : > { %v17142_v46 = vsub.f32 %v17029_v50, %v7911_v30  ;;  %v17145_v23 = vsub.f32 %v17032_v47, %v7911_v30  ;;  %v7912_v37 = vmul.f32 0.00390625, %v7900_v53  ;;  %9502 = vmatprep.subr.bf16.mxu0 %v11985_v16 }
 0x9fe   : > { %v7939_v31 = vmul.f32 %v17142_v46, %v17142_v46  ;;  %v7940_v14 = vmul.f32 %v17145_v23, %v17145_v23  ;;  %v17153_v15 = vsub.f32 %v17035_v24, %v7912_v37  ;;  %v17156_v18 = vsub.f32 %v17037_v54, %v7912_v37 }
 0xa00   : > { %v7941_v29 = vmul.f32 %v17153_v15, %v17153_v15  ;;  %v7942_v22 = vmul.f32 %v17156_v18, %v17156_v18  ;;  %v7959_v28 = vadd.f32 %v7940_v14, %v7939_v31 }
 0xa01   : > { %v7903_v32 = vpop.xlane.xlu0 %7902 }
 0xa02   : > { %v7913_v21 = vmul.f32 0.00390625, %v7903_v32  ;;  %7960 = vadd.xlane.f32.xlu0 %v7959_v28  ;;  %v7962_v0 = vadd.f32 %v7942_v22, %v7941_v29  ;;  %v7881_v22 = vld [vmem:[%s1058_s18] sm:$0x3] }
 0xa03   : > { %v7906_v45 = vpop.xlane.xlu1 %7905  ;;  %v8482_v28 = vld [vmem:[%s18647_s17] sm:$0x3]  ;;  %v17225_v16 = vrot.slane %v7881_v22, %v18630_v49 }
 0xa04   : > { %v17176_v1 = vsub.f32 %v17045_v6, %v7913_v21  ;;  %v17179_v63 = vsub.f32 %v17048_v57, %v7913_v21  ;;  %v7914_v12 = vmul.f32 0.00390625, %v7906_v45  ;;  %7963 = vadd.xlane.f32.xlu1 %v7962_v0  ;;  %v7882_v21 = vld [vmem:[%s1062_s3] sm:$0x3]  ;;  %v17214_v0 = vrot.slane %v7881_v22, %v18629_v8  ;;  %s18652_s3 = sld [smem:[#allocation26_spill]] }
 0xa05   : > { %v17217_v45 = vrot.slane %v8482_v28, %v18629_v8 }
 0xa06   : > { %v7943_v60 = vmul.f32 %v17176_v1, %v17176_v1  ;;  %v7944_v30 = vmul.f32 %v17179_v63, %v17179_v63  ;;  %v17188_v7 = vsub.f32 %v17051_v48, %v7914_v12  ;;  %v17191_v35 = vsub.f32 %v17053_v58, %v7914_v12 }
 0xa08   : > { %v7945_v53 = vmul.f32 %v17188_v7, %v17188_v7  ;;  %v7946_v19 = vmul.f32 %v17191_v35, %v17191_v35  ;;  %v7965_v37 = vadd.f32 %v7944_v30, %v7943_v60  ;;  %v17228_v60 = vrot.slane %v8482_v28, %v18630_v49 }
 0xa0a   : > { %7966 = vadd.xlane.f32.xlu0 %v7965_v37  ;;  %v7968_v38 = vadd.f32 %v7946_v19, %v7945_v53  ;;  %v17233_v19 = vrot.slane %v7882_v21, %v18629_v8  ;;  %s18653_s16 = scalar_lea.vmem [#allocation10], %s18652_s3 }
 0xa0c   : > { %7969 = vadd.xlane.f32.xlu1 %v7968_v38  ;;  %v17236_v38 = vrot.slane %v7882_v21, %v18630_v49 }
 0xa5a   : > { %v7949_v13 = vpop.xlane.xlu0 %7948 }
 0xa5b   : > { %v7971_v31 = vmul.f32 0.00390625, %v7949_v13  ;;  %v17242_v13 = vrot.slane %v8483_v62, %v18630_v49 }
 0xa5c   : > { %v7952_v14 = vpop.xlane.xlu1 %7951 }
 0xa5d   : > { %v7979_v36 = vadd.f32 1e-05, %v7971_v31  ;;  %v7972_v5 = vmul.f32 0.00390625, %v7952_v14 }
 0xa5f   : > { %13348 = vrsqrt.f32 %v7979_v36  ;;  %v7980_v52 = vadd.f32 1e-05, %v7972_v5 }
 0xa61   : > { %13350 = vrsqrt.f32 %v7980_v52 }
 0xa62   : > { %v7955_v43 = vpop.xlane.xlu0 %7954 }
 0xa63   : > { %v7973_v29 = vmul.f32 0.00390625, %v7955_v43 }
 0xa65   : > { %v7981_v32 = vadd.f32 1e-05, %v7973_v29 }
 0xa66   : > { %v7958_v25 = vpop.xlane.xlu1 %7957 }
 0xa67   : > { %13352 = vrsqrt.f32 %v7981_v32  ;;  %v7974_v41 = vmul.f32 0.00390625, %v7958_v25 }
 0xa69   : > { %v13349_v12 = vpop.eup %13348  ;;  %v7982_v20 = vadd.f32 1e-05, %v7974_v41 }
 0xa6a   : > { %v7995_v30 = vmul.f32 %v13349_v12, %v17084_v61  ;;  %v7996_v53 = vmul.f32 %v13349_v12, %v17087_v4  ;;  %v8556_v12 = vld [vmem:[%s14374_s20 + $0x50] sm:$0xff] }
 0xa6b   : > { %v13351_v37 = vpop.eup %13350  ;;  %13354 = vrsqrt.f32 %v7982_v20  ;;  %v8560_v20 = vld [vmem:[%s14374_s20 + $0x70] sm:$0xff] }
 0xa6c   : > { %v8022_v31 = vmul.f32 %v17214_v0, %v7995_v30  ;;  %v8495_v61 = vmul.f32 %v17217_v45, %v7995_v30  ;;  %v7997_v4 = vmul.f32 %v13351_v37, %v17094_v3  ;;  %v7998_v14 = vmul.f32 %v13351_v37, %v17097_v17 }
 0xa6d   : > { %v8023_v36 = vmul.f32 %v17225_v16, %v7996_v53  ;;  %v8496_v5 = vmul.f32 %v17228_v60, %v7996_v53 }
 0xa6e   : > { %v8024_v52 = vmul.f32 %v17214_v0, %v7997_v4  ;;  %v8497_v43 = vmul.f32 %v17217_v45, %v7997_v4  ;;  %v8025_v29 = vmul.f32 %v17225_v16, %v7998_v14  ;;  %v8498_v22 = vmul.f32 %v17228_v60, %v7998_v14 }
 0xa6f   : > { %v8050_v28 = vadd.f32 %v17236_v38, %v8023_v36  ;;  %v8523_v3 = vadd.f32 %v17242_v13, %v8496_v5  ;;  %v8049_v17 = vadd.f32 %v17233_v19, %v8022_v31  ;;  %v8522_v32 = vadd.f32 %v17239_v56, %v8495_v61  ;;  %v12994_v61 = vld [vmem:[%s18644_s19] ss:$8 sps:$4 sm:$0xff]  }
 0xa70   : > { %v8052_v25 = vadd.f32 %v17236_v38, %v8025_v29  ;;  %v8525_v41 = vadd.f32 %v17242_v13, %v8498_v22  ;;  %v8051_v21 = vadd.f32 %v17233_v19, %v8024_v52  ;;  %v8524_v62 = vadd.f32 %v17239_v56, %v8497_v43  ;;  %v13002_v52 = vld [vmem:[%s18644_s19 + $0x14] ss:$8 sps:$4 sm:$0xff]  }
 0xa71   : > { %v13353_v30 = vpop.eup %13352  ;;  %v11993_v5 = vcombine.high %v8556_v12, %v8560_v20  ;;  %v11992_v43 = vcombine.low %v8556_v12, %v8560_v20  ;;  %v8564_v29 = vld [vmem:[%s14374_s20 + $0x90] sm:$0xff]  ;;  %v13008_v20 = vld [vmem:[%s18644_s19 + $0x24] ss:$8 sps:$4 sm:$0xff]  }
 0xa72   : > { %v8066_v53 = vpack.c.bf16 %v8052_v25, %v8050_v28  ;;  %v17264_v37 = vpack.c.bf16 %v8525_v41, %v8523_v3  ;;  %v8065_v31 = vpack.c.bf16 %v8051_v21, %v8049_v17  ;;  %v17266_v4 = vpack.c.bf16 %v8524_v62, %v8522_v32  ;;  %v8568_v22 = vld [vmem:[%s14374_s20 + $0xb0] sm:$0xff] }
 0xa73   : > { %v8000_v14 = vmul.f32 %v13353_v30, %v17107_v11  ;;  %v7999_v36 = vmul.f32 %v13353_v30, %v17104_v27  ;;  %v12001_v41 = vcombine.high %v8564_v29, %v8568_v22  ;;  %v13000_v21 = vld [vmem:[%s18644_s19 + $0x10] ss:$8 sps:$4 sm:$0xff]  }
 0xa74   : > { %8240 = vmatprep.mubr.bf16.mxu1 %v8066_v53  ;;  %9388 = vmatprep.mubr.bf16.mxu0 %v17264_v37 }
 0xa75   : > { %v13355_v28 = vpop.eup %13354  ;;  %8241 = vmatmul.mubr.bf16.vlgmr.msra.gmra.mrb[88].mxu1 %v8065_v31  ;;  %9389 = vmatmul.mubr.bf16.vlgmr.msra.gmra.mrb[40].mxu0 %v17266_v4  ;;  %v8027_v3 = vmul.f32 %v17225_v16, %v8000_v14  ;;  %v8500_v11 = vmul.f32 %v17228_v60, %v8000_v14  ;;  %v8026_v27 = vmul.f32 %v17214_v0, %v7999_v36 }
 0xa76   : > { %v8002_v17 = vmul.f32 %v13355_v28, %v17117_v51  ;;  %v8001_v32 = vmul.f32 %v13355_v28, %v17114_v42  ;;  %v8499_v25 = vmul.f32 %v17217_v45, %v7999_v36  ;;  %9503 = vmatpush1.bf16.msra.mxu0 %v11984_v26  ;;  %8394 = vmatpush1.bf16.msra.mxu1 %v12994_v61  ;;  %v8572_v36 = vld [vmem:[%s14374_s20 + $0xd0] sm:$0xff] }
 0xa77   : > { %9504 = vmatprep.subr.bf16.mxu0 %v11993_v5  ;;  %8395 = vmatprep.subr.bf16.mxu1 %v13002_v52  ;;  %v8054_v30 = vadd.f32 %v17236_v38, %v8027_v3  ;;  %v8527_v44 = vadd.f32 %v17242_v13, %v8500_v11  ;;  %v8053_v40 = vadd.f32 %v17233_v19, %v8026_v27  ;;  %v8576_v5 = vld [vmem:[%s14374_s20 + $0xf0] sm:$0xff] }
 0xa78   : > { %v8029_v62 = vmul.f32 %v17225_v16, %v8002_v17  ;;  %v8502_v12 = vmul.f32 %v17228_v60, %v8002_v17  ;;  %v8028_v51 = vmul.f32 %v17214_v0, %v8001_v32  ;;  %v8501_v42 = vmul.f32 %v17217_v45, %v8001_v32  ;;  %v13006_v17 = vld [vmem:[%s18644_s19 + $0x20] ss:$8 sps:$4 sm:$0xff]  }
 0xa79   : > { %v8526_v26 = vadd.f32 %v17239_v56, %v8499_v25  ;;  %v12000_v52 = vcombine.low %v8564_v29, %v8568_v22  ;;  %v12009_v32 = vcombine.high %v8572_v36, %v8576_v5  ;;  %v8580_v29 = vld [vmem:[%s14374_s20 + $0x110] sm:$0xff]  ;;  %v12008_v25 = vcombine.low %v8572_v36, %v8576_v5 }
 0xa7a   : > { %v8056_v53 = vadd.f32 %v17236_v38, %v8029_v62  ;;  %v8529_v31 = vadd.f32 %v17242_v13, %v8502_v12  ;;  %v8055_v61 = vadd.f32 %v17233_v19, %v8028_v51  ;;  %v8528_v14 = vadd.f32 %v17239_v56, %v8501_v42  ;;  %9505 = vmatpush1.bf16.msra.mxu0 %v11992_v43  ;;  %v13014_v43 = vld [vmem:[%s18644_s19 + $0x34] ss:$8 sps:$4 sm:$0xff]   ;;  %v13020_v62 = vld [vmem:[%s18644_s19 + $0x44] ss:$8 sps:$4 sm:$0xff]  }
 0xa7b   : > { %9506 = vmatprep.subr.bf16.mxu0 %v12001_v41  ;;  %8396 = vmatpush1.bf16.msra.mxu1 %v13000_v21  ;;  %v8584_v22 = vld [vmem:[%s14374_s20 + $0x130] sm:$0xff] }
 0xa7c   : > { %v8068_v28 = vpack.c.bf16 %v8056_v53, %v8054_v30  ;;  %v17301_v3 = vpack.c.bf16 %v8529_v31, %v8527_v44  ;;  %v8067_v11 = vpack.c.bf16 %v8055_v61, %v8053_v40  ;;  %v17303_v27 = vpack.c.bf16 %v8528_v14, %v8526_v26  ;;  %8397 = vmatprep.subr.bf16.mxu1 %v13008_v20  ;;  %v13012_v41 = vld [vmem:[%s18644_s19 + $0x30] ss:$8 sps:$4 sm:$0xff]   ;;  %v13018_v20 = vld [vmem:[%s18644_s19 + $0x40] ss:$8 sps:$4 sm:$0xff]  }
 0xa7d   : > { %v12017_v21 = vcombine.high %v8580_v29, %v8584_v22  ;;  %v8588_v12 = vld [vmem:[%s14374_s20 + $0x150] sm:$0xff]  ;;  %v12016_v42 = vcombine.low %v8580_v29, %v8584_v22 }
 0xa7e   : > { %8248 = vmatprep.mubr.bf16.mxu1 %v8068_v28  ;;  %9398 = vmatprep.mubr.bf16.mxu0 %v17301_v3  ;;  %v8592_v51 = vld [vmem:[%s14374_s20 + $0x170] sm:$0xff] }
 0xa7f   : > { %8249 = vmatmul.mubr.bf16.gmra.mrb[92].mxu1 %v8067_v11  ;;  %9399 = vmatmul.mubr.bf16.gmra.mrb[44].mxu0 %v17303_v27  ;;  %v12025_v30 = vcombine.high %v8588_v12, %v8592_v51  ;;  %v8596_v44 = vld [vmem:[%s14374_s20 + $0x190] sm:$0xff]  ;;  %v12024_v26 = vcombine.low %v8588_v12, %v8592_v51 }
 0xa80   : > { %9507 = vmatpush1.bf16.msra.mxu0 %v12000_v52  ;;  %8398 = vmatpush1.bf16.msra.mxu1 %v13006_v17  ;;  %v8600_v40 = vld [vmem:[%s14374_s20 + $0x1b0] sm:$0xff] }
 0xa81   : > { %9508 = vmatprep.subr.bf16.mxu0 %v12009_v32  ;;  %8399 = vmatprep.subr.bf16.mxu1 %v13014_v43  ;;  %v12033_v53 = vcombine.high %v8596_v44, %v8600_v40  ;;  %v8604_v31 = vld [vmem:[%s14374_s20 + $0x1d0] sm:$0xff]  ;;  %v12032_v14 = vcombine.low %v8596_v44, %v8600_v40 }
 0xa82   : > { %v8608_v61 = vld [vmem:[%s14374_s20 + $0x1f0] sm:$0xff] }
 0xa83   : > { %v12041_v5 = vcombine.high %v8604_v31, %v8608_v61  ;;  %v8612_v28 = vld [vmem:[%s14374_s20 + $0x210] sm:$0xff]  ;;  %v12040_v29 = vcombine.low %v8604_v31, %v8608_v61 }
 0xa84   : > { %9509 = vmatpush1.bf16.msra.mxu0 %v12008_v25  ;;  %8400 = vmatpush1.bf16.msra.mxu1 %v13012_v41  ;;  %v8616_v11 = vld [vmem:[%s14374_s20 + $0x230] sm:$0xff] }
 0xa85   : > { %9510 = vmatprep.subr.bf16.mxu0 %v12017_v21  ;;  %8401 = vmatprep.subr.bf16.mxu1 %v13020_v62  ;;  %v12049_v22 = vcombine.high %v8612_v28, %v8616_v11  ;;  %v8620_v41 = vld [vmem:[%s14374_s20 + $0x250] sm:$0xff]  ;;  %v12048_v62 = vcombine.low %v8612_v28, %v8616_v11 }
 0xa86   : > { %v8624_v21 = vld [vmem:[%s14374_s20 + $0x270] sm:$0xff] }
 0xa87   : > { %v12057_v51 = vcombine.high %v8620_v41, %v8624_v21 }
 0xa88   : > { %9511 = vmatpush1.bf16.msra.mxu0 %v12016_v42  ;;  %8402 = vmatpush1.bf16.msra.mxu1 %v13018_v20  ;;  %v8628_v20 = vld [vmem:[%s14374_s20 + $0x290] sm:$0xff] }
 0xa89   : > { %9512 = vmatprep.subr.bf16.mxu0 %v12025_v30  ;;  %v8632_v30 = vld [vmem:[%s14374_s20 + $0x2b0] sm:$0xff] }
 0xa8a   : > { %v12065_v31 = vcombine.high %v8628_v20, %v8632_v30 }
 0xa8c   : > { %9513 = vmatpush1.bf16.msra.mxu0 %v12024_v26 }
 0xa8d   : > { %9514 = vmatprep.subr.bf16.mxu0 %v12033_v53  ;;  %v12056_v53 = vcombine.low %v8620_v41, %v8624_v21 }
 0xa8f   : > { %v7961_v36 = vpop.xlane.xlu0 %7960 }
 0xa90   : > { %v7975_v52 = vmul.f32 0.00390625, %v7961_v36  ;;  %9515 = vmatpush1.bf16.msra.mxu0 %v12032_v14  ;;  %v8636_v14 = vld [vmem:[%s14374_s20 + $0x2d0] sm:$0xff] }
 0xa91   : > { %v7964_v17 = vpop.xlane.xlu1 %7963  ;;  %9516 = vmatprep.subr.bf16.mxu0 %v12041_v5  ;;  %v8640_v36 = vld [vmem:[%s14374_s20 + $0x2f0] sm:$0xff] }
 0xa92   : > { %v7983_v32 = vadd.f32 1e-05, %v7975_v52  ;;  %v7976_v43 = vmul.f32 0.00390625, %v7964_v17  ;;  %v12064_v52 = vcombine.low %v8628_v20, %v8632_v30  ;;  %v12073_v28 = vcombine.high %v8636_v14, %v8640_v36 }
 0xa94   : > { %13356 = vrsqrt.f32 %v7983_v32  ;;  %v7984_v25 = vadd.f32 1e-05, %v7976_v43  ;;  %9517 = vmatpush1.bf16.msra.mxu0 %v12040_v29  ;;  %v8644_v43 = vld [vmem:[%s14374_s20 + $0x310] sm:$0xff] }
 0xa95   : > { %9518 = vmatprep.subr.bf16.mxu0 %v12049_v22  ;;  %v8648_v29 = vld [vmem:[%s14374_s20 + $0x330] sm:$0xff] }
 0xa96   : > { %13358 = vrsqrt.f32 %v7984_v25  ;;  %v12080_v30 = vcombine.low %v8644_v43, %v8648_v29 }
 0xa97   : > { %v7967_v12 = vpop.xlane.xlu0 %7966 }
 0xa98   : > { %v7977_v42 = vmul.f32 0.00390625, %v7967_v12  ;;  %9519 = vmatpush1.bf16.msra.mxu0 %v12048_v62  ;;  %v12072_v62 = vcombine.low %v8636_v14, %v8640_v36 }
 0xa99   : > { %v7970_v44 = vpop.xlane.xlu1 %7969  ;;  %9520 = vmatprep.subr.bf16.mxu0 %v12057_v51 }
 0xa9a   : > { %v7985_v40 = vadd.f32 1e-05, %v7977_v42  ;;  %v7978_v26 = vmul.f32 0.00390625, %v7970_v44 }
 0xa9c   : > { %13360 = vrsqrt.f32 %v7985_v40  ;;  %v7986_v61 = vadd.f32 1e-05, %v7978_v26  ;;  %9521 = vmatpush1.bf16.msra.mxu0 %v12056_v53  ;;  %v8652_v53 = vld [vmem:[%s14374_s20 + $0x350] sm:$0xff] }
 0xa9d   : > { %9522 = vmatprep.subr.bf16.mxu0 %v12065_v31  ;;  %v8656_v31 = vld [vmem:[%s14374_s20 + $0x370] sm:$0xff] }
 0xa9e   : > { %v13357_v5 = vpop.eup %13356  ;;  %13362 = vrsqrt.f32 %v7986_v61 }
 0xa9f   : > { %v8004_v11 = vmul.f32 %v13357_v5, %v17145_v23  ;;  %v8003_v17 = vmul.f32 %v13357_v5, %v17142_v46 }
 0xaa0   : > { %v13359_v32 = vpop.eup %13358  ;;  %9523 = vmatpush1.bf16.msra.mxu0 %v12064_v52 }
 0xaa1   : > { %v8006_v22 = vmul.f32 %v13359_v32, %v17156_v18  ;;  %v8031_v25 = vmul.f32 %v17225_v16, %v8004_v11  ;;  %v8504_v41 = vmul.f32 %v17228_v60, %v8004_v11  ;;  %v8005_v21 = vmul.f32 %v13359_v32, %v17153_v15  ;;  %9524 = vmatprep.subr.bf16.mxu0 %v12073_v28 }
 0xaa2   : > { %v8030_v12 = vmul.f32 %v17214_v0, %v8003_v17  ;;  %v8503_v23 = vmul.f32 %v17217_v45, %v8003_v17  ;;  %v12081_v18 = vcombine.high %v8644_v43, %v8648_v29 }
 0xaa3   : > { %v8033_v46 = vmul.f32 %v17225_v16, %v8006_v22  ;;  %v8506_v51 = vmul.f32 %v17228_v60, %v8006_v22  ;;  %v8032_v42 = vmul.f32 %v17214_v0, %v8005_v21  ;;  %v8505_v20 = vmul.f32 %v17217_v45, %v8005_v21 }
 0xaa4   : > { %v8058_v15 = vadd.f32 %v17236_v38, %v8031_v25  ;;  %v8531_v40 = vadd.f32 %v17242_v13, %v8504_v41  ;;  %9525 = vmatpush1.bf16.msra.mxu0 %v12072_v62  ;;  %v8057_v14 = vadd.f32 %v17233_v19, %v8030_v12  ;;  %v8530_v5 = vadd.f32 %v17239_v56, %v8503_v23  ;;  %v8660_v12 = vld [vmem:[%s14374_s20 + $0x390] sm:$0xff] }
 0xaa5   : > { %v8060_v44 = vadd.f32 %v17236_v38, %v8033_v46  ;;  %v8533_v26 = vadd.f32 %v17242_v13, %v8506_v51  ;;  %v8059_v36 = vadd.f32 %v17233_v19, %v8032_v42  ;;  %v8532_v52 = vadd.f32 %v17239_v56, %v8505_v20  ;;  %9526 = vmatprep.subr.bf16.mxu0 %v12081_v18  ;;  %v8664_v23 = vld [vmem:[%s14374_s20 + $0x3b0] sm:$0xff] }
 0xaa6   : > { %v13361_v61 = vpop.eup %13360  ;;  %v12089_v25 = vcombine.high %v8652_v53, %v8656_v31  ;;  %v12088_v51 = vcombine.low %v8652_v53, %v8656_v31  ;;  %v8672_v53 = vld [vmem:[%s14374_s20 + $0x3f0] sm:$0xff] }
 0xaa7   : > { %v8070_v28 = vpack.c.bf16 %v8060_v44, %v8058_v15  ;;  %v17352_v11 = vpack.c.bf16 %v8533_v26, %v8531_v40  ;;  %v8008_v17 = vmul.f32 %v13361_v61, %v17179_v63  ;;  %v8007_v32 = vmul.f32 %v13361_v61, %v17176_v1 }
 0xaa8   : > { %v13363_v43 = vpop.eup %13362  ;;  %v8069_v29 = vpack.c.bf16 %v8059_v36, %v8057_v14  ;;  %v17356_v22 = vpack.c.bf16 %v8532_v52, %v8530_v5  ;;  %9527 = vmatpush1.bf16.msra.mxu0 %v12080_v30  ;;  %v12097_v15 = vcombine.high %v8660_v12, %v8664_v23  ;;  %v8668_v30 = vld [vmem:[%s14374_s20 + $0x3d0] sm:$0xff]  ;;  %v18651_v5 = vmov 0   ;;  %v12988_v52 = vld [vmem:[%s18650_s24] ss:$8 sps:$4 sm:$0xff]  }
 0xaa9   : > { %8256 = vmatprep.mubr.bf16.mxu1 %v8070_v28  ;;  %9408 = vmatprep.mubr.bf16.mxu0 %v17352_v11  ;;  %v8010_v41 = vmul.f32 %v13363_v43, %v17191_v35  ;;  %v8035_v21 = vmul.f32 %v17225_v16, %v8008_v17  ;;  %v8508_v62 = vmul.f32 %v17228_v60, %v8008_v17  ;;  %v12993_v28 = vld [vmem:[%s18650_s24 + $0x14] ss:$8 sps:$4 sm:$0xff]   ;;  %v12991_v17 = vld [vmem:[%s18650_s24 + $0x10] ss:$8 sps:$4 sm:$0xff]  }
 0xaaa   : > { %8257 = vmatmul.mubr.bf16.gmra.mrb[96].mxu1 %v8069_v29  ;;  %9409 = vmatmul.mubr.bf16.gmra.mrb[48].mxu0 %v17356_v22  ;;  %v8009_v1 = vmul.f32 %v13363_v43, %v17188_v7  ;;  %v8034_v63 = vmul.f32 %v17214_v0, %v8007_v32  ;;  %v8507_v46 = vmul.f32 %v17217_v45, %v8007_v32  ;;  %v12999_v32 = vld [vmem:[%s18650_s24 + $0x24] ss:$8 sps:$4 sm:$0xff]   ;;  %v12997_v43 = vld [vmem:[%s18650_s24 + $0x20] ss:$8 sps:$4 sm:$0xff]   ;;  %v13005_v29 = vld [vmem:[%s18650_s24 + $0x34] ss:$8 sps:$4 sm:$0xff]  }
 0xaab   : > { %v8037_v35 = vmul.f32 %v17225_v16, %v8010_v41  ;;  %v8510_v18 = vmul.f32 %v17228_v60, %v8010_v41  ;;  %9528 = vmatprep.subr.bf16.mxu0 %v12089_v25  ;;  %v8062_v44 = vadd.f32 %v17236_v38, %v8035_v21  ;;  %v8535_v40 = vadd.f32 %v17242_v13, %v8508_v62  ;;  %v13003_v25 = vld [vmem:[%s18650_s24 + $0x30] ss:$8 sps:$4 sm:$0xff]   ;;  %v13011_v41 = vld [vmem:[%s18650_s24 + $0x44] ss:$8 sps:$4 sm:$0xff]   ;;  %v13009_v21 = vld [vmem:[%s18650_s24 + $0x40] ss:$8 sps:$4 sm:$0xff]  }
 0xaac   : > { %v8036_v42 = vmul.f32 %v17214_v0, %v8009_v1  ;;  %v8509_v20 = vmul.f32 %v17217_v45, %v8009_v1  ;;  %v8061_v16 = vadd.f32 %v17233_v19, %v8034_v63  ;;  %v8534_v31 = vadd.f32 %v17239_v56, %v8507_v46  ;;  %9529 = vmatpush1.bf16.msra.mxu0 %v12088_v51  ;;  %v13017_v62 = vld [vmem:[%s18650_s24 + $0x54] ss:$8 sps:$4 sm:$0xff]   ;;  %v13015_v1 = vld [vmem:[%s18650_s24 + $0x50] ss:$8 sps:$4 sm:$0xff]   ;;  %v13023_v63 = vld [vmem:[%s18650_s24 + $0x64] ss:$8 sps:$4 sm:$0xff]  }
 0xaad   : > { %v8064_v7 = vadd.f32 %v17236_v38, %v8037_v35  ;;  %v8537_v26 = vadd.f32 %v17242_v13, %v8510_v18  ;;  %v12096_v38 = vcombine.low %v8660_v12, %v8664_v23  ;;  %9530 = vmatprep.subr.bf16.mxu0 %v12097_v15  ;;  %v12105_v13 = vcombine.high %v8668_v30, %v8672_v53  ;;  %v13024_v12 = vld [vmem:[%s18644_s19 + $0x50] ss:$8 sps:$4 sm:$0xff]   ;;  %v13026_v23 = vld [vmem:[%s18644_s19 + $0x54] ss:$8 sps:$4 sm:$0xff]   ;;  %v13021_v46 = vld [vmem:[%s18650_s24 + $0x60] ss:$8 sps:$4 sm:$0xff]  }
 0xaae   : > { %v8063_v60 = vadd.f32 %v17233_v19, %v8036_v42  ;;  %v8536_v0 = vadd.f32 %v17239_v56, %v8509_v20  ;;  %v12104_v19 = vcombine.low %v8668_v30, %v8672_v53  ;;  %v12990_v56 = vld [vmem:[%s18650_s24 + $0x4] ss:$8 sps:$4 sm:$0xff]   ;;  %8403 = vmatprep.subr.bf16.mxu1 %v13026_v23  ;;  %v13027_v51 = vld [vmem:[%s18650_s24 + $0x70] ss:$8 sps:$4 sm:$0xff]   ;;  %v13029_v35 = vld [vmem:[%s18650_s24 + $0x74] ss:$8 sps:$4 sm:$0xff]  }
 0xaaf   : > { %v8072_v45 = vpack.c.bf16 %v8064_v7, %v8062_v44  ;;  %v17382_v61 = vpack.c.bf16 %v8537_v26, %v8535_v40  ;;  %8404 = vmatpush1.bf16.msra.mxu1 %v13024_v12  ;;  %v13030_v18 = vld [vmem:[%s18644_s19 + $0x60] ss:$8 sps:$4 sm:$0xff]   ;;  %v13032_v42 = vld [vmem:[%s18644_s19 + $0x64] ss:$8 sps:$4 sm:$0xff]   ;;  %v13038_v15 = vld [vmem:[%s18644_s19 + $0x74] ss:$8 sps:$4 sm:$0xff]  }
 0xab0   : > { %v8071_v14 = vpack.c.bf16 %v8063_v60, %v8061_v16  ;;  %v17384_v36 = vpack.c.bf16 %v8536_v0, %v8534_v31  ;;  %9531 = vmatpush1.bf16.msra.mxu0 %v12096_v38  ;;  %v13035_v20 = vld [vmem:[%s18650_s24 + $0x84] ss:$8 sps:$4 sm:$0xff]   ;;  %8405 = vmatprep.subr.bf16.mxu1 %v13032_v42  ;;  %v13033_v44 = vld [vmem:[%s18650_s24 + $0x80] ss:$8 sps:$4 sm:$0xff]   ;;  %v13036_v7 = vld [vmem:[%s18644_s19 + $0x70] ss:$8 sps:$4 sm:$0xff]  }
 0xab1   : > { %8264 = vmatprep.mubr.bf16.mxu1 %v8072_v45  ;;  %9418 = vmatprep.mubr.bf16.mxu0 %v17382_v61  ;;  %v13039_v40 = vld [vmem:[%s18650_s24 + $0x90] ss:$8 sps:$4 sm:$0xff]   ;;  %v13041_v26 = vld [vmem:[%s18650_s24 + $0x94] ss:$8 sps:$4 sm:$0xff]   ;;  %v13042_v30 = vld [vmem:[%s18650_s24 + $0xa0] ss:$8 sps:$4 sm:$0xff]  }
 0xab2   : > { %8265 = vmatmul.mubr.bf16.gmra.mrb[100].mxu1 %v8071_v14  ;;  %9419 = vmatmul.mubr.bf16.gmra.mrb[52].mxu0 %v17384_v36  ;;  %v13044_v53 = vld [vmem:[%s18650_s24 + $0xa4] ss:$8 sps:$4 sm:$0xff]   ;;  %v13047_v16 = vld [vmem:[%s18650_s24 + $0xb4] ss:$8 sps:$4 sm:$0xff]   ;;  %v13045_v38 = vld [vmem:[%s18650_s24 + $0xb0] ss:$8 sps:$4 sm:$0xff]  }
 0xab3   : > { %9534 = vmatprep.mubr.bf16.mxu0 %v17264_v37  ;;  %9532 = vmatprep.subr.bf16.mxu0 %v12105_v13  ;;  %v17427_v60 = vld [vmem:[%s14374_s20 + $0x8] sm:$0xff]  ;;  %v17461_v12 = vld [vmem:[%s18653_s16] ss:$0 sm:$0xff] }
 0xab4   : > { %8425 = vmatprep.mubr.bf16.mxu1 %v18651_v5  ;;  %9533 = vmatpush1.bf16.msra.mxu0 %v12104_v19  ;;  %v17430_v31 = vld [vmem:[%s14374_s20 + $0x28] sm:$0xff]  ;;  %v13053_v19 = vld [vmem:[%s18650_s24 + $0xd4] ss:$8 sps:$4 sm:$0xff]  }
 0xab5   : > { %10972 = vmatprep.subr.bf16.mxu0 %v12990_v56  ;;  %8406 = vmatpush1.bf16.msra.mxu1 %v13030_v18  ;;  %v11982_v0 = vcombine.low %v17427_v60, %v17430_v31  ;;  %v11983_v45 = vcombine.high %v17427_v60, %v17430_v31  ;;  %v13050_v14 = vld [vmem:[%s18650_s24 + $0xc4] ss:$8 sps:$4 sm:$0xff]   ;;  %v13048_v13 = vld [vmem:[%s18650_s24 + $0xc0] ss:$8 sps:$4 sm:$0xff]   ;;  %v13051_v56 = vld [vmem:[%s18650_s24 + $0xd0] ss:$8 sps:$4 sm:$0xff]  }
 0xab6   : > { %8407 = vmatprep.subr.bf16.mxu1 %v13038_v15 }
 0xab9   : > { %8408 = vmatpush1.bf16.msra.mxu1 %v13036_v7 }
 0xaba   : > { %9535 = vmatmul.mubr.bf16.vlgmr.msra.gmra.mrb[56].mxu0 %v17266_v4  ;;  %9429 = vmatprep.subr.bf16.mxu1 %v11983_v45 }
 0xabb   : > { %9544 = vmatprep.mubr.bf16.mxu0 %v17301_v3  ;;  %10973 = vmatpush1.bf16.msra.mxu0 %v12988_v52  ;;  %v13056_v52 = vld [vmem:[%s18650_s24 + $0xe4] ss:$8 sps:$4 sm:$0xff]  }
 0xabc   : > { %10974 = vmatprep.subr.bf16.mxu0 %v12993_v28  ;;  %v13054_v28 = vld [vmem:[%s18650_s24 + $0xe0] ss:$8 sps:$4 sm:$0xff]  }
 0xabf   : > { %10975 = vmatpush1.bf16.msra.mxu0 %v12991_v17  ;;  %v13059_v17 = vld [vmem:[%s18650_s24 + $0xf4] ss:$8 sps:$4 sm:$0xff]  }
 0xac0   : > { %10976 = vmatprep.subr.bf16.mxu0 %v12999_v32  ;;  %v13057_v32 = vld [vmem:[%s18650_s24 + $0xf0] ss:$8 sps:$4 sm:$0xff]  }
 0xac2   : > { %9545 = vmatmul.mubr.bf16.gmra.mrb[60].mxu0 %v17303_v27 }
 0xac3   : > { %9554 = vmatprep.mubr.bf16.mxu0 %v17352_v11  ;;  %10977 = vmatpush1.bf16.msra.mxu0 %v12997_v43  ;;  %v17446_v43 = vld [vmem:[%s14441_s10] sm:$0xff] }
 0xac4   : > { %10978 = vmatprep.subr.bf16.mxu0 %v13005_v29  ;;  %v17450_v29 = vrot.slane %v17446_v43, %v18629_v8 }
 0xac7   : > { %10979 = vmatpush1.bf16.msra.mxu0 %v13003_v25  ;;  %v17454_v25 = vrot.slane %v17446_v43, %v18630_v49 }
 0xac8   : > { %10980 = vmatprep.subr.bf16.mxu0 %v13011_v41 }
 0xaca   : > { %9555 = vmatmul.mubr.bf16.gmra.mrb[64].mxu0 %v17356_v22 }
 0xacb   : > { %9564 = vmatprep.mubr.bf16.mxu0 %v17382_v61  ;;  %10981 = vmatpush1.bf16.msra.mxu0 %v13009_v21 }
 0xacc   : > { %10982 = vmatprep.subr.bf16.mxu0 %v13017_v62 }
 0xacf   : > { %10983 = vmatpush1.bf16.msra.mxu0 %v13015_v1 }
 0xad0   : > { %10984 = vmatprep.subr.bf16.mxu0 %v13023_v63 }
 0xad2   : > { %9565 = vmatmul.mubr.bf16.gmra.mrb[68].mxu0 %v17384_v36 }
 0xad3   : > { %10985 = vmatpush1.bf16.msra.mxu0 %v13021_v46 }
 0xad4   : > { %10986 = vmatprep.subr.bf16.mxu0 %v13029_v35 }
 0xad7   : > { %10987 = vmatpush1.bf16.msra.mxu0 %v13027_v51 }
 0xad8   : > { %10988 = vmatprep.subr.bf16.mxu0 %v13035_v20 }
 0xadb   : > { %10989 = vmatpush1.bf16.msra.mxu0 %v13033_v44 }
 0xadc   : > { %10990 = vmatprep.subr.bf16.mxu0 %v13041_v26 }
 0xadf   : > { %10991 = vmatpush1.bf16.msra.mxu0 %v13039_v40 }
 0xae0   : > { %10992 = vmatprep.subr.bf16.mxu0 %v13044_v53 }
 0xae3   : > { %10993 = vmatpush1.bf16.msra.mxu0 %v13042_v30 }
 0xae4   : > { %10994 = vmatprep.subr.bf16.mxu0 %v13047_v16 }
 0xae7   : > { %10995 = vmatpush1.bf16.msra.mxu0 %v13045_v38 }
 0xae8   : > { %10996 = vmatprep.subr.bf16.mxu0 %v13050_v14 }
 0xaeb   : > { %10997 = vmatpush1.bf16.msra.mxu0 %v13048_v13  ;;  %v8555_v13 = vld [vmem:[%s14374_s20 + $0x48] sm:$0xff] }
 0xaec   : > { %10998 = vmatprep.subr.bf16.mxu0 %v13053_v19  ;;  %v8559_v19 = vld [vmem:[%s14374_s20 + $0x68] sm:$0xff] }
 0xaef   : > { %10999 = vmatpush1.bf16.msra.mxu0 %v13051_v56 }
 0xaf0   : > { %11000 = vmatprep.subr.bf16.mxu0 %v13056_v52 }
 0xaf3   : > { %11001 = vmatpush1.bf16.msra.mxu0 %v13054_v28 }
 0xaf4   : > { %11002 = vmatprep.subr.bf16.mxu0 %v13059_v17 }
 0xaf7   : > { %11003 = vmatpush1.bf16.msra.mxu0 %v13057_v32 }
 0xb48   : > { %v12391_v41 = vpop.f32.mrb[88].mxu1  ;;  %v9390_v21 = vpop.f32.mrb[40].mxu0 }
 0xb49   : > { %v17457_v62 = vadd.f32 %v9390_v21, %v17450_v29  ;;  %v12392_v23 = vpop.f32.mrb[89].mxu1  ;;  %v9392_v1 = vpop.f32.mrb[41].mxu0  ;;  %v11991_v21 = vcombine.high %v8555_v13, %v8559_v19 }
 0xb4a   : > { %v12393_v63 = vadd.f32 %v12392_v23, %v12391_v41  ;;  %v17464_v46 = vadd.f32 %v9392_v1, %v17454_v25  ;;  %v12394_v51 = vpop.f32.mrb[90].mxu1  ;;  %v9394_v35 = vpop.f32.mrb[42].mxu0  ;;  %v8563_v23 = vld [vmem:[%s14374_s20 + $0x88] sm:$0xff] }
 0xb4b   : > { %v12108_v18 = vmul.f32 -1.702, %v17457_v62  ;;  %v17468_v42 = vadd.f32 %v9394_v35, %v17450_v29  ;;  %v12395_v20 = vpop.f32.mrb[91].mxu1  ;;  %v9396_v15 = vpop.f32.mrb[43].mxu0  ;;  %v8567_v1 = vld [vmem:[%s14374_s20 + $0xa8] sm:$0xff] }
 0xb4c   : > { %v8243_v44 = vadd.f32 %v12393_v63, %v17461_v12  ;;  %v12109_v7 = vmul.f32 -1.702, %v17464_v46  ;;  %v12396_v40 = vadd.f32 %v12395_v20, %v12394_v51  ;;  %v17473_v26 = vadd.f32 %v9396_v15, %v17454_v25 }
 0xb4d   : > { %v9776_v30 = vmul.f32 1.442695, %v12108_v18  ;;  %v12116_v53 = vmul.f32 -1.702, %v17468_v42 }
 0xb4e   : > { %v9778_v16 = vmul.f32 1.442695, %v12109_v7  ;;  %v8246_v45 = vadd.f32 %v12396_v40, %v17461_v12  ;;  %v12117_v38 = vmul.f32 -1.702, %v17473_v26  ;;  %v8273_v56 = vmax.f32 %v8243_v44, 0.0 }
 0xb4f   : > { %13364 = vpow2.f32 %v9776_v30  ;;  %v9792_v14 = vmul.f32 1.442695, %v12116_v53 }
 0xb50   : > { %13366 = vpow2.f32 %v9778_v16  ;;  %v8274_v52 = vmax.f32 %v8246_v45, 0.0  ;;  %v9794_v28 = vmul.f32 1.442695, %v12117_v38  ;;  %v11990_v16 = vcombine.low %v8555_v13, %v8559_v19 }
 0xb51   : > { %13368 = vpow2.f32 %v9792_v14  ;;  %v11999_v45 = vcombine.high %v8563_v23, %v8567_v1  ;;  %v11998_v19 = vcombine.low %v8563_v23, %v8567_v1 }
 0xb52   : > { %v8281_v17 = vpack.c.bf16 %v8274_v52, %v8273_v56  ;;  %13370 = vpow2.f32 %v9794_v28  ;;  %v12397_v32 = vpop.f32.mrb[92].mxu1  ;;  %v9400_v41 = vpop.f32.mrb[44].mxu0  ;;  %v8571_v28 = vld [vmem:[%s14374_s20 + $0xc8] sm:$0xff] }
 0xb53   : > { %v17483_v63 = vadd.f32 %v9400_v41, %v17450_v29  ;;  %v12398_v51 = vpop.f32.mrb[93].mxu1  ;;  %v9402_v35 = vpop.f32.mrb[45].mxu0 }
 0xb54   : > { %v12399_v18 = vadd.f32 %v12398_v51, %v12397_v32  ;;  %v17486_v20 = vadd.f32 %v9402_v35, %v17454_v25  ;;  %v12400_v15 = vpop.f32.mrb[94].mxu1  ;;  %8426 = vmatmul.mubr.bf16.vlgmr.msra.gmra.mrb[104].mxu1 %v8281_v17  ;;  %v9404_v44 = vpop.f32.mrb[46].mxu0  ;;  %v8575_v17 = vld [vmem:[%s14374_s20 + $0xe8] sm:$0xff] }
 0xb55   : > { %v12124_v7 = vmul.f32 -1.702, %v17483_v63  ;;  %v17490_v40 = vadd.f32 %v9404_v44, %v17450_v29  ;;  %v12401_v30 = vpop.f32.mrb[95].mxu1  ;;  %v9406_v53 = vpop.f32.mrb[47].mxu0  ;;  %8435 = vmatprep.mubr.bf16.mxu1 %v18651_v5  ;;  %9430 = vmatpush1.bf16.msra.mxu1 %v11982_v0  ;;  %v12007_v35 = vcombine.high %v8571_v28, %v8575_v17  ;;  %v12006_v1 = vcombine.low %v8571_v28, %v8575_v17  ;;  %v8599_v28 = vld [vmem:[%s14374_s20 + $0x1a8] sm:$0xff] }
 0xb56   : > { %v8251_v38 = vadd.f32 %v12399_v18, %v17461_v12  ;;  %v12125_v14 = vmul.f32 -1.702, %v17486_v20  ;;  %v12402_v56 = vadd.f32 %v12401_v30, %v12400_v15  ;;  %v17499_v52 = vadd.f32 %v9406_v53, %v17454_v25  ;;  %9431 = vmatprep.subr.bf16.mxu1 %v11991_v21  ;;  %v8579_v53 = vld [vmem:[%s14374_s20 + $0x108] sm:$0xff] }
 0xb57   : > { %v9808_v32 = vmul.f32 1.442695, %v12124_v7  ;;  %v12132_v41 = vmul.f32 -1.702, %v17490_v40 }
 0xb58   : > { %v9810_v51 = vmul.f32 1.442695, %v12125_v14  ;;  %v8254_v60 = vadd.f32 %v12402_v56, %v17461_v12  ;;  %v12133_v31 = vmul.f32 -1.702, %v17499_v52  ;;  %v8275_v15 = vmax.f32 %v8251_v38, 0.0  ;;  %v8583_v14 = vld [vmem:[%s14374_s20 + $0x128] sm:$0xff] }
 0xb59   : > { %v13365_v0 = vpop.eup %13364  ;;  %13372 = vpow2.f32 %v9808_v32  ;;  %v9824_v13 = vmul.f32 1.442695, %v12132_v41  ;;  %9432 = vmatpush1.bf16.msra.mxu1 %v11990_v16  ;;  %v8587_v38 = vld [vmem:[%s14374_s20 + $0x148] sm:$0xff] }
 0xb5a   : > { %v13367_v18 = vpop.eup %13366  ;;  %v9904_v21 = vadd.f32 1.0, %v13365_v0  ;;  %13374 = vpow2.f32 %v9810_v51  ;;  %v8276_v44 = vmax.f32 %v8254_v60, 0.0  ;;  %9433 = vmatprep.subr.bf16.mxu1 %v11999_v45  ;;  %v9826_v41 = vmul.f32 1.442695, %v12133_v31  ;;  %v8591_v51 = vld [vmem:[%s14374_s20 + $0x168] sm:$0xff] }
 0xb5b   : > { %v13369_v7 = vpop.eup %13368  ;;  %v9905_v30 = vadd.f32 1.0, %v13367_v18  ;;  %13376 = vpow2.f32 %v9824_v13  ;;  %v12015_v45 = vcombine.high %v8579_v53, %v8583_v14  ;;  %v12014_v60 = vcombine.low %v8579_v53, %v8583_v14  ;;  %v8595_v13 = vld [vmem:[%s14374_s20 + $0x188] sm:$0xff] }
 0xb5c   : > { %v13371_v56 = vpop.eup %13370  ;;  %13378 = vrcp.f32 %v9904_v21  ;;  %v9912_v32 = vadd.f32 1.0, %v13369_v7  ;;  %v8282_v16 = vpack.c.bf16 %v8276_v44, %v8275_v15  ;;  %v12023_v31 = vcombine.high %v8587_v38, %v8591_v51  ;;  %v8603_v53 = vld [vmem:[%s14374_s20 + $0x1c8] sm:$0xff] }
 0xb5d   : > { %13380 = vrcp.f32 %v9905_v30  ;;  %v9913_v23 = vadd.f32 1.0, %v13371_v56  ;;  %9434 = vmatpush1.bf16.msra.mxu1 %v11998_v19  ;;  %v12031_v44 = vcombine.high %v8595_v13, %v8599_v28  ;;  %v8607_v14 = vld [vmem:[%s14374_s20 + $0x1e8] sm:$0xff] }
 0xb5e   : > { %13382 = vrcp.f32 %v9912_v32  ;;  %8436 = vmatmul.mubr.bf16.gmra.mrb[108].mxu1 %v8282_v16  ;;  %9435 = vmatprep.subr.bf16.mxu1 %v12007_v35  ;;  %v12022_v35 = vcombine.low %v8587_v38, %v8591_v51  ;;  %v12039_v51 = vcombine.high %v8603_v53, %v8607_v14 }
 0xb5f   : > { %13384 = vrcp.f32 %v9913_v23  ;;  %8445 = vmatprep.mubr.bf16.mxu1 %v18651_v5  ;;  %v12030_v23 = vcombine.low %v8595_v13, %v8599_v28 }
 0xb60   : > { %13386 = vpow2.f32 %v9826_v41 }
 0xb61   : > { %9436 = vmatpush1.bf16.msra.mxu1 %v12006_v1 }
 0xb62   : > { %9437 = vmatprep.subr.bf16.mxu1 %v12015_v45 }
 0xb63   : > { %v13373_v0 = vpop.eup %13372 }
 0xb64   : > { %v13375_v17 = vpop.eup %13374  ;;  %v9920_v19 = vadd.f32 1.0, %v13373_v0  ;;  %v8611_v0 = vld [vmem:[%s14374_s20 + $0x208] sm:$0xff] }
 0xb65   : > { %v13377_v18 = vpop.eup %13376  ;;  %9438 = vmatpush1.bf16.msra.mxu1 %v12014_v60  ;;  %v9921_v30 = vadd.f32 1.0, %v13375_v17  ;;  %v8615_v17 = vld [vmem:[%s14374_s20 + $0x228] sm:$0xff] }
 0xb66   : > { %v13379_v21 = vpop.eup %13378  ;;  %13388 = vrcp.f32 %v9920_v19  ;;  %v9928_v15 = vadd.f32 1.0, %v13377_v18  ;;  %9439 = vmatprep.subr.bf16.mxu1 %v12023_v31  ;;  %v12046_v28 = vcombine.low %v8611_v0, %v8615_v17 }
 0xb67   : > { %v13381_v7 = vpop.eup %13380  ;;  %v10096_v41 = vmul.f32 %v13379_v21, %v17457_v62  ;;  %v12038_v62 = vcombine.low %v8603_v53, %v8607_v14 }
 0xb68   : > { %v13383_v56 = vpop.eup %13382  ;;  %13390 = vrcp.f32 %v9928_v15  ;;  %v10097_v45 = vmul.f32 %v13381_v7, %v17464_v46  ;;  %v12047_v46 = vcombine.high %v8611_v0, %v8615_v17  ;;  %v8631_v7 = vld [vmem:[%s14374_s20 + $0x2a8] sm:$0xff] }
 0xb69   : > { %v13385_v32 = vpop.eup %13384  ;;  %v10104_v16 = vmul.f32 %v13383_v56, %v17468_v42  ;;  %9440 = vmatpush1.bf16.msra.mxu1 %v12022_v35  ;;  %13392 = vrcp.f32 %v9921_v30  ;;  %v8619_v42 = vld [vmem:[%s14374_s20 + $0x248] sm:$0xff] }
 0xb6a   : > { %v13387_v1 = vpop.eup %13386  ;;  %v10105_v38 = vmul.f32 %v13385_v32, %v17473_v26  ;;  %9441 = vmatprep.subr.bf16.mxu1 %v12031_v44  ;;  %v8623_v26 = vld [vmem:[%s14374_s20 + $0x268] sm:$0xff] }
 0xb6b   : > { %v10160_v60 = vpack.c.bf16 %v10104_v16, %v10096_v41  ;;  %v9929_v31 = vadd.f32 1.0, %v13387_v1  ;;  %v12055_v35 = vcombine.high %v8619_v42, %v8623_v26  ;;  %v8627_v44 = vld [vmem:[%s14374_s20 + $0x288] sm:$0xff]  ;;  %v12054_v14 = vcombine.low %v8619_v42, %v8623_v26 }
 0xb6c   : > { %v10161_v19 = vpack.c.bf16 %v10105_v38, %v10097_v45  ;;  %v12063_v56 = vcombine.high %v8627_v44, %v8631_v7  ;;  %v8635_v41 = vld [vmem:[%s14374_s20 + $0x2c8] sm:$0xff] }
 0xb6d   : > { %13394 = vrcp.f32 %v9929_v31  ;;  %9442 = vmatpush1.bf16.msra.mxu1 %v12030_v23  ;;  %v8639_v16 = vld [vmem:[%s14374_s20 + $0x2e8] sm:$0xff] }
 0xb6e   : > { %11004 = vmatprep.mubr.bf16.mxu0 %v10161_v19  ;;  %9443 = vmatprep.subr.bf16.mxu1 %v12039_v51  ;;  %v12071_v45 = vcombine.high %v8635_v41, %v8639_v16  ;;  %v8647_v31 = vld [vmem:[%s14374_s20 + $0x328] sm:$0xff]  ;;  %v12070_v42 = vcombine.low %v8635_v41, %v8639_v16 }
 0xb6f   : > { %11005 = vmatmul.mubr.bf16.vlgmr.msra.gmra.mrb[72].mxu0 %v10160_v60  ;;  %v8643_v60 = vld [vmem:[%s14374_s20 + $0x308] sm:$0xff] }
 0xb70   : > { %v13389_v13 = vpop.eup %13388 }
 0xb71   : > { %9444 = vmatpush1.bf16.msra.mxu1 %v12038_v62  ;;  %v10112_v21 = vmul.f32 %v13389_v13, %v17483_v63  ;;  %v12062_v63 = vcombine.low %v8627_v44, %v8631_v7 }
 0xb72   : > { %v13391_v18 = vpop.eup %13390  ;;  %9445 = vmatprep.subr.bf16.mxu1 %v12047_v46 }
 0xb73   : > { %v10120_v15 = vmul.f32 %v13391_v18, %v17490_v40  ;;  %v13393_v30 = vpop.eup %13392 }
 0xb74   : > { %v10113_v23 = vmul.f32 %v13393_v30, %v17486_v20  ;;  %v8651_v30 = vld [vmem:[%s14374_s20 + $0x348] sm:$0xff] }
 0xb75   : > { %v10168_v53 = vpack.c.bf16 %v10120_v15, %v10112_v21  ;;  %9446 = vmatpush1.bf16.msra.mxu1 %v12046_v28 }
 0xb76   : > { %9447 = vmatprep.subr.bf16.mxu1 %v12055_v35  ;;  %v12079_v35 = vcombine.high %v8643_v60, %v8647_v31 }
 0xb77   : > { %v13395_v32 = vpop.eup %13394 }
 0xb78   : > { %v10121_v1 = vmul.f32 %v13395_v32, %v17499_v52 }
 0xb79   : > { %9448 = vmatpush1.bf16.msra.mxu1 %v12054_v14 }
 0xb7a   : > { %v10169_v40 = vpack.c.bf16 %v10121_v1, %v10113_v23  ;;  %9449 = vmatprep.subr.bf16.mxu1 %v12063_v56  ;;  %v12078_v23 = vcombine.low %v8643_v60, %v8647_v31 }
 0xb7c   : > { %11014 = vmatprep.mubr.bf16.mxu0 %v10169_v40  ;;  %v17554_v40 = vld [vmem:[%s14374_s20 + $0x388] sm:$0xff] }
 0xb7d   : > { %v12403_v38 = vpop.f32.mrb[96].mxu1  ;;  %v9410_v51 = vpop.f32.mrb[48].mxu0  ;;  %11015 = vmatmul.mubr.bf16.gmra.mrb[76].mxu0 %v10168_v53  ;;  %9450 = vmatpush1.bf16.msra.mxu1 %v12062_v63  ;;  %v8655_v53 = vld [vmem:[%s14374_s20 + $0x368] sm:$0xff] }
 0xb7e   : > { %v17534_v0 = vadd.f32 %v9410_v51, %v17450_v29  ;;  %v12404_v17 = vpop.f32.mrb[97].mxu1  ;;  %v9412_v19 = vpop.f32.mrb[49].mxu0  ;;  %9451 = vmatprep.subr.bf16.mxu1 %v12071_v45  ;;  %v12087_v63 = vcombine.high %v8651_v30, %v8655_v53  ;;  %v17557_v45 = vld [vmem:[%s14374_s20 + $0x3a8] sm:$0xff]  ;;  %v12086_v31 = vcombine.low %v8651_v30, %v8655_v53 }
 0xb7f   : > { %v12405_v62 = vadd.f32 %v12404_v17, %v12403_v38  ;;  %v17537_v20 = vadd.f32 %v9412_v19, %v17454_v25  ;;  %v12406_v52 = vpop.f32.mrb[98].mxu1  ;;  %v9414_v46 = vpop.f32.mrb[50].mxu0  ;;  %v12095_v30 = vcombine.high %v17554_v40, %v17557_v45 }
 0xb80   : > { %v12140_v26 = vmul.f32 -1.702, %v17534_v0  ;;  %v17541_v13 = vadd.f32 %v9414_v46, %v17450_v29  ;;  %v12407_v28 = vpop.f32.mrb[99].mxu1  ;;  %v9416_v18 = vpop.f32.mrb[51].mxu0 }
 0xb81   : > { %v8259_v21 = vadd.f32 %v12405_v62, %v17461_v12  ;;  %v12141_v15 = vmul.f32 -1.702, %v17537_v20  ;;  %v12408_v44 = vadd.f32 %v12407_v28, %v12406_v52  ;;  %v17546_v7 = vadd.f32 %v9416_v18, %v17454_v25  ;;  %9452 = vmatpush1.bf16.msra.mxu1 %v12070_v42 }
 0xb82   : > { %v9840_v14 = vmul.f32 1.442695, %v12140_v26  ;;  %v12148_v56 = vmul.f32 -1.702, %v17541_v13  ;;  %9453 = vmatprep.subr.bf16.mxu1 %v12079_v35 }
 0xb83   : > { %v9842_v32 = vmul.f32 1.442695, %v12141_v15  ;;  %v8262_v41 = vadd.f32 %v12408_v44, %v17461_v12  ;;  %v12149_v16 = vmul.f32 -1.702, %v17546_v7  ;;  %v8277_v38 = vmax.f32 %v8259_v21, 0.0 }
 0xb84   : > { %13396 = vpow2.f32 %v9840_v14  ;;  %v9856_v1 = vmul.f32 1.442695, %v12148_v56 }
 0xb85   : > { %13398 = vpow2.f32 %v9842_v32  ;;  %v8278_v51 = vmax.f32 %v8262_v41, 0.0  ;;  %v9858_v17 = vmul.f32 1.442695, %v12149_v16  ;;  %v12409_v19 = vpop.f32.mrb[100].mxu1  ;;  %v9420_v62 = vpop.f32.mrb[52].mxu0  ;;  %9454 = vmatpush1.bf16.msra.mxu1 %v12078_v23  ;;  %v8667_v16 = vld [vmem:[%s14374_s20 + $0x3c8] sm:$0xff] }
 0xb86   : > { %13400 = vpow2.f32 %v9856_v1  ;;  %v17560_v52 = vadd.f32 %v9420_v62, %v17450_v29  ;;  %v12410_v46 = vpop.f32.mrb[101].mxu1  ;;  %v9422_v60 = vpop.f32.mrb[53].mxu0  ;;  %9455 = vmatprep.subr.bf16.mxu1 %v12087_v63  ;;  %v8671_v23 = vld [vmem:[%s14374_s20 + $0x3e8] sm:$0xff] }
 0xb87   : > { %13402 = vpow2.f32 %v9858_v17  ;;  %v12411_v42 = vadd.f32 %v12410_v46, %v12409_v19  ;;  %v17563_v26 = vadd.f32 %v9422_v60, %v17454_v25  ;;  %v12412_v28 = vpop.f32.mrb[102].mxu1  ;;  %v9424_v18 = vpop.f32.mrb[54].mxu0  ;;  %v8283_v35 = vpack.c.bf16 %v8278_v51, %v8277_v38  ;;  %v18654_v38 = vld [vmem:[#allocation30_spill] sm:$0xff] }
 0xb88   : > { %v12156_v21 = vmul.f32 -1.702, %v17560_v52  ;;  %v17567_v15 = vadd.f32 %v9424_v18, %v17450_v29  ;;  %v12413_v44 = vpop.f32.mrb[103].mxu1  ;;  %v9426_v14 = vpop.f32.mrb[55].mxu0  ;;  %v18655_v63 = vsub.s32 4, %v18654_v38  ;;  %v18656_v17 = vsub.s32 5, %v18654_v38 }
 0xb89   : > { %v8267_v53 = vadd.f32 %v12411_v42, %v17461_v12  ;;  %v12157_v56 = vmul.f32 -1.702, %v17563_v26  ;;  %v12414_v32 = vadd.f32 %v12413_v44, %v12412_v28  ;;  %v17574_v41 = vadd.f32 %v9426_v14, %v17454_v25  ;;  %8446 = vmatmul.mubr.bf16.gmra.mrb[112].mxu1 %v8283_v35  ;;  %v17595_v18 = vld [vmem:[%s14374_s20 + $0x18] sm:$0xff] }
 0xb8a   : > { %v9872_v29 = vmul.f32 1.442695, %v12156_v21  ;;  %v12164_v1 = vmul.f32 -1.702, %v17567_v15  ;;  %v17582_v51 = vrot.slane %v17446_v43, %v18655_v63  ;;  %v17587_v19 = vrot.slane %v17446_v43, %v18656_v17  ;;  %8455 = vmatprep.mubr.bf16.mxu1 %v18651_v5  ;;  %9456 = vmatpush1.bf16.msra.mxu1 %v12086_v31  ;;  %v17598_v44 = vld [vmem:[%s14374_s20 + $0x38] sm:$0xff] }
 0xb8b   : > { %v9874_v25 = vmul.f32 1.442695, %v12157_v56  ;;  %v8270_v62 = vadd.f32 %v12414_v32, %v17461_v12  ;;  %v12165_v46 = vmul.f32 -1.702, %v17574_v41  ;;  %v12094_v60 = vcombine.low %v17554_v40, %v17557_v45  ;;  %9457 = vmatprep.subr.bf16.mxu1 %v12095_v30 }
 0xb8c   : > { %13404 = vpow2.f32 %v9872_v29  ;;  %v9888_v42 = vmul.f32 1.442695, %v12164_v1  ;;  %v12103_v28 = vcombine.high %v8667_v16, %v8671_v23  ;;  %v8279_v43 = vmax.f32 %v8267_v53, 0.0 }
 0xb8d   : > { %13406 = vpow2.f32 %v9874_v25  ;;  %v8280_v35 = vmax.f32 %v8270_v62, 0.0  ;;  %v9890_v5 = vmul.f32 1.442695, %v12165_v46  ;;  %v9536_v21 = vpop.f32.mrb[56].mxu0  ;;  %v12102_v40 = vcombine.low %v8667_v16, %v8671_v23 }
 0xb8e   : > { %v13397_v12 = vpop.eup %13396  ;;  %13408 = vpow2.f32 %v9888_v42  ;;  %v17601_v31 = vadd.f32 %v9536_v21, %v17582_v51  ;;  %v9538_v14 = vpop.f32.mrb[57].mxu0  ;;  %9458 = vmatpush1.bf16.msra.mxu1 %v12094_v60  ;;  %v11987_v16 = vcombine.high %v17595_v18, %v17598_v44  ;;  %v17620_v21 = vld [vmem:[%s14374_s20 + $0x58] sm:$0xff] }
 0xb8f   : > { %v13399_v45 = vpop.eup %13398  ;;  %v9936_v56 = vadd.f32 1.0, %v13397_v12  ;;  %13410 = vpow2.f32 %v9890_v5  ;;  %v17604_v30 = vadd.f32 %v9538_v14, %v17587_v19  ;;  %v9540_v53 = vpop.f32.mrb[58].mxu0  ;;  %v8284_v32 = vpack.c.bf16 %v8280_v35, %v8279_v43  ;;  %9459 = vmatprep.subr.bf16.mxu1 %v12103_v28  ;;  %v17623_v12 = vld [vmem:[%s14374_s20 + $0x78] sm:$0xff] }
 0xb90   : > { %v13401_v29 = vpop.eup %13400  ;;  %v9937_v1 = vadd.f32 1.0, %v13399_v45  ;;  %v12112_v63 = vmul.f32 -1.702, %v17601_v31  ;;  %v17608_v17 = vadd.f32 %v9540_v53, %v17582_v51  ;;  %v9542_v25 = vpop.f32.mrb[59].mxu0  ;;  %v17626_v45 = vld [vmem:[%s14374_s20 + $0x98] sm:$0xff] }
 0xb91   : > { %v13403_v23 = vpop.eup %13402  ;;  %13412 = vrcp.f32 %v9936_v56  ;;  %v9944_v62 = vadd.f32 1.0, %v13401_v29  ;;  %v12113_v46 = vmul.f32 -1.702, %v17604_v30  ;;  %v17614_v60 = vadd.f32 %v9542_v25, %v17587_v19  ;;  %8456 = vmatmul.mubr.bf16.gmra.mrb[116].mxu1 %v8284_v32  ;;  %v17629_v56 = vld [vmem:[%s14374_s20 + $0xb8] sm:$0xff] }
 0xb92   : > { %13414 = vrcp.f32 %v9937_v1  ;;  %v9945_v42 = vadd.f32 1.0, %v13403_v23  ;;  %v9784_v43 = vmul.f32 1.442695, %v12112_v63  ;;  %v12120_v28 = vmul.f32 -1.702, %v17608_v17  ;;  %9461 = vmatprep.mubr.bf16.mxu1 %v17264_v37  ;;  %9460 = vmatpush1.bf16.msra.mxu1 %v12102_v40 }
 0xb93   : > { %13416 = vrcp.f32 %v9944_v62  ;;  %v9786_v35 = vmul.f32 1.442695, %v12113_v46  ;;  %v12121_v5 = vmul.f32 -1.702, %v17614_v60  ;;  %9575 = vmatprep.subr.bf16.mxu1 %v11987_v16  ;;  %v11986_v29 = vcombine.low %v17595_v18, %v17598_v44 }
 0xb94   : > { %13418 = vrcp.f32 %v9945_v42  ;;  %v9800_v14 = vmul.f32 1.442695, %v12120_v28  ;;  %v11994_v25 = vcombine.low %v17620_v21, %v17623_v12  ;;  %v11995_v16 = vcombine.high %v17620_v21, %v17623_v12 }
 0xb95   : > { %13420 = vpow2.f32 %v9784_v43  ;;  %v9802_v53 = vmul.f32 1.442695, %v12121_v5  ;;  %v9546_v32 = vpop.f32.mrb[60].mxu0  ;;  %v12003_v48 = vcombine.high %v17626_v45, %v17629_v56 }
 0xb96   : > { %v13405_v1 = vpop.eup %13404  ;;  %13422 = vpow2.f32 %v9786_v35  ;;  %v17634_v40 = vadd.f32 %v9546_v32, %v17582_v51  ;;  %v9548_v63 = vpop.f32.mrb[61].mxu0 }
 0xb97   : > { %v13407_v23 = vpop.eup %13406  ;;  %v9952_v62 = vadd.f32 1.0, %v13405_v1  ;;  %13424 = vpow2.f32 %v9800_v14  ;;  %v17641_v46 = vadd.f32 %v9548_v63, %v17587_v19  ;;  %v9550_v18 = vpop.f32.mrb[62].mxu0  ;;  %v17655_v1 = vld [vmem:[%s14374_s20 + $0xd8] sm:$0xff] }
 0xb98   : > { %v13409_v42 = vpop.eup %13408  ;;  %v9953_v43 = vadd.f32 1.0, %v13407_v23  ;;  %13426 = vpow2.f32 %v9802_v53  ;;  %v12128_v28 = vmul.f32 -1.702, %v17634_v40  ;;  %v17647_v35 = vadd.f32 %v9550_v18, %v17582_v51  ;;  %v9552_v5 = vpop.f32.mrb[63].mxu0  ;;  %v17658_v53 = vld [vmem:[%s14374_s20 + $0xf8] sm:$0xff] }
 0xb99   : > { %v13411_v21 = vpop.eup %13410  ;;  %13428 = vrcp.f32 %v9952_v62  ;;  %v9960_v12 = vadd.f32 1.0, %v13409_v42  ;;  %v12129_v14 = vmul.f32 -1.702, %v17641_v46  ;;  %v17651_v32 = vadd.f32 %v9552_v5, %v17587_v19  ;;  %9462 = vmatmul.mubr.bf16.vlgmr.msra.gmra.mrb[120].mxu1 %v17266_v4  ;;  %v17661_v63 = vld [vmem:[%s14374_s20 + $0x118] sm:$0xff] }
 0xb9a   : > { %13430 = vrcp.f32 %v9953_v43  ;;  %v9961_v23 = vadd.f32 1.0, %v13411_v21  ;;  %v9816_v18 = vmul.f32 1.442695, %v12128_v28  ;;  %v12136_v44 = vmul.f32 -1.702, %v17647_v35  ;;  %9576 = vmatpush1.bf16.msra.mxu1 %v11986_v29  ;;  %9471 = vmatprep.mubr.bf16.mxu1 %v17301_v3  ;;  %v17666_v62 = vld [vmem:[%s14374_s20 + $0x138] sm:$0xff] }
 0xb9b   : > { %v13413_v42 = vpop.eup %13412  ;;  %13432 = vrcp.f32 %v9960_v12  ;;  %v9818_v5 = vmul.f32 1.442695, %v12129_v14  ;;  %v12137_v58 = vmul.f32 -1.702, %v17651_v32  ;;  %9577 = vmatprep.subr.bf16.mxu1 %v11995_v16  ;;  %v12011_v29 = vcombine.high %v17655_v1, %v17658_v53 }
 0xb9c   : > { %v13415_v57 = vpop.eup %13414  ;;  %13434 = vrcp.f32 %v9961_v23  ;;  %v9832_v43 = vmul.f32 1.442695, %v12136_v44  ;;  %v10128_v23 = vmul.f32 %v13413_v42, %v17534_v0  ;;  %v18657_v16 = vcombine.low %v17626_v45, %v17629_v56 }
 0xb9d   : > { %v13417_v21 = vpop.eup %13416  ;;  %13436 = vpow2.f32 %v9816_v18  ;;  %v9834_v6 = vmul.f32 1.442695, %v12137_v58  ;;  %v9556_v12 = vpop.f32.mrb[64].mxu0  ;;  %v10129_v44 = vmul.f32 %v13415_v57, %v17537_v20 }
 0xb9e   : > { %v13419_v54 = vpop.eup %13418  ;;  %13438 = vpow2.f32 %v9818_v5  ;;  %v17682_v28 = vadd.f32 %v9556_v12, %v17582_v51  ;;  %9578 = vmatpush1.bf16.msra.mxu1 %v11994_v25  ;;  %v9558_v24 = vpop.f32.mrb[65].mxu0  ;;  %v10136_v58 = vmul.f32 %v13417_v21, %v17541_v13  ;;  %v17705_v21 = vld [vmem:[%s14374_s20 + $0x198] sm:$0xff] }
 0xb9f   : > { %v13421_v18 = vpop.eup %13420  ;;  %v10137_v47 = vmul.f32 %v13419_v54, %v17546_v7  ;;  %13440 = vpow2.f32 %v9832_v43  ;;  %v17687_v14 = vadd.f32 %v9558_v24, %v17587_v19  ;;  %v9560_v0 = vpop.f32.mrb[66].mxu0  ;;  %9579 = vmatprep.subr.bf16.mxu1 %v12003_v48  ;;  %v17699_v43 = vld [vmem:[%s14374_s20 + $0x158] sm:$0xff] }
 0xba0   : > { %v13423_v57 = vpop.eup %13422  ;;  %v9908_v20 = vadd.f32 1.0, %v13421_v18  ;;  %13442 = vpow2.f32 %v9834_v6  ;;  %v12144_v25 = vmul.f32 -1.702, %v17682_v28  ;;  %v17691_v42 = vadd.f32 %v9560_v0, %v17582_v51  ;;  %v9562_v13 = vpop.f32.mrb[67].mxu0  ;;  %v17702_v6 = vld [vmem:[%s14374_s20 + $0x178] sm:$0xff] }
 0xba1   : > { %v13425_v5 = vpop.eup %13424  ;;  %v9909_v54 = vadd.f32 1.0, %v13423_v57  ;;  %v12145_v7 = vmul.f32 -1.702, %v17687_v14  ;;  %v17695_v24 = vadd.f32 %v9562_v13, %v17587_v19  ;;  %9472 = vmatmul.mubr.bf16.gmra.mrb[124].mxu1 %v17303_v27  ;;  %v10177_v48 = vpack.c.bf16 %v10137_v47, %v10129_v44  ;;  %v17713_v13 = vld [vmem:[%s14374_s20 + $0x1b8] sm:$0xff] }
 0xba2   : > { %v13427_v12 = vpop.eup %13426  ;;  %13444 = vrcp.f32 %v9908_v20  ;;  %v9916_v18 = vadd.f32 1.0, %v13425_v5  ;;  %v9848_v0 = vmul.f32 1.442695, %v12144_v25  ;;  %v12152_v57 = vmul.f32 -1.702, %v17691_v42  ;;  %9580 = vmatpush1.bf16.msra.mxu1 %v18657_v16  ;;  %9481 = vmatprep.mubr.bf16.mxu1 %v17352_v11 }
 0xba3   : > { %v13429_v47 = vpop.eup %13428  ;;  %13446 = vrcp.f32 %v9909_v54  ;;  %v9917_v44 = vadd.f32 1.0, %v13427_v12  ;;  %v9850_v50 = vmul.f32 1.442695, %v12145_v7  ;;  %v12153_v59 = vmul.f32 -1.702, %v17695_v24  ;;  %11024 = vmatprep.mubr.bf16.mxu0 %v10177_v48  ;;  %9581 = vmatprep.subr.bf16.mxu1 %v12011_v29 }
 0xba4   : > { %v13431_v20 = vpop.eup %13430  ;;  %13448 = vrcp.f32 %v9916_v18  ;;  %v9864_v25 = vmul.f32 1.442695, %v12152_v57  ;;  %v10176_v5 = vpack.c.bf16 %v10136_v58, %v10128_v23  ;;  %v12026_v45 = vcombine.low %v17699_v43, %v17702_v6 }
 0xba5   : > { %v13433_v56 = vpop.eup %13432  ;;  %13450 = vrcp.f32 %v9917_v44  ;;  %v9866_v16 = vmul.f32 1.442695, %v12153_v59  ;;  %v9566_v33 = vpop.f32.mrb[68].mxu0  ;;  %v12027_v54 = vcombine.high %v17699_v43, %v17702_v6  ;;  %v12035_v7 = vcombine.high %v17705_v21, %v17713_v13 }
 0xba6   : > { %v13435_v12 = vpop.eup %13434  ;;  %v10144_v29 = vmul.f32 %v13429_v47, %v17560_v52  ;;  %v10145_v48 = vmul.f32 %v13431_v20, %v17563_v26  ;;  %13452 = vpow2.f32 %v9848_v0  ;;  %11025 = vmatmul.mubr.bf16.gmra.mrb[80].mxu0 %v10176_v5  ;;  %v17725_v23 = vadd.f32 %v9566_v33, %v17582_v51  ;;  %v9568_v58 = vpop.f32.mrb[69].mxu0 }
 0xba7   : > { %v18658_v59 = vcombine.low %v17655_v1, %v17658_v53  ;;  %v13437_v18 = vpop.eup %13436  ;;  %v10152_v43 = vmul.f32 %v13433_v56, %v17567_v15  ;;  %v10153_v6 = vmul.f32 %v13435_v12, %v17574_v41  ;;  %13454 = vpow2.f32 %v9850_v50  ;;  %v9570_v26 = vpop.f32.mrb[70].mxu0 }
 0xba8   : > { %v17733_v52 = vadd.f32 %v9568_v58, %v17587_v19  ;;  %v18659_v0 = vcombine.high %v17661_v63, %v17666_v62  ;;  %v13439_v33 = vpop.eup %13438  ;;  %v9924_v57 = vadd.f32 1.0, %v13437_v18  ;;  %13456 = vpow2.f32 %v9864_v25  ;;  %v9572_v15 = vpop.f32.mrb[71].mxu0 }
 0xba9   : > { %9582 = vmatpush1.bf16.msra.mxu1 %v18658_v59  ;;  %v12160_v1 = vmul.f32 -1.702, %v17725_v23  ;;  %v17740_v53 = vadd.f32 %v9570_v26, %v17582_v51  ;;  %v13441_v47 = vpop.eup %13440  ;;  %v9925_v41 = vadd.f32 1.0, %v13439_v33  ;;  %13458 = vpow2.f32 %v9866_v16  ;;  %v8609_v33 = vld [vmem:[%s14374_s20 + $0x1f8] sm:$0xff] }
 0xbaa   : > { %9583 = vmatprep.subr.bf16.mxu1 %v18659_v0  ;;  %v12161_v50 = vmul.f32 -1.702, %v17733_v52  ;;  %v17744_v44 = vadd.f32 %v9572_v15, %v17587_v19  ;;  %9482 = vmatmul.mubr.bf16.gmra.mrb[128].mxu1 %v17356_v22  ;;  %v13443_v20 = vpop.eup %13442  ;;  %13460 = vrcp.f32 %v9924_v57  ;;  %v9932_v25 = vadd.f32 1.0, %v13441_v47  ;;  %v8605_v0 = vld [vmem:[%s14374_s20 + $0x1d8] sm:$0xff] }
 0xbab   : > { %v9880_v5 = vmul.f32 1.442695, %v12160_v1  ;;  %v12168_v51 = vmul.f32 -1.702, %v17740_v53  ;;  %v18660_v56 = vcombine.low %v17661_v63, %v17666_v62  ;;  %9491 = vmatprep.mubr.bf16.mxu1 %v17382_v61  ;;  %13462 = vrcp.f32 %v9925_v41 }
 0xbac   : > { %v9933_v16 = vadd.f32 1.0, %v13443_v20  ;;  %v9882_v19 = vmul.f32 1.442695, %v12161_v50  ;;  %v12169_v12 = vmul.f32 -1.702, %v17744_v44  ;;  %v13445_v59 = vpop.eup %13444  ;;  %13464 = vrcp.f32 %v9932_v25 }
 0xbad   : > { %9584 = vmatpush1.bf16.msra.mxu1 %v18660_v56  ;;  %v9896_v58 = vmul.f32 1.442695, %v12168_v51  ;;  %v10185_v18 = vpack.c.bf16 %v10153_v6, %v10145_v48  ;;  %v10184_v26 = vpack.c.bf16 %v10152_v43, %v10144_v29  ;;  %v13447_v57 = vpop.eup %13446  ;;  %v12034_v62 = vcombine.low %v17705_v21, %v17713_v13  ;;  %v8613_v21 = vld [vmem:[%s14374_s20 + $0x218] sm:$0xff] }
 0xbae   : > { %9585 = vmatprep.subr.bf16.mxu1 %v12027_v54  ;;  %13466 = vrcp.f32 %v9933_v16  ;;  %v9898_v1 = vmul.f32 1.442695, %v12169_v12  ;;  %v13449_v63 = vpop.eup %13448  ;;  %v17758_v15 = vmul.f32 %v13445_v59, %v17601_v31  ;;  %v12043_v48 = vcombine.high %v8605_v0, %v8609_v33  ;;  %v8617_v13 = vld [vmem:[%s14374_s20 + $0x238] sm:$0xff] }
 0xbaf   : > { %13468 = vpow2.f32 %v9880_v5  ;;  %11034 = vmatprep.mubr.bf16.mxu0 %v10185_v18  ;;  %v13451_v54 = vpop.eup %13450  ;;  %v17761_v29 = vmul.f32 %v13449_v63, %v17608_v17  ;;  %v17764_v6 = vmul.f32 %v13447_v57, %v17604_v30  ;;  %v12042_v30 = vcombine.low %v8605_v0, %v8609_v33  ;;  %v8621_v56 = vld [vmem:[%s14374_s20 + $0x258] sm:$0xff] }
 0xbb0   : > { %13470 = vpow2.f32 %v9882_v19  ;;  %11035 = vmatmul.mubr.bf16.gmra.mrb[84].mxu0 %v10184_v26  ;;  %v13453_v43 = vpop.eup %13452  ;;  %v12051_v25 = vcombine.high %v8613_v21, %v8617_v13  ;;  %v8625_v16 = vld [vmem:[%s14374_s20 + $0x278] sm:$0xff] }
 0xbb1   : > { %9586 = vmatpush1.bf16.msra.mxu1 %v12026_v45  ;;  %v17767_v45 = vmul.f32 %v13451_v54, %v17614_v60  ;;  %13472 = vpow2.f32 %v9896_v58  ;;  %v13455_v47 = vpop.eup %13454  ;;  %v9940_v17 = vadd.f32 1.0, %v13453_v43  ;;  %v12059_v26 = vcombine.high %v8621_v56, %v8625_v16  ;;  %v8633_v63 = vld [vmem:[%s14374_s20 + $0x2b8] sm:$0xff] }
 0xbb2   : > { %9587 = vmatprep.subr.bf16.mxu1 %v12035_v7  ;;  %13474 = vpow2.f32 %v9898_v1  ;;  %9492 = vmatmul.mubr.bf16.gmra.mrb[132].mxu1 %v17384_v36  ;;  %v13457_v7 = vpop.eup %13456  ;;  %v9941_v41 = vadd.f32 1.0, %v13455_v47  ;;  %v8629_v1 = vld [vmem:[%s14374_s20 + $0x298] sm:$0xff] }
 0xbb3   : > { %9607 = vmatprep.mubr.bf16.mxu1 %v17264_v37  ;;  %v13459_v50 = vpop.eup %13458  ;;  %13476 = vrcp.f32 %v9940_v17  ;;  %v9948_v20 = vadd.f32 1.0, %v13457_v7  ;;  %v12050_v37 = vcombine.low %v8613_v21, %v8617_v13  ;;  %v13065_v13 = vld [vmem:[%s18650_s24 + $0x114] ss:$8 sps:$4 sm:$0xff]   ;;  %v12067_v7 = vcombine.high %v8629_v1, %v8633_v63 }
 0xbb4   : > { %v13461_v5 = vpop.eup %13460  ;;  %13478 = vrcp.f32 %v9941_v41  ;;  %v9949_v51 = vadd.f32 1.0, %v13459_v50  ;;  %v8641_v50 = vld [vmem:[%s14374_s20 + $0x2f8] sm:$0xff] }
 0xbb5   : > { %9588 = vmatpush1.bf16.msra.mxu1 %v12034_v62  ;;  %v13463_v19 = vpop.eup %13462  ;;  %13480 = vrcp.f32 %v9948_v20  ;;  %v17780_v58 = vmul.f32 %v13461_v5, %v17634_v40  ;;  %v13062_v40 = vld [vmem:[%s18650_s24 + $0x104] ss:$8 sps:$4 sm:$0xff]   ;;  %v13063_v20 = vld [vmem:[%s18650_s24 + $0x110] ss:$8 sps:$4 sm:$0xff]  }
 0xbb6   : > { %9589 = vmatprep.subr.bf16.mxu1 %v12043_v48  ;;  %v13465_v12 = vpop.eup %13464  ;;  %13482 = vrcp.f32 %v9949_v51  ;;  %v17786_v33 = vmul.f32 %v13463_v19, %v17641_v46  ;;  %v13060_v48 = vld [vmem:[%s18650_s24 + $0x100] ss:$8 sps:$4 sm:$0xff]   ;;  %v12058_v46 = vcombine.low %v8621_v56, %v8625_v16  ;;  %11045 = vmatprep.subr.bf16.mxu0 %v13062_v40  ;;  %v13068_v5 = vld [vmem:[%s18650_s24 + $0x124] ss:$8 sps:$4 sm:$0xff]   ;;  %v12066_v56 = vcombine.low %v8629_v1, %v8633_v63  ;;  %v8653_v40 = vld [vmem:[%s14374_s20 + $0x358] sm:$0xff] }
 0xbb7   : > { %v17783_v18 = vmul.f32 %v13465_v12, %v17647_v35  ;;  %11046 = vmatpush1.bf16.msra.mxu0 %v13060_v48 }
 0xbb8   : > { %v13467_v59 = vpop.eup %13466  ;;  %11047 = vmatprep.subr.bf16.mxu0 %v13065_v13 }
 0xbb9   : > { %9590 = vmatpush1.bf16.msra.mxu1 %v12042_v30  ;;  %v13469_v0 = vpop.eup %13468  ;;  %v17789_v57 = vmul.f32 %v13467_v59, %v17651_v32  ;;  %v8637_v30 = vld [vmem:[%s14374_s20 + $0x2d8] sm:$0xff] }
 0xbba   : > { %9591 = vmatprep.subr.bf16.mxu1 %v12051_v25  ;;  %v13471_v62 = vpop.eup %13470  ;;  %v9956_v54 = vadd.f32 1.0, %v13469_v0  ;;  %v12075_v19 = vcombine.high %v8637_v30, %v8641_v50  ;;  %v8649_v0 = vld [vmem:[%s14374_s20 + $0x338] sm:$0xff]  ;;  %v12074_v63 = vcombine.low %v8637_v30, %v8641_v50 }
 0xbbb   : > { %v13473_v43 = vpop.eup %13472  ;;  %v9957_v21 = vadd.f32 1.0, %v13471_v62  ;;  %11048 = vmatpush1.bf16.msra.mxu0 %v13063_v20  ;;  %v13066_v62 = vld [vmem:[%s18650_s24 + $0x120] ss:$8 sps:$4 sm:$0xff]   ;;  %v8665_v30 = vld [vmem:[%s14374_s20 + $0x3b8] sm:$0xff] }
 0xbbc   : > { %v13475_v47 = vpop.eup %13474  ;;  %13484 = vrcp.f32 %v9956_v54  ;;  %v9964_v17 = vadd.f32 1.0, %v13473_v43  ;;  %11049 = vmatprep.subr.bf16.mxu0 %v13068_v5  ;;  %v8657_v43 = vld [vmem:[%s14374_s20 + $0x378] sm:$0xff] }
 0xbbd   : > { %9592 = vmatpush1.bf16.msra.mxu1 %v12050_v37  ;;  %13486 = vrcp.f32 %v9957_v21  ;;  %v9965_v41 = vadd.f32 1.0, %v13475_v47  ;;  %v13477_v25 = vpop.eup %13476  ;;  %v12091_v13 = vcombine.high %v8653_v40, %v8657_v43 }
 0xbbe   : > { %9593 = vmatprep.subr.bf16.mxu1 %v12059_v26  ;;  %13488 = vrcp.f32 %v9964_v17  ;;  %v13479_v51 = vpop.eup %13478  ;;  %v17805_v37 = vmul.f32 %v13477_v25, %v17682_v28  ;;  %v8645_v26 = vld [vmem:[%s14374_s20 + $0x318] sm:$0xff]  ;;  %v12090_v25 = vcombine.low %v8653_v40, %v8657_v43  ;;  %v13092_v43 = vld [vmem:[%s18650_s24 + $0x1a4] ss:$8 sps:$4 sm:$0xff]  }
 0xbbf   : > { %13490 = vrcp.f32 %v9965_v41  ;;  %v13481_v16 = vpop.eup %13480  ;;  %v17814_v54 = vmul.f32 %v13479_v51, %v17687_v14  ;;  %11050 = vmatpush1.bf16.msra.mxu0 %v13066_v62  ;;  %v8661_v41 = vld [vmem:[%s14374_s20 + $0x398] sm:$0xff] }
 0xbc0   : > { %v13483_v12 = vpop.eup %13482  ;;  %v17808_v59 = vmul.f32 %v13481_v16, %v17691_v42  ;;  %v12083_v42 = vcombine.high %v8645_v26, %v8649_v0  ;;  %v8669_v51 = vld [vmem:[%s14374_s20 + $0x3d8] sm:$0xff] }
 0xbc1   : > { %9594 = vmatpush1.bf16.msra.mxu1 %v12058_v46  ;;  %v17817_v1 = vmul.f32 %v13483_v12, %v17695_v24  ;;  %v12082_v24 = vcombine.low %v8645_v26, %v8649_v0  ;;  %v13071_v12 = vld [vmem:[%s18650_s24 + $0x134] ss:$8 sps:$4 sm:$0xff]   ;;  %v13074_v26 = vld [vmem:[%s18650_s24 + $0x144] ss:$8 sps:$4 sm:$0xff]   ;;  %v13072_v0 = vld [vmem:[%s18650_s24 + $0x140] ss:$8 sps:$4 sm:$0xff]  }
 0xbc2   : > { %9595 = vmatprep.subr.bf16.mxu1 %v12067_v7  ;;  %11051 = vmatprep.subr.bf16.mxu0 %v13071_v12  ;;  %v13081_v62 = vld [vmem:[%s18650_s24 + $0x170] ss:$8 sps:$4 sm:$0xff]  }
 0xbc3   : > { %v13087_v40 = vld [vmem:[%s18650_s24 + $0x190] ss:$8 sps:$4 sm:$0xff]  }
 0xbc5   : > { %9596 = vmatpush1.bf16.msra.mxu1 %v12066_v56  ;;  %v8673_v56 = vld [vmem:[%s14374_s20 + $0x3f8] sm:$0xff] }
 0xbc6   : > { %9597 = vmatprep.subr.bf16.mxu1 %v12075_v19  ;;  %v13485_v14 = vpop.eup %13484  ;;  %v12106_v16 = vcombine.low %v8669_v51, %v8673_v56  ;;  %v13069_v19 = vld [vmem:[%s18650_s24 + $0x130] ss:$8 sps:$4 sm:$0xff]  }
 0xbc7   : > { %v13487_v21 = vpop.eup %13486  ;;  %v17826_v17 = vmul.f32 %v13485_v14, %v17725_v23  ;;  %v12099_v23 = vcombine.high %v8661_v41, %v8665_v30  ;;  %11052 = vmatpush1.bf16.msra.mxu0 %v13069_v19  ;;  %v13093_v14 = vld [vmem:[%s18650_s24 + $0x1b0] ss:$8 sps:$4 sm:$0xff]  }
 0xbc8   : > { %v13489_v46 = vpop.eup %13488  ;;  %v17834_v50 = vmul.f32 %v13487_v21, %v17733_v52  ;;  %v12098_v52 = vcombine.low %v8661_v41, %v8665_v30  ;;  %11053 = vmatprep.subr.bf16.mxu0 %v13074_v26  ;;  %v13095_v21 = vld [vmem:[%s18650_s24 + $0x1b4] ss:$8 sps:$4 sm:$0xff]   ;;  %v13104_v41 = vld [vmem:[%s18650_s24 + $0x1e4] ss:$8 sps:$4 sm:$0xff]  }
 0xbc9   : > { %9598 = vmatpush1.bf16.msra.mxu1 %v12074_v63  ;;  %v13491_v47 = vpop.eup %13490  ;;  %v17829_v7 = vmul.f32 %v13489_v46, %v17740_v53  ;;  %v13086_v63 = vld [vmem:[%s18650_s24 + $0x184] ss:$8 sps:$4 sm:$0xff]   ;;  %v13096_v46 = vld [vmem:[%s18650_s24 + $0x1c0] ss:$8 sps:$4 sm:$0xff]  }
 0xbca   : > { %9599 = vmatprep.subr.bf16.mxu1 %v12083_v42  ;;  %v17837_v20 = vmul.f32 %v13491_v47, %v17744_v44  ;;  %v12107_v44 = vcombine.high %v8669_v51, %v8673_v56  ;;  %v13089_v42 = vld [vmem:[%s18650_s24 + $0x194] ss:$8 sps:$4 sm:$0xff]  }
 0xbcb   : > { %11054 = vmatpush1.bf16.msra.mxu0 %v13072_v0  ;;  %v13101_v47 = vld [vmem:[%s18650_s24 + $0x1d4] ss:$8 sps:$4 sm:$0xff]  }
 0xbcc   : > { %v13107_v56 = vld [vmem:[%s18650_s24 + $0x1f4] ss:$8 sps:$4 sm:$0xff]  }
 0xbcd   : > { %9600 = vmatpush1.bf16.msra.mxu1 %v12082_v24  ;;  %v13098_v24 = vld [vmem:[%s18650_s24 + $0x1c4] ss:$8 sps:$4 sm:$0xff]  }
 0xbce   : > { %9601 = vmatprep.subr.bf16.mxu1 %v12091_v13  ;;  %v13099_v13 = vld [vmem:[%s18650_s24 + $0x1d0] ss:$8 sps:$4 sm:$0xff]  }
 0xbd1   : > { %9602 = vmatpush1.bf16.msra.mxu1 %v12090_v25 }
 0xbd2   : > { %9603 = vmatprep.subr.bf16.mxu1 %v12099_v23  ;;  %v13102_v23 = vld [vmem:[%s18650_s24 + $0x1e0] ss:$8 sps:$4 sm:$0xff]  }
 0xbd5   : > { %9604 = vmatpush1.bf16.msra.mxu1 %v12098_v52 }
 0xbd6   : > { %9605 = vmatprep.subr.bf16.mxu1 %v12107_v44  ;;  %v13105_v44 = vld [vmem:[%s18650_s24 + $0x1f0] ss:$8 sps:$4 sm:$0xff]  }
 0xbd9   : > { %9606 = vmatpush1.bf16.msra.mxu1 %v12106_v16  ;;  %v13110_v16 = vld [vmem:[%s18650_s24 + $0x204] ss:$8 sps:$4 sm:$0xff]  }
 0xbdc   : > { %9608 = vmatmul.mubr.bf16.vlgmr.msra.gmra.mrb[136].mxu1 %v17266_v4  ;;  %v13075_v4 = vld [vmem:[%s18650_s24 + $0x150] ss:$8 sps:$4 sm:$0xff]  }
 0xbdd   : > { %9617 = vmatprep.mubr.bf16.mxu1 %v17301_v3  ;;  %v13077_v3 = vld [vmem:[%s18650_s24 + $0x154] ss:$8 sps:$4 sm:$0xff]  }
 0xbde   : > { %11055 = vmatprep.subr.bf16.mxu0 %v13077_v3 }
 0xbdf   : > { %11056 = vmatpush1.bf16.msra.mxu0 %v13075_v4 }
 0xbe4   : > { %9618 = vmatmul.mubr.bf16.gmra.mrb[140].mxu1 %v17303_v27  ;;  %v13080_v27 = vld [vmem:[%s18650_s24 + $0x164] ss:$8 sps:$4 sm:$0xff]  }
 0xbe5   : > { %9627 = vmatprep.mubr.bf16.mxu1 %v17352_v11  ;;  %v13078_v11 = vld [vmem:[%s18650_s24 + $0x160] ss:$8 sps:$4 sm:$0xff]   ;;  %11057 = vmatprep.subr.bf16.mxu0 %v13080_v27 }
 0xbe6   : > { %11058 = vmatpush1.bf16.msra.mxu0 %v13078_v11 }
 0xbec   : > { %9628 = vmatmul.mubr.bf16.gmra.mrb[144].mxu1 %v17356_v22  ;;  %v13083_v22 = vld [vmem:[%s18650_s24 + $0x174] ss:$8 sps:$4 sm:$0xff]  }
 0xbed   : > { %9637 = vmatprep.mubr.bf16.mxu1 %v17382_v61  ;;  %11059 = vmatprep.subr.bf16.mxu0 %v13083_v22  ;;  %v13084_v61 = vld [vmem:[%s18650_s24 + $0x180] ss:$8 sps:$4 sm:$0xff]  }
 0xbee   : > { %11060 = vmatpush1.bf16.msra.mxu0 %v13081_v62 }
 0xbef   : > { %11061 = vmatprep.subr.bf16.mxu0 %v13086_v63 }
 0xbf2   : > { %11062 = vmatpush1.bf16.msra.mxu0 %v13084_v61 }
 0xbf3   : > { %11063 = vmatprep.subr.bf16.mxu0 %v13089_v42  ;;  %v17912_v42 = vld [vmem:[%s14441_s10] sm:$0xff] }
 0xbf4   : > { %9638 = vmatmul.mubr.bf16.gmra.mrb[148].mxu1 %v17384_v36  ;;  %v13090_v36 = vld [vmem:[%s18650_s24 + $0x1a0] ss:$8 sps:$4 sm:$0xff]  }
 0xbf6   : > { %11064 = vmatpush1.bf16.msra.mxu0 %v13087_v40  ;;  %v18672_v40 = vsub.s32 2, %v18654_v38 }
 0xbf7   : > { %11065 = vmatprep.subr.bf16.mxu0 %v13092_v43 }
 0xbf8   : > { %v17917_v43 = vrot.slane %v17912_v42, %v18672_v40 }
 0xbfa   : > { %11066 = vmatpush1.bf16.msra.mxu0 %v13090_v36  ;;  %v18673_v36 = vsub.s32 3, %v18654_v38 }
 0xbfb   : > { %11067 = vmatprep.subr.bf16.mxu0 %v13095_v21 }
 0xbfe   : > { %11068 = vmatpush1.bf16.msra.mxu0 %v13093_v14  ;;  %v17922_v14 = vrot.slane %v17912_v42, %v18673_v36 }
 0xbff   : > { %11069 = vmatprep.subr.bf16.mxu0 %v13098_v24 }
 0xc02   : > { %11070 = vmatpush1.bf16.msra.mxu0 %v13096_v46 }
 0xc03   : > { %11071 = vmatprep.subr.bf16.mxu0 %v13101_v47 }
 0xc06   : > { %11072 = vmatpush1.bf16.msra.mxu0 %v13099_v13 }
 0xc07   : > { %11073 = vmatprep.subr.bf16.mxu0 %v13104_v41 }
 0xc0a   : > { %11074 = vmatpush1.bf16.msra.mxu0 %v13102_v23 }
 0xc0b   : > { %11075 = vmatprep.subr.bf16.mxu0 %v13107_v56 }
 0xc0e   : > { %11076 = vmatpush1.bf16.msra.mxu0 %v13105_v44 }
 0xc0f   : > { %11118 = vmatprep.subr.bf16.mxu0 %v13110_v16 }
 0xc27   : > { %v17875_v30 = vpop.f32.mrb[104].mxu1 }
 0xc28   : > { %v17877_v25 = vpop.f32.mrb[105].mxu1 }
 0xc29   : > { %v17880_v51 = vpop.f32.mrb[106].mxu1 }
 0xc2a   : > { %v17883_v52 = vpop.f32.mrb[107].mxu1 }
 0xc31   : > { %v17887_v19 = vpop.f32.mrb[108].mxu1 }
 0xc32   : > { %v17889_v12 = vpop.f32.mrb[109].mxu1 }
 0xc33   : > { %18661 = vst [vmem:[#allocation39_spill] sm:$0xff] %v17889_v12  ;;  %v17891_v26 = vpop.f32.mrb[110].mxu1  ;;  %v13108_v12 = vld [vmem:[%s18650_s24 + $0x200] ss:$8 sps:$4 sm:$0xff]  }
 0xc34   : > { %18662 = vst [vmem:[#allocation38_spill] sm:$0xff] %v17891_v26  ;;  %v17893_v0 = vpop.f32.mrb[111].mxu1 }
 0xc35   : > { %18663 = vst [vmem:[#allocation32_spill] sm:$0xff] %v17893_v0 }
 0xc5c   : > { %v17895_v4 = vpop.f32.mrb[112].mxu1 }
 0xc5d   : > { %18664 = vst [vmem:[#allocation31_spill] sm:$0xff] %v17895_v4  ;;  %v17897_v3 = vpop.f32.mrb[113].mxu1 }
 0xc5e   : > { %18665 = vst [vmem:[#allocation30_spill] sm:$0xff] %v17897_v3  ;;  %v17899_v27 = vpop.f32.mrb[114].mxu1 }
 0xc5f   : > { %18666 = vst [vmem:[#allocation47_spill] sm:$0xff] %v17899_v27  ;;  %v17901_v11 = vpop.f32.mrb[115].mxu1 }
 0xc60   : > { %18667 = vst [vmem:[#allocation48_spill] sm:$0xff] %v17901_v11 }
 0xc64   : > { %v17903_v62 = vpop.f32.mrb[116].mxu1 }
 0xc65   : > { %18668 = vst [vmem:[#allocation49_spill] sm:$0xff] %v17903_v62  ;;  %v17905_v22 = vpop.f32.mrb[117].mxu1 }
 0xc66   : > { %18669 = vst [vmem:[#allocation50_spill] sm:$0xff] %v17905_v22  ;;  %v17907_v63 = vpop.f32.mrb[118].mxu1 }
 0xc67   : > { %18670 = vst [vmem:[#allocation51_spill] sm:$0xff] %v17907_v63  ;;  %v17909_v61 = vpop.f32.mrb[119].mxu1 }
 0xc68   : > { %18671 = vst [vmem:[#allocation52_spill] sm:$0xff] %v17909_v61 }
 0xc6c   : > { %v9463_v21 = vpop.f32.mrb[120].mxu1 }
 0xc6d   : > { %v17925_v24 = vadd.f32 %v9463_v21, %v17917_v43  ;;  %v9465_v46 = vpop.f32.mrb[121].mxu1 }
 0xc6e   : > { %v17928_v13 = vadd.f32 %v9465_v46, %v17922_v14  ;;  %v9467_v47 = vpop.f32.mrb[122].mxu1 }
 0xc6f   : > { %v12110_v41 = vmul.f32 -1.702, %v17925_v24  ;;  %v17932_v23 = vadd.f32 %v9467_v47, %v17917_v43  ;;  %v9469_v56 = vpop.f32.mrb[123].mxu1 }
 0xc70   : > { %v12111_v44 = vmul.f32 -1.702, %v17928_v13  ;;  %v17936_v16 = vadd.f32 %v9469_v56, %v17922_v14 }
 0xc71   : > { %v9780_v40 = vmul.f32 1.442695, %v12110_v41  ;;  %v12118_v36 = vmul.f32 -1.702, %v17932_v23 }
 0xc72   : > { %v9782_v21 = vmul.f32 1.442695, %v12111_v44  ;;  %v12119_v5 = vmul.f32 -1.702, %v17936_v16 }
 0xc73   : > { %13492 = vpow2.f32 %v9780_v40  ;;  %v9796_v46 = vmul.f32 1.442695, %v12118_v36 }
 0xc74   : > { %13494 = vpow2.f32 %v9782_v21  ;;  %v9798_v53 = vmul.f32 1.442695, %v12119_v5  ;;  %v9473_v28 = vpop.f32.mrb[124].mxu1 }
 0xc75   : > { %13496 = vpow2.f32 %v9796_v46  ;;  %v17941_v47 = vadd.f32 %v9473_v28, %v17917_v43  ;;  %v9475_v48 = vpop.f32.mrb[125].mxu1 }
 0xc76   : > { %13498 = vpow2.f32 %v9798_v53  ;;  %v17944_v56 = vadd.f32 %v9475_v48, %v17922_v14  ;;  %v9477_v41 = vpop.f32.mrb[126].mxu1 }
 0xc77   : > { %v12126_v35 = vmul.f32 -1.702, %v17941_v47  ;;  %v17948_v44 = vadd.f32 %v9477_v41, %v17917_v43  ;;  %v9479_v40 = vpop.f32.mrb[127].mxu1 }
 0xc78   : > { %v12127_v36 = vmul.f32 -1.702, %v17944_v56  ;;  %v17952_v5 = vadd.f32 %v9479_v40, %v17922_v14 }
 0xc79   : > { %v9812_v21 = vmul.f32 1.442695, %v12126_v35  ;;  %v12134_v28 = vmul.f32 -1.702, %v17948_v44 }
 0xc7a   : > { %v9814_v46 = vmul.f32 1.442695, %v12127_v36  ;;  %v12135_v53 = vmul.f32 -1.702, %v17952_v5 }
 0xc7b   : > { %13500 = vpow2.f32 %v9812_v21  ;;  %v9828_v48 = vmul.f32 1.442695, %v12134_v28 }
 0xc7c   : > { %13502 = vpow2.f32 %v9814_v46  ;;  %v9830_v32 = vmul.f32 1.442695, %v12135_v53 }
 0xc7d   : > { %v9483_v31 = vpop.f32.mrb[128].mxu1  ;;  %v13493_v60 = vpop.eup %13492  ;;  %13504 = vpow2.f32 %v9828_v48 }
 0xc7e   : > { %v17957_v41 = vadd.f32 %v9483_v31, %v17917_v43  ;;  %v9485_v61 = vpop.f32.mrb[129].mxu1  ;;  %v13495_v63 = vpop.eup %13494  ;;  %v9906_v40 = vadd.f32 1.0, %v13493_v60  ;;  %13506 = vpow2.f32 %v9830_v32 }
 0xc7f   : > { %v17960_v35 = vadd.f32 %v9485_v61, %v17922_v14  ;;  %v9487_v36 = vpop.f32.mrb[130].mxu1  ;;  %v13497_v22 = vpop.eup %13496  ;;  %v9907_v62 = vadd.f32 1.0, %v13495_v63 }
 0xc80   : > { %v12142_v21 = vmul.f32 -1.702, %v17957_v41  ;;  %v17964_v28 = vadd.f32 %v9487_v36, %v17917_v43  ;;  %v9489_v46 = vpop.f32.mrb[131].mxu1  ;;  %v13499_v53 = vpop.eup %13498  ;;  %13508 = vrcp.f32 %v9906_v40  ;;  %v9914_v31 = vadd.f32 1.0, %v13497_v22 }
 0xc81   : > { %v12143_v48 = vmul.f32 -1.702, %v17960_v35  ;;  %v17968_v60 = vadd.f32 %v9489_v46, %v17922_v14  ;;  %13510 = vrcp.f32 %v9907_v62  ;;  %v9915_v32 = vadd.f32 1.0, %v13499_v53 }
 0xc82   : > { %v9844_v61 = vmul.f32 1.442695, %v12142_v21  ;;  %v12150_v11 = vmul.f32 -1.702, %v17964_v28  ;;  %13512 = vrcp.f32 %v9914_v31 }
 0xc83   : > { %v9846_v63 = vmul.f32 1.442695, %v12143_v48  ;;  %v12151_v27 = vmul.f32 -1.702, %v17968_v60  ;;  %13514 = vrcp.f32 %v9915_v32 }
 0xc84   : > { %v9860_v36 = vmul.f32 1.442695, %v12150_v11  ;;  %13516 = vpow2.f32 %v9844_v61 }
 0xc85   : > { %v9862_v3 = vmul.f32 1.442695, %v12151_v27  ;;  %v9493_v40 = vpop.f32.mrb[132].mxu1  ;;  %v13501_v22 = vpop.eup %13500  ;;  %13518 = vpow2.f32 %v9846_v63 }
 0xc86   : > { %v17973_v4 = vadd.f32 %v9493_v40, %v17917_v43  ;;  %v9495_v46 = vpop.f32.mrb[133].mxu1  ;;  %v13503_v62 = vpop.eup %13502  ;;  %v9922_v53 = vadd.f32 1.0, %v13501_v22  ;;  %13520 = vpow2.f32 %v9860_v36 }
 0xc87   : > { %v17976_v21 = vadd.f32 %v9495_v46, %v17922_v14  ;;  %v9497_v31 = vpop.f32.mrb[134].mxu1  ;;  %v13505_v48 = vpop.eup %13504  ;;  %v9923_v39 = vadd.f32 1.0, %v13503_v62  ;;  %13522 = vpow2.f32 %v9862_v3 }
 0xc88   : > { %v12158_v11 = vmul.f32 -1.702, %v17973_v4  ;;  %v17980_v27 = vadd.f32 %v9497_v31, %v17917_v43  ;;  %v9499_v32 = vpop.f32.mrb[135].mxu1  ;;  %v13507_v61 = vpop.eup %13506  ;;  %13524 = vrcp.f32 %v9922_v53  ;;  %v9930_v63 = vadd.f32 1.0, %v13505_v48 }
 0xc89   : > { %v12159_v40 = vmul.f32 -1.702, %v17976_v21  ;;  %v17984_v36 = vadd.f32 %v9499_v32, %v17922_v14  ;;  %13526 = vrcp.f32 %v9923_v39  ;;  %v9931_v22 = vadd.f32 1.0, %v13507_v61 }
 0xc8a   : > { %v9876_v46 = vmul.f32 1.442695, %v12158_v11  ;;  %v12166_v62 = vmul.f32 -1.702, %v17980_v27  ;;  %v13509_v3 = vpop.eup %13508  ;;  %13528 = vrcp.f32 %v9930_v63 }
 0xc8b   : > { %v9878_v55 = vmul.f32 1.442695, %v12159_v40  ;;  %v12167_v43 = vmul.f32 -1.702, %v17984_v36  ;;  %v13511_v31 = vpop.eup %13510  ;;  %13530 = vrcp.f32 %v9931_v22  ;;  %v10098_v14 = vmul.f32 %v13509_v3, %v17925_v24 }
 0xc8c   : > { %v9892_v0 = vmul.f32 1.442695, %v12166_v62  ;;  %v13513_v53 = vpop.eup %13512  ;;  %13532 = vpow2.f32 %v9876_v46  ;;  %v10099_v32 = vmul.f32 %v13511_v31, %v17928_v13 }
 0xc8d   : > { %v9894_v48 = vmul.f32 1.442695, %v12167_v43  ;;  %v13515_v26 = vpop.eup %13514  ;;  %v10106_v39 = vmul.f32 %v13513_v53, %v17932_v23  ;;  %13534 = vpow2.f32 %v9878_v55  ;;  %v13113_v55 = vld [vmem:[%s18650_s24 + $0x214] ss:$8 sps:$4 sm:$0xff]  }
 0xc8e   : > { %v13517_v11 = vpop.eup %13516  ;;  %v10107_v61 = vmul.f32 %v13515_v26, %v17936_v16  ;;  %13536 = vpow2.f32 %v9892_v0  ;;  %v13111_v16 = vld [vmem:[%s18650_s24 + $0x210] ss:$8 sps:$4 sm:$0xff]  }
 0xc8f   : > { %v13519_v63 = vpop.eup %13518  ;;  %v10162_v40 = vpack.c.bf16 %v10106_v39, %v10098_v14  ;;  %v9938_v22 = vadd.f32 1.0, %v13517_v11  ;;  %13538 = vpow2.f32 %v9894_v48  ;;  %v13116_v14 = vld [vmem:[%s18650_s24 + $0x224] ss:$8 sps:$4 sm:$0xff]  }
 0xc90   : > { %v13521_v46 = vpop.eup %13520  ;;  %v9939_v62 = vadd.f32 1.0, %v13519_v63  ;;  %v10163_v43 = vpack.c.bf16 %v10107_v61, %v10099_v32 }
 0xc91   : > { %v13523_v24 = vpop.eup %13522  ;;  %13540 = vrcp.f32 %v9938_v22  ;;  %v9946_v23 = vadd.f32 1.0, %v13521_v46 }
 0xc92   : > { %v13525_v3 = vpop.eup %13524  ;;  %13542 = vrcp.f32 %v9939_v62  ;;  %v9947_v13 = vadd.f32 1.0, %v13523_v24  ;;  %11077 = vmatprep.mubr.bf16.mxu0 %v10163_v43  ;;  %v13114_v62 = vld [vmem:[%s18650_s24 + $0x220] ss:$8 sps:$4 sm:$0xff]   ;;  %v13119_v43 = vld [vmem:[%s18650_s24 + $0x234] ss:$8 sps:$4 sm:$0xff]  }
 0xc93   : > { %v13527_v26 = vpop.eup %13526  ;;  %13544 = vrcp.f32 %v9946_v23  ;;  %11078 = vmatmul.mubr.bf16.vlgmr.msra.gmra.mrb[72].mxu0 %v10162_v40  ;;  %v10114_v53 = vmul.f32 %v13525_v3, %v17941_v47  ;;  %v13117_v23 = vld [vmem:[%s18650_s24 + $0x230] ss:$8 sps:$4 sm:$0xff]   ;;  %v13122_v3 = vld [vmem:[%s18650_s24 + $0x244] ss:$8 sps:$4 sm:$0xff]  }
 0xc94   : > { %v13529_v0 = vpop.eup %13528  ;;  %13546 = vrcp.f32 %v9947_v13  ;;  %11119 = vmatpush1.bf16.msra.mxu0 %v13108_v12  ;;  %v10115_v11 = vmul.f32 %v13527_v26, %v17944_v56 }
 0xc95   : > { %v13531_v31 = vpop.eup %13530  ;;  %v10122_v48 = vmul.f32 %v13529_v0, %v17948_v44  ;;  %11120 = vmatprep.subr.bf16.mxu0 %v13113_v55 }
 0xc96   : > { %v13533_v39 = vpop.eup %13532  ;;  %v10123_v32 = vmul.f32 %v13531_v31, %v17952_v5 }
 0xc97   : > { %v13535_v61 = vpop.eup %13534  ;;  %v9954_v63 = vadd.f32 1.0, %v13533_v39  ;;  %v10170_v40 = vpack.c.bf16 %v10122_v48, %v10114_v53  ;;  %v13125_v39 = vld [vmem:[%s18650_s24 + $0x254] ss:$8 sps:$4 sm:$0xff]  }
 0xc98   : > { %v13537_v22 = vpop.eup %13536  ;;  %v9955_v12 = vadd.f32 1.0, %v13535_v61  ;;  %11121 = vmatpush1.bf16.msra.mxu0 %v13111_v16  ;;  %v10171_v46 = vpack.c.bf16 %v10123_v32, %v10115_v11  ;;  %v13123_v61 = vld [vmem:[%s18650_s24 + $0x250] ss:$8 sps:$4 sm:$0xff]  }
 0xc99   : > { %v13539_v47 = vpop.eup %13538  ;;  %13548 = vrcp.f32 %v9954_v63  ;;  %v9962_v44 = vadd.f32 1.0, %v13537_v22  ;;  %11122 = vmatprep.subr.bf16.mxu0 %v13116_v14  ;;  %v13120_v14 = vld [vmem:[%s18650_s24 + $0x240] ss:$8 sps:$4 sm:$0xff]   ;;  %v8706_v22 = vsub.s32 7, %v18654_v38 }
 0xc9a   : > { %13550 = vrcp.f32 %v9955_v12  ;;  %v9963_v24 = vadd.f32 1.0, %v13539_v47  ;;  %11087 = vmatprep.mubr.bf16.mxu0 %v10171_v46 }
 0xc9b   : > { %v13541_v56 = vpop.eup %13540  ;;  %13552 = vrcp.f32 %v9962_v44  ;;  %11088 = vmatmul.mubr.bf16.gmra.mrb[76].mxu0 %v10170_v40  ;;  %v13128_v40 = vld [vmem:[%s18650_s24 + $0x264] ss:$8 sps:$4 sm:$0xff]   ;;  %v13126_v44 = vld [vmem:[%s18650_s24 + $0x260] ss:$8 sps:$4 sm:$0xff]  }
 0xc9c   : > { %v13543_v5 = vpop.eup %13542  ;;  %13554 = vrcp.f32 %v9963_v24  ;;  %11123 = vmatpush1.bf16.msra.mxu0 %v13114_v62  ;;  %v10130_v26 = vmul.f32 %v13541_v56, %v17957_v41  ;;  %v18674_v24 = vpack.c.bf16 %v17767_v45, %v17764_v6  ;;  %v13129_v56 = vld [vmem:[%s18650_s24 + $0x270] ss:$8 sps:$4 sm:$0xff]  }
 0xc9d   : > { %v13545_v55 = vpop.eup %13544  ;;  %11124 = vmatprep.subr.bf16.mxu0 %v13119_v43  ;;  %v10131_v16 = vmul.f32 %v13543_v5, %v17960_v35 }
 0xc9e   : > { %v13547_v13 = vpop.eup %13546  ;;  %v10138_v0 = vmul.f32 %v13545_v55, %v17964_v28  ;;  %v8702_v28 = vsub.s32 6, %v18654_v38 }
 0xc9f   : > { %v10139_v31 = vmul.f32 %v13547_v13, %v17968_v60 }
 0xca0   : > { %11125 = vmatpush1.bf16.msra.mxu0 %v13117_v23  ;;  %v10178_v53 = vpack.c.bf16 %v10138_v0, %v10130_v26  ;;  %v18020_v43 = vrot.slane %v17912_v42, %v8702_v28  ;;  %v13134_v23 = vld [vmem:[%s18650_s24 + $0x284] ss:$8 sps:$4 sm:$0xff]  }
 0xca1   : > { %v10179_v48 = vpack.c.bf16 %v10139_v31, %v10131_v16  ;;  %11126 = vmatprep.subr.bf16.mxu0 %v13122_v3  ;;  %v13132_v16 = vld [vmem:[%s18650_s24 + $0x280] ss:$8 sps:$4 sm:$0xff]  }
 0xca3   : > { %v13549_v11 = vpop.eup %13548  ;;  %11097 = vmatprep.mubr.bf16.mxu0 %v10179_v48  ;;  %v13137_v48 = vld [vmem:[%s18650_s24 + $0x294] ss:$8 sps:$4 sm:$0xff]  }
 0xca4   : > { %v13551_v32 = vpop.eup %13550  ;;  %11098 = vmatmul.mubr.bf16.gmra.mrb[80].mxu0 %v10178_v53  ;;  %v10146_v60 = vmul.f32 %v13549_v11, %v17973_v4  ;;  %v18023_v4 = vrot.slane %v17912_v42, %v8706_v22 }
 0xca5   : > { %v13553_v41 = vpop.eup %13552  ;;  %11127 = vmatpush1.bf16.msra.mxu0 %v13120_v14  ;;  %v10147_v12 = vmul.f32 %v13551_v32, %v17976_v21 }
 0xca6   : > { %v13555_v35 = vpop.eup %13554  ;;  %v10154_v63 = vmul.f32 %v13553_v41, %v17980_v27  ;;  %11128 = vmatprep.subr.bf16.mxu0 %v13125_v39  ;;  %v13131_v27 = vld [vmem:[%s18650_s24 + $0x274] ss:$8 sps:$4 sm:$0xff]  }
 0xca7   : > { %v10155_v46 = vmul.f32 %v13555_v35, %v17984_v36 }
 0xca8   : > { %v10186_v62 = vpack.c.bf16 %v10154_v63, %v10146_v60  ;;  %v13140_v60 = vld [vmem:[%s18650_s24 + $0x2a4] ss:$8 sps:$4 sm:$0xff]  }
 0xca9   : > { %11129 = vmatpush1.bf16.msra.mxu0 %v13123_v61  ;;  %v10187_v47 = vpack.c.bf16 %v10155_v46, %v10147_v12  ;;  %v13135_v61 = vld [vmem:[%s18650_s24 + $0x290] ss:$8 sps:$4 sm:$0xff]  }
 0xcaa   : > { %11130 = vmatprep.subr.bf16.mxu0 %v13128_v40 }
 0xcab   : > { %11107 = vmatprep.mubr.bf16.mxu0 %v10187_v47 }
 0xcac   : > { %11108 = vmatmul.mubr.bf16.gmra.mrb[84].mxu0 %v10186_v62 }
 0xcad   : > { %11131 = vmatpush1.bf16.msra.mxu0 %v13126_v44  ;;  %11150 = vmatprep.mubr.bf16.mxu0 %v18674_v24  ;;  %v13138_v44 = vld [vmem:[%s18650_s24 + $0x2a0] ss:$8 sps:$4 sm:$0xff]  }
 0xcae   : > { %11132 = vmatprep.subr.bf16.mxu0 %v13131_v27 }
 0xcaf   : > { %v9609_v38 = vpop.f32.mrb[136].mxu1 }
 0xcb0   : > { %v18027_v21 = vadd.f32 %v9609_v38, %v18020_v43  ;;  %v9611_v36 = vpop.f32.mrb[137].mxu1 }
 0xcb1   : > { %v18034_v5 = vadd.f32 %v9611_v36, %v18023_v4  ;;  %v9613_v42 = vpop.f32.mrb[138].mxu1  ;;  %11133 = vmatpush1.bf16.msra.mxu0 %v13129_v56  ;;  %v13143_v36 = vld [vmem:[%s18650_s24 + $0x2b4] ss:$8 sps:$4 sm:$0xff]  }
 0xcb2   : > { %v12114_v55 = vmul.f32 -1.702, %v18027_v21  ;;  %v18039_v3 = vadd.f32 %v9613_v42, %v18020_v43  ;;  %v9615_v13 = vpop.f32.mrb[139].mxu1  ;;  %11134 = vmatprep.subr.bf16.mxu0 %v13134_v23 }
 0xcb3   : > { %v12115_v26 = vmul.f32 -1.702, %v18034_v5  ;;  %v18043_v0 = vadd.f32 %v9615_v13, %v18023_v4 }
 0xcb4   : > { %v9788_v6 = vmul.f32 1.442695, %v12114_v55  ;;  %v12122_v45 = vmul.f32 -1.702, %v18039_v3 }
 0xcb5   : > { %v9790_v31 = vmul.f32 1.442695, %v12115_v26  ;;  %v12123_v53 = vmul.f32 -1.702, %v18043_v0  ;;  %11135 = vmatpush1.bf16.msra.mxu0 %v13132_v16  ;;  %v13141_v26 = vld [vmem:[%s18650_s24 + $0x2b0] ss:$8 sps:$4 sm:$0xff]  }
 0xcb6   : > { %13556 = vpow2.f32 %v9788_v6  ;;  %v9804_v14 = vmul.f32 1.442695, %v12122_v45  ;;  %11136 = vmatprep.subr.bf16.mxu0 %v13137_v48 }
 0xcb7   : > { %13558 = vpow2.f32 %v9790_v31  ;;  %v9806_v39 = vmul.f32 1.442695, %v12123_v53  ;;  %v9619_v11 = vpop.f32.mrb[140].mxu1  ;;  %v13146_v53 = vld [vmem:[%s18650_s24 + $0x2c4] ss:$8 sps:$4 sm:$0xff]  }
 0xcb8   : > { %13560 = vpow2.f32 %v9804_v14  ;;  %v18050_v32 = vadd.f32 %v9619_v11, %v18020_v43  ;;  %v9621_v41 = vpop.f32.mrb[141].mxu1 }
 0xcb9   : > { %13562 = vpow2.f32 %v9806_v39  ;;  %v18054_v28 = vadd.f32 %v9621_v41, %v18023_v4  ;;  %v9623_v35 = vpop.f32.mrb[142].mxu1  ;;  %11137 = vmatpush1.bf16.msra.mxu0 %v13135_v61 }
 0xcba   : > { %v12130_v63 = vmul.f32 -1.702, %v18050_v32  ;;  %v18059_v40 = vadd.f32 %v9623_v35, %v18020_v43  ;;  %v9625_v22 = vpop.f32.mrb[143].mxu1  ;;  %11138 = vmatprep.subr.bf16.mxu0 %v13140_v60 }
 0xcbb   : > { %v12131_v12 = vmul.f32 -1.702, %v18054_v28  ;;  %v18063_v46 = vadd.f32 %v9625_v22, %v18023_v4  ;;  %v13144_v22 = vld [vmem:[%s18650_s24 + $0x2c0] ss:$8 sps:$4 sm:$0xff]  }
 0xcbc   : > { %v9820_v62 = vmul.f32 1.442695, %v12130_v63  ;;  %v12138_v47 = vmul.f32 -1.702, %v18059_v40 }
 0xcbd   : > { %v9822_v27 = vmul.f32 1.442695, %v12131_v12  ;;  %v12139_v38 = vmul.f32 -1.702, %v18063_v46  ;;  %11139 = vmatpush1.bf16.msra.mxu0 %v13138_v44 }
 0xcbe   : > { %13564 = vpow2.f32 %v9820_v62  ;;  %v9836_v24 = vmul.f32 1.442695, %v12138_v47  ;;  %11140 = vmatprep.subr.bf16.mxu0 %v13143_v36 }
 0xcbf   : > { %13566 = vpow2.f32 %v9822_v27  ;;  %v9838_v56 = vmul.f32 1.442695, %v12139_v38  ;;  %v9629_v42 = vpop.f32.mrb[144].mxu1  ;;  %v13149_v38 = vld [vmem:[%s18650_s24 + $0x2d4] ss:$8 sps:$4 sm:$0xff]  }
 0xcc0   : > { %v13557_v23 = vpop.eup %13556  ;;  %13568 = vpow2.f32 %v9836_v24  ;;  %v18070_v55 = vadd.f32 %v9629_v42, %v18020_v43  ;;  %v9631_v13 = vpop.f32.mrb[145].mxu1 }
 0xcc1   : > { %v13559_v6 = vpop.eup %13558  ;;  %v9910_v45 = vadd.f32 1.0, %v13557_v23  ;;  %13570 = vpow2.f32 %v9838_v56  ;;  %v18074_v16 = vadd.f32 %v9631_v13, %v18023_v4  ;;  %v9633_v31 = vpop.f32.mrb[146].mxu1  ;;  %11141 = vmatpush1.bf16.msra.mxu0 %v13141_v26  ;;  %v13147_v26 = vld [vmem:[%s18650_s24 + $0x2d0] ss:$8 sps:$4 sm:$0xff]  }
 0xcc2   : > { %v13561_v48 = vpop.eup %13560  ;;  %v9911_v14 = vadd.f32 1.0, %v13559_v6  ;;  %v12146_v39 = vmul.f32 -1.702, %v18070_v55  ;;  %v18079_v11 = vadd.f32 %v9633_v31, %v18020_v43  ;;  %v9635_v41 = vpop.f32.mrb[147].mxu1  ;;  %11142 = vmatprep.subr.bf16.mxu0 %v13146_v53 }
 0xcc3   : > { %v13563_v61 = vpop.eup %13562  ;;  %13572 = vrcp.f32 %v9910_v45  ;;  %v9918_v35 = vadd.f32 1.0, %v13561_v48  ;;  %v12147_v60 = vmul.f32 -1.702, %v18074_v16  ;;  %v18083_v63 = vadd.f32 %v9635_v41, %v18023_v4  ;;  %v13152_v48 = vld [vmem:[%s18650_s24 + $0x2e4] ss:$8 sps:$4 sm:$0xff]  }
 0xcc4   : > { %13574 = vrcp.f32 %v9911_v14  ;;  %v9919_v12 = vadd.f32 1.0, %v13563_v61  ;;  %v9852_v62 = vmul.f32 1.442695, %v12146_v39  ;;  %v12154_v47 = vmul.f32 -1.702, %v18079_v11 }
 0xcc5   : > { %13576 = vrcp.f32 %v9918_v35  ;;  %v9854_v44 = vmul.f32 1.442695, %v12147_v60  ;;  %v12155_v27 = vmul.f32 -1.702, %v18083_v63  ;;  %11143 = vmatpush1.bf16.msra.mxu0 %v13144_v22 }
 0xcc6   : > { %13578 = vrcp.f32 %v9919_v12  ;;  %v9868_v36 = vmul.f32 1.442695, %v12154_v47  ;;  %11144 = vmatprep.subr.bf16.mxu0 %v13149_v38  ;;  %v13150_v47 = vld [vmem:[%s18650_s24 + $0x2e0] ss:$8 sps:$4 sm:$0xff]  }
 0xcc7   : > { %13580 = vpow2.f32 %v9852_v62  ;;  %v9870_v24 = vmul.f32 1.442695, %v12155_v27  ;;  %v9639_v56 = vpop.f32.mrb[148].mxu1 }
 0xcc8   : > { %v13565_v42 = vpop.eup %13564  ;;  %13582 = vpow2.f32 %v9854_v44  ;;  %v18090_v23 = vadd.f32 %v9639_v56, %v18020_v43  ;;  %v9641_v13 = vpop.f32.mrb[149].mxu1  ;;  %v13155_v56 = vld [vmem:[%s18650_s24 + $0x2f4] ss:$8 sps:$4 sm:$0xff]  }
 0xcc9   : > { %v13567_v6 = vpop.eup %13566  ;;  %v9926_v45 = vadd.f32 1.0, %v13565_v42  ;;  %13584 = vpow2.f32 %v9868_v36  ;;  %v18094_v31 = vadd.f32 %v9641_v13, %v18023_v4  ;;  %v9643_v53 = vpop.f32.mrb[150].mxu1  ;;  %11145 = vmatpush1.bf16.msra.mxu0 %v13147_v26 }
 0xcca   : > { %v13569_v14 = vpop.eup %13568  ;;  %v9927_v39 = vadd.f32 1.0, %v13567_v6  ;;  %13586 = vpow2.f32 %v9870_v24  ;;  %v12162_v41 = vmul.f32 -1.702, %v18090_v23  ;;  %v18099_v61 = vadd.f32 %v9643_v53, %v18020_v43  ;;  %v9645_v35 = vpop.f32.mrb[151].mxu1  ;;  %11146 = vmatprep.subr.bf16.mxu0 %v13152_v48 }
 0xccb   : > { %v13571_v60 = vpop.eup %13570  ;;  %13588 = vrcp.f32 %v9926_v45  ;;  %v9934_v22 = vadd.f32 1.0, %v13569_v14  ;;  %v12163_v12 = vmul.f32 -1.702, %v18094_v31  ;;  %v18103_v62 = vadd.f32 %v9645_v35, %v18023_v4  ;;  %v13153_v14 = vld [vmem:[%s18650_s24 + $0x2f0] ss:$8 sps:$4 sm:$0xff]  }
 0xccc   : > { %13590 = vrcp.f32 %v9927_v39  ;;  %v9935_v44 = vadd.f32 1.0, %v13571_v60  ;;  %v9884_v27 = vmul.f32 1.442695, %v12162_v41  ;;  %v12170_v38 = vmul.f32 -1.702, %v18099_v61 }
 0xccd   : > { %v13573_v36 = vpop.eup %13572  ;;  %13592 = vrcp.f32 %v9934_v22  ;;  %v9886_v43 = vmul.f32 1.442695, %v12163_v12  ;;  %v12171_v24 = vmul.f32 -1.702, %v18103_v62  ;;  %11147 = vmatpush1.bf16.msra.mxu0 %v13150_v47  ;;  %v13158_v35 = vld [vmem:[%s18650_s24 + $0x304] ss:$8 sps:$4 sm:$0xff]  }
 0xcce   : > { %v13575_v42 = vpop.eup %13574  ;;  %13594 = vrcp.f32 %v9935_v44  ;;  %v9900_v4 = vmul.f32 1.442695, %v12170_v38  ;;  %v18110_v53 = vmul.f32 %v13573_v36, %v18027_v21  ;;  %11148 = vmatprep.subr.bf16.mxu0 %v13155_v56  ;;  %v13161_v36 = vld [vmem:[%s18650_s24 + $0x314] ss:$8 sps:$4 sm:$0xff]   ;;  %v18675_v56 = vpack.c.bf16 %v17761_v29, %v17758_v15  ;;  %v13164_v29 = vld [vmem:[%s18650_s24 + $0x324] ss:$8 sps:$4 sm:$0xff]  }
 0xccf   : > { %v13577_v13 = vpop.eup %13576  ;;  %13596 = vpow2.f32 %v9884_v27  ;;  %v9902_v6 = vmul.f32 1.442695, %v12171_v24  ;;  %v18117_v48 = vmul.f32 %v13575_v42, %v18034_v5 }
 0xcd0   : > { %v13579_v45 = vpop.eup %13578  ;;  %v18113_v26 = vmul.f32 %v13577_v13, %v18039_v3  ;;  %13598 = vpow2.f32 %v9886_v43 }
 0xcd1   : > { %v13581_v39 = vpop.eup %13580  ;;  %v18120_v41 = vmul.f32 %v13579_v45, %v18043_v0  ;;  %13600 = vpow2.f32 %v9900_v4  ;;  %11149 = vmatpush1.bf16.msra.mxu0 %v13153_v14  ;;  %v13156_v0 = vld [vmem:[%s18650_s24 + $0x300] ss:$8 sps:$4 sm:$0xff]   ;;  %v13159_v45 = vld [vmem:[%s18650_s24 + $0x310] ss:$8 sps:$4 sm:$0xff]  }
 0xcd2   : > { %v13583_v60 = vpop.eup %13582  ;;  %v10166_v21 = vpack.c.bf16 %v18113_v26, %v18110_v53  ;;  %v9942_v3 = vadd.f32 1.0, %v13581_v39  ;;  %13602 = vpow2.f32 %v9902_v6  ;;  %11191 = vmatprep.subr.bf16.mxu0 %v13158_v35  ;;  %v18676_v6 = vpack.c.bf16 %v17789_v57, %v17786_v33  ;;  %v8301_v53 = vld [vmem:[%s14460_s29] sm:$0x3]  ;;  %v10320_v26 = vld [vmem:[%s1054_s30] sm:$0x3] }
 0xcd3   : > { %v13585_v22 = vpop.eup %13584  ;;  %v9943_v12 = vadd.f32 1.0, %v13583_v60  ;;  %v10167_v5 = vpack.c.bf16 %v18120_v41, %v18117_v48  ;;  %v13186_v48 = vld [vmem:[%s18650_s24 + $0x3a0] ss:$8 sps:$4 sm:$0xff]   ;;  %v13191_v41 = vld [vmem:[%s18650_s24 + $0x3b4] ss:$8 sps:$4 sm:$0xff]  }
 0xcd4   : > { %v13587_v47 = vpop.eup %13586  ;;  %13604 = vrcp.f32 %v9942_v3  ;;  %v9950_v44 = vadd.f32 1.0, %v13585_v22  ;;  %11151 = vmatmul.mubr.bf16.vlgmr.msra.gmra.mrb[72].mxu0 %v18675_v56 }
 0xcd5   : > { %v13589_v27 = vpop.eup %13588  ;;  %13606 = vrcp.f32 %v9943_v12  ;;  %v9951_v38 = vadd.f32 1.0, %v13587_v47  ;;  %11160 = vmatprep.mubr.bf16.mxu0 %v18676_v6  ;;  %11192 = vmatpush1.bf16.msra.mxu0 %v13156_v0  ;;  %v13167_v12 = vld [vmem:[%s18650_s24 + $0x334] ss:$8 sps:$4 sm:$0xff]   ;;  %v18677_v0 = vpack.c.bf16 %v17783_v18, %v17780_v58 }
 0xcd6   : > { %v13591_v43 = vpop.eup %13590  ;;  %13608 = vrcp.f32 %v9950_v44  ;;  %v18133_v4 = vmul.f32 %v13589_v27, %v18050_v32  ;;  %11193 = vmatprep.subr.bf16.mxu0 %v13161_v36  ;;  %v13165_v36 = vld [vmem:[%s18650_s24 + $0x330] ss:$8 sps:$4 sm:$0xff]  }
 0xcd7   : > { %v13593_v24 = vpop.eup %13592  ;;  %13610 = vrcp.f32 %v9951_v38  ;;  %v18143_v39 = vmul.f32 %v13591_v43, %v18054_v28  ;;  %v18678_v38 = vpack.c.bf16 %v17817_v1, %v17814_v54  ;;  %v13168_v1 = vld [vmem:[%s18650_s24 + $0x340] ss:$8 sps:$4 sm:$0xff]  }
 0xcd8   : > { %v13595_v42 = vpop.eup %13594  ;;  %v18136_v13 = vmul.f32 %v13593_v24, %v18059_v40 }
 0xcd9   : > { %v13597_v14 = vpop.eup %13596  ;;  %v18146_v15 = vmul.f32 %v13595_v42, %v18063_v46  ;;  %11194 = vmatpush1.bf16.msra.mxu0 %v13159_v45  ;;  %v13162_v46 = vld [vmem:[%s18650_s24 + $0x320] ss:$8 sps:$4 sm:$0xff]   ;;  %v13170_v42 = vld [vmem:[%s18650_s24 + $0x344] ss:$8 sps:$4 sm:$0xff]  }
 0xcda   : > { %v13599_v32 = vpop.eup %13598  ;;  %v9958_v40 = vadd.f32 1.0, %v13597_v14  ;;  %v10174_v35 = vpack.c.bf16 %v18136_v13, %v18133_v4  ;;  %11195 = vmatprep.subr.bf16.mxu0 %v13164_v29  ;;  %v18680_v14 = vpack.c.bf16 %v17837_v20, %v17834_v50  ;;  %v13171_v29 = vld [vmem:[%s18650_s24 + $0x350] ss:$8 sps:$4 sm:$0xff]   ;;  %v13174_v20 = vld [vmem:[%s18650_s24 + $0x360] ss:$8 sps:$4 sm:$0xff]   ;;  %v18243_v4 = vrot.slane %v8301_v53, %v18630_v49 }
 0xcdb   : > { %v13601_v33 = vpop.eup %13600  ;;  %v9959_v57 = vadd.f32 1.0, %v13599_v32  ;;  %v10175_v60 = vpack.c.bf16 %v18146_v15, %v18143_v39  ;;  %v18246_v13 = vrot.slane %v10320_v26, %v18629_v8  ;;  %v18249_v39 = vrot.slane %v10320_v26, %v18630_v49 }
 0xcdc   : > { %v13603_v3 = vpop.eup %13602  ;;  %13612 = vrcp.f32 %v9958_v40  ;;  %v9966_v28 = vadd.f32 1.0, %v13601_v33  ;;  %11161 = vmatmul.mubr.bf16.gmra.mrb[76].mxu0 %v18677_v0  ;;  %v13200_v0 = vld [vmem:[%s18650_s24 + $0x3e4] ss:$8 sps:$4 sm:$0xff]  }
 0xcdd   : > { %13614 = vrcp.f32 %v9959_v57  ;;  %v9967_v22 = vadd.f32 1.0, %v13603_v3  ;;  %11170 = vmatprep.mubr.bf16.mxu0 %v18678_v38  ;;  %11196 = vmatpush1.bf16.msra.mxu0 %v13162_v46  ;;  %v13176_v57 = vld [vmem:[%s18650_s24 + $0x364] ss:$8 sps:$4 sm:$0xff]   ;;  %v13185_v46 = vld [vmem:[%s18650_s24 + $0x394] ss:$8 sps:$4 sm:$0xff]  }
 0xcde   : > { %v13605_v47 = vpop.eup %13604  ;;  %13616 = vrcp.f32 %v9966_v28  ;;  %11197 = vmatprep.subr.bf16.mxu0 %v13167_v12  ;;  %v13179_v28 = vld [vmem:[%s18650_s24 + $0x374] ss:$8 sps:$4 sm:$0xff]   ;;  %v13192_v12 = vld [vmem:[%s18650_s24 + $0x3c0] ss:$8 sps:$4 sm:$0xff]  }
 0xcdf   : > { %v13607_v44 = vpop.eup %13606  ;;  %13618 = vrcp.f32 %v9967_v22  ;;  %v18163_v24 = vmul.f32 %v13605_v47, %v18070_v55  ;;  %v13194_v22 = vld [vmem:[%s18650_s24 + $0x3c4] ss:$8 sps:$4 sm:$0xff]   ;;  %v13197_v47 = vld [vmem:[%s18650_s24 + $0x3d4] ss:$8 sps:$4 sm:$0xff]  }
 0xce0   : > { %v13609_v27 = vpop.eup %13608  ;;  %v18170_v58 = vmul.f32 %v13607_v44, %v18074_v16  ;;  %v18679_v16 = vpack.c.bf16 %v17808_v59, %v17805_v37  ;;  %v13195_v44 = vld [vmem:[%s18650_s24 + $0x3d0] ss:$8 sps:$4 sm:$0xff]   ;;  %v13203_v38 = vld [vmem:[%s18650_s24 + $0x3f4] ss:$8 sps:$4 sm:$0xff]  }
 0xce1   : > { %v13611_v43 = vpop.eup %13610  ;;  %v18166_v56 = vmul.f32 %v13609_v27, %v18079_v11  ;;  %11198 = vmatpush1.bf16.msra.mxu0 %v13165_v36  ;;  %v13173_v11 = vld [vmem:[%s18650_s24 + $0x354] ss:$8 sps:$4 sm:$0xff]   ;;  %v13198_v27 = vld [vmem:[%s18650_s24 + $0x3e0] ss:$8 sps:$4 sm:$0xff]   ;;  %v13201_v36 = vld [vmem:[%s18650_s24 + $0x3f0] ss:$8 sps:$4 sm:$0xff]  }
 0xce2   : > { %v18173_v18 = vmul.f32 %v13611_v43, %v18083_v63  ;;  %11199 = vmatprep.subr.bf16.mxu0 %v13170_v42 }
 0xce3   : > { %v10182_v54 = vpack.c.bf16 %v18166_v56, %v18163_v24 }
 0xce4   : > { %v10183_v55 = vpack.c.bf16 %v18173_v18, %v18170_v58  ;;  %11171 = vmatmul.mubr.bf16.gmra.mrb[80].mxu0 %v18679_v16 }
 0xce5   : > { %11180 = vmatprep.mubr.bf16.mxu0 %v18680_v14  ;;  %11200 = vmatpush1.bf16.msra.mxu0 %v13168_v1 }
 0xce6   : > { %v13613_v6 = vpop.eup %13612  ;;  %11201 = vmatprep.subr.bf16.mxu0 %v13173_v11 }
 0xce7   : > { %v13615_v45 = vpop.eup %13614  ;;  %v10150_v40 = vmul.f32 %v13613_v6, %v18090_v23  ;;  %v18681_v23 = vpack.c.bf16 %v17829_v7, %v17826_v17  ;;  %v13183_v17 = vld [vmem:[%s18650_s24 + $0x390] ss:$8 sps:$4 sm:$0xff]   ;;  %v13188_v7 = vld [vmem:[%s18650_s24 + $0x3a4] ss:$8 sps:$4 sm:$0xff]  }
 0xce8   : > { %v13617_v63 = vpop.eup %13616  ;;  %v10151_v37 = vmul.f32 %v13615_v45, %v18094_v31  ;;  %v13177_v31 = vld [vmem:[%s18650_s24 + $0x370] ss:$8 sps:$4 sm:$0xff]  }
 0xce9   : > { %v13619_v32 = vpop.eup %13618  ;;  %v10158_v33 = vmul.f32 %v13617_v63, %v18099_v61  ;;  %11202 = vmatpush1.bf16.msra.mxu0 %v13171_v29  ;;  %v13182_v61 = vld [vmem:[%s18650_s24 + $0x384] ss:$8 sps:$4 sm:$0xff]  }
 0xcea   : > { %v10159_v59 = vmul.f32 %v13619_v32, %v18103_v62  ;;  %11203 = vmatprep.subr.bf16.mxu0 %v13176_v57  ;;  %v13180_v62 = vld [vmem:[%s18650_s24 + $0x380] ss:$8 sps:$4 sm:$0xff]  }
 0xceb   : > { %v10190_v50 = vpack.c.bf16 %v10158_v33, %v10150_v40  ;;  %v18684_v32 = vld [vmem:[#allocation38_spill] sm:$0xff]  ;;  %v18685_v33 = vld [vmem:[#allocation32_spill] sm:$0xff] }
 0xcec   : > { %v10191_v3 = vpack.c.bf16 %v10159_v59, %v10151_v37  ;;  %11181 = vmatmul.mubr.bf16.gmra.mrb[84].mxu0 %v18681_v23  ;;  %v8444_v57 = vadd.f32 %v18685_v33, %v18243_v4  ;;  %v18699_v33 = vld [vmem:[#allocation50_spill] sm:$0xff] }
 0xced   : > { %11204 = vmatpush1.bf16.msra.mxu0 %v13174_v20  ;;  %11223 = vmatprep.mubr.bf16.mxu0 %v10167_v5  ;;  %v13189_v5 = vld [vmem:[%s18650_s24 + $0x3b0] ss:$8 sps:$4 sm:$0xff]  }
 0xcee   : > { %11205 = vmatprep.subr.bf16.mxu0 %v13179_v28  ;;  %v18686_v20 = vld [vmem:[#allocation43_spill] sm:$0xff] }
 0xcf1   : > { %11206 = vmatpush1.bf16.msra.mxu0 %v13177_v31 }
 0xcf2   : > { %11207 = vmatprep.subr.bf16.mxu0 %v13182_v61  ;;  %v18687_v61 = vld [vmem:[#allocation44_spill] sm:$0xff] }
 0xcf5   : > { %11208 = vmatpush1.bf16.msra.mxu0 %v13180_v62 }
 0xcf6   : > { %11209 = vmatprep.subr.bf16.mxu0 %v13185_v46 }
 0xcf9   : > { %11210 = vmatpush1.bf16.msra.mxu0 %v13183_v17 }
 0xcfa   : > { %11211 = vmatprep.subr.bf16.mxu0 %v13188_v7 }
 0xcfd   : > { %11212 = vmatpush1.bf16.msra.mxu0 %v13186_v48  ;;  %v18688_v48 = vld [vmem:[#allocation45_spill] sm:$0xff] }
 0xcfe   : > { %11213 = vmatprep.subr.bf16.mxu0 %v13191_v41 }
 0xd01   : > { %11214 = vmatpush1.bf16.msra.mxu0 %v13189_v5  ;;  %v8473_v5 = vmul.f32 0.1, %v8444_v57  ;;  %v8460_v57 = vadd.f32 %v18699_v33, %v18243_v4 }
 0xd02   : > { %11215 = vmatprep.subr.bf16.mxu0 %v13194_v22 }
 0xd05   : > { %11216 = vmatpush1.bf16.msra.mxu0 %v13192_v12  ;;  %v18689_v12 = vld [vmem:[#allocation46_spill] sm:$0xff] }
 0xd06   : > { %11217 = vmatprep.subr.bf16.mxu0 %v13197_v47 }
 0xd09   : > { %11218 = vmatpush1.bf16.msra.mxu0 %v13195_v44  ;;  %v18690_v44 = vld [vmem:[#allocation31_spill] sm:$0xff] }
 0xd0a   : > { %11219 = vmatprep.subr.bf16.mxu0 %v13200_v0 }
 0xd0d   : > { %11220 = vmatpush1.bf16.msra.mxu0 %v13198_v27 }
 0xd0e   : > { %11221 = vmatprep.subr.bf16.mxu0 %v13203_v38  ;;  %v18691_v38 = vld [vmem:[#allocation30_spill] sm:$0xff] }
 0xd11   : > { %11222 = vmatpush1.bf16.msra.mxu0 %v13201_v36  ;;  %v8450_v36 = vadd.f32 %v18691_v38, %v18243_v4 }
 0xd14   : > { %11224 = vmatmul.mubr.bf16.vlgmr.msra.gmra.mrb[72].mxu0 %v10166_v21  ;;  %v18240_v21 = vrot.slane %v8301_v53, %v18629_v8  ;;  %v8434_v8 = vadd.f32 %v17883_v52, %v18243_v4 }
 0xd15   : > { %11233 = vmatprep.mubr.bf16.mxu0 %v10175_v60 }
 0xd16   : > { %v8428_v15 = vadd.f32 %v17875_v30, %v18240_v21  ;;  %v8432_v43 = vadd.f32 %v17880_v51, %v18240_v21  ;;  %v8469_v52 = vmul.f32 0.1, %v8434_v8  ;;  %v8442_v40 = vadd.f32 %v18684_v32, %v18240_v21 }
 0xd17   : > { %v8448_v0 = vadd.f32 %v18690_v44, %v18240_v21 }
 0xd18   : > { %v8466_v58 = vmul.f32 0.1, %v8428_v15  ;;  %v8472_v17 = vmul.f32 0.1, %v8442_v40  ;;  %v18692_v15 = vld [vmem:[#allocation47_spill] sm:$0xff]  ;;  %v18698_v40 = vld [vmem:[#allocation49_spill] sm:$0xff] }
 0xd1c   : > { %11234 = vmatmul.mubr.bf16.gmra.mrb[76].mxu0 %v10174_v35  ;;  %v8430_v35 = vadd.f32 %v17877_v25, %v18243_v4 }
 0xd1d   : > { %11243 = vmatprep.mubr.bf16.mxu0 %v10183_v55  ;;  %v8468_v55 = vmul.f32 0.1, %v8432_v43 }
 0xd1e   : > { %v8467_v25 = vmul.f32 0.1, %v8430_v35  ;;  %v8452_v35 = vadd.f32 %v18692_v15, %v18240_v21 }
 0xd24   : > { %11244 = vmatmul.mubr.bf16.gmra.mrb[80].mxu0 %v10182_v54 }
 0xd25   : > { %11253 = vmatprep.mubr.bf16.mxu0 %v10191_v3 }
 0xd2c   : > { %11254 = vmatmul.mubr.bf16.gmra.mrb[84].mxu0 %v10190_v50 }
 0xde7   : > { %v11225_v60 = vpop.f32.mrb[72].mxu0 }
 0xde8   : > { %v12543_v24 = vadd.f32 %v11225_v60, %v18246_v13  ;;  %v11227_v56 = vpop.f32.mrb[73].mxu0 }
 0xde9   : > { %v12544_v42 = vadd.f32 %v11227_v56, %v18249_v39  ;;  %v11229_v49 = vpop.f32.mrb[74].mxu0 }
 0xdea   : > { %v11264_v18 = vadd.f32 %v12543_v24, %v16997_v9  ;;  %v12545_v30 = vadd.f32 %v11229_v49, %v18246_v13  ;;  %v11231_v54 = vpop.f32.mrb[75].mxu0  ;;  %v8438_v9 = vadd.f32 %v17887_v19, %v18240_v21  ;;  %v18693_v24 = vld [vmem:[#allocation48_spill] sm:$0xff]  ;;  %v8474_v49 = vmul.f32 0.1, %v8448_v0 }
 0xdeb   : > { %v11265_v1 = vadd.f32 %v12544_v42, %v17000_v10  ;;  %v12546_v51 = vadd.f32 %v11231_v54, %v18249_v39  ;;  %v18683_v10 = vld [vmem:[#allocation39_spill] sm:$0xff]  ;;  %v8454_v56 = vadd.f32 %v18693_v24, %v18243_v4 }
 0xdec   : > { %v18265_v11 = vadd.f32 %v11264_v18, %v8466_v58  ;;  %v11266_v6 = vadd.f32 %v12545_v30, %v17003_v34  ;;  %v8440_v14 = vadd.f32 %v18683_v10, %v18243_v4  ;;  %v8470_v50 = vmul.f32 0.1, %v8438_v9  ;;  %v18694_v58 = vld [vmem:[#allocation41_spill] sm:$0xff] }
 0xded   : > { %v18268_v45 = vadd.f32 %v11265_v1, %v8467_v25  ;;  %v11267_v16 = vadd.f32 %v12546_v51, %v17005_v2  ;;  %v8475_v25 = vmul.f32 0.1, %v8450_v36  ;;  %v18695_v1 = vld [vmem:[#allocation37_spill] sm:$0xff]  ;;  %v8477_v10 = vmul.f32 0.1, %v8454_v56  ;;  %v18704_v36 = vld [vmem:[#allocation35_spill] sm:$0xff] }
 0xdee   : > { %11296 = vst [vmem:[#allocation2] sm:$0xff] %v18265_v11  ;;  %v18274_v63 = vadd.f32 %v11266_v6, %v8468_v55  ;;  %v8471_v31 = vmul.f32 0.1, %v8440_v14  ;;  %v8476_v6 = vmul.f32 0.1, %v8452_v35  ;;  %v18705_v35 = vld [vmem:[#allocation36_spill] sm:$0xff]  ;;  %11316 = vst [vmem:[%s14458_s9] sm:$0xff] (!%p12300_p8), %v18265_v11 }
 0xdef   : > { %11297 = vst [vmem:[#allocation2 + $0x8] sm:$0xff] %v18268_v45  ;;  %v18279_v29 = vadd.f32 %v11267_v16, %v8469_v52  ;;  %v11235_v34 = vpop.f32.mrb[76].mxu0  ;;  %v18696_v16 = vld [vmem:[#allocation33_spill] sm:$0xff]  ;;  %11317 = vst [vmem:[%s14458_s9 + $0x8] sm:$0xff] (!%p12300_p8), %v18268_v45 }
 0xdf0   : > { %11298 = vst [vmem:[#allocation2 + $0x10] sm:$0xff] %v18274_v63  ;;  %v12547_v2 = vadd.f32 %v11235_v34, %v18246_v13  ;;  %v11237_v19 = vpop.f32.mrb[77].mxu0  ;;  %v18697_v34 = vld [vmem:[#allocation34_spill] sm:$0xff]  ;;  %11318 = vst [vmem:[%s14458_s9 + $0x10] sm:$0xff] (!%p12300_p8), %v18274_v63 }
 0xdf1   : > { %11299 = vst [vmem:[#allocation2 + $0x18] sm:$0xff] %v18279_v29  ;;  %v12548_v37 = vadd.f32 %v11237_v19, %v18249_v39  ;;  %v11239_v59 = vpop.f32.mrb[78].mxu0  ;;  %11319 = vst [vmem:[%s14458_s9 + $0x18] sm:$0xff] (!%p12300_p8), %v18279_v29 }
 0xdf2   : > { %v11268_v3 = vadd.f32 %v12547_v2, %v18686_v20  ;;  %v12549_v28 = vadd.f32 %v11239_v59, %v18246_v13  ;;  %v11241_v23 = vpop.f32.mrb[79].mxu0  ;;  %v8458_v2 = vadd.f32 %v18698_v40, %v18240_v21 }
 0xdf3   : > { %v11269_v62 = vadd.f32 %v12548_v37, %v18687_v61  ;;  %v12550_v46 = vadd.f32 %v11241_v23, %v18249_v39  ;;  %v18701_v23 = vld [vmem:[#allocation52_spill] sm:$0xff] }
 0xdf4   : > { %v18293_v7 = vadd.f32 %v11268_v3, %v8470_v50  ;;  %v11270_v41 = vadd.f32 %v12549_v28, %v18688_v48  ;;  %v18700_v50 = vld [vmem:[#allocation51_spill] sm:$0xff] }
 0xdf5   : > { %v18296_v22 = vadd.f32 %v11269_v62, %v8471_v31  ;;  %v11271_v47 = vadd.f32 %v12550_v46, %v18689_v12  ;;  %v8462_v20 = vadd.f32 %v18700_v50, %v18240_v21  ;;  %v8464_v31 = vadd.f32 %v18701_v23, %v18243_v4 }
 0xdf6   : > { %11300 = vst [vmem:[#allocation2 + $0x20] sm:$0xff] %v18293_v7  ;;  %v18302_v27 = vadd.f32 %v11270_v41, %v8472_v17  ;;  %v8478_v46 = vmul.f32 0.1, %v8458_v2  ;;  %v18702_v17 = vld [vmem:[#allocation40_spill] sm:$0xff]  ;;  %v8479_v12 = vmul.f32 0.1, %v8460_v57 }
 0xdf7   : > { %11301 = vst [vmem:[#allocation2 + $0x28] sm:$0xff] %v18296_v22  ;;  %v18307_v53 = vadd.f32 %v11271_v47, %v8473_v5  ;;  %v11245_v26 = vpop.f32.mrb[80].mxu0  ;;  %v18703_v47 = vld [vmem:[#allocation42_spill] sm:$0xff]  ;;  %v8480_v0 = vmul.f32 0.1, %v8462_v20  ;;  %11320 = vst [vmem:[%s14458_s9 + $0x20] sm:$0xff] (!%p12300_p8), %v18293_v7 }
 0xdf8   : > { %11302 = vst [vmem:[#allocation2 + $0x30] sm:$0xff] %v18302_v27  ;;  %v12551_v60 = vadd.f32 %v11245_v26, %v18246_v13  ;;  %v11247_v43 = vpop.f32.mrb[81].mxu0  ;;  %v8481_v4 = vmul.f32 0.1, %v8464_v31  ;;  %11321 = vst [vmem:[%s14458_s9 + $0x28] sm:$0xff] (!%p12300_p8), %v18296_v22 }
 0xdf9   : > { %11303 = vst [vmem:[#allocation2 + $0x38] sm:$0xff] %v18307_v53  ;;  %v12552_v8 = vadd.f32 %v11247_v43, %v18249_v39  ;;  %v11249_v42 = vpop.f32.mrb[82].mxu0  ;;  %11322 = vst [vmem:[%s14458_s9 + $0x30] sm:$0xff] (!%p12300_p8), %v18302_v27 }
 0xdfa   : > { %v11272_v18 = vadd.f32 %v12551_v60, %v18694_v58  ;;  %v12553_v30 = vadd.f32 %v11249_v42, %v18246_v13  ;;  %v11251_v54 = vpop.f32.mrb[83].mxu0  ;;  %11323 = vst [vmem:[%s14458_s9 + $0x38] sm:$0xff] (!%p12300_p8), %v18307_v53 }
 0xdfb   : > { %v11273_v51 = vadd.f32 %v12552_v8, %v18695_v1  ;;  %v12554_v55 = vadd.f32 %v11251_v54, %v18249_v39 }
 0xdfc   : > { %v11288_v52 = vadd.f32 %v11272_v18, %v8474_v49  ;;  %v11274_v9 = vadd.f32 %v12553_v30, %v18696_v16 }
 0xdfd   : > { %v11289_v14 = vadd.f32 %v11273_v51, %v8475_v25  ;;  %v11275_v32 = vadd.f32 %v12554_v55, %v18697_v34 }
 0xdfe   : > { %11304 = vst [vmem:[#allocation2 + $0x40] sm:$0xff] %v11288_v52  ;;  %v11290_v19 = vadd.f32 %v11274_v9, %v8476_v6  ;;  %11324 = vst [vmem:[%s14458_s9 + $0x40] sm:$0xff] (!%p12300_p8), %v11288_v52 }
 0xdff   : > { %11305 = vst [vmem:[#allocation2 + $0x48] sm:$0xff] %v11289_v14  ;;  %v11291_v37 = vadd.f32 %v11275_v32, %v8477_v10  ;;  %v11255_v59 = vpop.f32.mrb[84].mxu0  ;;  %11325 = vst [vmem:[%s14458_s9 + $0x48] sm:$0xff] (!%p12300_p8), %v11289_v14 }
 0xe00   : > { %11306 = vst [vmem:[#allocation2 + $0x50] sm:$0xff] %v11290_v19  ;;  %v12555_v3 = vadd.f32 %v11255_v59, %v18246_v13  ;;  %v11257_v28 = vpop.f32.mrb[85].mxu0  ;;  %11326 = vst [vmem:[%s14458_s9 + $0x50] sm:$0xff] (!%p12300_p8), %v11290_v19 }
 0xe01   : > { %11307 = vst [vmem:[#allocation2 + $0x58] sm:$0xff] %v11291_v37  ;;  %v12556_v61 = vadd.f32 %v11257_v28, %v18249_v39  ;;  %v11259_v62 = vpop.f32.mrb[86].mxu0  ;;  %11327 = vst [vmem:[%s14458_s9 + $0x58] sm:$0xff] (!%p12300_p8), %v11291_v37 }
 0xe02   : > { %v11276_v48 = vadd.f32 %v12555_v3, %v18702_v17  ;;  %v12557_v41 = vadd.f32 %v11259_v62, %v18246_v13  ;;  %v11261_v5 = vpop.f32.mrb[87].mxu0 }
 0xe03   : > { %v11277_v21 = vadd.f32 %v12556_v61, %v18703_v47  ;;  %v12558_v44 = vadd.f32 %v11261_v5, %v18249_v39  ;;  %11315 = sbr.rel (%p12300_p8) target bundleno = 3594 (0xe0a), region = 132 }
 0xe04   : > { %v11292_v38 = vadd.f32 %v11276_v48, %v8478_v46  ;;  %v11278_v26 = vadd.f32 %v12557_v41, %v18704_v36 }
 0xe05   : > { %v11293_v15 = vadd.f32 %v11277_v21, %v8479_v12  ;;  %v11279_v60 = vadd.f32 %v12558_v44, %v18705_v35 }
 0xe06   : > { %11308 = vst [vmem:[#allocation2 + $0x60] sm:$0xff] %v11292_v38  ;;  %v11294_v43 = vadd.f32 %v11278_v26, %v8480_v0  ;;  %11328 = vst [vmem:[%s14458_s9 + $0x60] sm:$0xff] (!%p12300_p8), %v11292_v38 }
 0xe07   : > { %11309 = vst [vmem:[#allocation2 + $0x68] sm:$0xff] %v11293_v15  ;;  %v11295_v24 = vadd.f32 %v11279_v60, %v8481_v4  ;;  %11329 = vst [vmem:[%s14458_s9 + $0x68] sm:$0xff] (!%p12300_p8), %v11293_v15 }
 0xe08   : > { %11310 = vst [vmem:[#allocation2 + $0x70] sm:$0xff] %v11294_v43  ;;  %11330 = vst [vmem:[%s14458_s9 + $0x70] sm:$0xff] (!%p12300_p8), %v11294_v43 }
 0xe09   : > { %11311 = vst [vmem:[#allocation2 + $0x78] sm:$0xff] %v11295_v24  ;;  %11331 = vst [vmem:[%s14458_s9 + $0x78] sm:$0xff] (!%p12300_p8), %v11295_v24 }
 0xe0a PF: > { %s18706_s21 = sld [smem:[#allocation22_spill]]  ;;  %s18707_s0 = sld [smem:[#allocation18_spill]] }
 0xe0b   : > { %s18708_s30 = sld [smem:[#allocation19_spill]]  ;;  %s18709_s20 = sld [smem:[#allocation25_spill]] }
 0xe0c   : > { %s18711_s1 = sld [smem:[#allocation21_spill]]  ;;  %s18712_s22 = sld [smem:[#allocation23_spill]] }
 0xe0d   : > { %s18713_s2 = sld [smem:[#allocation24_spill]] }
 0xe10   : > { %s41_s23 = sadd.s32 1, %s18706_s21   ;;  %s18710_s21 = sld [smem:[#allocation20_spill]] }
 0xe11   : > { %p38_p3 = scmp.ge.s32.totalorder %s41_s23, 6  }
 0xe13   :  { %40 = sbr.rel (!%p38_p3) target bundleno = 32 (0x20), region = 252 }
 0xe1a   :  { %11353 = vsyncpa [#allocation4], 1 }
 0xe1b   :  { %11355 = vsyncpa [#allocation4 + $0x1], 1 }
 0xe1c   :  { %11356 = vsyncpa [#allocation6], 1 }
 0xe1d   :  { %11358 = vsyncpa [#allocation6 + $0x1], 1 }
 0xe1e   :  { %11359 = vsyncpa [#allocation9], 1 }
 0xe1f   :  { %11361 = vsyncpa [#allocation9 + $0x1], 1 }
 0xe20   :  { %11362 = vsyncpa [#allocation12], 1 }
 0xe21   :  { %11364 = vsyncpa [#allocation12 + $0x1], 1 }

</bundles_post_ra>
